<compile_context>
chip_gen: v5e
topology: v5e:2x2
jax: 0.10.0
libtpu: 0.0.40
codegen_flags: <defaults>
</compile_context>

<pallas_src>
import functools
import math

import jax
import jax.numpy as jnp
from jax import lax
from jax.experimental import pallas as pl
from jax.experimental.pallas import tpu as pltpu

_MIB = 1024 * 1024


# ------------------------------ small helpers --------------------------------
def _round_up(x, m):
    return ((x + m - 1) // m) * m


def _vmem_limit_bytes():
    """Explicit scoped-VMEM limit (v5e default is 16 MiB; v7x physical is 64 MiB)."""
    cap = 64 * _MIB
    try:
        info = pltpu.get_tpu_info()
        c = getattr(info, "vmem_capacity_bytes", None)
        if c:
            cap = int(c)
    except Exception:
        pass
    cap = min(cap, 128 * _MIB)
    return max(32 * _MIB, min(int(cap * 0.75), 100 * _MIB))


def _pick_tile(dim, base, cap):
    """Largest multiple of `base` dividing `dim` <= cap, preferring 256-aligned
    tiles (wide v6e/v7x MXU); falls back to the full dim when nothing divides."""
    cap = min(dim, cap)
    cands = [t for t in range(base, cap + 1, base) if dim % t == 0]
    if not cands:
        return dim
    aligned = [t for t in cands if t % 256 == 0]
    return max(aligned) if aligned else max(cands)


def _pick_batch_block(B):
    # Split the batch over the 'parallel' grid axis only when both halves keep
    # >=64 rows (worth it for v7x's 2 TensorCores). On 1-TC chips (v5e/v6e)
    # splitting is pure overhead: smaller matmul M + more sequential grid steps.
    if B >= 128 and B % 2 == 0:
        return B // 2
    return B


def _pick_chunk(T, b_blk, Hp, vmem_budget):
    """Timesteps per recurrence grid step, sized to the VMEM budget.

    Per-step estimate: gx (f32) + y (bf16) double-buffered, resident W_hh
    (bf16, double-buffered by BlockSpec), h/c scratch + state blocks.
    """
    fixed = 2 * Hp * 4 * Hp * 2 + 10 * b_blk * Hp * 4
    best = 1
    for c in (64, 32, 16, 8, 4, 2, 1):
        if c > T:
            continue
        per_t = 2 * c * b_blk * (4 * Hp * 4 + Hp * 2)
        if fixed + per_t <= vmem_budget:
            best = c
            break
    return max(1, min(best, T))


# ----------------------- tiled matmul + bias (MXU) kernel ---------------------
def _matmul_bias_kernel(x_ref, w_ref, b_ref, o_ref, acc_ref):
    k = pl.program_id(2)

    @pl.when(k == 0)
    def _():
        acc_ref[...] = jnp.zeros_like(acc_ref)

    # Cast to bf16 inside the kernel (free in the VPU slot) instead of paying an
    # extra wrapper-side HBM round trip; no-op when x is already bf16.
    acc_ref[...] += jnp.dot(x_ref[...].astype(jnp.bfloat16), w_ref[...],
                            preferred_element_type=jnp.float32)

    @pl.when(k == pl.num_programs(2) - 1)
    def _():
        o_ref[...] = (acc_ref[...] + b_ref[...]).astype(o_ref.dtype)


def linear_bias(x, w_t, b, out_dtype=jnp.float32):
    """x: (M, K) f32/bf16, w_t: (K, N) bf16 (pre-transposed), b: (1, N) f32.

    Pads M to a multiple of 16 and N to a multiple of 128 so every output tile
    store is unmasked / lane-dense, then slices the result back.
    """
    M, K = x.shape
    N = w_t.shape[-1]

    Mp = _round_up(M, 16)
    Np = _round_up(N, 128)
    x_p = x if Mp == M else jnp.pad(x, ((0, Mp - M), (0, 0)))
    w_p = w_t if Np == N else jnp.pad(w_t, ((0, 0), (0, Np - N)))
    b_p = b if Np == N else jnp.pad(b, ((0, 0), (0, Np - N)))

    tm = _pick_tile(Mp, 16, 512)
    tn = _pick_tile(Np, 128, 512)
    tk = _pick_tile(K, 128, 1024)

    out = pl.pallas_call(
        _matmul_bias_kernel,
        out_shape=jax.ShapeDtypeStruct((Mp, Np), out_dtype),
        grid_spec=pltpu.PrefetchScalarGridSpec(
            num_scalar_prefetch=0,
            grid=(Mp // tm, Np // tn, K // tk),
            in_specs=[
                pl.BlockSpec((tm, tk), lambda i, j, k: (i, k)),
                pl.BlockSpec((tk, tn), lambda i, j, k: (k, j)),
                pl.BlockSpec((1, tn), lambda i, j, k: (0, j)),
            ],
            out_specs=pl.BlockSpec((tm, tn), lambda i, j, k: (i, j)),
            scratch_shapes=[pltpu.VMEM((tm, tn), jnp.float32)],
        ),
        compiler_params=pltpu.CompilerParams(
            dimension_semantics=("parallel", "parallel", "arbitrary"),
            vmem_limit_bytes=_vmem_limit_bytes()),
    )(x_p, w_p, b_p)

    if Mp != M or Np != N:
        out = out[:M, :N]
    return out


# --------------------------- LSTM recurrence kernel ---------------------------
def _lstm_recur_kernel(gx_ref, h0_ref, c0_ref, whh_ref,
                       y_ref, hT_ref, cT_ref, h_scr, c_scr,
                       *, chunk_size, t_valid, t_total, unroll):
    """One grid step == one chunk of timesteps for one batch block.

    gx_ref holds the pre-computed input projection (x @ W_ih^T + b) for the
    chunk; only the recurrent projection h @ W_hh^T runs per timestep.
    PyTorch gate order i, f, g, o. Carry lives in h_scr/c_scr and relies on the
    time axis being the innermost ('arbitrary') grid axis with re-init at s==0.
    """
    s = pl.program_id(1)
    H = h_scr.shape[-1]               # padded hidden (multiple of 128)
    steps = gx_ref.shape[0]

    @pl.when(s == 0)
    def _():
        h_scr[...] = h0_ref[...]
        c_scr[...] = c0_ref[...]

    whh = whh_ref[...]                # (Hp, 4Hp) bf16, loaded once per chunk

    def step(t, carry):
        h, c = carry
        gates = gx_ref[t] + jnp.dot(h.astype(jnp.bfloat16), whh,
                                    preferred_element_type=jnp.float32)
        i = jax.nn.sigmoid(gates[:, 0 * H:1 * H])   # lane-aligned (H % 128 == 0)
        f = jax.nn.sigmoid(gates[:, 1 * H:2 * H])
        g = jnp.tanh(gates[:, 2 * H:3 * H])
        o = jax.nn.sigmoid(gates[:, 3 * H:4 * H])
        c_new = f * c + i * g                       # f32 cell state
        h_new = o * jnp.tanh(c_new)
        if t_valid != t_total:                      # only when time axis was padded
            valid = (s * chunk_size + t) < t_valid
            c_new = jnp.where(valid, c_new, c)
            h_new = jnp.where(valid, h_new, h)
        y_ref[t] = h_new.astype(y_ref.dtype)        # bf16 VMEM write; HBM DMA/chunk
        return h_new, c_new

    h, c = lax.fori_loop(0, steps, step, (h_scr[...], c_scr[...]), unroll=unroll)
    h_scr[...] = h
    c_scr[...] = c

    @pl.when(s == pl.num_programs(1) - 1)
    def _():
        hT_ref[...] = h
        cT_ref[...] = c


def lstm_layer(gx_tm, h0, c0, whh_t_bf16):
    """Recurrent part of one LSTM layer over a whole sequence.

    gx_tm:      (T, B, 4Hp) f32 time-major pre-computed input gates.
    h0, c0:     (B, Hp) f32 initial state.
    whh_t_bf16: (Hp, 4Hp) bf16 pre-transposed recurrent weights.
    Returns (y_tm (T,B,Hp) bf16, h_T (B,Hp) f32, c_T (B,Hp) f32).
    """
    T, B, G = gx_tm.shape
    Hp = h0.shape[-1]
    assert G == 4 * Hp

    vmem_limit = _vmem_limit_bytes()
    b_blk = _pick_batch_block(B)
    chunk = _pick_chunk(T, b_blk, Hp, int(vmem_limit * 0.75))

    Tp = _round_up(T, chunk)
    if Tp != T:
        gx_tm = jnp.pad(gx_tm, ((0, Tp - T), (0, 0), (0, 0)))
    n_chunks = Tp // chunk
    n_bblk = B // b_blk

    kernel = functools.partial(
        _lstm_recur_kernel, chunk_size=chunk, t_valid=T, t_total=Tp,
        unroll=min(8, chunk))

    grid_spec = pltpu.PrefetchScalarGridSpec(
        num_scalar_prefetch=0,
        grid=(n_bblk, n_chunks),              # (parallel batch, sequential time)
        in_specs=[
            pl.BlockSpec((chunk, b_blk, 4 * Hp), lambda b, s: (s, b, 0)),  # gx
            pl.BlockSpec((b_blk, Hp), lambda b, s: (b, 0)),                # h0
            pl.BlockSpec((b_blk, Hp), lambda b, s: (b, 0)),                # c0
            pl.BlockSpec((Hp, 4 * Hp), lambda b, s: (0, 0)),               # W_hh^T
        ],
        out_specs=[
            pl.BlockSpec((chunk, b_blk, Hp), lambda b, s: (s, b, 0)),      # y chunk
            pl.BlockSpec((b_blk, Hp), lambda b, s: (b, 0)),                # h_T
            pl.BlockSpec((b_blk, Hp), lambda b, s: (b, 0)),                # c_T
        ],
        scratch_shapes=[pltpu.VMEM((b_blk, Hp), jnp.float32),              # h carry
                        pltpu.VMEM((b_blk, Hp), jnp.float32)],             # c carry
    )

    y, hT, cT = pl.pallas_call(
        kernel,
        out_shape=(
            jax.ShapeDtypeStruct((Tp, B, Hp), jnp.bfloat16),  # bf16 activations
            jax.ShapeDtypeStruct((B, Hp), jnp.float32),
            jax.ShapeDtypeStruct((B, Hp), jnp.float32),
        ),
        grid_spec=grid_spec,
        compiler_params=pltpu.CompilerParams(
            dimension_semantics=("parallel", "arbitrary"),  # time must stay serial
            vmem_limit_bytes=vmem_limit),
    )(gx_tm, h0, c0, whh_t_bf16)

    if Tp != T:
        y = y[:T]
    return y, hT, cT


# ------------------------------ parameter setup -------------------------------
def init_params(key, src_vocab, tgt_vocab, embed, hidden, num_layers):
    keys = iter(jax.random.split(key, 8 * num_layers + 8))
    bound = 1.0 / math.sqrt(hidden)
    Hp = _round_up(hidden, 128)   # lane-aligned gate slices inside the recurrence

    def uni(k, shape, bd):
        return jax.random.uniform(k, shape, jnp.float32, -bd, bd)

    def prep_w(w, in_size, in_pad):
        # w: (4H, in) PyTorch layout -> (in_pad, 4Hp) pre-transposed bf16 with
        # zero-padded gate blocks / input rows (zeros are exactly preserved
        # through the recurrence, so padded h/c columns stay 0).
        w = w.reshape(4, hidden, in_size)
        w = jnp.pad(w, ((0, 0), (0, Hp - hidden), (0, in_pad - in_size)))
        return jnp.transpose(w, (2, 0, 1)).reshape(in_pad, 4 * Hp).astype(jnp.bfloat16)

    def prep_b(b):
        b = jnp.pad(b.reshape(4, hidden), ((0, 0), (0, Hp - hidden)))
        return b.reshape(1, 4 * Hp)

    params = {
        "emb_src": jax.random.normal(next(keys), (src_vocab, embed), jnp.float32),
        "emb_tgt": jax.random.normal(next(keys), (tgt_vocab, embed), jnp.float32),
    }

    def lstm_stack():
        layers = []
        for layer in range(num_layers):
            in_size = embed if layer == 0 else hidden
            in_pad = embed if layer == 0 else Hp
            w_ih = uni(next(keys), (4 * hidden, in_size), bound)
            w_hh = uni(next(keys), (4 * hidden, hidden), bound)
            b_ih = uni(next(keys), (4 * hidden,), bound)
            b_hh = uni(next(keys), (4 * hidden,), bound)
            layers.append({
                "wih_t": prep_w(w_ih, in_size, in_pad),     # (in_pad, 4Hp) bf16
                "whh_t": prep_w(w_hh, hidden, Hp),          # (Hp, 4Hp) bf16
                "b": prep_b(b_ih + b_hh),                   # folded biases (1,4Hp) f32
            })
        return layers

    params["encoder"] = lstm_stack()
    params["decoder"] = lstm_stack()

    fc_w = uni(next(keys), (tgt_vocab, hidden), bound)
    fc_b = uni(next(keys), (tgt_vocab,), bound)
    params["fc_w_t"] = jnp.pad(fc_w.T, ((0, Hp - hidden), (0, 0))).astype(jnp.bfloat16)
    params["fc_b"] = fc_b[None, :]                          # (1, V) f32
    return params


# --------------------------------- forward ------------------------------------
def run_lstm_stack(x_tm, layers, init_states=None):
    """x_tm: (T, B, in) time-major. init_states: list of (h0, c0) or None."""
    T, B, _ = x_tm.shape
    final_states = []
    y = x_tm
    for idx, layer in enumerate(layers):
        Hp = layer["whh_t"].shape[0]
        # Hoisted input projection: one (T*B, in) x (in, 4Hp) MXU matmul + bias.
        gx = linear_bias(y.reshape(T * B, -1), layer["wih_t"], layer["b"])
        gx = gx.reshape(T, B, 4 * Hp)
        if init_states is None:
            h0 = jnp.zeros((B, Hp), jnp.float32)
            c0 = jnp.zeros((B, Hp), jnp.float32)
        else:
            h0, c0 = init_states[idx]
        y, hT, cT = lstm_layer(gx, h0, c0, layer["whh_t"])
        final_states.append((hT, cT))
        # TODO(synk): training-mode inter-layer LSTM dropout not implemented (eval).
    return y, final_states


def seq2seq_forward(params, src, tgt):
    # Embedding gathers + nn.Dropout (identity in eval) are plain-JAX glue.
    x = jnp.transpose(params["emb_src"][src], (1, 0, 2))      # (S, B, E) time-major
    _, enc_states = run_lstm_stack(x, params["encoder"])

    y = jnp.transpose(params["emb_tgt"][tgt], (1, 0, 2))      # (Tt, B, E)
    dec_out, _ = run_lstm_stack(y, params["decoder"], init_states=enc_states)

    # Transpose the H-wide activations (cheap) instead of the V-wide logits.
    Tt, B, Hp = dec_out.shape
    dec_bm = jnp.transpose(dec_out, (1, 0, 2)).reshape(B * Tt, Hp)
    V = params["fc_b"].shape[-1]
    logits = linear_bias(dec_bm, params["fc_w_t"], params["fc_b"])
    return logits.reshape(B, Tt, V)                           # (B, Tt, V) batch-major


# ----------------------------------- main --------------------------------------
if __name__ == "__main__":
    SRC_VOCAB, TGT_VOCAB = 32, 32
    EMBED, HIDDEN, NUM_LAYERS = 32, 32, 2
    B, SRC_LEN, TGT_LEN = 2, 8, 8

    key = jax.random.PRNGKey(0)
    pkey, skey, tkey = jax.random.split(key, 3)

    params = init_params(pkey, SRC_VOCAB, TGT_VOCAB, EMBED, HIDDEN, NUM_LAYERS)
    src = jax.random.randint(skey, (B, SRC_LEN), 0, SRC_VOCAB, dtype=jnp.int32)
    tgt = jax.random.randint(tkey, (B, TGT_LEN), 0, TGT_VOCAB, dtype=jnp.int32)

    out = jax.jit(seq2seq_forward)(params, src, tgt)
    jax.block_until_ready(out)
    assert out.shape == (B, TGT_LEN, TGT_VOCAB), out.shape
    assert out.dtype == jnp.float32
    assert bool(jnp.isfinite(out).all())
    print("KERNEL_OK")
</pallas_src>

<mosaic_0001>
module attributes {stable_mosaic.version = 11 : i64} {
  func.func @_matmul_bias_kernel(%arg0: i32, %arg1: i32, %arg2: i32, %arg3: memref<16x32xf32, #tpu.memory_space<vmem>>, %arg4: memref<32x512xbf16, #tpu.memory_space<vmem>>, %arg5: memref<1x512xf32, #tpu.memory_space<vmem>>, %arg6: memref<16x512xf32, #tpu.memory_space<vmem>>, %arg7: memref<16x512xf32, #tpu.memory_space<vmem>>) attributes {dimension_semantics = [#tpu.dimension_semantics<parallel>, #tpu.dimension_semantics<parallel>, #tpu.dimension_semantics<arbitrary>], iteration_bounds = array<i64: 1, 1, 1>, scalar_prefetch = 0 : i64, scratch_operands = 1 : i64, tpu.core_type = #tpu.core_type<tc>, window_params = [{transform_indices = @transform_0, window_bounds = array<i64: 16, 32>}, {transform_indices = @transform_1, window_bounds = array<i64: 32, 512>}, {transform_indices = @transform_2, window_bounds = array<i64: 1, 512>}, {transform_indices = @transform_3, window_bounds = array<i64: 16, 512>}]} {
    %c0_i32 = arith.constant 0 : i32
    %0 = arith.cmpi eq, %arg2, %c0_i32 : i32
    %1 = arith.extui %0 : i1 to i32
    %c0_i32_0 = arith.constant 0 : i32
    %2 = arith.cmpi ne, %1, %c0_i32_0 : i32
    scf.if %2 {
      %cst_10 = arith.constant 0.000000e+00 : f32
      %13 = vector.broadcast %cst_10 : f32 to vector<16x512xf32>
      %c0_11 = arith.constant 0 : index
      %c0_12 = arith.constant 0 : index
      %14 = vector.load %arg7[%c0_11, %c0_12] : memref<16x512xf32, #tpu.memory_space<vmem>>, vector<16x512xf32>
      tpu.vector_store %arg7[%c0_11, %c0_12], %13 {strides = array<i32>} : memref<16x512xf32, #tpu.memory_space<vmem>>, vector<16x512xf32>,
    } else {
    }
    %c0 = arith.constant 0 : index
    %c0_1 = arith.constant 0 : index
    %3 = vector.load %arg7[%c0, %c0_1] : memref<16x512xf32, #tpu.memory_space<vmem>>, vector<16x512xf32>
    %c0_2 = arith.constant 0 : index
    %c0_3 = arith.constant 0 : index
    %4 = vector.load %arg3[%c0_2, %c0_3] : memref<16x32xf32, #tpu.memory_space<vmem>>, vector<16x32xf32>
    %5 = arith.truncf %4 : vector<16x32xf32> to vector<16x32xbf16>
    %c0_4 = arith.constant 0 : index
    %c0_5 = arith.constant 0 : index
    %6 = vector.load %arg4[%c0_4, %c0_5] : memref<32x512xbf16, #tpu.memory_space<vmem>>, vector<32x512xbf16>
    %cst = arith.constant dense<0.000000e+00> : vector<16x512xf32>
    %7 = tpu.matmul %5, %6, %cst {dimension_numbers = #tpu.dot_dimension_numbers<[1], [0], [0], [1], [0, 0, 1, 1], [], []>} : vector<16x32xbf16>, vector<32x512xbf16>, vector<16x512xf32> -> vector<16x512xf32>
    %8 = arith.addf %3, %7 : vector<16x512xf32>
    %c0_6 = arith.constant 0 : index
    %c0_7 = arith.constant 0 : index
    %9 = vector.load %arg7[%c0_6, %c0_7] : memref<16x512xf32, #tpu.memory_space<vmem>>, vector<16x512xf32>
    tpu.vector_store %arg7[%c0_6, %c0_7], %8 {strides = array<i32>} : memref<16x512xf32, #tpu.memory_space<vmem>>, vector<16x512xf32>,
    %c0_i32_8 = arith.constant 0 : i32
    %10 = arith.cmpi eq, %arg2, %c0_i32_8 : i32
    %11 = arith.extui %10 : i1 to i32
    %c0_i32_9 = arith.constant 0 : i32
    %12 = arith.cmpi ne, %11, %c0_i32_9 : i32
    scf.if %12 {
      %c0_10 = arith.constant 0 : index
      %c0_11 = arith.constant 0 : index
      %13 = vector.load %arg7[%c0_10, %c0_11] : memref<16x512xf32, #tpu.memory_space<vmem>>, vector<16x512xf32>
      %c0_12 = arith.constant 0 : index
      %c0_13 = arith.constant 0 : index
      %14 = vector.load %arg5[%c0_12, %c0_13] : memref<1x512xf32, #tpu.memory_space<vmem>>, vector<1x512xf32>
      %15 = vector.broadcast %14 : vector<1x512xf32> to vector<16x512xf32>
      %16 = arith.addf %13, %15 : vector<16x512xf32>
      %c0_14 = arith.constant 0 : index
      %c0_15 = arith.constant 0 : index
      %17 = vector.load %arg6[%c0_14, %c0_15] : memref<16x512xf32, #tpu.memory_space<vmem>>, vector<16x512xf32>
      tpu.vector_store %arg6[%c0_14, %c0_15], %16 {strides = array<i32>} : memref<16x512xf32, #tpu.memory_space<vmem>>, vector<16x512xf32>,
    } else {
    }
    return
  }
  func.func @transform_0(%arg0: i32, %arg1: i32, %arg2: i32) -> (i32, i32) {
    %c0_i32 = arith.constant 0 : i32
    return %arg0, %arg2 : i32, i32
  }
  func.func @transform_1(%arg0: i32, %arg1: i32, %arg2: i32) -> (i32, i32) {
    %c0_i32 = arith.constant 0 : i32
    return %arg2, %arg1 : i32, i32
  }
  func.func @transform_2(%arg0: i32, %arg1: i32, %arg2: i32) -> (i32, i32) {
    %c0_i32 = arith.constant 0 : i32
    %c0_i32_0 = arith.constant 0 : i32
    return %c0_i32, %arg1 : i32, i32
  }
  func.func @transform_3(%arg0: i32, %arg1: i32, %arg2: i32) -> (i32, i32) {
    %c0_i32 = arith.constant 0 : i32
    return %arg0, %arg1 : i32, i32
  }
}

module attributes {stable_mosaic.version = 11 : i64} {
  func.func @_lstm_recur_kernel(%arg0: i32, %arg1: i32, %arg2: memref<8x2x512xf32, #tpu.memory_space<vmem>>, %arg3: memref<2x128xf32, #tpu.memory_space<vmem>>, %arg4: memref<2x128xf32, #tpu.memory_space<vmem>>, %arg5: memref<128x512xbf16, #tpu.memory_space<vmem>>, %arg6: memref<8x2x128xbf16, #tpu.memory_space<vmem>>, %arg7: memref<2x128xf32, #tpu.memory_space<vmem>>, %arg8: memref<2x128xf32, #tpu.memory_space<vmem>>, %arg9: memref<2x128xf32, #tpu.memory_space<vmem>>, %arg10: memref<2x128xf32, #tpu.memory_space<vmem>>) attributes {dimension_semantics = [#tpu.dimension_semantics<parallel>, #tpu.dimension_semantics<arbitrary>], iteration_bounds = array<i64: 1, 1>, scalar_prefetch = 0 : i64, scratch_operands = 2 : i64, tpu.core_type = #tpu.core_type<tc>, window_params = [{transform_indices = @transform_0, window_bounds = array<i64: 8, 2, 512>}, {transform_indices = @transform_1, window_bounds = array<i64: 2, 128>}, {transform_indices = @transform_2, window_bounds = array<i64: 2, 128>}, {pipeline_mode = #tpu.pipeline_mode<synchronous>, transform_indices = @transform_3, window_bounds = array<i64: 128, 512>}, {transform_indices = @transform_4, window_bounds = array<i64: 8, 2, 128>}, {transform_indices = @transform_5, window_bounds = array<i64: 2, 128>}, {transform_indices = @transform_6, window_bounds = array<i64: 2, 128>}]} {
    %c0_i32 = arith.constant 0 : i32
    %0 = arith.cmpi eq, %arg1, %c0_i32 : i32
    %1 = arith.extui %0 : i1 to i32
    %c0_i32_0 = arith.constant 0 : i32
    %2 = arith.cmpi ne, %1, %c0_i32_0 : i32
    scf.if %2 {
      %c0_76 = arith.constant 0 : index
      %c0_77 = arith.constant 0 : index
      %299 = vector.load %arg3[%c0_76, %c0_77] : memref<2x128xf32, #tpu.memory_space<vmem>>, vector<2x128xf32>
      %c0_78 = arith.constant 0 : index
      %c0_79 = arith.constant 0 : index
      %300 = vector.load %arg9[%c0_78, %c0_79] : memref<2x128xf32, #tpu.memory_space<vmem>>, vector<2x128xf32>
      tpu.vector_store %arg9[%c0_78, %c0_79], %299 {strides = array<i32>} : memref<2x128xf32, #tpu.memory_space<vmem>>, vector<2x128xf32>,
      %c0_80 = arith.constant 0 : index
      %c0_81 = arith.constant 0 : index
      %301 = vector.load %arg4[%c0_80, %c0_81] : memref<2x128xf32, #tpu.memory_space<vmem>>, vector<2x128xf32>
      %c0_82 = arith.constant 0 : index
      %c0_83 = arith.constant 0 : index
      %302 = vector.load %arg10[%c0_82, %c0_83] : memref<2x128xf32, #tpu.memory_space<vmem>>, vector<2x128xf32>
      tpu.vector_store %arg10[%c0_82, %c0_83], %301 {strides = array<i32>} : memref<2x128xf32, #tpu.memory_space<vmem>>, vector<2x128xf32>,
    } else {
    }
    %c0 = arith.constant 0 : index
    %c0_1 = arith.constant 0 : index
    %3 = vector.load %arg5[%c0, %c0_1] : memref<128x512xbf16, #tpu.memory_space<vmem>>, vector<128x512xbf16>
    %c0_2 = arith.constant 0 : index
    %c0_3 = arith.constant 0 : index
    %4 = vector.load %arg9[%c0_2, %c0_3] : memref<2x128xf32, #tpu.memory_space<vmem>>, vector<2x128xf32>
    %c0_4 = arith.constant 0 : index
    %c0_5 = arith.constant 0 : index
    %5 = vector.load %arg10[%c0_4, %c0_5] : memref<2x128xf32, #tpu.memory_space<vmem>>, vector<2x128xf32>
    %c0_i32_6 = arith.constant 0 : i32
    %6 = arith.index_cast %c0_i32_6 : i32 to index
    %c0_7 = arith.constant 0 : index
    %c0_8 = arith.constant 0 : index
    %7 = vector.load %arg2[%6, %c0_7, %c0_8] : memref<8x2x512xf32, #tpu.memory_space<vmem>>, vector<1x2x512xf32>
    %8 = vector.shape_cast %7 : vector<1x2x512xf32> to vector<2x512xf32>
    %9 = arith.truncf %4 : vector<2x128xf32> to vector<2x128xbf16>
    %cst = arith.constant dense<0.000000e+00> : vector<2x512xf32>
    %10 = tpu.matmul %9, %3, %cst {dimension_numbers = #tpu.dot_dimension_numbers<[1], [0], [0], [1], [0, 0, 1, 1], [], []>} : vector<2x128xbf16>, vector<128x512xbf16>, vector<2x512xf32> -> vector<2x512xf32>
    %11 = arith.addf %8, %10 : vector<2x512xf32>
    %12 = vector.extract_strided_slice %11 {offsets = [0, 0], sizes = [2, 128], strides = [1, 1]} : vector<2x512xf32> to vector<2x128xf32>
    %13 = arith.negf %12 : vector<2x128xf32>
    %14 = math.exp %13 : vector<2x128xf32>
    %cst_9 = arith.constant 1.000000e+00 : f32
    %15 = vector.broadcast %cst_9 : f32 to vector<2x128xf32>
    %16 = arith.addf %15, %14 : vector<2x128xf32>
    %17 = arith.divf %15, %16 : vector<2x128xf32>
    %18 = vector.extract_strided_slice %11 {offsets = [0, 128], sizes = [2, 128], strides = [1, 1]} : vector<2x512xf32> to vector<2x128xf32>
    %19 = arith.negf %18 : vector<2x128xf32>
    %20 = math.exp %19 : vector<2x128xf32>
    %cst_10 = arith.constant 1.000000e+00 : f32
    %21 = vector.broadcast %cst_10 : f32 to vector<2x128xf32>
    %22 = arith.addf %21, %20 : vector<2x128xf32>
    %23 = arith.divf %21, %22 : vector<2x128xf32>
    %24 = vector.extract_strided_slice %11 {offsets = [0, 256], sizes = [2, 128], strides = [1, 1]} : vector<2x512xf32> to vector<2x128xf32>
    %25 = math.tanh %24 : vector<2x128xf32>
    %26 = vector.extract_strided_slice %11 {offsets = [0, 384], sizes = [2, 128], strides = [1, 1]} : vector<2x512xf32> to vector<2x128xf32>
    %27 = arith.negf %26 : vector<2x128xf32>
    %28 = math.exp %27 : vector<2x128xf32>
    %cst_11 = arith.constant 1.000000e+00 : f32
    %29 = vector.broadcast %cst_11 : f32 to vector<2x128xf32>
    %30 = arith.addf %29, %28 : vector<2x128xf32>
    %31 = arith.divf %29, %30 : vector<2x128xf32>
    %32 = arith.mulf %23, %5 : vector<2x128xf32>
    %33 = arith.mulf %17, %25 : vector<2x128xf32>
    %34 = arith.addf %32, %33 : vector<2x128xf32>
    %35 = math.tanh %34 : vector<2x128xf32>
    %36 = arith.mulf %31, %35 : vector<2x128xf32>
    %37 = arith.truncf %36 : vector<2x128xf32> to vector<2x128xbf16>
    %38 = arith.index_cast %c0_i32_6 : i32 to index
    %c0_12 = arith.constant 0 : index
    %c0_13 = arith.constant 0 : index
    %39 = vector.load %arg6[%38, %c0_12, %c0_13] : memref<8x2x128xbf16, #tpu.memory_space<vmem>>, vector<1x2x128xbf16>
    %40 = vector.shape_cast %39 : vector<1x2x128xbf16> to vector<2x128xbf16>
    %41 = vector.shape_cast %37 : vector<2x128xbf16> to vector<1x2x128xbf16>
    tpu.vector_store %arg6[%38, %c0_12, %c0_13], %41 {strides = array<i32>} : memref<8x2x128xbf16, #tpu.memory_space<vmem>>, vector<1x2x128xbf16>,
    %c1_i32 = arith.constant 1 : i32
    %42 = arith.index_cast %c1_i32 : i32 to index
    %c0_14 = arith.constant 0 : index
    %c0_15 = arith.constant 0 : index
    %43 = vector.load %arg2[%42, %c0_14, %c0_15] : memref<8x2x512xf32, #tpu.memory_space<vmem>>, vector<1x2x512xf32>
    %44 = vector.shape_cast %43 : vector<1x2x512xf32> to vector<2x512xf32>
    %45 = arith.truncf %36 : vector<2x128xf32> to vector<2x128xbf16>
    %cst_16 = arith.constant dense<0.000000e+00> : vector<2x512xf32>
    %46 = tpu.matmul %45, %3, %cst_16 {dimension_numbers = #tpu.dot_dimension_numbers<[1], [0], [0], [1], [0, 0, 1, 1], [], []>} : vector<2x128xbf16>, vector<128x512xbf16>, vector<2x512xf32> -> vector<2x512xf32>
    %47 = arith.addf %44, %46 : vector<2x512xf32>
    %48 = vector.extract_strided_slice %47 {offsets = [0, 0], sizes = [2, 128], strides = [1, 1]} : vector<2x512xf32> to vector<2x128xf32>
    %49 = arith.negf %48 : vector<2x128xf32>
    %50 = math.exp %49 : vector<2x128xf32>
    %cst_17 = arith.constant 1.000000e+00 : f32
    %51 = vector.broadcast %cst_17 : f32 to vector<2x128xf32>
    %52 = arith.addf %51, %50 : vector<2x128xf32>
    %53 = arith.divf %51, %52 : vector<2x128xf32>
    %54 = vector.extract_strided_slice %47 {offsets = [0, 128], sizes = [2, 128], strides = [1, 1]} : vector<2x512xf32> to vector<2x128xf32>
    %55 = arith.negf %54 : vector<2x128xf32>
    %56 = math.exp %55 : vector<2x128xf32>
    %cst_18 = arith.constant 1.000000e+00 : f32
    %57 = vector.broadcast %cst_18 : f32 to vector<2x128xf32>
    %58 = arith.addf %57, %56 : vector<2x128xf32>
    %59 = arith.divf %57, %58 : vector<2x128xf32>
    %60 = vector.extract_strided_slice %47 {offsets = [0, 256], sizes = [2, 128], strides = [1, 1]} : vector<2x512xf32> to vector<2x128xf32>
    %61 = math.tanh %60 : vector<2x128xf32>
    %62 = vector.extract_strided_slice %47 {offsets = [0, 384], sizes = [2, 128], strides = [1, 1]} : vector<2x512xf32> to vector<2x128xf32>
    %63 = arith.negf %62 : vector<2x128xf32>
    %64 = math.exp %63 : vector<2x128xf32>
    %cst_19 = arith.constant 1.000000e+00 : f32
    %65 = vector.broadcast %cst_19 : f32 to vector<2x128xf32>
    %66 = arith.addf %65, %64 : vector<2x128xf32>
    %67 = arith.divf %65, %66 : vector<2x128xf32>
    %68 = arith.mulf %59, %34 : vector<2x128xf32>
    %69 = arith.mulf %53, %61 : vector<2x128xf32>
    %70 = arith.addf %68, %69 : vector<2x128xf32>
    %71 = math.tanh %70 : vector<2x128xf32>
    %72 = arith.mulf %67, %71 : vector<2x128xf32>
    %73 = arith.truncf %72 : vector<2x128xf32> to vector<2x128xbf16>
    %74 = arith.index_cast %c1_i32 : i32 to index
    %c0_20 = arith.constant 0 : index
    %c0_21 = arith.constant 0 : index
    %75 = vector.load %arg6[%74, %c0_20, %c0_21] : memref<8x2x128xbf16, #tpu.memory_space<vmem>>, vector<1x2x128xbf16>
    %76 = vector.shape_cast %75 : vector<1x2x128xbf16> to vector<2x128xbf16>
    %77 = vector.shape_cast %73 : vector<2x128xbf16> to vector<1x2x128xbf16>
    tpu.vector_store %arg6[%74, %c0_20, %c0_21], %77 {strides = array<i32>} : memref<8x2x128xbf16, #tpu.memory_space<vmem>>, vector<1x2x128xbf16>,
    %c2_i32 = arith.constant 2 : i32
    %78 = arith.index_cast %c2_i32 : i32 to index
    %c0_22 = arith.constant 0 : index
    %c0_23 = arith.constant 0 : index
    %79 = vector.load %arg2[%78, %c0_22, %c0_23] : memref<8x2x512xf32, #tpu.memory_space<vmem>>, vector<1x2x512xf32>
    %80 = vector.shape_cast %79 : vector<1x2x512xf32> to vector<2x512xf32>
    %81 = arith.truncf %72 : vector<2x128xf32> to vector<2x128xbf16>
    %cst_24 = arith.constant dense<0.000000e+00> : vector<2x512xf32>
    %82 = tpu.matmul %81, %3, %cst_24 {dimension_numbers = #tpu.dot_dimension_numbers<[1], [0], [0], [1], [0, 0, 1, 1], [], []>} : vector<2x128xbf16>, vector<128x512xbf16>, vector<2x512xf32> -> vector<2x512xf32>
    %83 = arith.addf %80, %82 : vector<2x512xf32>
    %84 = vector.extract_strided_slice %83 {offsets = [0, 0], sizes = [2, 128], strides = [1, 1]} : vector<2x512xf32> to vector<2x128xf32>
    %85 = arith.negf %84 : vector<2x128xf32>
    %86 = math.exp %85 : vector<2x128xf32>
    %cst_25 = arith.constant 1.000000e+00 : f32
    %87 = vector.broadcast %cst_25 : f32 to vector<2x128xf32>
    %88 = arith.addf %87, %86 : vector<2x128xf32>
    %89 = arith.divf %87, %88 : vector<2x128xf32>
    %90 = vector.extract_strided_slice %83 {offsets = [0, 128], sizes = [2, 128], strides = [1, 1]} : vector<2x512xf32> to vector<2x128xf32>
    %91 = arith.negf %90 : vector<2x128xf32>
    %92 = math.exp %91 : vector<2x128xf32>
    %cst_26 = arith.constant 1.000000e+00 : f32
    %93 = vector.broadcast %cst_26 : f32 to vector<2x128xf32>
    %94 = arith.addf %93, %92 : vector<2x128xf32>
    %95 = arith.divf %93, %94 : vector<2x128xf32>
    %96 = vector.extract_strided_slice %83 {offsets = [0, 256], sizes = [2, 128], strides = [1, 1]} : vector<2x512xf32> to vector<2x128xf32>
    %97 = math.tanh %96 : vector<2x128xf32>
    %98 = vector.extract_strided_slice %83 {offsets = [0, 384], sizes = [2, 128], strides = [1, 1]} : vector<2x512xf32> to vector<2x128xf32>
    %99 = arith.negf %98 : vector<2x128xf32>
    %100 = math.exp %99 : vector<2x128xf32>
    %cst_27 = arith.constant 1.000000e+00 : f32
    %101 = vector.broadcast %cst_27 : f32 to vector<2x128xf32>
    %102 = arith.addf %101, %100 : vector<2x128xf32>
    %103 = arith.divf %101, %102 : vector<2x128xf32>
    %104 = arith.mulf %95, %70 : vector<2x128xf32>
    %105 = arith.mulf %89, %97 : vector<2x128xf32>
    %106 = arith.addf %104, %105 : vector<2x128xf32>
    %107 = math.tanh %106 : vector<2x128xf32>
    %108 = arith.mulf %103, %107 : vector<2x128xf32>
    %109 = arith.truncf %108 : vector<2x128xf32> to vector<2x128xbf16>
    %110 = arith.index_cast %c2_i32 : i32 to index
    %c0_28 = arith.constant 0 : index
    %c0_29 = arith.constant 0 : index
    %111 = vector.load %arg6[%110, %c0_28, %c0_29] : memref<8x2x128xbf16, #tpu.memory_space<vmem>>, vector<1x2x128xbf16>
    %112 = vector.shape_cast %111 : vector<1x2x128xbf16> to vector<2x128xbf16>
    %113 = vector.shape_cast %109 : vector<2x128xbf16> to vector<1x2x128xbf16>
    tpu.vector_store %arg6[%110, %c0_28, %c0_29], %113 {strides = array<i32>} : memref<8x2x128xbf16, #tpu.memory_space<vmem>>, vector<1x2x128xbf16>,
    %c3_i32 = arith.constant 3 : i32
    %114 = arith.index_cast %c3_i32 : i32 to index
    %c0_30 = arith.constant 0 : index
    %c0_31 = arith.constant 0 : index
    %115 = vector.load %arg2[%114, %c0_30, %c0_31] : memref<8x2x512xf32, #tpu.memory_space<vmem>>, vector<1x2x512xf32>
    %116 = vector.shape_cast %115 : vector<1x2x512xf32> to vector<2x512xf32>
    %117 = arith.truncf %108 : vector<2x128xf32> to vector<2x128xbf16>
    %cst_32 = arith.constant dense<0.000000e+00> : vector<2x512xf32>
    %118 = tpu.matmul %117, %3, %cst_32 {dimension_numbers = #tpu.dot_dimension_numbers<[1], [0], [0], [1], [0, 0, 1, 1], [], []>} : vector<2x128xbf16>, vector<128x512xbf16>, vector<2x512xf32> -> vector<2x512xf32>
    %119 = arith.addf %116, %118 : vector<2x512xf32>
    %120 = vector.extract_strided_slice %119 {offsets = [0, 0], sizes = [2, 128], strides = [1, 1]} : vector<2x512xf32> to vector<2x128xf32>
    %121 = arith.negf %120 : vector<2x128xf32>
    %122 = math.exp %121 : vector<2x128xf32>
    %cst_33 = arith.constant 1.000000e+00 : f32
    %123 = vector.broadcast %cst_33 : f32 to vector<2x128xf32>
    %124 = arith.addf %123, %122 : vector<2x128xf32>
    %125 = arith.divf %123, %124 : vector<2x128xf32>
    %126 = vector.extract_strided_slice %119 {offsets = [0, 128], sizes = [2, 128], strides = [1, 1]} : vector<2x512xf32> to vector<2x128xf32>
    %127 = arith.negf %126 : vector<2x128xf32>
    %128 = math.exp %127 : vector<2x128xf32>
    %cst_34 = arith.constant 1.000000e+00 : f32
    %129 = vector.broadcast %cst_34 : f32 to vector<2x128xf32>
    %130 = arith.addf %129, %128 : vector<2x128xf32>
    %131 = arith.divf %129, %130 : vector<2x128xf32>
    %132 = vector.extract_strided_slice %119 {offsets = [0, 256], sizes = [2, 128], strides = [1, 1]} : vector<2x512xf32> to vector<2x128xf32>
    %133 = math.tanh %132 : vector<2x128xf32>
    %134 = vector.extract_strided_slice %119 {offsets = [0, 384], sizes = [2, 128], strides = [1, 1]} : vector<2x512xf32> to vector<2x128xf32>
    %135 = arith.negf %134 : vector<2x128xf32>
    %136 = math.exp %135 : vector<2x128xf32>
    %cst_35 = arith.constant 1.000000e+00 : f32
    %137 = vector.broadcast %cst_35 : f32 to vector<2x128xf32>
    %138 = arith.addf %137, %136 : vector<2x128xf32>
    %139 = arith.divf %137, %138 : vector<2x128xf32>
    %140 = arith.mulf %131, %106 : vector<2x128xf32>
    %141 = arith.mulf %125, %133 : vector<2x128xf32>
    %142 = arith.addf %140, %141 : vector<2x128xf32>
    %143 = math.tanh %142 : vector<2x128xf32>
    %144 = arith.mulf %139, %143 : vector<2x128xf32>
    %145 = arith.truncf %144 : vector<2x128xf32> to vector<2x128xbf16>
    %146 = arith.index_cast %c3_i32 : i32 to index
    %c0_36 = arith.constant 0 : index
    %c0_37 = arith.constant 0 : index
    %147 = vector.load %arg6[%146, %c0_36, %c0_37] : memref<8x2x128xbf16, #tpu.memory_space<vmem>>, vector<1x2x128xbf16>
    %148 = vector.shape_cast %147 : vector<1x2x128xbf16> to vector<2x128xbf16>
    %149 = vector.shape_cast %145 : vector<2x128xbf16> to vector<1x2x128xbf16>
    tpu.vector_store %arg6[%146, %c0_36, %c0_37], %149 {strides = array<i32>} : memref<8x2x128xbf16, #tpu.memory_space<vmem>>, vector<1x2x128xbf16>,
    %c4_i32 = arith.constant 4 : i32
    %150 = arith.index_cast %c4_i32 : i32 to index
    %c0_38 = arith.constant 0 : index
    %c0_39 = arith.constant 0 : index
    %151 = vector.load %arg2[%150, %c0_38, %c0_39] : memref<8x2x512xf32, #tpu.memory_space<vmem>>, vector<1x2x512xf32>
    %152 = vector.shape_cast %151 : vector<1x2x512xf32> to vector<2x512xf32>
    %153 = arith.truncf %144 : vector<2x128xf32> to vector<2x128xbf16>
    %cst_40 = arith.constant dense<0.000000e+00> : vector<2x512xf32>
    %154 = tpu.matmul %153, %3, %cst_40 {dimension_numbers = #tpu.dot_dimension_numbers<[1], [0], [0], [1], [0, 0, 1, 1], [], []>} : vector<2x128xbf16>, vector<128x512xbf16>, vector<2x512xf32> -> vector<2x512xf32>
    %155 = arith.addf %152, %154 : vector<2x512xf32>
    %156 = vector.extract_strided_slice %155 {offsets = [0, 0], sizes = [2, 128], strides = [1, 1]} : vector<2x512xf32> to vector<2x128xf32>
    %157 = arith.negf %156 : vector<2x128xf32>
    %158 = math.exp %157 : vector<2x128xf32>
    %cst_41 = arith.constant 1.000000e+00 : f32
    %159 = vector.broadcast %cst_41 : f32 to vector<2x128xf32>
    %160 = arith.addf %159, %158 : vector<2x128xf32>
    %161 = arith.divf %159, %160 : vector<2x128xf32>
    %162 = vector.extract_strided_slice %155 {offsets = [0, 128], sizes = [2, 128], strides = [1, 1]} : vector<2x512xf32> to vector<2x128xf32>
    %163 = arith.negf %162 : vector<2x128xf32>
    %164 = math.exp %163 : vector<2x128xf32>
    %cst_42 = arith.constant 1.000000e+00 : f32
    %165 = vector.broadcast %cst_42 : f32 to vector<2x128xf32>
    %166 = arith.addf %165, %164 : vector<2x128xf32>
    %167 = arith.divf %165, %166 : vector<2x128xf32>
    %168 = vector.extract_strided_slice %155 {offsets = [0, 256], sizes = [2, 128], strides = [1, 1]} : vector<2x512xf32> to vector<2x128xf32>
    %169 = math.tanh %168 : vector<2x128xf32>
    %170 = vector.extract_strided_slice %155 {offsets = [0, 384], sizes = [2, 128], strides = [1, 1]} : vector<2x512xf32> to vector<2x128xf32>
    %171 = arith.negf %170 : vector<2x128xf32>
    %172 = math.exp %171 : vector<2x128xf32>
    %cst_43 = arith.constant 1.000000e+00 : f32
    %173 = vector.broadcast %cst_43 : f32 to vector<2x128xf32>
    %174 = arith.addf %173, %172 : vector<2x128xf32>
    %175 = arith.divf %173, %174 : vector<2x128xf32>
    %176 = arith.mulf %167, %142 : vector<2x128xf32>
    %177 = arith.mulf %161, %169 : vector<2x128xf32>
    %178 = arith.addf %176, %177 : vector<2x128xf32>
    %179 = math.tanh %178 : vector<2x128xf32>
    %180 = arith.mulf %175, %179 : vector<2x128xf32>
    %181 = arith.truncf %180 : vector<2x128xf32> to vector<2x128xbf16>
    %182 = arith.index_cast %c4_i32 : i32 to index
    %c0_44 = arith.constant 0 : index
    %c0_45 = arith.constant 0 : index
    %183 = vector.load %arg6[%182, %c0_44, %c0_45] : memref<8x2x128xbf16, #tpu.memory_space<vmem>>, vector<1x2x128xbf16>
    %184 = vector.shape_cast %183 : vector<1x2x128xbf16> to vector<2x128xbf16>
    %185 = vector.shape_cast %181 : vector<2x128xbf16> to vector<1x2x128xbf16>
    tpu.vector_store %arg6[%182, %c0_44, %c0_45], %185 {strides = array<i32>} : memref<8x2x128xbf16, #tpu.memory_space<vmem>>, vector<1x2x128xbf16>,
    %c5_i32 = arith.constant 5 : i32
    %186 = arith.index_cast %c5_i32 : i32 to index
    %c0_46 = arith.constant 0 : index
    %c0_47 = arith.constant 0 : index
    %187 = vector.load %arg2[%186, %c0_46, %c0_47] : memref<8x2x512xf32, #tpu.memory_space<vmem>>, vector<1x2x512xf32>
    %188 = vector.shape_cast %187 : vector<1x2x512xf32> to vector<2x512xf32>
    %189 = arith.truncf %180 : vector<2x128xf32> to vector<2x128xbf16>
    %cst_48 = arith.constant dense<0.000000e+00> : vector<2x512xf32>
    %190 = tpu.matmul %189, %3, %cst_48 {dimension_numbers = #tpu.dot_dimension_numbers<[1], [0], [0], [1], [0, 0, 1, 1], [], []>} : vector<2x128xbf16>, vector<128x512xbf16>, vector<2x512xf32> -> vector<2x512xf32>
    %191 = arith.addf %188, %190 : vector<2x512xf32>
    %192 = vector.extract_strided_slice %191 {offsets = [0, 0], sizes = [2, 128], strides = [1, 1]} : vector<2x512xf32> to vector<2x128xf32>
    %193 = arith.negf %192 : vector<2x128xf32>
    %194 = math.exp %193 : vector<2x128xf32>
    %cst_49 = arith.constant 1.000000e+00 : f32
    %195 = vector.broadcast %cst_49 : f32 to vector<2x128xf32>
    %196 = arith.addf %195, %194 : vector<2x128xf32>
    %197 = arith.divf %195, %196 : vector<2x128xf32>
    %198 = vector.extract_strided_slice %191 {offsets = [0, 128], sizes = [2, 128], strides = [1, 1]} : vector<2x512xf32> to vector<2x128xf32>
    %199 = arith.negf %198 : vector<2x128xf32>
    %200 = math.exp %199 : vector<2x128xf32>
    %cst_50 = arith.constant 1.000000e+00 : f32
    %201 = vector.broadcast %cst_50 : f32 to vector<2x128xf32>
    %202 = arith.addf %201, %200 : vector<2x128xf32>
    %203 = arith.divf %201, %202 : vector<2x128xf32>
    %204 = vector.extract_strided_slice %191 {offsets = [0, 256], sizes = [2, 128], strides = [1, 1]} : vector<2x512xf32> to vector<2x128xf32>
    %205 = math.tanh %204 : vector<2x128xf32>
    %206 = vector.extract_strided_slice %191 {offsets = [0, 384], sizes = [2, 128], strides = [1, 1]} : vector<2x512xf32> to vector<2x128xf32>
    %207 = arith.negf %206 : vector<2x128xf32>
    %208 = math.exp %207 : vector<2x128xf32>
    %cst_51 = arith.constant 1.000000e+00 : f32
    %209 = vector.broadcast %cst_51 : f32 to vector<2x128xf32>
    %210 = arith.addf %209, %208 : vector<2x128xf32>
    %211 = arith.divf %209, %210 : vector<2x128xf32>
    %212 = arith.mulf %203, %178 : vector<2x128xf32>
    %213 = arith.mulf %197, %205 : vector<2x128xf32>
    %214 = arith.addf %212, %213 : vector<2x128xf32>
    %215 = math.tanh %214 : vector<2x128xf32>
    %216 = arith.mulf %211, %215 : vector<2x128xf32>
    %217 = arith.truncf %216 : vector<2x128xf32> to vector<2x128xbf16>
    %218 = arith.index_cast %c5_i32 : i32 to index
    %c0_52 = arith.constant 0 : index
    %c0_53 = arith.constant 0 : index
    %219 = vector.load %arg6[%218, %c0_52, %c0_53] : memref<8x2x128xbf16, #tpu.memory_space<vmem>>, vector<1x2x128xbf16>
    %220 = vector.shape_cast %219 : vector<1x2x128xbf16> to vector<2x128xbf16>
    %221 = vector.shape_cast %217 : vector<2x128xbf16> to vector<1x2x128xbf16>
    tpu.vector_store %arg6[%218, %c0_52, %c0_53], %221 {strides = array<i32>} : memref<8x2x128xbf16, #tpu.memory_space<vmem>>, vector<1x2x128xbf16>,
    %c6_i32 = arith.constant 6 : i32
    %222 = arith.index_cast %c6_i32 : i32 to index
    %c0_54 = arith.constant 0 : index
    %c0_55 = arith.constant 0 : index
    %223 = vector.load %arg2[%222, %c0_54, %c0_55] : memref<8x2x512xf32, #tpu.memory_space<vmem>>, vector<1x2x512xf32>
    %224 = vector.shape_cast %223 : vector<1x2x512xf32> to vector<2x512xf32>
    %225 = arith.truncf %216 : vector<2x128xf32> to vector<2x128xbf16>
    %cst_56 = arith.constant dense<0.000000e+00> : vector<2x512xf32>
    %226 = tpu.matmul %225, %3, %cst_56 {dimension_numbers = #tpu.dot_dimension_numbers<[1], [0], [0], [1], [0, 0, 1, 1], [], []>} : vector<2x128xbf16>, vector<128x512xbf16>, vector<2x512xf32> -> vector<2x512xf32>
    %227 = arith.addf %224, %226 : vector<2x512xf32>
    %228 = vector.extract_strided_slice %227 {offsets = [0, 0], sizes = [2, 128], strides = [1, 1]} : vector<2x512xf32> to vector<2x128xf32>
    %229 = arith.negf %228 : vector<2x128xf32>
    %230 = math.exp %229 : vector<2x128xf32>
    %cst_57 = arith.constant 1.000000e+00 : f32
    %231 = vector.broadcast %cst_57 : f32 to vector<2x128xf32>
    %232 = arith.addf %231, %230 : vector<2x128xf32>
    %233 = arith.divf %231, %232 : vector<2x128xf32>
    %234 = vector.extract_strided_slice %227 {offsets = [0, 128], sizes = [2, 128], strides = [1, 1]} : vector<2x512xf32> to vector<2x128xf32>
    %235 = arith.negf %234 : vector<2x128xf32>
    %236 = math.exp %235 : vector<2x128xf32>
    %cst_58 = arith.constant 1.000000e+00 : f32
    %237 = vector.broadcast %cst_58 : f32 to vector<2x128xf32>
    %238 = arith.addf %237, %236 : vector<2x128xf32>
    %239 = arith.divf %237, %238 : vector<2x128xf32>
    %240 = vector.extract_strided_slice %227 {offsets = [0, 256], sizes = [2, 128], strides = [1, 1]} : vector<2x512xf32> to vector<2x128xf32>
    %241 = math.tanh %240 : vector<2x128xf32>
    %242 = vector.extract_strided_slice %227 {offsets = [0, 384], sizes = [2, 128], strides = [1, 1]} : vector<2x512xf32> to vector<2x128xf32>
    %243 = arith.negf %242 : vector<2x128xf32>
    %244 = math.exp %243 : vector<2x128xf32>
    %cst_59 = arith.constant 1.000000e+00 : f32
    %245 = vector.broadcast %cst_59 : f32 to vector<2x128xf32>
    %246 = arith.addf %245, %244 : vector<2x128xf32>
    %247 = arith.divf %245, %246 : vector<2x128xf32>
    %248 = arith.mulf %239, %214 : vector<2x128xf32>
    %249 = arith.mulf %233, %241 : vector<2x128xf32>
    %250 = arith.addf %248, %249 : vector<2x128xf32>
    %251 = math.tanh %250 : vector<2x128xf32>
    %252 = arith.mulf %247, %251 : vector<2x128xf32>
    %253 = arith.truncf %252 : vector<2x128xf32> to vector<2x128xbf16>
    %254 = arith.index_cast %c6_i32 : i32 to index
    %c0_60 = arith.constant 0 : index
    %c0_61 = arith.constant 0 : index
    %255 = vector.load %arg6[%254, %c0_60, %c0_61] : memref<8x2x128xbf16, #tpu.memory_space<vmem>>, vector<1x2x128xbf16>
    %256 = vector.shape_cast %255 : vector<1x2x128xbf16> to vector<2x128xbf16>
    %257 = vector.shape_cast %253 : vector<2x128xbf16> to vector<1x2x128xbf16>
    tpu.vector_store %arg6[%254, %c0_60, %c0_61], %257 {strides = array<i32>} : memref<8x2x128xbf16, #tpu.memory_space<vmem>>, vector<1x2x128xbf16>,
    %c7_i32 = arith.constant 7 : i32
    %258 = arith.index_cast %c7_i32 : i32 to index
    %c0_62 = arith.constant 0 : index
    %c0_63 = arith.constant 0 : index
    %259 = vector.load %arg2[%258, %c0_62, %c0_63] : memref<8x2x512xf32, #tpu.memory_space<vmem>>, vector<1x2x512xf32>
    %260 = vector.shape_cast %259 : vector<1x2x512xf32> to vector<2x512xf32>
    %261 = arith.truncf %252 : vector<2x128xf32> to vector<2x128xbf16>
    %cst_64 = arith.constant dense<0.000000e+00> : vector<2x512xf32>
    %262 = tpu.matmul %261, %3, %cst_64 {dimension_numbers = #tpu.dot_dimension_numbers<[1], [0], [0], [1], [0, 0, 1, 1], [], []>} : vector<2x128xbf16>, vector<128x512xbf16>, vector<2x512xf32> -> vector<2x512xf32>
    %263 = arith.addf %260, %262 : vector<2x512xf32>
    %264 = vector.extract_strided_slice %263 {offsets = [0, 0], sizes = [2, 128], strides = [1, 1]} : vector<2x512xf32> to vector<2x128xf32>
    %265 = arith.negf %264 : vector<2x128xf32>
    %266 = math.exp %265 : vector<2x128xf32>
    %cst_65 = arith.constant 1.000000e+00 : f32
    %267 = vector.broadcast %cst_65 : f32 to vector<2x128xf32>
    %268 = arith.addf %267, %266 : vector<2x128xf32>
    %269 = arith.divf %267, %268 : vector<2x128xf32>
    %270 = vector.extract_strided_slice %263 {offsets = [0, 128], sizes = [2, 128], strides = [1, 1]} : vector<2x512xf32> to vector<2x128xf32>
    %271 = arith.negf %270 : vector<2x128xf32>
    %272 = math.exp %271 : vector<2x128xf32>
    %cst_66 = arith.constant 1.000000e+00 : f32
    %273 = vector.broadcast %cst_66 : f32 to vector<2x128xf32>
    %274 = arith.addf %273, %272 : vector<2x128xf32>
    %275 = arith.divf %273, %274 : vector<2x128xf32>
    %276 = vector.extract_strided_slice %263 {offsets = [0, 256], sizes = [2, 128], strides = [1, 1]} : vector<2x512xf32> to vector<2x128xf32>
    %277 = math.tanh %276 : vector<2x128xf32>
    %278 = vector.extract_strided_slice %263 {offsets = [0, 384], sizes = [2, 128], strides = [1, 1]} : vector<2x512xf32> to vector<2x128xf32>
    %279 = arith.negf %278 : vector<2x128xf32>
    %280 = math.exp %279 : vector<2x128xf32>
    %cst_67 = arith.constant 1.000000e+00 : f32
    %281 = vector.broadcast %cst_67 : f32 to vector<2x128xf32>
    %282 = arith.addf %281, %280 : vector<2x128xf32>
    %283 = arith.divf %281, %282 : vector<2x128xf32>
    %284 = arith.mulf %275, %250 : vector<2x128xf32>
    %285 = arith.mulf %269, %277 : vector<2x128xf32>
    %286 = arith.addf %284, %285 : vector<2x128xf32>
    %287 = math.tanh %286 : vector<2x128xf32>
    %288 = arith.mulf %283, %287 : vector<2x128xf32>
    %289 = arith.truncf %288 : vector<2x128xf32> to vector<2x128xbf16>
    %290 = arith.index_cast %c7_i32 : i32 to index
    %c0_68 = arith.constant 0 : index
    %c0_69 = arith.constant 0 : index
    %291 = vector.load %arg6[%290, %c0_68, %c0_69] : memref<8x2x128xbf16, #tpu.memory_space<vmem>>, vector<1x2x128xbf16>
    %292 = vector.shape_cast %291 : vector<1x2x128xbf16> to vector<2x128xbf16>
    %293 = vector.shape_cast %289 : vector<2x128xbf16> to vector<1x2x128xbf16>
    tpu.vector_store %arg6[%290, %c0_68, %c0_69], %293 {strides = array<i32>} : memref<8x2x128xbf16, #tpu.memory_space<vmem>>, vector<1x2x128xbf16>,
    %c8_i32 = arith.constant 8 : i32
    %c0_70 = arith.constant 0 : index
    %c0_71 = arith.constant 0 : index
    %294 = vector.load %arg9[%c0_70, %c0_71] : memref<2x128xf32, #tpu.memory_space<vmem>>, vector<2x128xf32>
    tpu.vector_store %arg9[%c0_70, %c0_71], %288 {strides = array<i32>} : memref<2x128xf32, #tpu.memory_space<vmem>>, vector<2x128xf32>,
    %c0_72 = arith.constant 0 : index
    %c0_73 = arith.constant 0 : index
    %295 = vector.load %arg10[%c0_72, %c0_73] : memref<2x128xf32, #tpu.memory_space<vmem>>, vector<2x128xf32>
    tpu.vector_store %arg10[%c0_72, %c0_73], %286 {strides = array<i32>} : memref<2x128xf32, #tpu.memory_space<vmem>>, vector<2x128xf32>,
    %c0_i32_74 = arith.constant 0 : i32
    %296 = arith.cmpi eq, %arg1, %c0_i32_74 : i32
    %297 = arith.extui %296 : i1 to i32
    %c0_i32_75 = arith.constant 0 : i32
    %298 = arith.cmpi ne, %297, %c0_i32_75 : i32
    scf.if %298 {
      %c0_76 = arith.constant 0 : index
      %c0_77 = arith.constant 0 : index
      %299 = vector.load %arg7[%c0_76, %c0_77] : memref<2x128xf32, #tpu.memory_space<vmem>>, vector<2x128xf32>
      tpu.vector_store %arg7[%c0_76, %c0_77], %288 {strides = array<i32>} : memref<2x128xf32, #tpu.memory_space<vmem>>, vector<2x128xf32>,
      %c0_78 = arith.constant 0 : index
      %c0_79 = arith.constant 0 : index
      %300 = vector.load %arg8[%c0_78, %c0_79] : memref<2x128xf32, #tpu.memory_space<vmem>>, vector<2x128xf32>
      tpu.vector_store %arg8[%c0_78, %c0_79], %286 {strides = array<i32>} : memref<2x128xf32, #tpu.memory_space<vmem>>, vector<2x128xf32>,
    } else {
    }
    return
  }
  func.func @transform_0(%arg0: i32, %arg1: i32) -> (i32, i32, i32) {
    %c0_i32 = arith.constant 0 : i32
    %c0_i32_0 = arith.constant 0 : i32
    return %arg1, %arg0, %c0_i32 : i32, i32, i32
  }
  func.func @transform_1(%arg0: i32, %arg1: i32) -> (i32, i32) {
    %c0_i32 = arith.constant 0 : i32
    %c0_i32_0 = arith.constant 0 : i32
    return %arg0, %c0_i32 : i32, i32
  }
  func.func @transform_2(%arg0: i32, %arg1: i32) -> (i32, i32) {
    %c0_i32 = arith.constant 0 : i32
    %c0_i32_0 = arith.constant 0 : i32
    return %arg0, %c0_i32 : i32, i32
  }
  func.func @transform_3(%arg0: i32, %arg1: i32) -> (i32, i32) {
    %c0_i32 = arith.constant 0 : i32
    %c0_i32_0 = arith.constant 0 : i32
    %c0_i32_1 = arith.constant 0 : i32
    return %c0_i32, %c0_i32_0 : i32, i32
  }
  func.func @transform_4(%arg0: i32, %arg1: i32) -> (i32, i32, i32) {
    %c0_i32 = arith.constant 0 : i32
    %c0_i32_0 = arith.constant 0 : i32
    return %arg1, %arg0, %c0_i32 : i32, i32, i32
  }
  func.func @transform_5(%arg0: i32, %arg1: i32) -> (i32, i32) {
    %c0_i32 = arith.constant 0 : i32
    %c0_i32_0 = arith.constant 0 : i32
    return %arg0, %c0_i32 : i32, i32
  }
  func.func @transform_6(%arg0: i32, %arg1: i32) -> (i32, i32) {
    %c0_i32 = arith.constant 0 : i32
    %c0_i32_0 = arith.constant 0 : i32
    return %arg0, %c0_i32 : i32, i32
  }
}

module attributes {stable_mosaic.version = 11 : i64} {
  func.func @_lstm_recur_kernel(%arg0: i32, %arg1: i32, %arg2: memref<8x2x512xf32, #tpu.memory_space<vmem>>, %arg3: memref<2x128xf32, #tpu.memory_space<vmem>>, %arg4: memref<2x128xf32, #tpu.memory_space<vmem>>, %arg5: memref<128x512xbf16, #tpu.memory_space<vmem>>, %arg6: memref<8x2x128xbf16, #tpu.memory_space<vmem>>, %arg7: memref<2x128xf32, #tpu.memory_space<vmem>>, %arg8: memref<2x128xf32, #tpu.memory_space<vmem>>, %arg9: memref<2x128xf32, #tpu.memory_space<vmem>>, %arg10: memref<2x128xf32, #tpu.memory_space<vmem>>) attributes {dimension_semantics = [#tpu.dimension_semantics<parallel>, #tpu.dimension_semantics<arbitrary>], iteration_bounds = array<i64: 1, 1>, scalar_prefetch = 0 : i64, scratch_operands = 2 : i64, tpu.core_type = #tpu.core_type<tc>, window_params = [{transform_indices = @transform_0, window_bounds = array<i64: 8, 2, 512>}, {transform_indices = @transform_1, window_bounds = array<i64: 2, 128>}, {transform_indices = @transform_2, window_bounds = array<i64: 2, 128>}, {pipeline_mode = #tpu.pipeline_mode<synchronous>, transform_indices = @transform_3, window_bounds = array<i64: 128, 512>}, {transform_indices = @transform_4, window_bounds = array<i64: 8, 2, 128>}, {transform_indices = @transform_5, window_bounds = array<i64: 2, 128>}, {transform_indices = @transform_6, window_bounds = array<i64: 2, 128>}]} {
    %c0_i32 = arith.constant 0 : i32
    %0 = arith.cmpi eq, %arg1, %c0_i32 : i32
    %1 = arith.extui %0 : i1 to i32
    %c0_i32_0 = arith.constant 0 : i32
    %2 = arith.cmpi ne, %1, %c0_i32_0 : i32
    scf.if %2 {
      %c0_76 = arith.constant 0 : index
      %c0_77 = arith.constant 0 : index
      %299 = vector.load %arg3[%c0_76, %c0_77] : memref<2x128xf32, #tpu.memory_space<vmem>>, vector<2x128xf32>
      %c0_78 = arith.constant 0 : index
      %c0_79 = arith.constant 0 : index
      %300 = vector.load %arg9[%c0_78, %c0_79] : memref<2x128xf32, #tpu.memory_space<vmem>>, vector<2x128xf32>
      tpu.vector_store %arg9[%c0_78, %c0_79], %299 {strides = array<i32>} : memref<2x128xf32, #tpu.memory_space<vmem>>, vector<2x128xf32>,
      %c0_80 = arith.constant 0 : index
      %c0_81 = arith.constant 0 : index
      %301 = vector.load %arg4[%c0_80, %c0_81] : memref<2x128xf32, #tpu.memory_space<vmem>>, vector<2x128xf32>
      %c0_82 = arith.constant 0 : index
      %c0_83 = arith.constant 0 : index
      %302 = vector.load %arg10[%c0_82, %c0_83] : memref<2x128xf32, #tpu.memory_space<vmem>>, vector<2x128xf32>
      tpu.vector_store %arg10[%c0_82, %c0_83], %301 {strides = array<i32>} : memref<2x128xf32, #tpu.memory_space<vmem>>, vector<2x128xf32>,
    } else {
    }
    %c0 = arith.constant 0 : index
    %c0_1 = arith.constant 0 : index
    %3 = vector.load %arg5[%c0, %c0_1] : memref<128x512xbf16, #tpu.memory_space<vmem>>, vector<128x512xbf16>
    %c0_2 = arith.constant 0 : index
    %c0_3 = arith.constant 0 : index
    %4 = vector.load %arg9[%c0_2, %c0_3] : memref<2x128xf32, #tpu.memory_space<vmem>>, vector<2x128xf32>
    %c0_4 = arith.constant 0 : index
    %c0_5 = arith.constant 0 : index
    %5 = vector.load %arg10[%c0_4, %c0_5] : memref<2x128xf32, #tpu.memory_space<vmem>>, vector<2x128xf32>
    %c0_i32_6 = arith.constant 0 : i32
    %6 = arith.index_cast %c0_i32_6 : i32 to index
    %c0_7 = arith.constant 0 : index
    %c0_8 = arith.constant 0 : index
    %7 = vector.load %arg2[%6, %c0_7, %c0_8] : memref<8x2x512xf32, #tpu.memory_space<vmem>>, vector<1x2x512xf32>
    %8 = vector.shape_cast %7 : vector<1x2x512xf32> to vector<2x512xf32>
    %9 = arith.truncf %4 : vector<2x128xf32> to vector<2x128xbf16>
    %cst = arith.constant dense<0.000000e+00> : vector<2x512xf32>
    %10 = tpu.matmul %9, %3, %cst {dimension_numbers = #tpu.dot_dimension_numbers<[1], [0], [0], [1], [0, 0, 1, 1], [], []>} : vector<2x128xbf16>, vector<128x512xbf16>, vector<2x512xf32> -> vector<2x512xf32>
    %11 = arith.addf %8, %10 : vector<2x512xf32>
    %12 = vector.extract_strided_slice %11 {offsets = [0, 0], sizes = [2, 128], strides = [1, 1]} : vector<2x512xf32> to vector<2x128xf32>
    %13 = arith.negf %12 : vector<2x128xf32>
    %14 = math.exp %13 : vector<2x128xf32>
    %cst_9 = arith.constant 1.000000e+00 : f32
    %15 = vector.broadcast %cst_9 : f32 to vector<2x128xf32>
    %16 = arith.addf %15, %14 : vector<2x128xf32>
    %17 = arith.divf %15, %16 : vector<2x128xf32>
    %18 = vector.extract_strided_slice %11 {offsets = [0, 128], sizes = [2, 128], strides = [1, 1]} : vector<2x512xf32> to vector<2x128xf32>
    %19 = arith.negf %18 : vector<2x128xf32>
    %20 = math.exp %19 : vector<2x128xf32>
    %cst_10 = arith.constant 1.000000e+00 : f32
    %21 = vector.broadcast %cst_10 : f32 to vector<2x128xf32>
    %22 = arith.addf %21, %20 : vector<2x128xf32>
    %23 = arith.divf %21, %22 : vector<2x128xf32>
    %24 = vector.extract_strided_slice %11 {offsets = [0, 256], sizes = [2, 128], strides = [1, 1]} : vector<2x512xf32> to vector<2x128xf32>
    %25 = math.tanh %24 : vector<2x128xf32>
    %26 = vector.extract_strided_slice %11 {offsets = [0, 384], sizes = [2, 128], strides = [1, 1]} : vector<2x512xf32> to vector<2x128xf32>
    %27 = arith.negf %26 : vector<2x128xf32>
    %28 = math.exp %27 : vector<2x128xf32>
    %cst_11 = arith.constant 1.000000e+00 : f32
    %29 = vector.broadcast %cst_11 : f32 to vector<2x128xf32>
    %30 = arith.addf %29, %28 : vector<2x128xf32>
    %31 = arith.divf %29, %30 : vector<2x128xf32>
    %32 = arith.mulf %23, %5 : vector<2x128xf32>
    %33 = arith.mulf %17, %25 : vector<2x128xf32>
    %34 = arith.addf %32, %33 : vector<2x128xf32>
    %35 = math.tanh %34 : vector<2x128xf32>
    %36 = arith.mulf %31, %35 : vector<2x128xf32>
    %37 = arith.truncf %36 : vector<2x128xf32> to vector<2x128xbf16>
    %38 = arith.index_cast %c0_i32_6 : i32 to index
    %c0_12 = arith.constant 0 : index
    %c0_13 = arith.constant 0 : index
    %39 = vector.load %arg6[%38, %c0_12, %c0_13] : memref<8x2x128xbf16, #tpu.memory_space<vmem>>, vector<1x2x128xbf16>
    %40 = vector.shape_cast %39 : vector<1x2x128xbf16> to vector<2x128xbf16>
    %41 = vector.shape_cast %37 : vector<2x128xbf16> to vector<1x2x128xbf16>
    tpu.vector_store %arg6[%38, %c0_12, %c0_13], %41 {strides = array<i32>} : memref<8x2x128xbf16, #tpu.memory_space<vmem>>, vector<1x2x128xbf16>,
    %c1_i32 = arith.constant 1 : i32
    %42 = arith.index_cast %c1_i32 : i32 to index
    %c0_14 = arith.constant 0 : index
    %c0_15 = arith.constant 0 : index
    %43 = vector.load %arg2[%42, %c0_14, %c0_15] : memref<8x2x512xf32, #tpu.memory_space<vmem>>, vector<1x2x512xf32>
    %44 = vector.shape_cast %43 : vector<1x2x512xf32> to vector<2x512xf32>
    %45 = arith.truncf %36 : vector<2x128xf32> to vector<2x128xbf16>
    %cst_16 = arith.constant dense<0.000000e+00> : vector<2x512xf32>
    %46 = tpu.matmul %45, %3, %cst_16 {dimension_numbers = #tpu.dot_dimension_numbers<[1], [0], [0], [1], [0, 0, 1, 1], [], []>} : vector<2x128xbf16>, vector<128x512xbf16>, vector<2x512xf32> -> vector<2x512xf32>
    %47 = arith.addf %44, %46 : vector<2x512xf32>
    %48 = vector.extract_strided_slice %47 {offsets = [0, 0], sizes = [2, 128], strides = [1, 1]} : vector<2x512xf32> to vector<2x128xf32>
    %49 = arith.negf %48 : vector<2x128xf32>
    %50 = math.exp %49 : vector<2x128xf32>
    %cst_17 = arith.constant 1.000000e+00 : f32
    %51 = vector.broadcast %cst_17 : f32 to vector<2x128xf32>
    %52 = arith.addf %51, %50 : vector<2x128xf32>
    %53 = arith.divf %51, %52 : vector<2x128xf32>
    %54 = vector.extract_strided_slice %47 {offsets = [0, 128], sizes = [2, 128], strides = [1, 1]} : vector<2x512xf32> to vector<2x128xf32>
    %55 = arith.negf %54 : vector<2x128xf32>
    %56 = math.exp %55 : vector<2x128xf32>
    %cst_18 = arith.constant 1.000000e+00 : f32
    %57 = vector.broadcast %cst_18 : f32 to vector<2x128xf32>
    %58 = arith.addf %57, %56 : vector<2x128xf32>
    %59 = arith.divf %57, %58 : vector<2x128xf32>
    %60 = vector.extract_strided_slice %47 {offsets = [0, 256], sizes = [2, 128], strides = [1, 1]} : vector<2x512xf32> to vector<2x128xf32>
    %61 = math.tanh %60 : vector<2x128xf32>
    %62 = vector.extract_strided_slice %47 {offsets = [0, 384], sizes = [2, 128], strides = [1, 1]} : vector<2x512xf32> to vector<2x128xf32>
    %63 = arith.negf %62 : vector<2x128xf32>
    %64 = math.exp %63 : vector<2x128xf32>
    %cst_19 = arith.constant 1.000000e+00 : f32
    %65 = vector.broadcast %cst_19 : f32 to vector<2x128xf32>
    %66 = arith.addf %65, %64 : vector<2x128xf32>
    %67 = arith.divf %65, %66 : vector<2x128xf32>
    %68 = arith.mulf %59, %34 : vector<2x128xf32>
    %69 = arith.mulf %53, %61 : vector<2x128xf32>
    %70 = arith.addf %68, %69 : vector<2x128xf32>
    %71 = math.tanh %70 : vector<2x128xf32>
    %72 = arith.mulf %67, %71 : vector<2x128xf32>
    %73 = arith.truncf %72 : vector<2x128xf32> to vector<2x128xbf16>
    %74 = arith.index_cast %c1_i32 : i32 to index
    %c0_20 = arith.constant 0 : index
    %c0_21 = arith.constant 0 : index
    %75 = vector.load %arg6[%74, %c0_20, %c0_21] : memref<8x2x128xbf16, #tpu.memory_space<vmem>>, vector<1x2x128xbf16>
    %76 = vector.shape_cast %75 : vector<1x2x128xbf16> to vector<2x128xbf16>
    %77 = vector.shape_cast %73 : vector<2x128xbf16> to vector<1x2x128xbf16>
    tpu.vector_store %arg6[%74, %c0_20, %c0_21], %77 {strides = array<i32>} : memref<8x2x128xbf16, #tpu.memory_space<vmem>>, vector<1x2x128xbf16>,
    %c2_i32 = arith.constant 2 : i32
    %78 = arith.index_cast %c2_i32 : i32 to index
    %c0_22 = arith.constant 0 : index
    %c0_23 = arith.constant 0 : index
    %79 = vector.load %arg2[%78, %c0_22, %c0_23] : memref<8x2x512xf32, #tpu.memory_space<vmem>>, vector<1x2x512xf32>
    %80 = vector.shape_cast %79 : vector<1x2x512xf32> to vector<2x512xf32>
    %81 = arith.truncf %72 : vector<2x128xf32> to vector<2x128xbf16>
    %cst_24 = arith.constant dense<0.000000e+00> : vector<2x512xf32>
    %82 = tpu.matmul %81, %3, %cst_24 {dimension_numbers = #tpu.dot_dimension_numbers<[1], [0], [0], [1], [0, 0, 1, 1], [], []>} : vector<2x128xbf16>, vector<128x512xbf16>, vector<2x512xf32> -> vector<2x512xf32>
    %83 = arith.addf %80, %82 : vector<2x512xf32>
    %84 = vector.extract_strided_slice %83 {offsets = [0, 0], sizes = [2, 128], strides = [1, 1]} : vector<2x512xf32> to vector<2x128xf32>
    %85 = arith.negf %84 : vector<2x128xf32>
    %86 = math.exp %85 : vector<2x128xf32>
    %cst_25 = arith.constant 1.000000e+00 : f32
    %87 = vector.broadcast %cst_25 : f32 to vector<2x128xf32>
    %88 = arith.addf %87, %86 : vector<2x128xf32>
    %89 = arith.divf %87, %88 : vector<2x128xf32>
    %90 = vector.extract_strided_slice %83 {offsets = [0, 128], sizes = [2, 128], strides = [1, 1]} : vector<2x512xf32> to vector<2x128xf32>
    %91 = arith.negf %90 : vector<2x128xf32>
    %92 = math.exp %91 : vector<2x128xf32>
    %cst_26 = arith.constant 1.000000e+00 : f32
    %93 = vector.broadcast %cst_26 : f32 to vector<2x128xf32>
    %94 = arith.addf %93, %92 : vector<2x128xf32>
    %95 = arith.divf %93, %94 : vector<2x128xf32>
    %96 = vector.extract_strided_slice %83 {offsets = [0, 256], sizes = [2, 128], strides = [1, 1]} : vector<2x512xf32> to vector<2x128xf32>
    %97 = math.tanh %96 : vector<2x128xf32>
    %98 = vector.extract_strided_slice %83 {offsets = [0, 384], sizes = [2, 128], strides = [1, 1]} : vector<2x512xf32> to vector<2x128xf32>
    %99 = arith.negf %98 : vector<2x128xf32>
    %100 = math.exp %99 : vector<2x128xf32>
    %cst_27 = arith.constant 1.000000e+00 : f32
    %101 = vector.broadcast %cst_27 : f32 to vector<2x128xf32>
    %102 = arith.addf %101, %100 : vector<2x128xf32>
    %103 = arith.divf %101, %102 : vector<2x128xf32>
    %104 = arith.mulf %95, %70 : vector<2x128xf32>
    %105 = arith.mulf %89, %97 : vector<2x128xf32>
    %106 = arith.addf %104, %105 : vector<2x128xf32>
    %107 = math.tanh %106 : vector<2x128xf32>
    %108 = arith.mulf %103, %107 : vector<2x128xf32>
    %109 = arith.truncf %108 : vector<2x128xf32> to vector<2x128xbf16>
    %110 = arith.index_cast %c2_i32 : i32 to index
    %c0_28 = arith.constant 0 : index
    %c0_29 = arith.constant 0 : index
    %111 = vector.load %arg6[%110, %c0_28, %c0_29] : memref<8x2x128xbf16, #tpu.memory_space<vmem>>, vector<1x2x128xbf16>
    %112 = vector.shape_cast %111 : vector<1x2x128xbf16> to vector<2x128xbf16>
    %113 = vector.shape_cast %109 : vector<2x128xbf16> to vector<1x2x128xbf16>
    tpu.vector_store %arg6[%110, %c0_28, %c0_29], %113 {strides = array<i32>} : memref<8x2x128xbf16, #tpu.memory_space<vmem>>, vector<1x2x128xbf16>,
    %c3_i32 = arith.constant 3 : i32
    %114 = arith.index_cast %c3_i32 : i32 to index
    %c0_30 = arith.constant 0 : index
    %c0_31 = arith.constant 0 : index
    %115 = vector.load %arg2[%114, %c0_30, %c0_31] : memref<8x2x512xf32, #tpu.memory_space<vmem>>, vector<1x2x512xf32>
    %116 = vector.shape_cast %115 : vector<1x2x512xf32> to vector<2x512xf32>
    %117 = arith.truncf %108 : vector<2x128xf32> to vector<2x128xbf16>
    %cst_32 = arith.constant dense<0.000000e+00> : vector<2x512xf32>
    %118 = tpu.matmul %117, %3, %cst_32 {dimension_numbers = #tpu.dot_dimension_numbers<[1], [0], [0], [1], [0, 0, 1, 1], [], []>} : vector<2x128xbf16>, vector<128x512xbf16>, vector<2x512xf32> -> vector<2x512xf32>
    %119 = arith.addf %116, %118 : vector<2x512xf32>
    %120 = vector.extract_strided_slice %119 {offsets = [0, 0], sizes = [2, 128], strides = [1, 1]} : vector<2x512xf32> to vector<2x128xf32>
    %121 = arith.negf %120 : vector<2x128xf32>
    %122 = math.exp %121 : vector<2x128xf32>
    %cst_33 = arith.constant 1.000000e+00 : f32
    %123 = vector.broadcast %cst_33 : f32 to vector<2x128xf32>
    %124 = arith.addf %123, %122 : vector<2x128xf32>
    %125 = arith.divf %123, %124 : vector<2x128xf32>
    %126 = vector.extract_strided_slice %119 {offsets = [0, 128], sizes = [2, 128], strides = [1, 1]} : vector<2x512xf32> to vector<2x128xf32>
    %127 = arith.negf %126 : vector<2x128xf32>
    %128 = math.exp %127 : vector<2x128xf32>
    %cst_34 = arith.constant 1.000000e+00 : f32
    %129 = vector.broadcast %cst_34 : f32 to vector<2x128xf32>
    %130 = arith.addf %129, %128 : vector<2x128xf32>
    %131 = arith.divf %129, %130 : vector<2x128xf32>
    %132 = vector.extract_strided_slice %119 {offsets = [0, 256], sizes = [2, 128], strides = [1, 1]} : vector<2x512xf32> to vector<2x128xf32>
    %133 = math.tanh %132 : vector<2x128xf32>
    %134 = vector.extract_strided_slice %119 {offsets = [0, 384], sizes = [2, 128], strides = [1, 1]} : vector<2x512xf32> to vector<2x128xf32>
    %135 = arith.negf %134 : vector<2x128xf32>
    %136 = math.exp %135 : vector<2x128xf32>
    %cst_35 = arith.constant 1.000000e+00 : f32
    %137 = vector.broadcast %cst_35 : f32 to vector<2x128xf32>
    %138 = arith.addf %137, %136 : vector<2x128xf32>
    %139 = arith.divf %137, %138 : vector<2x128xf32>
    %140 = arith.mulf %131, %106 : vector<2x128xf32>
    %141 = arith.mulf %125, %133 : vector<2x128xf32>
    %142 = arith.addf %140, %141 : vector<2x128xf32>
    %143 = math.tanh %142 : vector<2x128xf32>
    %144 = arith.mulf %139, %143 : vector<2x128xf32>
    %145 = arith.truncf %144 : vector<2x128xf32> to vector<2x128xbf16>
    %146 = arith.index_cast %c3_i32 : i32 to index
    %c0_36 = arith.constant 0 : index
    %c0_37 = arith.constant 0 : index
    %147 = vector.load %arg6[%146, %c0_36, %c0_37] : memref<8x2x128xbf16, #tpu.memory_space<vmem>>, vector<1x2x128xbf16>
    %148 = vector.shape_cast %147 : vector<1x2x128xbf16> to vector<2x128xbf16>
    %149 = vector.shape_cast %145 : vector<2x128xbf16> to vector<1x2x128xbf16>
    tpu.vector_store %arg6[%146, %c0_36, %c0_37], %149 {strides = array<i32>} : memref<8x2x128xbf16, #tpu.memory_space<vmem>>, vector<1x2x128xbf16>,
    %c4_i32 = arith.constant 4 : i32
    %150 = arith.index_cast %c4_i32 : i32 to index
    %c0_38 = arith.constant 0 : index
    %c0_39 = arith.constant 0 : index
    %151 = vector.load %arg2[%150, %c0_38, %c0_39] : memref<8x2x512xf32, #tpu.memory_space<vmem>>, vector<1x2x512xf32>
    %152 = vector.shape_cast %151 : vector<1x2x512xf32> to vector<2x512xf32>
    %153 = arith.truncf %144 : vector<2x128xf32> to vector<2x128xbf16>
    %cst_40 = arith.constant dense<0.000000e+00> : vector<2x512xf32>
    %154 = tpu.matmul %153, %3, %cst_40 {dimension_numbers = #tpu.dot_dimension_numbers<[1], [0], [0], [1], [0, 0, 1, 1], [], []>} : vector<2x128xbf16>, vector<128x512xbf16>, vector<2x512xf32> -> vector<2x512xf32>
    %155 = arith.addf %152, %154 : vector<2x512xf32>
    %156 = vector.extract_strided_slice %155 {offsets = [0, 0], sizes = [2, 128], strides = [1, 1]} : vector<2x512xf32> to vector<2x128xf32>
    %157 = arith.negf %156 : vector<2x128xf32>
    %158 = math.exp %157 : vector<2x128xf32>
    %cst_41 = arith.constant 1.000000e+00 : f32
    %159 = vector.broadcast %cst_41 : f32 to vector<2x128xf32>
    %160 = arith.addf %159, %158 : vector<2x128xf32>
    %161 = arith.divf %159, %160 : vector<2x128xf32>
    %162 = vector.extract_strided_slice %155 {offsets = [0, 128], sizes = [2, 128], strides = [1, 1]} : vector<2x512xf32> to vector<2x128xf32>
    %163 = arith.negf %162 : vector<2x128xf32>
    %164 = math.exp %163 : vector<2x128xf32>
    %cst_42 = arith.constant 1.000000e+00 : f32
    %165 = vector.broadcast %cst_42 : f32 to vector<2x128xf32>
    %166 = arith.addf %165, %164 : vector<2x128xf32>
    %167 = arith.divf %165, %166 : vector<2x128xf32>
    %168 = vector.extract_strided_slice %155 {offsets = [0, 256], sizes = [2, 128], strides = [1, 1]} : vector<2x512xf32> to vector<2x128xf32>
    %169 = math.tanh %168 : vector<2x128xf32>
    %170 = vector.extract_strided_slice %155 {offsets = [0, 384], sizes = [2, 128], strides = [1, 1]} : vector<2x512xf32> to vector<2x128xf32>
    %171 = arith.negf %170 : vector<2x128xf32>
    %172 = math.exp %171 : vector<2x128xf32>
    %cst_43 = arith.constant 1.000000e+00 : f32
    %173 = vector.broadcast %cst_43 : f32 to vector<2x128xf32>
    %174 = arith.addf %173, %172 : vector<2x128xf32>
    %175 = arith.divf %173, %174 : vector<2x128xf32>
    %176 = arith.mulf %167, %142 : vector<2x128xf32>
    %177 = arith.mulf %161, %169 : vector<2x128xf32>
    %178 = arith.addf %176, %177 : vector<2x128xf32>
    %179 = math.tanh %178 : vector<2x128xf32>
    %180 = arith.mulf %175, %179 : vector<2x128xf32>
    %181 = arith.truncf %180 : vector<2x128xf32> to vector<2x128xbf16>
    %182 = arith.index_cast %c4_i32 : i32 to index
    %c0_44 = arith.constant 0 : index
    %c0_45 = arith.constant 0 : index
    %183 = vector.load %arg6[%182, %c0_44, %c0_45] : memref<8x2x128xbf16, #tpu.memory_space<vmem>>, vector<1x2x128xbf16>
    %184 = vector.shape_cast %183 : vector<1x2x128xbf16> to vector<2x128xbf16>
    %185 = vector.shape_cast %181 : vector<2x128xbf16> to vector<1x2x128xbf16>
    tpu.vector_store %arg6[%182, %c0_44, %c0_45], %185 {strides = array<i32>} : memref<8x2x128xbf16, #tpu.memory_space<vmem>>, vector<1x2x128xbf16>,
    %c5_i32 = arith.constant 5 : i32
    %186 = arith.index_cast %c5_i32 : i32 to index
    %c0_46 = arith.constant 0 : index
    %c0_47 = arith.constant 0 : index
    %187 = vector.load %arg2[%186, %c0_46, %c0_47] : memref<8x2x512xf32, #tpu.memory_space<vmem>>, vector<1x2x512xf32>
    %188 = vector.shape_cast %187 : vector<1x2x512xf32> to vector<2x512xf32>
    %189 = arith.truncf %180 : vector<2x128xf32> to vector<2x128xbf16>
    %cst_48 = arith.constant dense<0.000000e+00> : vector<2x512xf32>
    %190 = tpu.matmul %189, %3, %cst_48 {dimension_numbers = #tpu.dot_dimension_numbers<[1], [0], [0], [1], [0, 0, 1, 1], [], []>} : vector<2x128xbf16>, vector<128x512xbf16>, vector<2x512xf32> -> vector<2x512xf32>
    %191 = arith.addf %188, %190 : vector<2x512xf32>
    %192 = vector.extract_strided_slice %191 {offsets = [0, 0], sizes = [2, 128], strides = [1, 1]} : vector<2x512xf32> to vector<2x128xf32>
    %193 = arith.negf %192 : vector<2x128xf32>
    %194 = math.exp %193 : vector<2x128xf32>
    %cst_49 = arith.constant 1.000000e+00 : f32
    %195 = vector.broadcast %cst_49 : f32 to vector<2x128xf32>
    %196 = arith.addf %195, %194 : vector<2x128xf32>
    %197 = arith.divf %195, %196 : vector<2x128xf32>
    %198 = vector.extract_strided_slice %191 {offsets = [0, 128], sizes = [2, 128], strides = [1, 1]} : vector<2x512xf32> to vector<2x128xf32>
    %199 = arith.negf %198 : vector<2x128xf32>
    %200 = math.exp %199 : vector<2x128xf32>
    %cst_50 = arith.constant 1.000000e+00 : f32
    %201 = vector.broadcast %cst_50 : f32 to vector<2x128xf32>
    %202 = arith.addf %201, %200 : vector<2x128xf32>
    %203 = arith.divf %201, %202 : vector<2x128xf32>
    %204 = vector.extract_strided_slice %191 {offsets = [0, 256], sizes = [2, 128], strides = [1, 1]} : vector<2x512xf32> to vector<2x128xf32>
    %205 = math.tanh %204 : vector<2x128xf32>
    %206 = vector.extract_strided_slice %191 {offsets = [0, 384], sizes = [2, 128], strides = [1, 1]} : vector<2x512xf32> to vector<2x128xf32>
    %207 = arith.negf %206 : vector<2x128xf32>
    %208 = math.exp %207 : vector<2x128xf32>
    %cst_51 = arith.constant 1.000000e+00 : f32
    %209 = vector.broadcast %cst_51 : f32 to vector<2x128xf32>
    %210 = arith.addf %209, %208 : vector<2x128xf32>
    %211 = arith.divf %209, %210 : vector<2x128xf32>
    %212 = arith.mulf %203, %178 : vector<2x128xf32>
    %213 = arith.mulf %197, %205 : vector<2x128xf32>
    %214 = arith.addf %212, %213 : vector<2x128xf32>
    %215 = math.tanh %214 : vector<2x128xf32>
    %216 = arith.mulf %211, %215 : vector<2x128xf32>
    %217 = arith.truncf %216 : vector<2x128xf32> to vector<2x128xbf16>
    %218 = arith.index_cast %c5_i32 : i32 to index
    %c0_52 = arith.constant 0 : index
    %c0_53 = arith.constant 0 : index
    %219 = vector.load %arg6[%218, %c0_52, %c0_53] : memref<8x2x128xbf16, #tpu.memory_space<vmem>>, vector<1x2x128xbf16>
    %220 = vector.shape_cast %219 : vector<1x2x128xbf16> to vector<2x128xbf16>
    %221 = vector.shape_cast %217 : vector<2x128xbf16> to vector<1x2x128xbf16>
    tpu.vector_store %arg6[%218, %c0_52, %c0_53], %221 {strides = array<i32>} : memref<8x2x128xbf16, #tpu.memory_space<vmem>>, vector<1x2x128xbf16>,
    %c6_i32 = arith.constant 6 : i32
    %222 = arith.index_cast %c6_i32 : i32 to index
    %c0_54 = arith.constant 0 : index
    %c0_55 = arith.constant 0 : index
    %223 = vector.load %arg2[%222, %c0_54, %c0_55] : memref<8x2x512xf32, #tpu.memory_space<vmem>>, vector<1x2x512xf32>
    %224 = vector.shape_cast %223 : vector<1x2x512xf32> to vector<2x512xf32>
    %225 = arith.truncf %216 : vector<2x128xf32> to vector<2x128xbf16>
    %cst_56 = arith.constant dense<0.000000e+00> : vector<2x512xf32>
    %226 = tpu.matmul %225, %3, %cst_56 {dimension_numbers = #tpu.dot_dimension_numbers<[1], [0], [0], [1], [0, 0, 1, 1], [], []>} : vector<2x128xbf16>, vector<128x512xbf16>, vector<2x512xf32> -> vector<2x512xf32>
    %227 = arith.addf %224, %226 : vector<2x512xf32>
    %228 = vector.extract_strided_slice %227 {offsets = [0, 0], sizes = [2, 128], strides = [1, 1]} : vector<2x512xf32> to vector<2x128xf32>
    %229 = arith.negf %228 : vector<2x128xf32>
    %230 = math.exp %229 : vector<2x128xf32>
    %cst_57 = arith.constant 1.000000e+00 : f32
    %231 = vector.broadcast %cst_57 : f32 to vector<2x128xf32>
    %232 = arith.addf %231, %230 : vector<2x128xf32>
    %233 = arith.divf %231, %232 : vector<2x128xf32>
    %234 = vector.extract_strided_slice %227 {offsets = [0, 128], sizes = [2, 128], strides = [1, 1]} : vector<2x512xf32> to vector<2x128xf32>
    %235 = arith.negf %234 : vector<2x128xf32>
    %236 = math.exp %235 : vector<2x128xf32>
    %cst_58 = arith.constant 1.000000e+00 : f32
    %237 = vector.broadcast %cst_58 : f32 to vector<2x128xf32>
    %238 = arith.addf %237, %236 : vector<2x128xf32>
    %239 = arith.divf %237, %238 : vector<2x128xf32>
    %240 = vector.extract_strided_slice %227 {offsets = [0, 256], sizes = [2, 128], strides = [1, 1]} : vector<2x512xf32> to vector<2x128xf32>
    %241 = math.tanh %240 : vector<2x128xf32>
    %242 = vector.extract_strided_slice %227 {offsets = [0, 384], sizes = [2, 128], strides = [1, 1]} : vector<2x512xf32> to vector<2x128xf32>
    %243 = arith.negf %242 : vector<2x128xf32>
    %244 = math.exp %243 : vector<2x128xf32>
    %cst_59 = arith.constant 1.000000e+00 : f32
    %245 = vector.broadcast %cst_59 : f32 to vector<2x128xf32>
    %246 = arith.addf %245, %244 : vector<2x128xf32>
    %247 = arith.divf %245, %246 : vector<2x128xf32>
    %248 = arith.mulf %239, %214 : vector<2x128xf32>
    %249 = arith.mulf %233, %241 : vector<2x128xf32>
    %250 = arith.addf %248, %249 : vector<2x128xf32>
    %251 = math.tanh %250 : vector<2x128xf32>
    %252 = arith.mulf %247, %251 : vector<2x128xf32>
    %253 = arith.truncf %252 : vector<2x128xf32> to vector<2x128xbf16>
    %254 = arith.index_cast %c6_i32 : i32 to index
    %c0_60 = arith.constant 0 : index
    %c0_61 = arith.constant 0 : index
    %255 = vector.load %arg6[%254, %c0_60, %c0_61] : memref<8x2x128xbf16, #tpu.memory_space<vmem>>, vector<1x2x128xbf16>
    %256 = vector.shape_cast %255 : vector<1x2x128xbf16> to vector<2x128xbf16>
    %257 = vector.shape_cast %253 : vector<2x128xbf16> to vector<1x2x128xbf16>
    tpu.vector_store %arg6[%254, %c0_60, %c0_61], %257 {strides = array<i32>} : memref<8x2x128xbf16, #tpu.memory_space<vmem>>, vector<1x2x128xbf16>,
    %c7_i32 = arith.constant 7 : i32
    %258 = arith.index_cast %c7_i32 : i32 to index
    %c0_62 = arith.constant 0 : index
    %c0_63 = arith.constant 0 : index
    %259 = vector.load %arg2[%258, %c0_62, %c0_63] : memref<8x2x512xf32, #tpu.memory_space<vmem>>, vector<1x2x512xf32>
    %260 = vector.shape_cast %259 : vector<1x2x512xf32> to vector<2x512xf32>
    %261 = arith.truncf %252 : vector<2x128xf32> to vector<2x128xbf16>
    %cst_64 = arith.constant dense<0.000000e+00> : vector<2x512xf32>
    %262 = tpu.matmul %261, %3, %cst_64 {dimension_numbers = #tpu.dot_dimension_numbers<[1], [0], [0], [1], [0, 0, 1, 1], [], []>} : vector<2x128xbf16>, vector<128x512xbf16>, vector<2x512xf32> -> vector<2x512xf32>
    %263 = arith.addf %260, %262 : vector<2x512xf32>
    %264 = vector.extract_strided_slice %263 {offsets = [0, 0], sizes = [2, 128], strides = [1, 1]} : vector<2x512xf32> to vector<2x128xf32>
    %265 = arith.negf %264 : vector<2x128xf32>
    %266 = math.exp %265 : vector<2x128xf32>
    %cst_65 = arith.constant 1.000000e+00 : f32
    %267 = vector.broadcast %cst_65 : f32 to vector<2x128xf32>
    %268 = arith.addf %267, %266 : vector<2x128xf32>
    %269 = arith.divf %267, %268 : vector<2x128xf32>
    %270 = vector.extract_strided_slice %263 {offsets = [0, 128], sizes = [2, 128], strides = [1, 1]} : vector<2x512xf32> to vector<2x128xf32>
    %271 = arith.negf %270 : vector<2x128xf32>
    %272 = math.exp %271 : vector<2x128xf32>
    %cst_66 = arith.constant 1.000000e+00 : f32
    %273 = vector.broadcast %cst_66 : f32 to vector<2x128xf32>
    %274 = arith.addf %273, %272 : vector<2x128xf32>
    %275 = arith.divf %273, %274 : vector<2x128xf32>
    %276 = vector.extract_strided_slice %263 {offsets = [0, 256], sizes = [2, 128], strides = [1, 1]} : vector<2x512xf32> to vector<2x128xf32>
    %277 = math.tanh %276 : vector<2x128xf32>
    %278 = vector.extract_strided_slice %263 {offsets = [0, 384], sizes = [2, 128], strides = [1, 1]} : vector<2x512xf32> to vector<2x128xf32>
    %279 = arith.negf %278 : vector<2x128xf32>
    %280 = math.exp %279 : vector<2x128xf32>
    %cst_67 = arith.constant 1.000000e+00 : f32
    %281 = vector.broadcast %cst_67 : f32 to vector<2x128xf32>
    %282 = arith.addf %281, %280 : vector<2x128xf32>
    %283 = arith.divf %281, %282 : vector<2x128xf32>
    %284 = arith.mulf %275, %250 : vector<2x128xf32>
    %285 = arith.mulf %269, %277 : vector<2x128xf32>
    %286 = arith.addf %284, %285 : vector<2x128xf32>
    %287 = math.tanh %286 : vector<2x128xf32>
    %288 = arith.mulf %283, %287 : vector<2x128xf32>
    %289 = arith.truncf %288 : vector<2x128xf32> to vector<2x128xbf16>
    %290 = arith.index_cast %c7_i32 : i32 to index
    %c0_68 = arith.constant 0 : index
    %c0_69 = arith.constant 0 : index
    %291 = vector.load %arg6[%290, %c0_68, %c0_69] : memref<8x2x128xbf16, #tpu.memory_space<vmem>>, vector<1x2x128xbf16>
    %292 = vector.shape_cast %291 : vector<1x2x128xbf16> to vector<2x128xbf16>
    %293 = vector.shape_cast %289 : vector<2x128xbf16> to vector<1x2x128xbf16>
    tpu.vector_store %arg6[%290, %c0_68, %c0_69], %293 {strides = array<i32>} : memref<8x2x128xbf16, #tpu.memory_space<vmem>>, vector<1x2x128xbf16>,
    %c8_i32 = arith.constant 8 : i32
    %c0_70 = arith.constant 0 : index
    %c0_71 = arith.constant 0 : index
    %294 = vector.load %arg9[%c0_70, %c0_71] : memref<2x128xf32, #tpu.memory_space<vmem>>, vector<2x128xf32>
    tpu.vector_store %arg9[%c0_70, %c0_71], %288 {strides = array<i32>} : memref<2x128xf32, #tpu.memory_space<vmem>>, vector<2x128xf32>,
    %c0_72 = arith.constant 0 : index
    %c0_73 = arith.constant 0 : index
    %295 = vector.load %arg10[%c0_72, %c0_73] : memref<2x128xf32, #tpu.memory_space<vmem>>, vector<2x128xf32>
    tpu.vector_store %arg10[%c0_72, %c0_73], %286 {strides = array<i32>} : memref<2x128xf32, #tpu.memory_space<vmem>>, vector<2x128xf32>,
    %c0_i32_74 = arith.constant 0 : i32
    %296 = arith.cmpi eq, %arg1, %c0_i32_74 : i32
    %297 = arith.extui %296 : i1 to i32
    %c0_i32_75 = arith.constant 0 : i32
    %298 = arith.cmpi ne, %297, %c0_i32_75 : i32
    scf.if %298 {
      %c0_76 = arith.constant 0 : index
      %c0_77 = arith.constant 0 : index
      %299 = vector.load %arg7[%c0_76, %c0_77] : memref<2x128xf32, #tpu.memory_space<vmem>>, vector<2x128xf32>
      tpu.vector_store %arg7[%c0_76, %c0_77], %288 {strides = array<i32>} : memref<2x128xf32, #tpu.memory_space<vmem>>, vector<2x128xf32>,
      %c0_78 = arith.constant 0 : index
      %c0_79 = arith.constant 0 : index
      %300 = vector.load %arg8[%c0_78, %c0_79] : memref<2x128xf32, #tpu.memory_space<vmem>>, vector<2x128xf32>
      tpu.vector_store %arg8[%c0_78, %c0_79], %286 {strides = array<i32>} : memref<2x128xf32, #tpu.memory_space<vmem>>, vector<2x128xf32>,
    } else {
    }
    return
  }
  func.func @transform_0(%arg0: i32, %arg1: i32) -> (i32, i32, i32) {
    %c0_i32 = arith.constant 0 : i32
    %c0_i32_0 = arith.constant 0 : i32
    return %arg1, %arg0, %c0_i32 : i32, i32, i32
  }
  func.func @transform_1(%arg0: i32, %arg1: i32) -> (i32, i32) {
    %c0_i32 = arith.constant 0 : i32
    %c0_i32_0 = arith.constant 0 : i32
    return %arg0, %c0_i32 : i32, i32
  }
  func.func @transform_2(%arg0: i32, %arg1: i32) -> (i32, i32) {
    %c0_i32 = arith.constant 0 : i32
    %c0_i32_0 = arith.constant 0 : i32
    return %arg0, %c0_i32 : i32, i32
  }
  func.func @transform_3(%arg0: i32, %arg1: i32) -> (i32, i32) {
    %c0_i32 = arith.constant 0 : i32
    %c0_i32_0 = arith.constant 0 : i32
    %c0_i32_1 = arith.constant 0 : i32
    return %c0_i32, %c0_i32_0 : i32, i32
  }
  func.func @transform_4(%arg0: i32, %arg1: i32) -> (i32, i32, i32) {
    %c0_i32 = arith.constant 0 : i32
    %c0_i32_0 = arith.constant 0 : i32
    return %arg1, %arg0, %c0_i32 : i32, i32, i32
  }
  func.func @transform_5(%arg0: i32, %arg1: i32) -> (i32, i32) {
    %c0_i32 = arith.constant 0 : i32
    %c0_i32_0 = arith.constant 0 : i32
    return %arg0, %c0_i32 : i32, i32
  }
  func.func @transform_6(%arg0: i32, %arg1: i32) -> (i32, i32) {
    %c0_i32 = arith.constant 0 : i32
    %c0_i32_0 = arith.constant 0 : i32
    return %arg0, %c0_i32 : i32, i32
  }
}

module attributes {stable_mosaic.version = 11 : i64} {
  func.func @_matmul_bias_kernel(%arg0: i32, %arg1: i32, %arg2: i32, %arg3: memref<16x128xbf16, #tpu.memory_space<vmem>>, %arg4: memref<128x512xbf16, #tpu.memory_space<vmem>>, %arg5: memref<1x512xf32, #tpu.memory_space<vmem>>, %arg6: memref<16x512xf32, #tpu.memory_space<vmem>>, %arg7: memref<16x512xf32, #tpu.memory_space<vmem>>) attributes {dimension_semantics = [#tpu.dimension_semantics<parallel>, #tpu.dimension_semantics<parallel>, #tpu.dimension_semantics<arbitrary>], iteration_bounds = array<i64: 1, 1, 1>, scalar_prefetch = 0 : i64, scratch_operands = 1 : i64, tpu.core_type = #tpu.core_type<tc>, window_params = [{transform_indices = @transform_0, window_bounds = array<i64: 16, 128>}, {transform_indices = @transform_1, window_bounds = array<i64: 128, 512>}, {transform_indices = @transform_2, window_bounds = array<i64: 1, 512>}, {transform_indices = @transform_3, window_bounds = array<i64: 16, 512>}]} {
    %c0_i32 = arith.constant 0 : i32
    %0 = arith.cmpi eq, %arg2, %c0_i32 : i32
    %1 = arith.extui %0 : i1 to i32
    %c0_i32_0 = arith.constant 0 : i32
    %2 = arith.cmpi ne, %1, %c0_i32_0 : i32
    scf.if %2 {
      %cst_10 = arith.constant 0.000000e+00 : f32
      %12 = vector.broadcast %cst_10 : f32 to vector<16x512xf32>
      %c0_11 = arith.constant 0 : index
      %c0_12 = arith.constant 0 : index
      %13 = vector.load %arg7[%c0_11, %c0_12] : memref<16x512xf32, #tpu.memory_space<vmem>>, vector<16x512xf32>
      tpu.vector_store %arg7[%c0_11, %c0_12], %12 {strides = array<i32>} : memref<16x512xf32, #tpu.memory_space<vmem>>, vector<16x512xf32>,
    } else {
    }
    %c0 = arith.constant 0 : index
    %c0_1 = arith.constant 0 : index
    %3 = vector.load %arg7[%c0, %c0_1] : memref<16x512xf32, #tpu.memory_space<vmem>>, vector<16x512xf32>
    %c0_2 = arith.constant 0 : index
    %c0_3 = arith.constant 0 : index
    %4 = vector.load %arg3[%c0_2, %c0_3] : memref<16x128xbf16, #tpu.memory_space<vmem>>, vector<16x128xbf16>
    %c0_4 = arith.constant 0 : index
    %c0_5 = arith.constant 0 : index
    %5 = vector.load %arg4[%c0_4, %c0_5] : memref<128x512xbf16, #tpu.memory_space<vmem>>, vector<128x512xbf16>
    %cst = arith.constant dense<0.000000e+00> : vector<16x512xf32>
    %6 = tpu.matmul %4, %5, %cst {dimension_numbers = #tpu.dot_dimension_numbers<[1], [0], [0], [1], [0, 0, 1, 1], [], []>} : vector<16x128xbf16>, vector<128x512xbf16>, vector<16x512xf32> -> vector<16x512xf32>
    %7 = arith.addf %3, %6 : vector<16x512xf32>
    %c0_6 = arith.constant 0 : index
    %c0_7 = arith.constant 0 : index
    %8 = vector.load %arg7[%c0_6, %c0_7] : memref<16x512xf32, #tpu.memory_space<vmem>>, vector<16x512xf32>
    tpu.vector_store %arg7[%c0_6, %c0_7], %7 {strides = array<i32>} : memref<16x512xf32, #tpu.memory_space<vmem>>, vector<16x512xf32>,
    %c0_i32_8 = arith.constant 0 : i32
    %9 = arith.cmpi eq, %arg2, %c0_i32_8 : i32
    %10 = arith.extui %9 : i1 to i32
    %c0_i32_9 = arith.constant 0 : i32
    %11 = arith.cmpi ne, %10, %c0_i32_9 : i32
    scf.if %11 {
      %c0_10 = arith.constant 0 : index
      %c0_11 = arith.constant 0 : index
      %12 = vector.load %arg7[%c0_10, %c0_11] : memref<16x512xf32, #tpu.memory_space<vmem>>, vector<16x512xf32>
      %c0_12 = arith.constant 0 : index
      %c0_13 = arith.constant 0 : index
      %13 = vector.load %arg5[%c0_12, %c0_13] : memref<1x512xf32, #tpu.memory_space<vmem>>, vector<1x512xf32>
      %14 = vector.broadcast %13 : vector<1x512xf32> to vector<16x512xf32>
      %15 = arith.addf %12, %14 : vector<16x512xf32>
      %c0_14 = arith.constant 0 : index
      %c0_15 = arith.constant 0 : index
      %16 = vector.load %arg6[%c0_14, %c0_15] : memref<16x512xf32, #tpu.memory_space<vmem>>, vector<16x512xf32>
      tpu.vector_store %arg6[%c0_14, %c0_15], %15 {strides = array<i32>} : memref<16x512xf32, #tpu.memory_space<vmem>>, vector<16x512xf32>,
    } else {
    }
    return
  }
  func.func @transform_0(%arg0: i32, %arg1: i32, %arg2: i32) -> (i32, i32) {
    %c0_i32 = arith.constant 0 : i32
    return %arg0, %arg2 : i32, i32
  }
  func.func @transform_1(%arg0: i32, %arg1: i32, %arg2: i32) -> (i32, i32) {
    %c0_i32 = arith.constant 0 : i32
    return %arg2, %arg1 : i32, i32
  }
  func.func @transform_2(%arg0: i32, %arg1: i32, %arg2: i32) -> (i32, i32) {
    %c0_i32 = arith.constant 0 : i32
    %c0_i32_0 = arith.constant 0 : i32
    return %c0_i32, %arg1 : i32, i32
  }
  func.func @transform_3(%arg0: i32, %arg1: i32, %arg2: i32) -> (i32, i32) {
    %c0_i32 = arith.constant 0 : i32
    return %arg0, %arg1 : i32, i32
  }
}

module attributes {stable_mosaic.version = 11 : i64} {
  func.func @_lstm_recur_kernel(%arg0: i32, %arg1: i32, %arg2: memref<8x2x512xf32, #tpu.memory_space<vmem>>, %arg3: memref<2x128xf32, #tpu.memory_space<vmem>>, %arg4: memref<2x128xf32, #tpu.memory_space<vmem>>, %arg5: memref<128x512xbf16, #tpu.memory_space<vmem>>, %arg6: memref<8x2x128xbf16, #tpu.memory_space<vmem>>, %arg7: memref<2x128xf32, #tpu.memory_space<vmem>>, %arg8: memref<2x128xf32, #tpu.memory_space<vmem>>, %arg9: memref<2x128xf32, #tpu.memory_space<vmem>>, %arg10: memref<2x128xf32, #tpu.memory_space<vmem>>) attributes {dimension_semantics = [#tpu.dimension_semantics<parallel>, #tpu.dimension_semantics<arbitrary>], iteration_bounds = array<i64: 1, 1>, scalar_prefetch = 0 : i64, scratch_operands = 2 : i64, tpu.core_type = #tpu.core_type<tc>, window_params = [{transform_indices = @transform_0, window_bounds = array<i64: 8, 2, 512>}, {transform_indices = @transform_1, window_bounds = array<i64: 2, 128>}, {transform_indices = @transform_2, window_bounds = array<i64: 2, 128>}, {pipeline_mode = #tpu.pipeline_mode<synchronous>, transform_indices = @transform_3, window_bounds = array<i64: 128, 512>}, {transform_indices = @transform_4, window_bounds = array<i64: 8, 2, 128>}, {transform_indices = @transform_5, window_bounds = array<i64: 2, 128>}, {transform_indices = @transform_6, window_bounds = array<i64: 2, 128>}]} {
    %c0_i32 = arith.constant 0 : i32
    %0 = arith.cmpi eq, %arg1, %c0_i32 : i32
    %1 = arith.extui %0 : i1 to i32
    %c0_i32_0 = arith.constant 0 : i32
    %2 = arith.cmpi ne, %1, %c0_i32_0 : i32
    scf.if %2 {
      %c0_76 = arith.constant 0 : index
      %c0_77 = arith.constant 0 : index
      %299 = vector.load %arg3[%c0_76, %c0_77] : memref<2x128xf32, #tpu.memory_space<vmem>>, vector<2x128xf32>
      %c0_78 = arith.constant 0 : index
      %c0_79 = arith.constant 0 : index
      %300 = vector.load %arg9[%c0_78, %c0_79] : memref<2x128xf32, #tpu.memory_space<vmem>>, vector<2x128xf32>
      tpu.vector_store %arg9[%c0_78, %c0_79], %299 {strides = array<i32>} : memref<2x128xf32, #tpu.memory_space<vmem>>, vector<2x128xf32>,
      %c0_80 = arith.constant 0 : index
      %c0_81 = arith.constant 0 : index
      %301 = vector.load %arg4[%c0_80, %c0_81] : memref<2x128xf32, #tpu.memory_space<vmem>>, vector<2x128xf32>
      %c0_82 = arith.constant 0 : index
      %c0_83 = arith.constant 0 : index
      %302 = vector.load %arg10[%c0_82, %c0_83] : memref<2x128xf32, #tpu.memory_space<vmem>>, vector<2x128xf32>
      tpu.vector_store %arg10[%c0_82, %c0_83], %301 {strides = array<i32>} : memref<2x128xf32, #tpu.memory_space<vmem>>, vector<2x128xf32>,
    } else {
    }
    %c0 = arith.constant 0 : index
    %c0_1 = arith.constant 0 : index
    %3 = vector.load %arg5[%c0, %c0_1] : memref<128x512xbf16, #tpu.memory_space<vmem>>, vector<128x512xbf16>
    %c0_2 = arith.constant 0 : index
    %c0_3 = arith.constant 0 : index
    %4 = vector.load %arg9[%c0_2, %c0_3] : memref<2x128xf32, #tpu.memory_space<vmem>>, vector<2x128xf32>
    %c0_4 = arith.constant 0 : index
    %c0_5 = arith.constant 0 : index
    %5 = vector.load %arg10[%c0_4, %c0_5] : memref<2x128xf32, #tpu.memory_space<vmem>>, vector<2x128xf32>
    %c0_i32_6 = arith.constant 0 : i32
    %6 = arith.index_cast %c0_i32_6 : i32 to index
    %c0_7 = arith.constant 0 : index
    %c0_8 = arith.constant 0 : index
    %7 = vector.load %arg2[%6, %c0_7, %c0_8] : memref<8x2x512xf32, #tpu.memory_space<vmem>>, vector<1x2x512xf32>
    %8 = vector.shape_cast %7 : vector<1x2x512xf32> to vector<2x512xf32>
    %9 = arith.truncf %4 : vector<2x128xf32> to vector<2x128xbf16>
    %cst = arith.constant dense<0.000000e+00> : vector<2x512xf32>
    %10 = tpu.matmul %9, %3, %cst {dimension_numbers = #tpu.dot_dimension_numbers<[1], [0], [0], [1], [0, 0, 1, 1], [], []>} : vector<2x128xbf16>, vector<128x512xbf16>, vector<2x512xf32> -> vector<2x512xf32>
    %11 = arith.addf %8, %10 : vector<2x512xf32>
    %12 = vector.extract_strided_slice %11 {offsets = [0, 0], sizes = [2, 128], strides = [1, 1]} : vector<2x512xf32> to vector<2x128xf32>
    %13 = arith.negf %12 : vector<2x128xf32>
    %14 = math.exp %13 : vector<2x128xf32>
    %cst_9 = arith.constant 1.000000e+00 : f32
    %15 = vector.broadcast %cst_9 : f32 to vector<2x128xf32>
    %16 = arith.addf %15, %14 : vector<2x128xf32>
    %17 = arith.divf %15, %16 : vector<2x128xf32>
    %18 = vector.extract_strided_slice %11 {offsets = [0, 128], sizes = [2, 128], strides = [1, 1]} : vector<2x512xf32> to vector<2x128xf32>
    %19 = arith.negf %18 : vector<2x128xf32>
    %20 = math.exp %19 : vector<2x128xf32>
    %cst_10 = arith.constant 1.000000e+00 : f32
    %21 = vector.broadcast %cst_10 : f32 to vector<2x128xf32>
    %22 = arith.addf %21, %20 : vector<2x128xf32>
    %23 = arith.divf %21, %22 : vector<2x128xf32>
    %24 = vector.extract_strided_slice %11 {offsets = [0, 256], sizes = [2, 128], strides = [1, 1]} : vector<2x512xf32> to vector<2x128xf32>
    %25 = math.tanh %24 : vector<2x128xf32>
    %26 = vector.extract_strided_slice %11 {offsets = [0, 384], sizes = [2, 128], strides = [1, 1]} : vector<2x512xf32> to vector<2x128xf32>
    %27 = arith.negf %26 : vector<2x128xf32>
    %28 = math.exp %27 : vector<2x128xf32>
    %cst_11 = arith.constant 1.000000e+00 : f32
    %29 = vector.broadcast %cst_11 : f32 to vector<2x128xf32>
    %30 = arith.addf %29, %28 : vector<2x128xf32>
    %31 = arith.divf %29, %30 : vector<2x128xf32>
    %32 = arith.mulf %23, %5 : vector<2x128xf32>
    %33 = arith.mulf %17, %25 : vector<2x128xf32>
    %34 = arith.addf %32, %33 : vector<2x128xf32>
    %35 = math.tanh %34 : vector<2x128xf32>
    %36 = arith.mulf %31, %35 : vector<2x128xf32>
    %37 = arith.truncf %36 : vector<2x128xf32> to vector<2x128xbf16>
    %38 = arith.index_cast %c0_i32_6 : i32 to index
    %c0_12 = arith.constant 0 : index
    %c0_13 = arith.constant 0 : index
    %39 = vector.load %arg6[%38, %c0_12, %c0_13] : memref<8x2x128xbf16, #tpu.memory_space<vmem>>, vector<1x2x128xbf16>
    %40 = vector.shape_cast %39 : vector<1x2x128xbf16> to vector<2x128xbf16>
    %41 = vector.shape_cast %37 : vector<2x128xbf16> to vector<1x2x128xbf16>
    tpu.vector_store %arg6[%38, %c0_12, %c0_13], %41 {strides = array<i32>} : memref<8x2x128xbf16, #tpu.memory_space<vmem>>, vector<1x2x128xbf16>,
    %c1_i32 = arith.constant 1 : i32
    %42 = arith.index_cast %c1_i32 : i32 to index
    %c0_14 = arith.constant 0 : index
    %c0_15 = arith.constant 0 : index
    %43 = vector.load %arg2[%42, %c0_14, %c0_15] : memref<8x2x512xf32, #tpu.memory_space<vmem>>, vector<1x2x512xf32>
    %44 = vector.shape_cast %43 : vector<1x2x512xf32> to vector<2x512xf32>
    %45 = arith.truncf %36 : vector<2x128xf32> to vector<2x128xbf16>
    %cst_16 = arith.constant dense<0.000000e+00> : vector<2x512xf32>
    %46 = tpu.matmul %45, %3, %cst_16 {dimension_numbers = #tpu.dot_dimension_numbers<[1], [0], [0], [1], [0, 0, 1, 1], [], []>} : vector<2x128xbf16>, vector<128x512xbf16>, vector<2x512xf32> -> vector<2x512xf32>
    %47 = arith.addf %44, %46 : vector<2x512xf32>
    %48 = vector.extract_strided_slice %47 {offsets = [0, 0], sizes = [2, 128], strides = [1, 1]} : vector<2x512xf32> to vector<2x128xf32>
    %49 = arith.negf %48 : vector<2x128xf32>
    %50 = math.exp %49 : vector<2x128xf32>
    %cst_17 = arith.constant 1.000000e+00 : f32
    %51 = vector.broadcast %cst_17 : f32 to vector<2x128xf32>
    %52 = arith.addf %51, %50 : vector<2x128xf32>
    %53 = arith.divf %51, %52 : vector<2x128xf32>
    %54 = vector.extract_strided_slice %47 {offsets = [0, 128], sizes = [2, 128], strides = [1, 1]} : vector<2x512xf32> to vector<2x128xf32>
    %55 = arith.negf %54 : vector<2x128xf32>
    %56 = math.exp %55 : vector<2x128xf32>
    %cst_18 = arith.constant 1.000000e+00 : f32
    %57 = vector.broadcast %cst_18 : f32 to vector<2x128xf32>
    %58 = arith.addf %57, %56 : vector<2x128xf32>
    %59 = arith.divf %57, %58 : vector<2x128xf32>
    %60 = vector.extract_strided_slice %47 {offsets = [0, 256], sizes = [2, 128], strides = [1, 1]} : vector<2x512xf32> to vector<2x128xf32>
    %61 = math.tanh %60 : vector<2x128xf32>
    %62 = vector.extract_strided_slice %47 {offsets = [0, 384], sizes = [2, 128], strides = [1, 1]} : vector<2x512xf32> to vector<2x128xf32>
    %63 = arith.negf %62 : vector<2x128xf32>
    %64 = math.exp %63 : vector<2x128xf32>
    %cst_19 = arith.constant 1.000000e+00 : f32
    %65 = vector.broadcast %cst_19 : f32 to vector<2x128xf32>
    %66 = arith.addf %65, %64 : vector<2x128xf32>
    %67 = arith.divf %65, %66 : vector<2x128xf32>
    %68 = arith.mulf %59, %34 : vector<2x128xf32>
    %69 = arith.mulf %53, %61 : vector<2x128xf32>
    %70 = arith.addf %68, %69 : vector<2x128xf32>
    %71 = math.tanh %70 : vector<2x128xf32>
    %72 = arith.mulf %67, %71 : vector<2x128xf32>
    %73 = arith.truncf %72 : vector<2x128xf32> to vector<2x128xbf16>
    %74 = arith.index_cast %c1_i32 : i32 to index
    %c0_20 = arith.constant 0 : index
    %c0_21 = arith.constant 0 : index
    %75 = vector.load %arg6[%74, %c0_20, %c0_21] : memref<8x2x128xbf16, #tpu.memory_space<vmem>>, vector<1x2x128xbf16>
    %76 = vector.shape_cast %75 : vector<1x2x128xbf16> to vector<2x128xbf16>
    %77 = vector.shape_cast %73 : vector<2x128xbf16> to vector<1x2x128xbf16>
    tpu.vector_store %arg6[%74, %c0_20, %c0_21], %77 {strides = array<i32>} : memref<8x2x128xbf16, #tpu.memory_space<vmem>>, vector<1x2x128xbf16>,
    %c2_i32 = arith.constant 2 : i32
    %78 = arith.index_cast %c2_i32 : i32 to index
    %c0_22 = arith.constant 0 : index
    %c0_23 = arith.constant 0 : index
    %79 = vector.load %arg2[%78, %c0_22, %c0_23] : memref<8x2x512xf32, #tpu.memory_space<vmem>>, vector<1x2x512xf32>
    %80 = vector.shape_cast %79 : vector<1x2x512xf32> to vector<2x512xf32>
    %81 = arith.truncf %72 : vector<2x128xf32> to vector<2x128xbf16>
    %cst_24 = arith.constant dense<0.000000e+00> : vector<2x512xf32>
    %82 = tpu.matmul %81, %3, %cst_24 {dimension_numbers = #tpu.dot_dimension_numbers<[1], [0], [0], [1], [0, 0, 1, 1], [], []>} : vector<2x128xbf16>, vector<128x512xbf16>, vector<2x512xf32> -> vector<2x512xf32>
    %83 = arith.addf %80, %82 : vector<2x512xf32>
    %84 = vector.extract_strided_slice %83 {offsets = [0, 0], sizes = [2, 128], strides = [1, 1]} : vector<2x512xf32> to vector<2x128xf32>
    %85 = arith.negf %84 : vector<2x128xf32>
    %86 = math.exp %85 : vector<2x128xf32>
    %cst_25 = arith.constant 1.000000e+00 : f32
    %87 = vector.broadcast %cst_25 : f32 to vector<2x128xf32>
    %88 = arith.addf %87, %86 : vector<2x128xf32>
    %89 = arith.divf %87, %88 : vector<2x128xf32>
    %90 = vector.extract_strided_slice %83 {offsets = [0, 128], sizes = [2, 128], strides = [1, 1]} : vector<2x512xf32> to vector<2x128xf32>
    %91 = arith.negf %90 : vector<2x128xf32>
    %92 = math.exp %91 : vector<2x128xf32>
    %cst_26 = arith.constant 1.000000e+00 : f32
    %93 = vector.broadcast %cst_26 : f32 to vector<2x128xf32>
    %94 = arith.addf %93, %92 : vector<2x128xf32>
    %95 = arith.divf %93, %94 : vector<2x128xf32>
    %96 = vector.extract_strided_slice %83 {offsets = [0, 256], sizes = [2, 128], strides = [1, 1]} : vector<2x512xf32> to vector<2x128xf32>
    %97 = math.tanh %96 : vector<2x128xf32>
    %98 = vector.extract_strided_slice %83 {offsets = [0, 384], sizes = [2, 128], strides = [1, 1]} : vector<2x512xf32> to vector<2x128xf32>
    %99 = arith.negf %98 : vector<2x128xf32>
    %100 = math.exp %99 : vector<2x128xf32>
    %cst_27 = arith.constant 1.000000e+00 : f32
    %101 = vector.broadcast %cst_27 : f32 to vector<2x128xf32>
    %102 = arith.addf %101, %100 : vector<2x128xf32>
    %103 = arith.divf %101, %102 : vector<2x128xf32>
    %104 = arith.mulf %95, %70 : vector<2x128xf32>
    %105 = arith.mulf %89, %97 : vector<2x128xf32>
    %106 = arith.addf %104, %105 : vector<2x128xf32>
    %107 = math.tanh %106 : vector<2x128xf32>
    %108 = arith.mulf %103, %107 : vector<2x128xf32>
    %109 = arith.truncf %108 : vector<2x128xf32> to vector<2x128xbf16>
    %110 = arith.index_cast %c2_i32 : i32 to index
    %c0_28 = arith.constant 0 : index
    %c0_29 = arith.constant 0 : index
    %111 = vector.load %arg6[%110, %c0_28, %c0_29] : memref<8x2x128xbf16, #tpu.memory_space<vmem>>, vector<1x2x128xbf16>
    %112 = vector.shape_cast %111 : vector<1x2x128xbf16> to vector<2x128xbf16>
    %113 = vector.shape_cast %109 : vector<2x128xbf16> to vector<1x2x128xbf16>
    tpu.vector_store %arg6[%110, %c0_28, %c0_29], %113 {strides = array<i32>} : memref<8x2x128xbf16, #tpu.memory_space<vmem>>, vector<1x2x128xbf16>,
    %c3_i32 = arith.constant 3 : i32
    %114 = arith.index_cast %c3_i32 : i32 to index
    %c0_30 = arith.constant 0 : index
    %c0_31 = arith.constant 0 : index
    %115 = vector.load %arg2[%114, %c0_30, %c0_31] : memref<8x2x512xf32, #tpu.memory_space<vmem>>, vector<1x2x512xf32>
    %116 = vector.shape_cast %115 : vector<1x2x512xf32> to vector<2x512xf32>
    %117 = arith.truncf %108 : vector<2x128xf32> to vector<2x128xbf16>
    %cst_32 = arith.constant dense<0.000000e+00> : vector<2x512xf32>
    %118 = tpu.matmul %117, %3, %cst_32 {dimension_numbers = #tpu.dot_dimension_numbers<[1], [0], [0], [1], [0, 0, 1, 1], [], []>} : vector<2x128xbf16>, vector<128x512xbf16>, vector<2x512xf32> -> vector<2x512xf32>
    %119 = arith.addf %116, %118 : vector<2x512xf32>
    %120 = vector.extract_strided_slice %119 {offsets = [0, 0], sizes = [2, 128], strides = [1, 1]} : vector<2x512xf32> to vector<2x128xf32>
    %121 = arith.negf %120 : vector<2x128xf32>
    %122 = math.exp %121 : vector<2x128xf32>
    %cst_33 = arith.constant 1.000000e+00 : f32
    %123 = vector.broadcast %cst_33 : f32 to vector<2x128xf32>
    %124 = arith.addf %123, %122 : vector<2x128xf32>
    %125 = arith.divf %123, %124 : vector<2x128xf32>
    %126 = vector.extract_strided_slice %119 {offsets = [0, 128], sizes = [2, 128], strides = [1, 1]} : vector<2x512xf32> to vector<2x128xf32>
    %127 = arith.negf %126 : vector<2x128xf32>
    %128 = math.exp %127 : vector<2x128xf32>
    %cst_34 = arith.constant 1.000000e+00 : f32
    %129 = vector.broadcast %cst_34 : f32 to vector<2x128xf32>
    %130 = arith.addf %129, %128 : vector<2x128xf32>
    %131 = arith.divf %129, %130 : vector<2x128xf32>
    %132 = vector.extract_strided_slice %119 {offsets = [0, 256], sizes = [2, 128], strides = [1, 1]} : vector<2x512xf32> to vector<2x128xf32>
    %133 = math.tanh %132 : vector<2x128xf32>
    %134 = vector.extract_strided_slice %119 {offsets = [0, 384], sizes = [2, 128], strides = [1, 1]} : vector<2x512xf32> to vector<2x128xf32>
    %135 = arith.negf %134 : vector<2x128xf32>
    %136 = math.exp %135 : vector<2x128xf32>
    %cst_35 = arith.constant 1.000000e+00 : f32
    %137 = vector.broadcast %cst_35 : f32 to vector<2x128xf32>
    %138 = arith.addf %137, %136 : vector<2x128xf32>
    %139 = arith.divf %137, %138 : vector<2x128xf32>
    %140 = arith.mulf %131, %106 : vector<2x128xf32>
    %141 = arith.mulf %125, %133 : vector<2x128xf32>
    %142 = arith.addf %140, %141 : vector<2x128xf32>
    %143 = math.tanh %142 : vector<2x128xf32>
    %144 = arith.mulf %139, %143 : vector<2x128xf32>
    %145 = arith.truncf %144 : vector<2x128xf32> to vector<2x128xbf16>
    %146 = arith.index_cast %c3_i32 : i32 to index
    %c0_36 = arith.constant 0 : index
    %c0_37 = arith.constant 0 : index
    %147 = vector.load %arg6[%146, %c0_36, %c0_37] : memref<8x2x128xbf16, #tpu.memory_space<vmem>>, vector<1x2x128xbf16>
    %148 = vector.shape_cast %147 : vector<1x2x128xbf16> to vector<2x128xbf16>
    %149 = vector.shape_cast %145 : vector<2x128xbf16> to vector<1x2x128xbf16>
    tpu.vector_store %arg6[%146, %c0_36, %c0_37], %149 {strides = array<i32>} : memref<8x2x128xbf16, #tpu.memory_space<vmem>>, vector<1x2x128xbf16>,
    %c4_i32 = arith.constant 4 : i32
    %150 = arith.index_cast %c4_i32 : i32 to index
    %c0_38 = arith.constant 0 : index
    %c0_39 = arith.constant 0 : index
    %151 = vector.load %arg2[%150, %c0_38, %c0_39] : memref<8x2x512xf32, #tpu.memory_space<vmem>>, vector<1x2x512xf32>
    %152 = vector.shape_cast %151 : vector<1x2x512xf32> to vector<2x512xf32>
    %153 = arith.truncf %144 : vector<2x128xf32> to vector<2x128xbf16>
    %cst_40 = arith.constant dense<0.000000e+00> : vector<2x512xf32>
    %154 = tpu.matmul %153, %3, %cst_40 {dimension_numbers = #tpu.dot_dimension_numbers<[1], [0], [0], [1], [0, 0, 1, 1], [], []>} : vector<2x128xbf16>, vector<128x512xbf16>, vector<2x512xf32> -> vector<2x512xf32>
    %155 = arith.addf %152, %154 : vector<2x512xf32>
    %156 = vector.extract_strided_slice %155 {offsets = [0, 0], sizes = [2, 128], strides = [1, 1]} : vector<2x512xf32> to vector<2x128xf32>
    %157 = arith.negf %156 : vector<2x128xf32>
    %158 = math.exp %157 : vector<2x128xf32>
    %cst_41 = arith.constant 1.000000e+00 : f32
    %159 = vector.broadcast %cst_41 : f32 to vector<2x128xf32>
    %160 = arith.addf %159, %158 : vector<2x128xf32>
    %161 = arith.divf %159, %160 : vector<2x128xf32>
    %162 = vector.extract_strided_slice %155 {offsets = [0, 128], sizes = [2, 128], strides = [1, 1]} : vector<2x512xf32> to vector<2x128xf32>
    %163 = arith.negf %162 : vector<2x128xf32>
    %164 = math.exp %163 : vector<2x128xf32>
    %cst_42 = arith.constant 1.000000e+00 : f32
    %165 = vector.broadcast %cst_42 : f32 to vector<2x128xf32>
    %166 = arith.addf %165, %164 : vector<2x128xf32>
    %167 = arith.divf %165, %166 : vector<2x128xf32>
    %168 = vector.extract_strided_slice %155 {offsets = [0, 256], sizes = [2, 128], strides = [1, 1]} : vector<2x512xf32> to vector<2x128xf32>
    %169 = math.tanh %168 : vector<2x128xf32>
    %170 = vector.extract_strided_slice %155 {offsets = [0, 384], sizes = [2, 128], strides = [1, 1]} : vector<2x512xf32> to vector<2x128xf32>
    %171 = arith.negf %170 : vector<2x128xf32>
    %172 = math.exp %171 : vector<2x128xf32>
    %cst_43 = arith.constant 1.000000e+00 : f32
    %173 = vector.broadcast %cst_43 : f32 to vector<2x128xf32>
    %174 = arith.addf %173, %172 : vector<2x128xf32>
    %175 = arith.divf %173, %174 : vector<2x128xf32>
    %176 = arith.mulf %167, %142 : vector<2x128xf32>
    %177 = arith.mulf %161, %169 : vector<2x128xf32>
    %178 = arith.addf %176, %177 : vector<2x128xf32>
    %179 = math.tanh %178 : vector<2x128xf32>
    %180 = arith.mulf %175, %179 : vector<2x128xf32>
    %181 = arith.truncf %180 : vector<2x128xf32> to vector<2x128xbf16>
    %182 = arith.index_cast %c4_i32 : i32 to index
    %c0_44 = arith.constant 0 : index
    %c0_45 = arith.constant 0 : index
    %183 = vector.load %arg6[%182, %c0_44, %c0_45] : memref<8x2x128xbf16, #tpu.memory_space<vmem>>, vector<1x2x128xbf16>
    %184 = vector.shape_cast %183 : vector<1x2x128xbf16> to vector<2x128xbf16>
    %185 = vector.shape_cast %181 : vector<2x128xbf16> to vector<1x2x128xbf16>
    tpu.vector_store %arg6[%182, %c0_44, %c0_45], %185 {strides = array<i32>} : memref<8x2x128xbf16, #tpu.memory_space<vmem>>, vector<1x2x128xbf16>,
    %c5_i32 = arith.constant 5 : i32
    %186 = arith.index_cast %c5_i32 : i32 to index
    %c0_46 = arith.constant 0 : index
    %c0_47 = arith.constant 0 : index
    %187 = vector.load %arg2[%186, %c0_46, %c0_47] : memref<8x2x512xf32, #tpu.memory_space<vmem>>, vector<1x2x512xf32>
    %188 = vector.shape_cast %187 : vector<1x2x512xf32> to vector<2x512xf32>
    %189 = arith.truncf %180 : vector<2x128xf32> to vector<2x128xbf16>
    %cst_48 = arith.constant dense<0.000000e+00> : vector<2x512xf32>
    %190 = tpu.matmul %189, %3, %cst_48 {dimension_numbers = #tpu.dot_dimension_numbers<[1], [0], [0], [1], [0, 0, 1, 1], [], []>} : vector<2x128xbf16>, vector<128x512xbf16>, vector<2x512xf32> -> vector<2x512xf32>
    %191 = arith.addf %188, %190 : vector<2x512xf32>
    %192 = vector.extract_strided_slice %191 {offsets = [0, 0], sizes = [2, 128], strides = [1, 1]} : vector<2x512xf32> to vector<2x128xf32>
    %193 = arith.negf %192 : vector<2x128xf32>
    %194 = math.exp %193 : vector<2x128xf32>
    %cst_49 = arith.constant 1.000000e+00 : f32
    %195 = vector.broadcast %cst_49 : f32 to vector<2x128xf32>
    %196 = arith.addf %195, %194 : vector<2x128xf32>
    %197 = arith.divf %195, %196 : vector<2x128xf32>
    %198 = vector.extract_strided_slice %191 {offsets = [0, 128], sizes = [2, 128], strides = [1, 1]} : vector<2x512xf32> to vector<2x128xf32>
    %199 = arith.negf %198 : vector<2x128xf32>
    %200 = math.exp %199 : vector<2x128xf32>
    %cst_50 = arith.constant 1.000000e+00 : f32
    %201 = vector.broadcast %cst_50 : f32 to vector<2x128xf32>
    %202 = arith.addf %201, %200 : vector<2x128xf32>
    %203 = arith.divf %201, %202 : vector<2x128xf32>
    %204 = vector.extract_strided_slice %191 {offsets = [0, 256], sizes = [2, 128], strides = [1, 1]} : vector<2x512xf32> to vector<2x128xf32>
    %205 = math.tanh %204 : vector<2x128xf32>
    %206 = vector.extract_strided_slice %191 {offsets = [0, 384], sizes = [2, 128], strides = [1, 1]} : vector<2x512xf32> to vector<2x128xf32>
    %207 = arith.negf %206 : vector<2x128xf32>
    %208 = math.exp %207 : vector<2x128xf32>
    %cst_51 = arith.constant 1.000000e+00 : f32
    %209 = vector.broadcast %cst_51 : f32 to vector<2x128xf32>
    %210 = arith.addf %209, %208 : vector<2x128xf32>
    %211 = arith.divf %209, %210 : vector<2x128xf32>
    %212 = arith.mulf %203, %178 : vector<2x128xf32>
    %213 = arith.mulf %197, %205 : vector<2x128xf32>
    %214 = arith.addf %212, %213 : vector<2x128xf32>
    %215 = math.tanh %214 : vector<2x128xf32>
    %216 = arith.mulf %211, %215 : vector<2x128xf32>
    %217 = arith.truncf %216 : vector<2x128xf32> to vector<2x128xbf16>
    %218 = arith.index_cast %c5_i32 : i32 to index
    %c0_52 = arith.constant 0 : index
    %c0_53 = arith.constant 0 : index
    %219 = vector.load %arg6[%218, %c0_52, %c0_53] : memref<8x2x128xbf16, #tpu.memory_space<vmem>>, vector<1x2x128xbf16>
    %220 = vector.shape_cast %219 : vector<1x2x128xbf16> to vector<2x128xbf16>
    %221 = vector.shape_cast %217 : vector<2x128xbf16> to vector<1x2x128xbf16>
    tpu.vector_store %arg6[%218, %c0_52, %c0_53], %221 {strides = array<i32>} : memref<8x2x128xbf16, #tpu.memory_space<vmem>>, vector<1x2x128xbf16>,
    %c6_i32 = arith.constant 6 : i32
    %222 = arith.index_cast %c6_i32 : i32 to index
    %c0_54 = arith.constant 0 : index
    %c0_55 = arith.constant 0 : index
    %223 = vector.load %arg2[%222, %c0_54, %c0_55] : memref<8x2x512xf32, #tpu.memory_space<vmem>>, vector<1x2x512xf32>
    %224 = vector.shape_cast %223 : vector<1x2x512xf32> to vector<2x512xf32>
    %225 = arith.truncf %216 : vector<2x128xf32> to vector<2x128xbf16>
    %cst_56 = arith.constant dense<0.000000e+00> : vector<2x512xf32>
    %226 = tpu.matmul %225, %3, %cst_56 {dimension_numbers = #tpu.dot_dimension_numbers<[1], [0], [0], [1], [0, 0, 1, 1], [], []>} : vector<2x128xbf16>, vector<128x512xbf16>, vector<2x512xf32> -> vector<2x512xf32>
    %227 = arith.addf %224, %226 : vector<2x512xf32>
    %228 = vector.extract_strided_slice %227 {offsets = [0, 0], sizes = [2, 128], strides = [1, 1]} : vector<2x512xf32> to vector<2x128xf32>
    %229 = arith.negf %228 : vector<2x128xf32>
    %230 = math.exp %229 : vector<2x128xf32>
    %cst_57 = arith.constant 1.000000e+00 : f32
    %231 = vector.broadcast %cst_57 : f32 to vector<2x128xf32>
    %232 = arith.addf %231, %230 : vector<2x128xf32>
    %233 = arith.divf %231, %232 : vector<2x128xf32>
    %234 = vector.extract_strided_slice %227 {offsets = [0, 128], sizes = [2, 128], strides = [1, 1]} : vector<2x512xf32> to vector<2x128xf32>
    %235 = arith.negf %234 : vector<2x128xf32>
    %236 = math.exp %235 : vector<2x128xf32>
    %cst_58 = arith.constant 1.000000e+00 : f32
    %237 = vector.broadcast %cst_58 : f32 to vector<2x128xf32>
    %238 = arith.addf %237, %236 : vector<2x128xf32>
    %239 = arith.divf %237, %238 : vector<2x128xf32>
    %240 = vector.extract_strided_slice %227 {offsets = [0, 256], sizes = [2, 128], strides = [1, 1]} : vector<2x512xf32> to vector<2x128xf32>
    %241 = math.tanh %240 : vector<2x128xf32>
    %242 = vector.extract_strided_slice %227 {offsets = [0, 384], sizes = [2, 128], strides = [1, 1]} : vector<2x512xf32> to vector<2x128xf32>
    %243 = arith.negf %242 : vector<2x128xf32>
    %244 = math.exp %243 : vector<2x128xf32>
    %cst_59 = arith.constant 1.000000e+00 : f32
    %245 = vector.broadcast %cst_59 : f32 to vector<2x128xf32>
    %246 = arith.addf %245, %244 : vector<2x128xf32>
    %247 = arith.divf %245, %246 : vector<2x128xf32>
    %248 = arith.mulf %239, %214 : vector<2x128xf32>
    %249 = arith.mulf %233, %241 : vector<2x128xf32>
    %250 = arith.addf %248, %249 : vector<2x128xf32>
    %251 = math.tanh %250 : vector<2x128xf32>
    %252 = arith.mulf %247, %251 : vector<2x128xf32>
    %253 = arith.truncf %252 : vector<2x128xf32> to vector<2x128xbf16>
    %254 = arith.index_cast %c6_i32 : i32 to index
    %c0_60 = arith.constant 0 : index
    %c0_61 = arith.constant 0 : index
    %255 = vector.load %arg6[%254, %c0_60, %c0_61] : memref<8x2x128xbf16, #tpu.memory_space<vmem>>, vector<1x2x128xbf16>
    %256 = vector.shape_cast %255 : vector<1x2x128xbf16> to vector<2x128xbf16>
    %257 = vector.shape_cast %253 : vector<2x128xbf16> to vector<1x2x128xbf16>
    tpu.vector_store %arg6[%254, %c0_60, %c0_61], %257 {strides = array<i32>} : memref<8x2x128xbf16, #tpu.memory_space<vmem>>, vector<1x2x128xbf16>,
    %c7_i32 = arith.constant 7 : i32
    %258 = arith.index_cast %c7_i32 : i32 to index
    %c0_62 = arith.constant 0 : index
    %c0_63 = arith.constant 0 : index
    %259 = vector.load %arg2[%258, %c0_62, %c0_63] : memref<8x2x512xf32, #tpu.memory_space<vmem>>, vector<1x2x512xf32>
    %260 = vector.shape_cast %259 : vector<1x2x512xf32> to vector<2x512xf32>
    %261 = arith.truncf %252 : vector<2x128xf32> to vector<2x128xbf16>
    %cst_64 = arith.constant dense<0.000000e+00> : vector<2x512xf32>
    %262 = tpu.matmul %261, %3, %cst_64 {dimension_numbers = #tpu.dot_dimension_numbers<[1], [0], [0], [1], [0, 0, 1, 1], [], []>} : vector<2x128xbf16>, vector<128x512xbf16>, vector<2x512xf32> -> vector<2x512xf32>
    %263 = arith.addf %260, %262 : vector<2x512xf32>
    %264 = vector.extract_strided_slice %263 {offsets = [0, 0], sizes = [2, 128], strides = [1, 1]} : vector<2x512xf32> to vector<2x128xf32>
    %265 = arith.negf %264 : vector<2x128xf32>
    %266 = math.exp %265 : vector<2x128xf32>
    %cst_65 = arith.constant 1.000000e+00 : f32
    %267 = vector.broadcast %cst_65 : f32 to vector<2x128xf32>
    %268 = arith.addf %267, %266 : vector<2x128xf32>
    %269 = arith.divf %267, %268 : vector<2x128xf32>
    %270 = vector.extract_strided_slice %263 {offsets = [0, 128], sizes = [2, 128], strides = [1, 1]} : vector<2x512xf32> to vector<2x128xf32>
    %271 = arith.negf %270 : vector<2x128xf32>
    %272 = math.exp %271 : vector<2x128xf32>
    %cst_66 = arith.constant 1.000000e+00 : f32
    %273 = vector.broadcast %cst_66 : f32 to vector<2x128xf32>
    %274 = arith.addf %273, %272 : vector<2x128xf32>
    %275 = arith.divf %273, %274 : vector<2x128xf32>
    %276 = vector.extract_strided_slice %263 {offsets = [0, 256], sizes = [2, 128], strides = [1, 1]} : vector<2x512xf32> to vector<2x128xf32>
    %277 = math.tanh %276 : vector<2x128xf32>
    %278 = vector.extract_strided_slice %263 {offsets = [0, 384], sizes = [2, 128], strides = [1, 1]} : vector<2x512xf32> to vector<2x128xf32>
    %279 = arith.negf %278 : vector<2x128xf32>
    %280 = math.exp %279 : vector<2x128xf32>
    %cst_67 = arith.constant 1.000000e+00 : f32
    %281 = vector.broadcast %cst_67 : f32 to vector<2x128xf32>
    %282 = arith.addf %281, %280 : vector<2x128xf32>
    %283 = arith.divf %281, %282 : vector<2x128xf32>
    %284 = arith.mulf %275, %250 : vector<2x128xf32>
    %285 = arith.mulf %269, %277 : vector<2x128xf32>
    %286 = arith.addf %284, %285 : vector<2x128xf32>
    %287 = math.tanh %286 : vector<2x128xf32>
    %288 = arith.mulf %283, %287 : vector<2x128xf32>
    %289 = arith.truncf %288 : vector<2x128xf32> to vector<2x128xbf16>
    %290 = arith.index_cast %c7_i32 : i32 to index
    %c0_68 = arith.constant 0 : index
    %c0_69 = arith.constant 0 : index
    %291 = vector.load %arg6[%290, %c0_68, %c0_69] : memref<8x2x128xbf16, #tpu.memory_space<vmem>>, vector<1x2x128xbf16>
    %292 = vector.shape_cast %291 : vector<1x2x128xbf16> to vector<2x128xbf16>
    %293 = vector.shape_cast %289 : vector<2x128xbf16> to vector<1x2x128xbf16>
    tpu.vector_store %arg6[%290, %c0_68, %c0_69], %293 {strides = array<i32>} : memref<8x2x128xbf16, #tpu.memory_space<vmem>>, vector<1x2x128xbf16>,
    %c8_i32 = arith.constant 8 : i32
    %c0_70 = arith.constant 0 : index
    %c0_71 = arith.constant 0 : index
    %294 = vector.load %arg9[%c0_70, %c0_71] : memref<2x128xf32, #tpu.memory_space<vmem>>, vector<2x128xf32>
    tpu.vector_store %arg9[%c0_70, %c0_71], %288 {strides = array<i32>} : memref<2x128xf32, #tpu.memory_space<vmem>>, vector<2x128xf32>,
    %c0_72 = arith.constant 0 : index
    %c0_73 = arith.constant 0 : index
    %295 = vector.load %arg10[%c0_72, %c0_73] : memref<2x128xf32, #tpu.memory_space<vmem>>, vector<2x128xf32>
    tpu.vector_store %arg10[%c0_72, %c0_73], %286 {strides = array<i32>} : memref<2x128xf32, #tpu.memory_space<vmem>>, vector<2x128xf32>,
    %c0_i32_74 = arith.constant 0 : i32
    %296 = arith.cmpi eq, %arg1, %c0_i32_74 : i32
    %297 = arith.extui %296 : i1 to i32
    %c0_i32_75 = arith.constant 0 : i32
    %298 = arith.cmpi ne, %297, %c0_i32_75 : i32
    scf.if %298 {
      %c0_76 = arith.constant 0 : index
      %c0_77 = arith.constant 0 : index
      %299 = vector.load %arg7[%c0_76, %c0_77] : memref<2x128xf32, #tpu.memory_space<vmem>>, vector<2x128xf32>
      tpu.vector_store %arg7[%c0_76, %c0_77], %288 {strides = array<i32>} : memref<2x128xf32, #tpu.memory_space<vmem>>, vector<2x128xf32>,
      %c0_78 = arith.constant 0 : index
      %c0_79 = arith.constant 0 : index
      %300 = vector.load %arg8[%c0_78, %c0_79] : memref<2x128xf32, #tpu.memory_space<vmem>>, vector<2x128xf32>
      tpu.vector_store %arg8[%c0_78, %c0_79], %286 {strides = array<i32>} : memref<2x128xf32, #tpu.memory_space<vmem>>, vector<2x128xf32>,
    } else {
    }
    return
  }
  func.func @transform_0(%arg0: i32, %arg1: i32) -> (i32, i32, i32) {
    %c0_i32 = arith.constant 0 : i32
    %c0_i32_0 = arith.constant 0 : i32
    return %arg1, %arg0, %c0_i32 : i32, i32, i32
  }
  func.func @transform_1(%arg0: i32, %arg1: i32) -> (i32, i32) {
    %c0_i32 = arith.constant 0 : i32
    %c0_i32_0 = arith.constant 0 : i32
    return %arg0, %c0_i32 : i32, i32
  }
  func.func @transform_2(%arg0: i32, %arg1: i32) -> (i32, i32) {
    %c0_i32 = arith.constant 0 : i32
    %c0_i32_0 = arith.constant 0 : i32
    return %arg0, %c0_i32 : i32, i32
  }
  func.func @transform_3(%arg0: i32, %arg1: i32) -> (i32, i32) {
    %c0_i32 = arith.constant 0 : i32
    %c0_i32_0 = arith.constant 0 : i32
    %c0_i32_1 = arith.constant 0 : i32
    return %c0_i32, %c0_i32_0 : i32, i32
  }
  func.func @transform_4(%arg0: i32, %arg1: i32) -> (i32, i32, i32) {
    %c0_i32 = arith.constant 0 : i32
    %c0_i32_0 = arith.constant 0 : i32
    return %arg1, %arg0, %c0_i32 : i32, i32, i32
  }
  func.func @transform_5(%arg0: i32, %arg1: i32) -> (i32, i32) {
    %c0_i32 = arith.constant 0 : i32
    %c0_i32_0 = arith.constant 0 : i32
    return %arg0, %c0_i32 : i32, i32
  }
  func.func @transform_6(%arg0: i32, %arg1: i32) -> (i32, i32) {
    %c0_i32 = arith.constant 0 : i32
    %c0_i32_0 = arith.constant 0 : i32
    return %arg0, %c0_i32 : i32, i32
  }
}

module attributes {stable_mosaic.version = 11 : i64} {
  func.func @_lstm_recur_kernel(%arg0: i32, %arg1: i32, %arg2: memref<8x2x512xf32, #tpu.memory_space<vmem>>, %arg3: memref<2x128xf32, #tpu.memory_space<vmem>>, %arg4: memref<2x128xf32, #tpu.memory_space<vmem>>, %arg5: memref<128x512xbf16, #tpu.memory_space<vmem>>, %arg6: memref<8x2x128xbf16, #tpu.memory_space<vmem>>, %arg7: memref<2x128xf32, #tpu.memory_space<vmem>>, %arg8: memref<2x128xf32, #tpu.memory_space<vmem>>, %arg9: memref<2x128xf32, #tpu.memory_space<vmem>>, %arg10: memref<2x128xf32, #tpu.memory_space<vmem>>) attributes {dimension_semantics = [#tpu.dimension_semantics<parallel>, #tpu.dimension_semantics<arbitrary>], iteration_bounds = array<i64: 1, 1>, scalar_prefetch = 0 : i64, scratch_operands = 2 : i64, tpu.core_type = #tpu.core_type<tc>, window_params = [{transform_indices = @transform_0, window_bounds = array<i64: 8, 2, 512>}, {transform_indices = @transform_1, window_bounds = array<i64: 2, 128>}, {transform_indices = @transform_2, window_bounds = array<i64: 2, 128>}, {pipeline_mode = #tpu.pipeline_mode<synchronous>, transform_indices = @transform_3, window_bounds = array<i64: 128, 512>}, {transform_indices = @transform_4, window_bounds = array<i64: 8, 2, 128>}, {transform_indices = @transform_5, window_bounds = array<i64: 2, 128>}, {transform_indices = @transform_6, window_bounds = array<i64: 2, 128>}]} {
    %c0_i32 = arith.constant 0 : i32
    %0 = arith.cmpi eq, %arg1, %c0_i32 : i32
    %1 = arith.extui %0 : i1 to i32
    %c0_i32_0 = arith.constant 0 : i32
    %2 = arith.cmpi ne, %1, %c0_i32_0 : i32
    scf.if %2 {
      %c0_76 = arith.constant 0 : index
      %c0_77 = arith.constant 0 : index
      %299 = vector.load %arg3[%c0_76, %c0_77] : memref<2x128xf32, #tpu.memory_space<vmem>>, vector<2x128xf32>
      %c0_78 = arith.constant 0 : index
      %c0_79 = arith.constant 0 : index
      %300 = vector.load %arg9[%c0_78, %c0_79] : memref<2x128xf32, #tpu.memory_space<vmem>>, vector<2x128xf32>
      tpu.vector_store %arg9[%c0_78, %c0_79], %299 {strides = array<i32>} : memref<2x128xf32, #tpu.memory_space<vmem>>, vector<2x128xf32>,
      %c0_80 = arith.constant 0 : index
      %c0_81 = arith.constant 0 : index
      %301 = vector.load %arg4[%c0_80, %c0_81] : memref<2x128xf32, #tpu.memory_space<vmem>>, vector<2x128xf32>
      %c0_82 = arith.constant 0 : index
      %c0_83 = arith.constant 0 : index
      %302 = vector.load %arg10[%c0_82, %c0_83] : memref<2x128xf32, #tpu.memory_space<vmem>>, vector<2x128xf32>
      tpu.vector_store %arg10[%c0_82, %c0_83], %301 {strides = array<i32>} : memref<2x128xf32, #tpu.memory_space<vmem>>, vector<2x128xf32>,
    } else {
    }
    %c0 = arith.constant 0 : index
    %c0_1 = arith.constant 0 : index
    %3 = vector.load %arg5[%c0, %c0_1] : memref<128x512xbf16, #tpu.memory_space<vmem>>, vector<128x512xbf16>
    %c0_2 = arith.constant 0 : index
    %c0_3 = arith.constant 0 : index
    %4 = vector.load %arg9[%c0_2, %c0_3] : memref<2x128xf32, #tpu.memory_space<vmem>>, vector<2x128xf32>
    %c0_4 = arith.constant 0 : index
    %c0_5 = arith.constant 0 : index
    %5 = vector.load %arg10[%c0_4, %c0_5] : memref<2x128xf32, #tpu.memory_space<vmem>>, vector<2x128xf32>
    %c0_i32_6 = arith.constant 0 : i32
    %6 = arith.index_cast %c0_i32_6 : i32 to index
    %c0_7 = arith.constant 0 : index
    %c0_8 = arith.constant 0 : index
    %7 = vector.load %arg2[%6, %c0_7, %c0_8] : memref<8x2x512xf32, #tpu.memory_space<vmem>>, vector<1x2x512xf32>
    %8 = vector.shape_cast %7 : vector<1x2x512xf32> to vector<2x512xf32>
    %9 = arith.truncf %4 : vector<2x128xf32> to vector<2x128xbf16>
    %cst = arith.constant dense<0.000000e+00> : vector<2x512xf32>
    %10 = tpu.matmul %9, %3, %cst {dimension_numbers = #tpu.dot_dimension_numbers<[1], [0], [0], [1], [0, 0, 1, 1], [], []>} : vector<2x128xbf16>, vector<128x512xbf16>, vector<2x512xf32> -> vector<2x512xf32>
    %11 = arith.addf %8, %10 : vector<2x512xf32>
    %12 = vector.extract_strided_slice %11 {offsets = [0, 0], sizes = [2, 128], strides = [1, 1]} : vector<2x512xf32> to vector<2x128xf32>
    %13 = arith.negf %12 : vector<2x128xf32>
    %14 = math.exp %13 : vector<2x128xf32>
    %cst_9 = arith.constant 1.000000e+00 : f32
    %15 = vector.broadcast %cst_9 : f32 to vector<2x128xf32>
    %16 = arith.addf %15, %14 : vector<2x128xf32>
    %17 = arith.divf %15, %16 : vector<2x128xf32>
    %18 = vector.extract_strided_slice %11 {offsets = [0, 128], sizes = [2, 128], strides = [1, 1]} : vector<2x512xf32> to vector<2x128xf32>
    %19 = arith.negf %18 : vector<2x128xf32>
    %20 = math.exp %19 : vector<2x128xf32>
    %cst_10 = arith.constant 1.000000e+00 : f32
    %21 = vector.broadcast %cst_10 : f32 to vector<2x128xf32>
    %22 = arith.addf %21, %20 : vector<2x128xf32>
    %23 = arith.divf %21, %22 : vector<2x128xf32>
    %24 = vector.extract_strided_slice %11 {offsets = [0, 256], sizes = [2, 128], strides = [1, 1]} : vector<2x512xf32> to vector<2x128xf32>
    %25 = math.tanh %24 : vector<2x128xf32>
    %26 = vector.extract_strided_slice %11 {offsets = [0, 384], sizes = [2, 128], strides = [1, 1]} : vector<2x512xf32> to vector<2x128xf32>
    %27 = arith.negf %26 : vector<2x128xf32>
    %28 = math.exp %27 : vector<2x128xf32>
    %cst_11 = arith.constant 1.000000e+00 : f32
    %29 = vector.broadcast %cst_11 : f32 to vector<2x128xf32>
    %30 = arith.addf %29, %28 : vector<2x128xf32>
    %31 = arith.divf %29, %30 : vector<2x128xf32>
    %32 = arith.mulf %23, %5 : vector<2x128xf32>
    %33 = arith.mulf %17, %25 : vector<2x128xf32>
    %34 = arith.addf %32, %33 : vector<2x128xf32>
    %35 = math.tanh %34 : vector<2x128xf32>
    %36 = arith.mulf %31, %35 : vector<2x128xf32>
    %37 = arith.truncf %36 : vector<2x128xf32> to vector<2x128xbf16>
    %38 = arith.index_cast %c0_i32_6 : i32 to index
    %c0_12 = arith.constant 0 : index
    %c0_13 = arith.constant 0 : index
    %39 = vector.load %arg6[%38, %c0_12, %c0_13] : memref<8x2x128xbf16, #tpu.memory_space<vmem>>, vector<1x2x128xbf16>
    %40 = vector.shape_cast %39 : vector<1x2x128xbf16> to vector<2x128xbf16>
    %41 = vector.shape_cast %37 : vector<2x128xbf16> to vector<1x2x128xbf16>
    tpu.vector_store %arg6[%38, %c0_12, %c0_13], %41 {strides = array<i32>} : memref<8x2x128xbf16, #tpu.memory_space<vmem>>, vector<1x2x128xbf16>,
    %c1_i32 = arith.constant 1 : i32
    %42 = arith.index_cast %c1_i32 : i32 to index
    %c0_14 = arith.constant 0 : index
    %c0_15 = arith.constant 0 : index
    %43 = vector.load %arg2[%42, %c0_14, %c0_15] : memref<8x2x512xf32, #tpu.memory_space<vmem>>, vector<1x2x512xf32>
    %44 = vector.shape_cast %43 : vector<1x2x512xf32> to vector<2x512xf32>
    %45 = arith.truncf %36 : vector<2x128xf32> to vector<2x128xbf16>
    %cst_16 = arith.constant dense<0.000000e+00> : vector<2x512xf32>
    %46 = tpu.matmul %45, %3, %cst_16 {dimension_numbers = #tpu.dot_dimension_numbers<[1], [0], [0], [1], [0, 0, 1, 1], [], []>} : vector<2x128xbf16>, vector<128x512xbf16>, vector<2x512xf32> -> vector<2x512xf32>
    %47 = arith.addf %44, %46 : vector<2x512xf32>
    %48 = vector.extract_strided_slice %47 {offsets = [0, 0], sizes = [2, 128], strides = [1, 1]} : vector<2x512xf32> to vector<2x128xf32>
    %49 = arith.negf %48 : vector<2x128xf32>
    %50 = math.exp %49 : vector<2x128xf32>
    %cst_17 = arith.constant 1.000000e+00 : f32
    %51 = vector.broadcast %cst_17 : f32 to vector<2x128xf32>
    %52 = arith.addf %51, %50 : vector<2x128xf32>
    %53 = arith.divf %51, %52 : vector<2x128xf32>
    %54 = vector.extract_strided_slice %47 {offsets = [0, 128], sizes = [2, 128], strides = [1, 1]} : vector<2x512xf32> to vector<2x128xf32>
    %55 = arith.negf %54 : vector<2x128xf32>
    %56 = math.exp %55 : vector<2x128xf32>
    %cst_18 = arith.constant 1.000000e+00 : f32
    %57 = vector.broadcast %cst_18 : f32 to vector<2x128xf32>
    %58 = arith.addf %57, %56 : vector<2x128xf32>
    %59 = arith.divf %57, %58 : vector<2x128xf32>
    %60 = vector.extract_strided_slice %47 {offsets = [0, 256], sizes = [2, 128], strides = [1, 1]} : vector<2x512xf32> to vector<2x128xf32>
    %61 = math.tanh %60 : vector<2x128xf32>
    %62 = vector.extract_strided_slice %47 {offsets = [0, 384], sizes = [2, 128], strides = [1, 1]} : vector<2x512xf32> to vector<2x128xf32>
    %63 = arith.negf %62 : vector<2x128xf32>
    %64 = math.exp %63 : vector<2x128xf32>
    %cst_19 = arith.constant 1.000000e+00 : f32
    %65 = vector.broadcast %cst_19 : f32 to vector<2x128xf32>
    %66 = arith.addf %65, %64 : vector<2x128xf32>
    %67 = arith.divf %65, %66 : vector<2x128xf32>
    %68 = arith.mulf %59, %34 : vector<2x128xf32>
    %69 = arith.mulf %53, %61 : vector<2x128xf32>
    %70 = arith.addf %68, %69 : vector<2x128xf32>
    %71 = math.tanh %70 : vector<2x128xf32>
    %72 = arith.mulf %67, %71 : vector<2x128xf32>
    %73 = arith.truncf %72 : vector<2x128xf32> to vector<2x128xbf16>
    %74 = arith.index_cast %c1_i32 : i32 to index
    %c0_20 = arith.constant 0 : index
    %c0_21 = arith.constant 0 : index
    %75 = vector.load %arg6[%74, %c0_20, %c0_21] : memref<8x2x128xbf16, #tpu.memory_space<vmem>>, vector<1x2x128xbf16>
    %76 = vector.shape_cast %75 : vector<1x2x128xbf16> to vector<2x128xbf16>
    %77 = vector.shape_cast %73 : vector<2x128xbf16> to vector<1x2x128xbf16>
    tpu.vector_store %arg6[%74, %c0_20, %c0_21], %77 {strides = array<i32>} : memref<8x2x128xbf16, #tpu.memory_space<vmem>>, vector<1x2x128xbf16>,
    %c2_i32 = arith.constant 2 : i32
    %78 = arith.index_cast %c2_i32 : i32 to index
    %c0_22 = arith.constant 0 : index
    %c0_23 = arith.constant 0 : index
    %79 = vector.load %arg2[%78, %c0_22, %c0_23] : memref<8x2x512xf32, #tpu.memory_space<vmem>>, vector<1x2x512xf32>
    %80 = vector.shape_cast %79 : vector<1x2x512xf32> to vector<2x512xf32>
    %81 = arith.truncf %72 : vector<2x128xf32> to vector<2x128xbf16>
    %cst_24 = arith.constant dense<0.000000e+00> : vector<2x512xf32>
    %82 = tpu.matmul %81, %3, %cst_24 {dimension_numbers = #tpu.dot_dimension_numbers<[1], [0], [0], [1], [0, 0, 1, 1], [], []>} : vector<2x128xbf16>, vector<128x512xbf16>, vector<2x512xf32> -> vector<2x512xf32>
    %83 = arith.addf %80, %82 : vector<2x512xf32>
    %84 = vector.extract_strided_slice %83 {offsets = [0, 0], sizes = [2, 128], strides = [1, 1]} : vector<2x512xf32> to vector<2x128xf32>
    %85 = arith.negf %84 : vector<2x128xf32>
    %86 = math.exp %85 : vector<2x128xf32>
    %cst_25 = arith.constant 1.000000e+00 : f32
    %87 = vector.broadcast %cst_25 : f32 to vector<2x128xf32>
    %88 = arith.addf %87, %86 : vector<2x128xf32>
    %89 = arith.divf %87, %88 : vector<2x128xf32>
    %90 = vector.extract_strided_slice %83 {offsets = [0, 128], sizes = [2, 128], strides = [1, 1]} : vector<2x512xf32> to vector<2x128xf32>
    %91 = arith.negf %90 : vector<2x128xf32>
    %92 = math.exp %91 : vector<2x128xf32>
    %cst_26 = arith.constant 1.000000e+00 : f32
    %93 = vector.broadcast %cst_26 : f32 to vector<2x128xf32>
    %94 = arith.addf %93, %92 : vector<2x128xf32>
    %95 = arith.divf %93, %94 : vector<2x128xf32>
    %96 = vector.extract_strided_slice %83 {offsets = [0, 256], sizes = [2, 128], strides = [1, 1]} : vector<2x512xf32> to vector<2x128xf32>
    %97 = math.tanh %96 : vector<2x128xf32>
    %98 = vector.extract_strided_slice %83 {offsets = [0, 384], sizes = [2, 128], strides = [1, 1]} : vector<2x512xf32> to vector<2x128xf32>
    %99 = arith.negf %98 : vector<2x128xf32>
    %100 = math.exp %99 : vector<2x128xf32>
    %cst_27 = arith.constant 1.000000e+00 : f32
    %101 = vector.broadcast %cst_27 : f32 to vector<2x128xf32>
    %102 = arith.addf %101, %100 : vector<2x128xf32>
    %103 = arith.divf %101, %102 : vector<2x128xf32>
    %104 = arith.mulf %95, %70 : vector<2x128xf32>
    %105 = arith.mulf %89, %97 : vector<2x128xf32>
    %106 = arith.addf %104, %105 : vector<2x128xf32>
    %107 = math.tanh %106 : vector<2x128xf32>
    %108 = arith.mulf %103, %107 : vector<2x128xf32>
    %109 = arith.truncf %108 : vector<2x128xf32> to vector<2x128xbf16>
    %110 = arith.index_cast %c2_i32 : i32 to index
    %c0_28 = arith.constant 0 : index
    %c0_29 = arith.constant 0 : index
    %111 = vector.load %arg6[%110, %c0_28, %c0_29] : memref<8x2x128xbf16, #tpu.memory_space<vmem>>, vector<1x2x128xbf16>
    %112 = vector.shape_cast %111 : vector<1x2x128xbf16> to vector<2x128xbf16>
    %113 = vector.shape_cast %109 : vector<2x128xbf16> to vector<1x2x128xbf16>
    tpu.vector_store %arg6[%110, %c0_28, %c0_29], %113 {strides = array<i32>} : memref<8x2x128xbf16, #tpu.memory_space<vmem>>, vector<1x2x128xbf16>,
    %c3_i32 = arith.constant 3 : i32
    %114 = arith.index_cast %c3_i32 : i32 to index
    %c0_30 = arith.constant 0 : index
    %c0_31 = arith.constant 0 : index
    %115 = vector.load %arg2[%114, %c0_30, %c0_31] : memref<8x2x512xf32, #tpu.memory_space<vmem>>, vector<1x2x512xf32>
    %116 = vector.shape_cast %115 : vector<1x2x512xf32> to vector<2x512xf32>
    %117 = arith.truncf %108 : vector<2x128xf32> to vector<2x128xbf16>
    %cst_32 = arith.constant dense<0.000000e+00> : vector<2x512xf32>
    %118 = tpu.matmul %117, %3, %cst_32 {dimension_numbers = #tpu.dot_dimension_numbers<[1], [0], [0], [1], [0, 0, 1, 1], [], []>} : vector<2x128xbf16>, vector<128x512xbf16>, vector<2x512xf32> -> vector<2x512xf32>
    %119 = arith.addf %116, %118 : vector<2x512xf32>
    %120 = vector.extract_strided_slice %119 {offsets = [0, 0], sizes = [2, 128], strides = [1, 1]} : vector<2x512xf32> to vector<2x128xf32>
    %121 = arith.negf %120 : vector<2x128xf32>
    %122 = math.exp %121 : vector<2x128xf32>
    %cst_33 = arith.constant 1.000000e+00 : f32
    %123 = vector.broadcast %cst_33 : f32 to vector<2x128xf32>
    %124 = arith.addf %123, %122 : vector<2x128xf32>
    %125 = arith.divf %123, %124 : vector<2x128xf32>
    %126 = vector.extract_strided_slice %119 {offsets = [0, 128], sizes = [2, 128], strides = [1, 1]} : vector<2x512xf32> to vector<2x128xf32>
    %127 = arith.negf %126 : vector<2x128xf32>
    %128 = math.exp %127 : vector<2x128xf32>
    %cst_34 = arith.constant 1.000000e+00 : f32
    %129 = vector.broadcast %cst_34 : f32 to vector<2x128xf32>
    %130 = arith.addf %129, %128 : vector<2x128xf32>
    %131 = arith.divf %129, %130 : vector<2x128xf32>
    %132 = vector.extract_strided_slice %119 {offsets = [0, 256], sizes = [2, 128], strides = [1, 1]} : vector<2x512xf32> to vector<2x128xf32>
    %133 = math.tanh %132 : vector<2x128xf32>
    %134 = vector.extract_strided_slice %119 {offsets = [0, 384], sizes = [2, 128], strides = [1, 1]} : vector<2x512xf32> to vector<2x128xf32>
    %135 = arith.negf %134 : vector<2x128xf32>
    %136 = math.exp %135 : vector<2x128xf32>
    %cst_35 = arith.constant 1.000000e+00 : f32
    %137 = vector.broadcast %cst_35 : f32 to vector<2x128xf32>
    %138 = arith.addf %137, %136 : vector<2x128xf32>
    %139 = arith.divf %137, %138 : vector<2x128xf32>
    %140 = arith.mulf %131, %106 : vector<2x128xf32>
    %141 = arith.mulf %125, %133 : vector<2x128xf32>
    %142 = arith.addf %140, %141 : vector<2x128xf32>
    %143 = math.tanh %142 : vector<2x128xf32>
    %144 = arith.mulf %139, %143 : vector<2x128xf32>
    %145 = arith.truncf %144 : vector<2x128xf32> to vector<2x128xbf16>
    %146 = arith.index_cast %c3_i32 : i32 to index
    %c0_36 = arith.constant 0 : index
    %c0_37 = arith.constant 0 : index
    %147 = vector.load %arg6[%146, %c0_36, %c0_37] : memref<8x2x128xbf16, #tpu.memory_space<vmem>>, vector<1x2x128xbf16>
    %148 = vector.shape_cast %147 : vector<1x2x128xbf16> to vector<2x128xbf16>
    %149 = vector.shape_cast %145 : vector<2x128xbf16> to vector<1x2x128xbf16>
    tpu.vector_store %arg6[%146, %c0_36, %c0_37], %149 {strides = array<i32>} : memref<8x2x128xbf16, #tpu.memory_space<vmem>>, vector<1x2x128xbf16>,
    %c4_i32 = arith.constant 4 : i32
    %150 = arith.index_cast %c4_i32 : i32 to index
    %c0_38 = arith.constant 0 : index
    %c0_39 = arith.constant 0 : index
    %151 = vector.load %arg2[%150, %c0_38, %c0_39] : memref<8x2x512xf32, #tpu.memory_space<vmem>>, vector<1x2x512xf32>
    %152 = vector.shape_cast %151 : vector<1x2x512xf32> to vector<2x512xf32>
    %153 = arith.truncf %144 : vector<2x128xf32> to vector<2x128xbf16>
    %cst_40 = arith.constant dense<0.000000e+00> : vector<2x512xf32>
    %154 = tpu.matmul %153, %3, %cst_40 {dimension_numbers = #tpu.dot_dimension_numbers<[1], [0], [0], [1], [0, 0, 1, 1], [], []>} : vector<2x128xbf16>, vector<128x512xbf16>, vector<2x512xf32> -> vector<2x512xf32>
    %155 = arith.addf %152, %154 : vector<2x512xf32>
    %156 = vector.extract_strided_slice %155 {offsets = [0, 0], sizes = [2, 128], strides = [1, 1]} : vector<2x512xf32> to vector<2x128xf32>
    %157 = arith.negf %156 : vector<2x128xf32>
    %158 = math.exp %157 : vector<2x128xf32>
    %cst_41 = arith.constant 1.000000e+00 : f32
    %159 = vector.broadcast %cst_41 : f32 to vector<2x128xf32>
    %160 = arith.addf %159, %158 : vector<2x128xf32>
    %161 = arith.divf %159, %160 : vector<2x128xf32>
    %162 = vector.extract_strided_slice %155 {offsets = [0, 128], sizes = [2, 128], strides = [1, 1]} : vector<2x512xf32> to vector<2x128xf32>
    %163 = arith.negf %162 : vector<2x128xf32>
    %164 = math.exp %163 : vector<2x128xf32>
    %cst_42 = arith.constant 1.000000e+00 : f32
    %165 = vector.broadcast %cst_42 : f32 to vector<2x128xf32>
    %166 = arith.addf %165, %164 : vector<2x128xf32>
    %167 = arith.divf %165, %166 : vector<2x128xf32>
    %168 = vector.extract_strided_slice %155 {offsets = [0, 256], sizes = [2, 128], strides = [1, 1]} : vector<2x512xf32> to vector<2x128xf32>
    %169 = math.tanh %168 : vector<2x128xf32>
    %170 = vector.extract_strided_slice %155 {offsets = [0, 384], sizes = [2, 128], strides = [1, 1]} : vector<2x512xf32> to vector<2x128xf32>
    %171 = arith.negf %170 : vector<2x128xf32>
    %172 = math.exp %171 : vector<2x128xf32>
    %cst_43 = arith.constant 1.000000e+00 : f32
    %173 = vector.broadcast %cst_43 : f32 to vector<2x128xf32>
    %174 = arith.addf %173, %172 : vector<2x128xf32>
    %175 = arith.divf %173, %174 : vector<2x128xf32>
    %176 = arith.mulf %167, %142 : vector<2x128xf32>
    %177 = arith.mulf %161, %169 : vector<2x128xf32>
    %178 = arith.addf %176, %177 : vector<2x128xf32>
    %179 = math.tanh %178 : vector<2x128xf32>
    %180 = arith.mulf %175, %179 : vector<2x128xf32>
    %181 = arith.truncf %180 : vector<2x128xf32> to vector<2x128xbf16>
    %182 = arith.index_cast %c4_i32 : i32 to index
    %c0_44 = arith.constant 0 : index
    %c0_45 = arith.constant 0 : index
    %183 = vector.load %arg6[%182, %c0_44, %c0_45] : memref<8x2x128xbf16, #tpu.memory_space<vmem>>, vector<1x2x128xbf16>
    %184 = vector.shape_cast %183 : vector<1x2x128xbf16> to vector<2x128xbf16>
    %185 = vector.shape_cast %181 : vector<2x128xbf16> to vector<1x2x128xbf16>
    tpu.vector_store %arg6[%182, %c0_44, %c0_45], %185 {strides = array<i32>} : memref<8x2x128xbf16, #tpu.memory_space<vmem>>, vector<1x2x128xbf16>,
    %c5_i32 = arith.constant 5 : i32
    %186 = arith.index_cast %c5_i32 : i32 to index
    %c0_46 = arith.constant 0 : index
    %c0_47 = arith.constant 0 : index
    %187 = vector.load %arg2[%186, %c0_46, %c0_47] : memref<8x2x512xf32, #tpu.memory_space<vmem>>, vector<1x2x512xf32>
    %188 = vector.shape_cast %187 : vector<1x2x512xf32> to vector<2x512xf32>
    %189 = arith.truncf %180 : vector<2x128xf32> to vector<2x128xbf16>
    %cst_48 = arith.constant dense<0.000000e+00> : vector<2x512xf32>
    %190 = tpu.matmul %189, %3, %cst_48 {dimension_numbers = #tpu.dot_dimension_numbers<[1], [0], [0], [1], [0, 0, 1, 1], [], []>} : vector<2x128xbf16>, vector<128x512xbf16>, vector<2x512xf32> -> vector<2x512xf32>
    %191 = arith.addf %188, %190 : vector<2x512xf32>
    %192 = vector.extract_strided_slice %191 {offsets = [0, 0], sizes = [2, 128], strides = [1, 1]} : vector<2x512xf32> to vector<2x128xf32>
    %193 = arith.negf %192 : vector<2x128xf32>
    %194 = math.exp %193 : vector<2x128xf32>
    %cst_49 = arith.constant 1.000000e+00 : f32
    %195 = vector.broadcast %cst_49 : f32 to vector<2x128xf32>
    %196 = arith.addf %195, %194 : vector<2x128xf32>
    %197 = arith.divf %195, %196 : vector<2x128xf32>
    %198 = vector.extract_strided_slice %191 {offsets = [0, 128], sizes = [2, 128], strides = [1, 1]} : vector<2x512xf32> to vector<2x128xf32>
    %199 = arith.negf %198 : vector<2x128xf32>
    %200 = math.exp %199 : vector<2x128xf32>
    %cst_50 = arith.constant 1.000000e+00 : f32
    %201 = vector.broadcast %cst_50 : f32 to vector<2x128xf32>
    %202 = arith.addf %201, %200 : vector<2x128xf32>
    %203 = arith.divf %201, %202 : vector<2x128xf32>
    %204 = vector.extract_strided_slice %191 {offsets = [0, 256], sizes = [2, 128], strides = [1, 1]} : vector<2x512xf32> to vector<2x128xf32>
    %205 = math.tanh %204 : vector<2x128xf32>
    %206 = vector.extract_strided_slice %191 {offsets = [0, 384], sizes = [2, 128], strides = [1, 1]} : vector<2x512xf32> to vector<2x128xf32>
    %207 = arith.negf %206 : vector<2x128xf32>
    %208 = math.exp %207 : vector<2x128xf32>
    %cst_51 = arith.constant 1.000000e+00 : f32
    %209 = vector.broadcast %cst_51 : f32 to vector<2x128xf32>
    %210 = arith.addf %209, %208 : vector<2x128xf32>
    %211 = arith.divf %209, %210 : vector<2x128xf32>
    %212 = arith.mulf %203, %178 : vector<2x128xf32>
    %213 = arith.mulf %197, %205 : vector<2x128xf32>
    %214 = arith.addf %212, %213 : vector<2x128xf32>
    %215 = math.tanh %214 : vector<2x128xf32>
    %216 = arith.mulf %211, %215 : vector<2x128xf32>
    %217 = arith.truncf %216 : vector<2x128xf32> to vector<2x128xbf16>
    %218 = arith.index_cast %c5_i32 : i32 to index
    %c0_52 = arith.constant 0 : index
    %c0_53 = arith.constant 0 : index
    %219 = vector.load %arg6[%218, %c0_52, %c0_53] : memref<8x2x128xbf16, #tpu.memory_space<vmem>>, vector<1x2x128xbf16>
    %220 = vector.shape_cast %219 : vector<1x2x128xbf16> to vector<2x128xbf16>
    %221 = vector.shape_cast %217 : vector<2x128xbf16> to vector<1x2x128xbf16>
    tpu.vector_store %arg6[%218, %c0_52, %c0_53], %221 {strides = array<i32>} : memref<8x2x128xbf16, #tpu.memory_space<vmem>>, vector<1x2x128xbf16>,
    %c6_i32 = arith.constant 6 : i32
    %222 = arith.index_cast %c6_i32 : i32 to index
    %c0_54 = arith.constant 0 : index
    %c0_55 = arith.constant 0 : index
    %223 = vector.load %arg2[%222, %c0_54, %c0_55] : memref<8x2x512xf32, #tpu.memory_space<vmem>>, vector<1x2x512xf32>
    %224 = vector.shape_cast %223 : vector<1x2x512xf32> to vector<2x512xf32>
    %225 = arith.truncf %216 : vector<2x128xf32> to vector<2x128xbf16>
    %cst_56 = arith.constant dense<0.000000e+00> : vector<2x512xf32>
    %226 = tpu.matmul %225, %3, %cst_56 {dimension_numbers = #tpu.dot_dimension_numbers<[1], [0], [0], [1], [0, 0, 1, 1], [], []>} : vector<2x128xbf16>, vector<128x512xbf16>, vector<2x512xf32> -> vector<2x512xf32>
    %227 = arith.addf %224, %226 : vector<2x512xf32>
    %228 = vector.extract_strided_slice %227 {offsets = [0, 0], sizes = [2, 128], strides = [1, 1]} : vector<2x512xf32> to vector<2x128xf32>
    %229 = arith.negf %228 : vector<2x128xf32>
    %230 = math.exp %229 : vector<2x128xf32>
    %cst_57 = arith.constant 1.000000e+00 : f32
    %231 = vector.broadcast %cst_57 : f32 to vector<2x128xf32>
    %232 = arith.addf %231, %230 : vector<2x128xf32>
    %233 = arith.divf %231, %232 : vector<2x128xf32>
    %234 = vector.extract_strided_slice %227 {offsets = [0, 128], sizes = [2, 128], strides = [1, 1]} : vector<2x512xf32> to vector<2x128xf32>
    %235 = arith.negf %234 : vector<2x128xf32>
    %236 = math.exp %235 : vector<2x128xf32>
    %cst_58 = arith.constant 1.000000e+00 : f32
    %237 = vector.broadcast %cst_58 : f32 to vector<2x128xf32>
    %238 = arith.addf %237, %236 : vector<2x128xf32>
    %239 = arith.divf %237, %238 : vector<2x128xf32>
    %240 = vector.extract_strided_slice %227 {offsets = [0, 256], sizes = [2, 128], strides = [1, 1]} : vector<2x512xf32> to vector<2x128xf32>
    %241 = math.tanh %240 : vector<2x128xf32>
    %242 = vector.extract_strided_slice %227 {offsets = [0, 384], sizes = [2, 128], strides = [1, 1]} : vector<2x512xf32> to vector<2x128xf32>
    %243 = arith.negf %242 : vector<2x128xf32>
    %244 = math.exp %243 : vector<2x128xf32>
    %cst_59 = arith.constant 1.000000e+00 : f32
    %245 = vector.broadcast %cst_59 : f32 to vector<2x128xf32>
    %246 = arith.addf %245, %244 : vector<2x128xf32>
    %247 = arith.divf %245, %246 : vector<2x128xf32>
    %248 = arith.mulf %239, %214 : vector<2x128xf32>
    %249 = arith.mulf %233, %241 : vector<2x128xf32>
    %250 = arith.addf %248, %249 : vector<2x128xf32>
    %251 = math.tanh %250 : vector<2x128xf32>
    %252 = arith.mulf %247, %251 : vector<2x128xf32>
    %253 = arith.truncf %252 : vector<2x128xf32> to vector<2x128xbf16>
    %254 = arith.index_cast %c6_i32 : i32 to index
    %c0_60 = arith.constant 0 : index
    %c0_61 = arith.constant 0 : index
    %255 = vector.load %arg6[%254, %c0_60, %c0_61] : memref<8x2x128xbf16, #tpu.memory_space<vmem>>, vector<1x2x128xbf16>
    %256 = vector.shape_cast %255 : vector<1x2x128xbf16> to vector<2x128xbf16>
    %257 = vector.shape_cast %253 : vector<2x128xbf16> to vector<1x2x128xbf16>
    tpu.vector_store %arg6[%254, %c0_60, %c0_61], %257 {strides = array<i32>} : memref<8x2x128xbf16, #tpu.memory_space<vmem>>, vector<1x2x128xbf16>,
    %c7_i32 = arith.constant 7 : i32
    %258 = arith.index_cast %c7_i32 : i32 to index
    %c0_62 = arith.constant 0 : index
    %c0_63 = arith.constant 0 : index
    %259 = vector.load %arg2[%258, %c0_62, %c0_63] : memref<8x2x512xf32, #tpu.memory_space<vmem>>, vector<1x2x512xf32>
    %260 = vector.shape_cast %259 : vector<1x2x512xf32> to vector<2x512xf32>
    %261 = arith.truncf %252 : vector<2x128xf32> to vector<2x128xbf16>
    %cst_64 = arith.constant dense<0.000000e+00> : vector<2x512xf32>
    %262 = tpu.matmul %261, %3, %cst_64 {dimension_numbers = #tpu.dot_dimension_numbers<[1], [0], [0], [1], [0, 0, 1, 1], [], []>} : vector<2x128xbf16>, vector<128x512xbf16>, vector<2x512xf32> -> vector<2x512xf32>
    %263 = arith.addf %260, %262 : vector<2x512xf32>
    %264 = vector.extract_strided_slice %263 {offsets = [0, 0], sizes = [2, 128], strides = [1, 1]} : vector<2x512xf32> to vector<2x128xf32>
    %265 = arith.negf %264 : vector<2x128xf32>
    %266 = math.exp %265 : vector<2x128xf32>
    %cst_65 = arith.constant 1.000000e+00 : f32
    %267 = vector.broadcast %cst_65 : f32 to vector<2x128xf32>
    %268 = arith.addf %267, %266 : vector<2x128xf32>
    %269 = arith.divf %267, %268 : vector<2x128xf32>
    %270 = vector.extract_strided_slice %263 {offsets = [0, 128], sizes = [2, 128], strides = [1, 1]} : vector<2x512xf32> to vector<2x128xf32>
    %271 = arith.negf %270 : vector<2x128xf32>
    %272 = math.exp %271 : vector<2x128xf32>
    %cst_66 = arith.constant 1.000000e+00 : f32
    %273 = vector.broadcast %cst_66 : f32 to vector<2x128xf32>
    %274 = arith.addf %273, %272 : vector<2x128xf32>
    %275 = arith.divf %273, %274 : vector<2x128xf32>
    %276 = vector.extract_strided_slice %263 {offsets = [0, 256], sizes = [2, 128], strides = [1, 1]} : vector<2x512xf32> to vector<2x128xf32>
    %277 = math.tanh %276 : vector<2x128xf32>
    %278 = vector.extract_strided_slice %263 {offsets = [0, 384], sizes = [2, 128], strides = [1, 1]} : vector<2x512xf32> to vector<2x128xf32>
    %279 = arith.negf %278 : vector<2x128xf32>
    %280 = math.exp %279 : vector<2x128xf32>
    %cst_67 = arith.constant 1.000000e+00 : f32
    %281 = vector.broadcast %cst_67 : f32 to vector<2x128xf32>
    %282 = arith.addf %281, %280 : vector<2x128xf32>
    %283 = arith.divf %281, %282 : vector<2x128xf32>
    %284 = arith.mulf %275, %250 : vector<2x128xf32>
    %285 = arith.mulf %269, %277 : vector<2x128xf32>
    %286 = arith.addf %284, %285 : vector<2x128xf32>
    %287 = math.tanh %286 : vector<2x128xf32>
    %288 = arith.mulf %283, %287 : vector<2x128xf32>
    %289 = arith.truncf %288 : vector<2x128xf32> to vector<2x128xbf16>
    %290 = arith.index_cast %c7_i32 : i32 to index
    %c0_68 = arith.constant 0 : index
    %c0_69 = arith.constant 0 : index
    %291 = vector.load %arg6[%290, %c0_68, %c0_69] : memref<8x2x128xbf16, #tpu.memory_space<vmem>>, vector<1x2x128xbf16>
    %292 = vector.shape_cast %291 : vector<1x2x128xbf16> to vector<2x128xbf16>
    %293 = vector.shape_cast %289 : vector<2x128xbf16> to vector<1x2x128xbf16>
    tpu.vector_store %arg6[%290, %c0_68, %c0_69], %293 {strides = array<i32>} : memref<8x2x128xbf16, #tpu.memory_space<vmem>>, vector<1x2x128xbf16>,
    %c8_i32 = arith.constant 8 : i32
    %c0_70 = arith.constant 0 : index
    %c0_71 = arith.constant 0 : index
    %294 = vector.load %arg9[%c0_70, %c0_71] : memref<2x128xf32, #tpu.memory_space<vmem>>, vector<2x128xf32>
    tpu.vector_store %arg9[%c0_70, %c0_71], %288 {strides = array<i32>} : memref<2x128xf32, #tpu.memory_space<vmem>>, vector<2x128xf32>,
    %c0_72 = arith.constant 0 : index
    %c0_73 = arith.constant 0 : index
    %295 = vector.load %arg10[%c0_72, %c0_73] : memref<2x128xf32, #tpu.memory_space<vmem>>, vector<2x128xf32>
    tpu.vector_store %arg10[%c0_72, %c0_73], %286 {strides = array<i32>} : memref<2x128xf32, #tpu.memory_space<vmem>>, vector<2x128xf32>,
    %c0_i32_74 = arith.constant 0 : i32
    %296 = arith.cmpi eq, %arg1, %c0_i32_74 : i32
    %297 = arith.extui %296 : i1 to i32
    %c0_i32_75 = arith.constant 0 : i32
    %298 = arith.cmpi ne, %297, %c0_i32_75 : i32
    scf.if %298 {
      %c0_76 = arith.constant 0 : index
      %c0_77 = arith.constant 0 : index
      %299 = vector.load %arg7[%c0_76, %c0_77] : memref<2x128xf32, #tpu.memory_space<vmem>>, vector<2x128xf32>
      tpu.vector_store %arg7[%c0_76, %c0_77], %288 {strides = array<i32>} : memref<2x128xf32, #tpu.memory_space<vmem>>, vector<2x128xf32>,
      %c0_78 = arith.constant 0 : index
      %c0_79 = arith.constant 0 : index
      %300 = vector.load %arg8[%c0_78, %c0_79] : memref<2x128xf32, #tpu.memory_space<vmem>>, vector<2x128xf32>
      tpu.vector_store %arg8[%c0_78, %c0_79], %286 {strides = array<i32>} : memref<2x128xf32, #tpu.memory_space<vmem>>, vector<2x128xf32>,
    } else {
    }
    return
  }
  func.func @transform_0(%arg0: i32, %arg1: i32) -> (i32, i32, i32) {
    %c0_i32 = arith.constant 0 : i32
    %c0_i32_0 = arith.constant 0 : i32
    return %arg1, %arg0, %c0_i32 : i32, i32, i32
  }
  func.func @transform_1(%arg0: i32, %arg1: i32) -> (i32, i32) {
    %c0_i32 = arith.constant 0 : i32
    %c0_i32_0 = arith.constant 0 : i32
    return %arg0, %c0_i32 : i32, i32
  }
  func.func @transform_2(%arg0: i32, %arg1: i32) -> (i32, i32) {
    %c0_i32 = arith.constant 0 : i32
    %c0_i32_0 = arith.constant 0 : i32
    return %arg0, %c0_i32 : i32, i32
  }
  func.func @transform_3(%arg0: i32, %arg1: i32) -> (i32, i32) {
    %c0_i32 = arith.constant 0 : i32
    %c0_i32_0 = arith.constant 0 : i32
    %c0_i32_1 = arith.constant 0 : i32
    return %c0_i32, %c0_i32_0 : i32, i32
  }
  func.func @transform_4(%arg0: i32, %arg1: i32) -> (i32, i32, i32) {
    %c0_i32 = arith.constant 0 : i32
    %c0_i32_0 = arith.constant 0 : i32
    return %arg1, %arg0, %c0_i32 : i32, i32, i32
  }
  func.func @transform_5(%arg0: i32, %arg1: i32) -> (i32, i32) {
    %c0_i32 = arith.constant 0 : i32
    %c0_i32_0 = arith.constant 0 : i32
    return %arg0, %c0_i32 : i32, i32
  }
  func.func @transform_6(%arg0: i32, %arg1: i32) -> (i32, i32) {
    %c0_i32 = arith.constant 0 : i32
    %c0_i32_0 = arith.constant 0 : i32
    return %arg0, %c0_i32 : i32, i32
  }
}

module attributes {stable_mosaic.version = 11 : i64} {
  func.func @_matmul_bias_kernel(%arg0: i32, %arg1: i32, %arg2: i32, %arg3: memref<16x128xbf16, #tpu.memory_space<vmem>>, %arg4: memref<128x128xbf16, #tpu.memory_space<vmem>>, %arg5: memref<1x128xf32, #tpu.memory_space<vmem>>, %arg6: memref<16x128xf32, #tpu.memory_space<vmem>>, %arg7: memref<16x128xf32, #tpu.memory_space<vmem>>) attributes {dimension_semantics = [#tpu.dimension_semantics<parallel>, #tpu.dimension_semantics<parallel>, #tpu.dimension_semantics<arbitrary>], iteration_bounds = array<i64: 1, 1, 1>, scalar_prefetch = 0 : i64, scratch_operands = 1 : i64, tpu.core_type = #tpu.core_type<tc>, window_params = [{transform_indices = @transform_0, window_bounds = array<i64: 16, 128>}, {transform_indices = @transform_1, window_bounds = array<i64: 128, 128>}, {transform_indices = @transform_2, window_bounds = array<i64: 1, 128>}, {transform_indices = @transform_3, window_bounds = array<i64: 16, 128>}]} {
    %c0_i32 = arith.constant 0 : i32
    %0 = arith.cmpi eq, %arg2, %c0_i32 : i32
    %1 = arith.extui %0 : i1 to i32
    %c0_i32_0 = arith.constant 0 : i32
    %2 = arith.cmpi ne, %1, %c0_i32_0 : i32
    scf.if %2 {
      %cst_10 = arith.constant 0.000000e+00 : f32
      %12 = vector.broadcast %cst_10 : f32 to vector<16x128xf32>
      %c0_11 = arith.constant 0 : index
      %c0_12 = arith.constant 0 : index
      %13 = vector.load %arg7[%c0_11, %c0_12] : memref<16x128xf32, #tpu.memory_space<vmem>>, vector<16x128xf32>
      tpu.vector_store %arg7[%c0_11, %c0_12], %12 {strides = array<i32>} : memref<16x128xf32, #tpu.memory_space<vmem>>, vector<16x128xf32>,
    } else {
    }
    %c0 = arith.constant 0 : index
    %c0_1 = arith.constant 0 : index
    %3 = vector.load %arg7[%c0, %c0_1] : memref<16x128xf32, #tpu.memory_space<vmem>>, vector<16x128xf32>
    %c0_2 = arith.constant 0 : index
    %c0_3 = arith.constant 0 : index
    %4 = vector.load %arg3[%c0_2, %c0_3] : memref<16x128xbf16, #tpu.memory_space<vmem>>, vector<16x128xbf16>
    %c0_4 = arith.constant 0 : index
    %c0_5 = arith.constant 0 : index
    %5 = vector.load %arg4[%c0_4, %c0_5] : memref<128x128xbf16, #tpu.memory_space<vmem>>, vector<128x128xbf16>
    %cst = arith.constant dense<0.000000e+00> : vector<16x128xf32>
    %6 = tpu.matmul %4, %5, %cst {dimension_numbers = #tpu.dot_dimension_numbers<[1], [0], [0], [1], [0, 0, 1, 1], [], []>} : vector<16x128xbf16>, vector<128x128xbf16>, vector<16x128xf32> -> vector<16x128xf32>
    %7 = arith.addf %3, %6 : vector<16x128xf32>
    %c0_6 = arith.constant 0 : index
    %c0_7 = arith.constant 0 : index
    %8 = vector.load %arg7[%c0_6, %c0_7] : memref<16x128xf32, #tpu.memory_space<vmem>>, vector<16x128xf32>
    tpu.vector_store %arg7[%c0_6, %c0_7], %7 {strides = array<i32>} : memref<16x128xf32, #tpu.memory_space<vmem>>, vector<16x128xf32>,
    %c0_i32_8 = arith.constant 0 : i32
    %9 = arith.cmpi eq, %arg2, %c0_i32_8 : i32
    %10 = arith.extui %9 : i1 to i32
    %c0_i32_9 = arith.constant 0 : i32
    %11 = arith.cmpi ne, %10, %c0_i32_9 : i32
    scf.if %11 {
      %c0_10 = arith.constant 0 : index
      %c0_11 = arith.constant 0 : index
      %12 = vector.load %arg7[%c0_10, %c0_11] : memref<16x128xf32, #tpu.memory_space<vmem>>, vector<16x128xf32>
      %c0_12 = arith.constant 0 : index
      %c0_13 = arith.constant 0 : index
      %13 = vector.load %arg5[%c0_12, %c0_13] : memref<1x128xf32, #tpu.memory_space<vmem>>, vector<1x128xf32>
      %14 = vector.broadcast %13 : vector<1x128xf32> to vector<16x128xf32>
      %15 = arith.addf %12, %14 : vector<16x128xf32>
      %c0_14 = arith.constant 0 : index
      %c0_15 = arith.constant 0 : index
      %16 = vector.load %arg6[%c0_14, %c0_15] : memref<16x128xf32, #tpu.memory_space<vmem>>, vector<16x128xf32>
      tpu.vector_store %arg6[%c0_14, %c0_15], %15 {strides = array<i32>} : memref<16x128xf32, #tpu.memory_space<vmem>>, vector<16x128xf32>,
    } else {
    }
    return
  }
  func.func @transform_0(%arg0: i32, %arg1: i32, %arg2: i32) -> (i32, i32) {
    %c0_i32 = arith.constant 0 : i32
    return %arg0, %arg2 : i32, i32
  }
  func.func @transform_1(%arg0: i32, %arg1: i32, %arg2: i32) -> (i32, i32) {
    %c0_i32 = arith.constant 0 : i32
    return %arg2, %arg1 : i32, i32
  }
  func.func @transform_2(%arg0: i32, %arg1: i32, %arg2: i32) -> (i32, i32) {
    %c0_i32 = arith.constant 0 : i32
    %c0_i32_0 = arith.constant 0 : i32
    return %c0_i32, %arg1 : i32, i32
  }
  func.func @transform_3(%arg0: i32, %arg1: i32, %arg2: i32) -> (i32, i32) {
    %c0_i32 = arith.constant 0 : i32
    return %arg0, %arg1 : i32, i32
  }
}

</mosaic_0001>

<bundles_post_ra>
// kernel: seq2seq_forward.9
= control target key start
LH: loop header
LB: loop body
LE: loop exit
PB: predicated region body
PF: predicated region fallthrough
CT: control target
= control target key end

     0   :  { %8 = vsyncpa [#allocation4], 0  ;;  %s293_s15 = smov [#allocation3]   ;;  %s294_s17 = smov 256   ;;  %s352_s0 = inlined_call_operand.vmem [shape: f32[16,32], index: 0, kind: input, shape index: {}]   ;;  %s353_s1 = inlined_call_operand.hbm [shape: bf16[32,512], index: 1, kind: input, shape index: {}]   ;;  %s354_s2 = inlined_call_operand.vmem [shape: f32[1,512], index: 2, kind: input, shape index: {}]   ;;  %s355_s3 = inlined_call_operand.vmem [shape: f32[16,512], index: 3, kind: output, shape index: {}]  }
   0x1   :  { %s15_s14 = sshll.u32 %s353_s1, 4  ;;  %s17_s16 = sshll.u32 %s293_s15, 4  ;;  %s16_s14 = int_to_ptr.hbm [resolvable:$true] %s15_s14  ;;  %s18_s16 = int_to_ptr.vmem [resolvable:$true] %s17_s16 }
   0x2   :  { %s295_s18 = smov 16  }
   0x3   :  { %23 = dma.hbm_to_vmem [thread:$0]  %s16_s14, 1024, %s18_s16, [#allocation4], %s294_s17, %s294_s17, %s295_s18  }
   0x4   :  { %291 = dma.done.wait [#allocation4], 1024  }
   0x5   :  { %292 = vsyncadd [#allocation4], 4294966272  ;;  %v238_v0 = vld [vmem:[#allocation3 + $0x20] sm:$0xf]  ;;  %v262_v1 = vld [vmem:[#allocation3 + $0x2c] sm:$0xf0] }
   0x6   :  { %v260_v2 = vld [vmem:[#allocation3 + $0x24] sm:$0xf]  ;;  %v239_v3 = vor.u32 %v262_v1, %v238_v0  ;;  %v240_v4 = vld [vmem:[#allocation3 + $0x30] sm:$0xf0]  ;;  %v246_v5 = vld [vmem:[#allocation3 + $0x28] sm:$0xf] }
   0x7   :  { %v263_v6 = vld [vmem:[#allocation3 + $0x34] sm:$0xf0]  ;;  %v243_v7 = vor.u32 %v260_v2, %v240_v4  ;;  %v261_v9 = vld [vmem:[#allocation3 + $0x2c] sm:$0xf]  ;;  %v248_v10 = vld [vmem:[#allocation3 + $0x38] sm:$0xf0] }
   0x8   :  { %v247_v8 = vor.u32 %v263_v6, %v246_v5  ;;  %v222_v11 = vld [vmem:[#allocation3] sm:$0xf]  ;;  %112 = vmatpush.bf16.msra.mxu0 %v239_v3  ;;  %v251_v12 = vor.u32 %v261_v9, %v248_v10  ;;  %v258_v13 = vld [vmem:[#allocation3 + $0xc] sm:$0xf0]  ;;  %v256_v14 = vld [vmem:[#allocation3 + $0x4] sm:$0xf] }
   0x9   :  { %v224_v15 = vld [vmem:[#allocation3 + $0x10] sm:$0xf0]  ;;  %126 = vmatpush.bf16.msra.mxu1 %v243_v7  ;;  %v223_v16 = vor.u32 %v258_v13, %v222_v11  ;;  %v230_v18 = vld [vmem:[#allocation3 + $0x8] sm:$0xf]  ;;  %v259_v19 = vld [vmem:[#allocation3 + $0x14] sm:$0xf0] }
   0xa   :  { %140 = vmatpush.bf16.msra.mxu2 %v247_v8  ;;  %v227_v17 = vor.u32 %v256_v14, %v224_v15  ;;  %v257_v20 = vld [vmem:[#allocation3 + $0xc] sm:$0xf]  ;;  %154 = vmatpush.bf16.msra.mxu3 %v251_v12  ;;  %v231_v21 = vor.u32 %v259_v19, %v230_v18  ;;  %v232_v22 = vld [vmem:[#allocation3 + $0x18] sm:$0xf0]  ;;  %v51_v23 = vld [vmem:[%s352_s0] sm:$0xff]  ;;  %vm102_vm0 = vcmask 261120  }
   0xb   :  { %v52_v24 = vld [vmem:[%s352_s0 + $0x8] sm:$0xff]  ;;  %v235_v25 = vor.u32 %v257_v20, %v232_v22  ;;  %v189_v27 = vld [vmem:[%s354_s2] sm:$0xf] }
   0xc   :  { %v53_v26 = vpack.c.bf16 %v52_v24, %v51_v23  ;;  %113 = vmatpush.bf16.msra.mxu0 %v223_v16  ;;  %v191_v28 = vperm.slane %v189_v27, 0  ;;  %v192_v29 = vperm.slane %v189_v27, 1  ;;  %v193_v34 = vperm.slane %v189_v27, 2 }
   0xd   :  { %127 = vmatpush.bf16.msra.mxu1 %v227_v17  ;;  %v194_v35 = vperm.slane %v189_v27, 3 }
   0xe   :  { %141 = vmatpush.bf16.msra.mxu2 %v231_v21  ;;  %155 = vmatpush.bf16.msra.mxu3 %v235_v25 }
   0xf   :  { %252 = vmatmul.msk.bf16.vlgmr.msra.gmra.mxu0 %vm102_vm0, %v53_v26 }
  0x10   :  { %253 = vmatmul.msk.bf16.vlgmr.msra.gmra.mxu1 %vm102_vm0, %v53_v26 }
  0x11   :  { %254 = vmatmul.msk.bf16.vlgmr.msra.gmra.mxu2 %vm102_vm0, %v53_v26  ;;  %255 = vmatmul.msk.bf16.vlgmr.msra.gmra.mxu3 %vm102_vm0, %v53_v26 }
  0x8c   :  { %v115_v30 = vpop.f32.mrf.mxu0 }
  0x8d   :  { %v199_v31 = vadd.f32 %v191_v28, %v115_v30  ;;  %v129_v32 = vpop.f32.mrf.mxu1 }
  0x8e   :  { %v200_v33 = vadd.f32 %v192_v29, %v129_v32 }
  0x8f   :  { %207 = vst [vmem:[%s355_s3] sm:$0xff] %v199_v31 }
  0x90   :  { %208 = vst [vmem:[%s355_s3 + $0x8] sm:$0xff] %v200_v33 }
  0x94   :  { %v143_v36 = vpop.f32.mrf.mxu2  ;;  %v157_v38 = vpop.f32.mrf.mxu3 }
  0x95   :  { %v201_v37 = vadd.f32 %v193_v34, %v143_v36  ;;  %v117_v39 = vpop.f32.mrf.mxu0  ;;  %v202_v40 = vadd.f32 %v194_v35, %v157_v38  ;;  %v131_v42 = vpop.f32.mrf.mxu1 }
  0x96   :  { %v203_v41 = vadd.f32 %v191_v28, %v117_v39  ;;  %v204_v43 = vadd.f32 %v192_v29, %v131_v42 }
  0x97   :  { %209 = vst [vmem:[%s355_s3 + $0x10] sm:$0xff] %v201_v37 }
  0x98   :  { %210 = vst [vmem:[%s355_s3 + $0x18] sm:$0xff] %v202_v40 }
  0x99   :  { %211 = vst [vmem:[%s355_s3 + $0x20] sm:$0xff] %v203_v41 }
  0x9a   :  { %212 = vst [vmem:[%s355_s3 + $0x28] sm:$0xff] %v204_v43 }
  0x9c   :  { %v145_v44 = vpop.f32.mrf.mxu2  ;;  %v159_v46 = vpop.f32.mrf.mxu3 }
  0x9d   :  { %v205_v45 = vadd.f32 %v193_v34, %v145_v44  ;;  %v206_v47 = vadd.f32 %v194_v35, %v159_v46 }
  0x9f   :  { %213 = vst [vmem:[%s355_s3 + $0x30] sm:$0xff] %v205_v45 }
  0xa0   :  { %214 = vst [vmem:[%s355_s3 + $0x38] sm:$0xff] %v206_v47 }
  0xa1   :  { %219 = vsyncpa [#allocation4], 1 }

// kernel: seq2seq_forward.15
= control target key start
LH: loop header
LB: loop body
LE: loop exit
PB: predicated region body
PF: predicated region fallthrough
CT: control target
= control target key end

     0   :  { %8 = vsyncpa [#allocation4], 0  ;;  %s558_s15 = smov [#allocation3]   ;;  %s559_s17 = smov 256   ;;  %s614_s0 = inlined_call_operand.vmem [shape: bf16[16,128], index: 0, kind: input, shape index: {}]   ;;  %s615_s1 = inlined_call_operand.hbm [shape: bf16[128,512], index: 1, kind: input, shape index: {}]   ;;  %s616_s2 = inlined_call_operand.vmem [shape: f32[1,512], index: 2, kind: input, shape index: {}]   ;;  %s617_s3 = inlined_call_operand.vmem [shape: f32[16,512], index: 3, kind: output, shape index: {}]  }
   0x1   :  { %s15_s14 = sshll.u32 %s615_s1, 4  ;;  %s17_s16 = sshll.u32 %s558_s15, 4  ;;  %s16_s14 = int_to_ptr.hbm [resolvable:$true] %s15_s14  ;;  %s18_s16 = int_to_ptr.vmem [resolvable:$true] %s17_s16 }
   0x2   :  { %s560_s18 = smov 16  }
   0x3   :  { %23 = dma.hbm_to_vmem [thread:$0]  %s16_s14, 4096, %s18_s16, [#allocation4], %s559_s17, %s559_s17, %s560_s18  }
   0x4   :  { %556 = dma.done.wait [#allocation4], 4096  }
   0x5   :  { %557 = vsyncadd [#allocation4], 4294963200  ;;  %v482_v0 = vld [vmem:[#allocation3 + $0xe0] sm:$0xf]  ;;  %v527_v1 = vld [vmem:[#allocation3 + $0xec] sm:$0xf0] }
   0x6   :  { %v525_v2 = vld [vmem:[#allocation3 + $0xe4] sm:$0xf]  ;;  %v483_v3 = vor.u32 %v527_v1, %v482_v0  ;;  %v484_v4 = vld [vmem:[#allocation3 + $0xf0] sm:$0xf0]  ;;  %v490_v5 = vld [vmem:[#allocation3 + $0xe8] sm:$0xf] }
   0x7   :  { %v528_v6 = vld [vmem:[#allocation3 + $0xf4] sm:$0xf0]  ;;  %v487_v7 = vor.u32 %v525_v2, %v484_v4  ;;  %v526_v9 = vld [vmem:[#allocation3 + $0xec] sm:$0xf]  ;;  %v492_v10 = vld [vmem:[#allocation3 + $0xf8] sm:$0xf0] }
   0x8   :  { %v491_v8 = vor.u32 %v528_v6, %v490_v5  ;;  %v466_v11 = vld [vmem:[#allocation3 + $0xc0] sm:$0xf]  ;;  %250 = vmatpush.bf16.msra.mxu0 %v483_v3  ;;  %v495_v12 = vor.u32 %v526_v9, %v492_v10  ;;  %v523_v13 = vld [vmem:[#allocation3 + $0xcc] sm:$0xf0]  ;;  %v521_v14 = vld [vmem:[#allocation3 + $0xc4] sm:$0xf] }
   0x9   :  { %v468_v15 = vld [vmem:[#allocation3 + $0xd0] sm:$0xf0]  ;;  %264 = vmatpush.bf16.msra.mxu1 %v487_v7  ;;  %v467_v16 = vor.u32 %v523_v13, %v466_v11  ;;  %v474_v18 = vld [vmem:[#allocation3 + $0xc8] sm:$0xf]  ;;  %v524_v19 = vld [vmem:[#allocation3 + $0xd4] sm:$0xf0] }
   0xa   :  { %278 = vmatpush.bf16.msra.mxu2 %v491_v8  ;;  %v471_v17 = vor.u32 %v521_v14, %v468_v15  ;;  %v522_v20 = vld [vmem:[#allocation3 + $0xcc] sm:$0xf]  ;;  %292 = vmatpush.bf16.msra.mxu3 %v495_v12  ;;  %v475_v21 = vor.u32 %v524_v19, %v474_v18  ;;  %v476_v22 = vld [vmem:[#allocation3 + $0xd8] sm:$0xf0]  ;;  %v450_v23 = vld [vmem:[#allocation3 + $0xa0] sm:$0xf] }
   0xb   :  { %v519_v24 = vld [vmem:[#allocation3 + $0xac] sm:$0xf0]  ;;  %v479_v25 = vor.u32 %v522_v20, %v476_v22  ;;  %v517_v26 = vld [vmem:[#allocation3 + $0xa4] sm:$0xf]  ;;  %v452_v27 = vld [vmem:[#allocation3 + $0xb0] sm:$0xf0] }
   0xc   :  { %v458_v28 = vld [vmem:[#allocation3 + $0xa8] sm:$0xf]  ;;  %251 = vmatpush.bf16.msra.mxu0 %v467_v16  ;;  %v451_v29 = vor.u32 %v519_v24, %v450_v23  ;;  %v520_v30 = vld [vmem:[#allocation3 + $0xb4] sm:$0xf0]  ;;  %v518_v31 = vld [vmem:[#allocation3 + $0xac] sm:$0xf]  ;;  %v455_v33 = vor.u32 %v517_v26, %v452_v27 }
   0xd   :  { %v460_v32 = vld [vmem:[#allocation3 + $0xb8] sm:$0xf0]  ;;  %265 = vmatpush.bf16.msra.mxu1 %v471_v17  ;;  %v459_v34 = vor.u32 %v520_v30, %v458_v28  ;;  %v434_v35 = vld [vmem:[#allocation3 + $0x80] sm:$0xf]  ;;  %v515_v36 = vld [vmem:[#allocation3 + $0x8c] sm:$0xf0] }
   0xe   :  { %279 = vmatpush.bf16.msra.mxu2 %v475_v21  ;;  %v513_v37 = vld [vmem:[#allocation3 + $0x84] sm:$0xf]  ;;  %293 = vmatpush.bf16.msra.mxu3 %v479_v25  ;;  %v463_v38 = vor.u32 %v518_v31, %v460_v32  ;;  %v436_v39 = vld [vmem:[#allocation3 + $0x90] sm:$0xf0]  ;;  %v442_v40 = vld [vmem:[#allocation3 + $0x88] sm:$0xf]  ;;  %v435_v44 = vor.u32 %v515_v36, %v434_v35 }
   0xf   :  { %v516_v41 = vld [vmem:[#allocation3 + $0x94] sm:$0xf0]  ;;  %v514_v42 = vld [vmem:[#allocation3 + $0x8c] sm:$0xf]  ;;  %v444_v43 = vld [vmem:[#allocation3 + $0x98] sm:$0xf0]  ;;  %v439_v45 = vor.u32 %v513_v37, %v436_v39 }
  0x10   :  { %252 = vmatpush.bf16.msra.mxu0 %v451_v29  ;;  %v443_v46 = vor.u32 %v516_v41, %v442_v40  ;;  %v418_v47 = vld [vmem:[#allocation3 + $0x60] sm:$0xf]  ;;  %v511_v48 = vld [vmem:[#allocation3 + $0x6c] sm:$0xf0]  ;;  %v509_v49 = vld [vmem:[#allocation3 + $0x64] sm:$0xf]  ;;  %v447_v50 = vor.u32 %v514_v42, %v444_v43 }
  0x11   :  { %266 = vmatpush.bf16.msra.mxu1 %v455_v33  ;;  %v420_v51 = vld [vmem:[#allocation3 + $0x70] sm:$0xf0]  ;;  %v426_v52 = vld [vmem:[#allocation3 + $0x68] sm:$0xf]  ;;  %v512_v53 = vld [vmem:[#allocation3 + $0x74] sm:$0xf0]  ;;  %v419_v56 = vor.u32 %v511_v48, %v418_v47 }
  0x12   :  { %280 = vmatpush.bf16.msra.mxu2 %v459_v34  ;;  %294 = vmatpush.bf16.msra.mxu3 %v463_v38  ;;  %v510_v54 = vld [vmem:[#allocation3 + $0x6c] sm:$0xf]  ;;  %v428_v55 = vld [vmem:[#allocation3 + $0x78] sm:$0xf0]  ;;  %v423_v57 = vor.u32 %v509_v49, %v420_v51  ;;  %v427_v58 = vor.u32 %v512_v53, %v426_v52  ;;  %v402_v59 = vld [vmem:[#allocation3 + $0x40] sm:$0xf] }
  0x13   :  { %v507_v60 = vld [vmem:[#allocation3 + $0x4c] sm:$0xf0]  ;;  %v505_v61 = vld [vmem:[#allocation3 + $0x44] sm:$0xf]  ;;  %v431_v62 = vor.u32 %v510_v54, %v428_v55  ;;  %v404_v63 = vld [vmem:[#allocation3 + $0x50] sm:$0xf0] }
  0x14   :  { %253 = vmatpush.bf16.msra.mxu0 %v435_v44  ;;  %v410_v0 = vld [vmem:[#allocation3 + $0x48] sm:$0xf]  ;;  %v508_v1 = vld [vmem:[#allocation3 + $0x54] sm:$0xf0]  ;;  %v506_v2 = vld [vmem:[#allocation3 + $0x4c] sm:$0xf]  ;;  %v403_v4 = vor.u32 %v507_v60, %v402_v59  ;;  %v407_v5 = vor.u32 %v505_v61, %v404_v63 }
  0x15   :  { %267 = vmatpush.bf16.msra.mxu1 %v439_v45  ;;  %v412_v3 = vld [vmem:[#allocation3 + $0x58] sm:$0xf0]  ;;  %v411_v6 = vor.u32 %v508_v1, %v410_v0  ;;  %v386_v7 = vld [vmem:[#allocation3 + $0x20] sm:$0xf]  ;;  %v503_v8 = vld [vmem:[#allocation3 + $0x2c] sm:$0xf0] }
  0x16   :  { %281 = vmatpush.bf16.msra.mxu2 %v443_v46  ;;  %295 = vmatpush.bf16.msra.mxu3 %v447_v50  ;;  %v501_v9 = vld [vmem:[#allocation3 + $0x24] sm:$0xf]  ;;  %v415_v10 = vor.u32 %v506_v2, %v412_v3  ;;  %v388_v11 = vld [vmem:[#allocation3 + $0x30] sm:$0xf0]  ;;  %v394_v12 = vld [vmem:[#allocation3 + $0x28] sm:$0xf]  ;;  %v387_v16 = vor.u32 %v503_v8, %v386_v7 }
  0x17   :  { %v504_v13 = vld [vmem:[#allocation3 + $0x34] sm:$0xf0]  ;;  %v502_v14 = vld [vmem:[#allocation3 + $0x2c] sm:$0xf]  ;;  %v396_v15 = vld [vmem:[#allocation3 + $0x38] sm:$0xf0]  ;;  %v391_v17 = vor.u32 %v501_v9, %v388_v11 }
  0x18   :  { %254 = vmatpush.bf16.msra.mxu0 %v419_v56  ;;  %v395_v18 = vor.u32 %v504_v13, %v394_v12  ;;  %v370_v19 = vld [vmem:[#allocation3] sm:$0xf]  ;;  %v499_v20 = vld [vmem:[#allocation3 + $0xc] sm:$0xf0]  ;;  %v497_v21 = vld [vmem:[#allocation3 + $0x4] sm:$0xf]  ;;  %v399_v22 = vor.u32 %v502_v14, %v396_v15 }
  0x19   :  { %268 = vmatpush.bf16.msra.mxu1 %v423_v57  ;;  %v372_v23 = vld [vmem:[#allocation3 + $0x10] sm:$0xf0]  ;;  %v378_v24 = vld [vmem:[#allocation3 + $0x8] sm:$0xf]  ;;  %v500_v25 = vld [vmem:[#allocation3 + $0x14] sm:$0xf0]  ;;  %v371_v28 = vor.u32 %v499_v20, %v370_v19 }
  0x1a   :  { %282 = vmatpush.bf16.msra.mxu2 %v427_v58  ;;  %296 = vmatpush.bf16.msra.mxu3 %v431_v62  ;;  %v498_v26 = vld [vmem:[#allocation3 + $0xc] sm:$0xf]  ;;  %v380_v27 = vld [vmem:[#allocation3 + $0x18] sm:$0xf0]  ;;  %v375_v29 = vor.u32 %v497_v21, %v372_v23  ;;  %v379_v30 = vor.u32 %v500_v25, %v378_v24  ;;  %v496_v32 = vld [vmem:[%s614_s0] sm:$0xff] }
  0x1b   :  { %v383_v31 = vor.u32 %v498_v26, %v380_v27  ;;  %v333_v33 = vld [vmem:[%s616_s2] sm:$0xf] }
  0x1c   :  { %255 = vmatpush.bf16.msra.mxu0 %v403_v4  ;;  %v335_v34 = vperm.slane %v333_v33, 0  ;;  %v336_v35 = vperm.slane %v333_v33, 1  ;;  %v337_v40 = vperm.slane %v333_v33, 2  ;;  %v338_v41 = vperm.slane %v333_v33, 3 }
  0x1d   :  { %269 = vmatpush.bf16.msra.mxu1 %v407_v5 }
  0x1e   :  { %283 = vmatpush.bf16.msra.mxu2 %v411_v6  ;;  %297 = vmatpush.bf16.msra.mxu3 %v415_v10 }
  0x20   :  { %256 = vmatpush.bf16.msra.mxu0 %v387_v16 }
  0x21   :  { %270 = vmatpush.bf16.msra.mxu1 %v391_v17 }
  0x22   :  { %284 = vmatpush.bf16.msra.mxu2 %v395_v18  ;;  %298 = vmatpush.bf16.msra.mxu3 %v399_v22 }
  0x24   :  { %257 = vmatpush.bf16.msra.mxu0 %v371_v28 }
  0x25   :  { %271 = vmatpush.bf16.msra.mxu1 %v375_v29 }
  0x26   :  { %285 = vmatpush.bf16.msra.mxu2 %v379_v30  ;;  %299 = vmatpush.bf16.msra.mxu3 %v383_v31 }
  0x27   :  { %258 = vmatmul.bf16.vlgmr.msra.gmra.mxu0 %v496_v32 }
  0x28   :  { %272 = vmatmul.bf16.vlgmr.msra.gmra.mxu1 %v496_v32 }
  0x29   :  { %286 = vmatmul.bf16.vlgmr.msra.gmra.mxu2 %v496_v32  ;;  %300 = vmatmul.bf16.vlgmr.msra.gmra.mxu3 %v496_v32 }
  0xa4   :  { %v259_v36 = vpop.f32.mrf.mxu0 }
  0xa5   :  { %v343_v37 = vadd.f32 %v335_v34, %v259_v36  ;;  %v273_v38 = vpop.f32.mrf.mxu1 }
  0xa6   :  { %v344_v39 = vadd.f32 %v336_v35, %v273_v38 }
  0xa7   :  { %351 = vst [vmem:[%s617_s3] sm:$0xff] %v343_v37 }
  0xa8   :  { %352 = vst [vmem:[%s617_s3 + $0x8] sm:$0xff] %v344_v39 }
  0xac   :  { %v287_v42 = vpop.f32.mrf.mxu2  ;;  %v301_v44 = vpop.f32.mrf.mxu3 }
  0xad   :  { %v345_v43 = vadd.f32 %v337_v40, %v287_v42  ;;  %v261_v45 = vpop.f32.mrf.mxu0  ;;  %v346_v46 = vadd.f32 %v338_v41, %v301_v44  ;;  %v275_v48 = vpop.f32.mrf.mxu1 }
  0xae   :  { %v347_v47 = vadd.f32 %v335_v34, %v261_v45  ;;  %v348_v49 = vadd.f32 %v336_v35, %v275_v48 }
  0xaf   :  { %353 = vst [vmem:[%s617_s3 + $0x10] sm:$0xff] %v345_v43 }
  0xb0   :  { %354 = vst [vmem:[%s617_s3 + $0x18] sm:$0xff] %v346_v46 }
  0xb1   :  { %355 = vst [vmem:[%s617_s3 + $0x20] sm:$0xff] %v347_v47 }
  0xb2   :  { %356 = vst [vmem:[%s617_s3 + $0x28] sm:$0xff] %v348_v49 }
  0xb4   :  { %v289_v50 = vpop.f32.mrf.mxu2  ;;  %v303_v52 = vpop.f32.mrf.mxu3 }
  0xb5   :  { %v349_v51 = vadd.f32 %v337_v40, %v289_v50  ;;  %v350_v53 = vadd.f32 %v338_v41, %v303_v52 }
  0xb7   :  { %357 = vst [vmem:[%s617_s3 + $0x30] sm:$0xff] %v349_v51 }
  0xb8   :  { %358 = vst [vmem:[%s617_s3 + $0x38] sm:$0xff] %v350_v53 }
  0xb9   :  { %363 = vsyncpa [#allocation4], 1 }

// kernel: seq2seq_forward.14
= control target key start
LH: loop header
LB: loop body
LE: loop exit
PB: predicated region body
PF: predicated region fallthrough
CT: control target
= control target key end

     0   :  { %12 = vsyncpa [#allocation5], 0  ;;  %s2422_s0 = inlined_call_operand.vmem [shape: f32[8,2,512], index: 0, kind: input, shape index: {}]   ;;  %s2423_s1 = inlined_call_operand.vmem [shape: f32[2,128], index: 1, kind: input, shape index: {}]   ;;  %s2424_s2 = inlined_call_operand.vmem [shape: f32[2,128], index: 2, kind: input, shape index: {}]   ;;  %s2425_s3 = inlined_call_operand.vmem [shape: bf16[128,512], index: 3, kind: input, shape index: {}]   ;;  %s2426_s4 = inlined_call_operand.vmem [shape: bf16[8,2,128], index: 4, kind: output, shape index: {0}]   ;;  %s2427_s5 = inlined_call_operand.hbm [shape: f32[2,128], index: 5, kind: output, shape index: {1}]   ;;  %s2428_s6 = inlined_call_operand.hbm [shape: f32[2,128], index: 6, kind: output, shape index: {2}]  }
   0x1   :  { %v1495_v0 = vld [vmem:[%s2425_s3 + $0xe0] sm:$0xf]  ;;  %v1577_v1 = vld [vmem:[%s2425_s3 + $0xec] sm:$0xf0]  ;;  %v1575_v2 = vld [vmem:[%s2425_s3 + $0xe4] sm:$0xf] }
   0x2   :  { %v1807_v3 = vor.u32 %v1577_v1, %v1495_v0  ;;  %v1497_v4 = vld [vmem:[%s2425_s3 + $0xf0] sm:$0xf0]  ;;  %v1503_v5 = vld [vmem:[%s2425_s3 + $0xe8] sm:$0xf]  ;;  %v1578_v6 = vld [vmem:[%s2425_s3 + $0xf4] sm:$0xf0] }
   0x3   :  { %v1818_v7 = vor.u32 %v1575_v2, %v1497_v4  ;;  %v1820_v8 = vor.u32 %v1578_v6, %v1503_v5  ;;  %v1576_v9 = vld [vmem:[%s2425_s3 + $0xec] sm:$0xf]  ;;  %v1505_v10 = vld [vmem:[%s2425_s3 + $0xf8] sm:$0xf0]  ;;  %v1479_v11 = vld [vmem:[%s2425_s3 + $0xc0] sm:$0xf] }
   0x4   :  { %226 = vmatpush.bf16.msra.mxu0 %v1807_v3  ;;  %v1832_v12 = vor.u32 %v1576_v9, %v1505_v10  ;;  %v1573_v13 = vld [vmem:[%s2425_s3 + $0xcc] sm:$0xf0]  ;;  %v1571_v14 = vld [vmem:[%s2425_s3 + $0xc4] sm:$0xf]  ;;  %v1481_v15 = vld [vmem:[%s2425_s3 + $0xd0] sm:$0xf0] }
   0x5   :  { %239 = vmatpush.bf16.msra.mxu1 %v1818_v7  ;;  %252 = vmatpush.bf16.msra.mxu2 %v1820_v8  ;;  %v1845_v16 = vor.u32 %v1573_v13, %v1479_v11  ;;  %v1847_v17 = vor.u32 %v1571_v14, %v1481_v15  ;;  %v1487_v18 = vld [vmem:[%s2425_s3 + $0xc8] sm:$0xf]  ;;  %v1574_v19 = vld [vmem:[%s2425_s3 + $0xd4] sm:$0xf0]  ;;  %v1572_v20 = vld [vmem:[%s2425_s3 + $0xcc] sm:$0xf] }
   0x6   :  { %265 = vmatpush.bf16.msra.mxu3 %v1832_v12  ;;  %v1859_v21 = vor.u32 %v1574_v19, %v1487_v18  ;;  %v1489_v22 = vld [vmem:[%s2425_s3 + $0xd8] sm:$0xf0]  ;;  %v1463_v23 = vld [vmem:[%s2425_s3 + $0xa0] sm:$0xf]  ;;  %v1569_v24 = vld [vmem:[%s2425_s3 + $0xac] sm:$0xf0] }
   0x7   :  { %v1870_v25 = vor.u32 %v1572_v20, %v1489_v22  ;;  %v1567_v26 = vld [vmem:[%s2425_s3 + $0xa4] sm:$0xf]  ;;  %v1465_v27 = vld [vmem:[%s2425_s3 + $0xb0] sm:$0xf0]  ;;  %v1471_v28 = vld [vmem:[%s2425_s3 + $0xa8] sm:$0xf]  ;;  %v1882_v29 = vor.u32 %v1569_v24, %v1463_v23 }
   0x8   :  { %227 = vmatpush.bf16.msra.mxu0 %v1845_v16  ;;  %v1570_v30 = vld [vmem:[%s2425_s3 + $0xb4] sm:$0xf0]  ;;  %v1568_v31 = vld [vmem:[%s2425_s3 + $0xac] sm:$0xf]  ;;  %v1473_v32 = vld [vmem:[%s2425_s3 + $0xb8] sm:$0xf0]  ;;  %v1895_v33 = vor.u32 %v1567_v26, %v1465_v27 }
   0x9   :  { %240 = vmatpush.bf16.msra.mxu1 %v1847_v17  ;;  %253 = vmatpush.bf16.msra.mxu2 %v1859_v21  ;;  %v1897_v34 = vor.u32 %v1570_v30, %v1471_v28  ;;  %v1447_v35 = vld [vmem:[%s2425_s3 + $0x80] sm:$0xf]  ;;  %v1565_v36 = vld [vmem:[%s2425_s3 + $0x8c] sm:$0xf0]  ;;  %v1563_v37 = vld [vmem:[%s2425_s3 + $0x84] sm:$0xf]  ;;  %v1909_v38 = vor.u32 %v1568_v31, %v1473_v32 }
   0xa   :  { %266 = vmatpush.bf16.msra.mxu3 %v1870_v25  ;;  %v1449_v39 = vld [vmem:[%s2425_s3 + $0x90] sm:$0xf0]  ;;  %v1455_v40 = vld [vmem:[%s2425_s3 + $0x88] sm:$0xf]  ;;  %v1566_v41 = vld [vmem:[%s2425_s3 + $0x94] sm:$0xf0]  ;;  %v1927_v44 = vor.u32 %v1565_v36, %v1447_v35 }
   0xb   :  { %v1564_v42 = vld [vmem:[%s2425_s3 + $0x8c] sm:$0xf]  ;;  %v1457_v43 = vld [vmem:[%s2425_s3 + $0x98] sm:$0xf0]  ;;  %v1931_v45 = vor.u32 %v1563_v37, %v1449_v39  ;;  %v1933_v46 = vor.u32 %v1566_v41, %v1455_v40  ;;  %v1431_v47 = vld [vmem:[%s2425_s3 + $0x60] sm:$0xf] }
   0xc   :  { %228 = vmatpush.bf16.msra.mxu0 %v1882_v29  ;;  %v1561_v48 = vld [vmem:[%s2425_s3 + $0x6c] sm:$0xf0]  ;;  %v1559_v49 = vld [vmem:[%s2425_s3 + $0x64] sm:$0xf]  ;;  %v1945_v50 = vor.u32 %v1564_v42, %v1457_v43  ;;  %v1433_v51 = vld [vmem:[%s2425_s3 + $0x70] sm:$0xf0] }
   0xd   :  { %241 = vmatpush.bf16.msra.mxu1 %v1895_v33  ;;  %254 = vmatpush.bf16.msra.mxu2 %v1897_v34  ;;  %v1439_v52 = vld [vmem:[%s2425_s3 + $0x68] sm:$0xf]  ;;  %v1562_v53 = vld [vmem:[%s2425_s3 + $0x74] sm:$0xf0]  ;;  %v1560_v54 = vld [vmem:[%s2425_s3 + $0x6c] sm:$0xf]  ;;  %v1963_v56 = vor.u32 %v1561_v48, %v1431_v47  ;;  %v1967_v57 = vor.u32 %v1559_v49, %v1433_v51 }
   0xe   :  { %267 = vmatpush.bf16.msra.mxu3 %v1909_v38  ;;  %v1441_v55 = vld [vmem:[%s2425_s3 + $0x78] sm:$0xf0]  ;;  %v1969_v58 = vor.u32 %v1562_v53, %v1439_v52  ;;  %v1415_v59 = vld [vmem:[%s2425_s3 + $0x40] sm:$0xf]  ;;  %v1557_v60 = vld [vmem:[%s2425_s3 + $0x4c] sm:$0xf0] }
   0xf   :  { %v1555_v61 = vld [vmem:[%s2425_s3 + $0x44] sm:$0xf]  ;;  %v1981_v62 = vor.u32 %v1560_v54, %v1441_v55  ;;  %v1417_v63 = vld [vmem:[%s2425_s3 + $0x50] sm:$0xf0]  ;;  %v1423_v0 = vld [vmem:[%s2425_s3 + $0x48] sm:$0xf]  ;;  %v1999_v5 = vor.u32 %v1557_v60, %v1415_v59 }
  0x10   :  { %229 = vmatpush.bf16.msra.mxu0 %v1927_v44  ;;  %v1558_v1 = vld [vmem:[%s2425_s3 + $0x54] sm:$0xf0]  ;;  %v1556_v2 = vld [vmem:[%s2425_s3 + $0x4c] sm:$0xf]  ;;  %v1425_v4 = vld [vmem:[%s2425_s3 + $0x58] sm:$0xf0]  ;;  %v2009_v10 = vor.u32 %v1555_v61, %v1417_v63 }
  0x11   :  { %242 = vmatpush.bf16.msra.mxu1 %v1931_v45  ;;  %255 = vmatpush.bf16.msra.mxu2 %v1933_v46  ;;  %v1399_v6 = vld [vmem:[%s2425_s3 + $0x20] sm:$0xf]  ;;  %v1553_v9 = vld [vmem:[%s2425_s3 + $0x2c] sm:$0xf0]  ;;  %v2011_v11 = vor.u32 %v1558_v1, %v1423_v0  ;;  %v1551_v13 = vld [vmem:[%s2425_s3 + $0x24] sm:$0xf]  ;;  %v2023_v18 = vor.u32 %v1556_v2, %v1425_v4 }
  0x12   :  { %268 = vmatpush.bf16.msra.mxu3 %v1945_v50  ;;  %v1401_v14 = vld [vmem:[%s2425_s3 + $0x30] sm:$0xf0]  ;;  %v1407_v15 = vld [vmem:[%s2425_s3 + $0x28] sm:$0xf]  ;;  %v1554_v19 = vld [vmem:[%s2425_s3 + $0x34] sm:$0xf0] }
  0x13   :  { %v26_v20 = vld [vmem:[%s2423_s1] sm:$0x3] }
  0x14   :  { %230 = vmatpush.bf16.msra.mxu0 %v1963_v56 }
  0x15   :  { %243 = vmatpush.bf16.msra.mxu1 %v1967_v57  ;;  %256 = vmatpush.bf16.msra.mxu2 %v1969_v58 }
  0x16   :  { %269 = vmatpush.bf16.msra.mxu3 %v1981_v62 }
  0x17   :  { %13 = vsyncpa [#allocation7], 0  ;;  %v1552_v22 = vld [vmem:[%s2425_s3 + $0x2c] sm:$0xf]  ;;  %v1409_v23 = vld [vmem:[%s2425_s3 + $0x38] sm:$0xf0]  ;;  %v2038_v24 = vor.u32 %v1553_v9, %v1399_v6  ;;  %v2042_v26 = vor.u32 %v1551_v13, %v1401_v14  ;;  %v2044_v27 = vor.u32 %v1554_v19, %v1407_v15 }
  0x18   :  { %27 = vst [vmem:[#allocation2] sm:$0x3] %v26_v20  ;;  %231 = vmatpush.bf16.msra.mxu0 %v1999_v5  ;;  %v1383_v28 = vld [vmem:[%s2425_s3] sm:$0xf]  ;;  %v1549_v30 = vld [vmem:[%s2425_s3 + $0xc] sm:$0xf0]  ;;  %v2056_v32 = vor.u32 %v1552_v22, %v1409_v23 }
  0x19   :  { %244 = vmatpush.bf16.msra.mxu1 %v2009_v10  ;;  %257 = vmatpush.bf16.msra.mxu2 %v2011_v11  ;;  %v1547_v31 = vld [vmem:[%s2425_s3 + $0x4] sm:$0xf]  ;;  %v1385_v35 = vld [vmem:[%s2425_s3 + $0x10] sm:$0xf0]  ;;  %v1391_v36 = vld [vmem:[%s2425_s3 + $0x8] sm:$0xf]  ;;  %v2074_v41 = vor.u32 %v1549_v30, %v1383_v28 }
  0x1a   :  { %270 = vmatpush.bf16.msra.mxu3 %v2023_v18  ;;  %v1550_v37 = vld [vmem:[%s2425_s3 + $0x14] sm:$0xf0]  ;;  %v1548_v39 = vld [vmem:[%s2425_s3 + $0xc] sm:$0xf]  ;;  %v1393_v40 = vld [vmem:[%s2425_s3 + $0x18] sm:$0xf0]  ;;  %v2078_v42 = vor.u32 %v1547_v31, %v1385_v35 }
  0x1b   :  { %v2080_v43 = vor.u32 %v1550_v37, %v1391_v36  ;;  %v2083_v47 = vor.u32 %v1548_v39, %v1393_v40  ;;  %v28_v54 = vld [vmem:[%s2424_s2] sm:$0x3]  ;;  %vm285_vm0 = vcmask 1041408   ;;  %vm287_vm1 = vcmask 1045508   ;;  %s1365_s12 = sshll.u32 %s2428_s6, 4  ;;  %s1762_s13 = smov [#allocation4]   ;;  %s1366_s12 = int_to_ptr.hbm [resolvable:$true] %s1365_s12 }
  0x1c   :  { %232 = vmatpush.bf16.msra.mxu0 %v2038_v24  ;;  %29 = vst [vmem:[#allocation3] sm:$0x3] %v28_v54  ;;  %vm289_vm2 = vcmask 1043456   ;;  %v64_v2 = vld [vmem:[%s2422_s0] sm:$0xff]  ;;  %s1352_s14 = sshll.u32 %s1762_s13, 4  ;;  %s1354_s15 = sshll.u32 %s2427_s5, 4  ;;  %s1353_s14 = int_to_ptr.vmem [resolvable:$true] %s1352_s14  ;;  %s1355_s15 = int_to_ptr.hbm [resolvable:$true] %s1354_s15 }
  0x1d   :  { %245 = vmatpush.bf16.msra.mxu1 %v2042_v26  ;;  %258 = vmatpush.bf16.msra.mxu2 %v2044_v27 }
  0x1e   :  { %271 = vmatpush.bf16.msra.mxu3 %v2056_v32 }
  0x1f   :  { %v62_v48 = vld [vmem:[#allocation2] sm:$0x3] }
  0x20   :  { %v65_v49 = vpack.c.bf16 %v62_v48, %v62_v48  ;;  %233 = vmatpush.bf16.msra.mxu0 %v2074_v41 }
  0x21   :  { %246 = vmatpush.bf16.msra.mxu1 %v2078_v42  ;;  %259 = vmatpush.bf16.msra.mxu2 %v2080_v43 }
  0x22   :  { %272 = vmatpush.bf16.msra.mxu3 %v2083_v47 }
  0x23   :  { %234 = vmatmul.bf16.vlgmr.msra.gmra.mxu0 %v65_v49 }
  0x24   :  { %367 = vmatpush.bf16.msrb.mxu0 %v1807_v3  ;;  %247 = vmatmul.bf16.vlgmr.msra.gmra.mxu1 %v65_v49 }
  0x25   :  { %380 = vmatpush.bf16.msrb.mxu1 %v1818_v7  ;;  %260 = vmatmul.bf16.vlgmr.msra.gmra.mxu2 %v65_v49 }
  0x26   :  { %273 = vmatmul.bf16.vlgmr.msra.gmra.mxu3 %v65_v49  ;;  %393 = vmatpush.bf16.msrb.mxu2 %v1820_v8 }
  0x27   :  { %406 = vmatpush.bf16.msrb.mxu3 %v1832_v12 }
  0x28   :  { %368 = vmatpush.bf16.msrb.mxu0 %v1845_v16 }
  0x29   :  { %381 = vmatpush.bf16.msrb.mxu1 %v1847_v17 }
  0x2a   :  { %394 = vmatpush.bf16.msrb.mxu2 %v1859_v21 }
  0x2b   :  { %407 = vmatpush.bf16.msrb.mxu3 %v1870_v25 }
  0x2c   :  { %369 = vmatpush.bf16.msrb.mxu0 %v1882_v29 }
  0x2d   :  { %382 = vmatpush.bf16.msrb.mxu1 %v1895_v33 }
  0x2e   :  { %395 = vmatpush.bf16.msrb.mxu2 %v1897_v34 }
  0x2f   :  { %408 = vmatpush.bf16.msrb.mxu3 %v1909_v38 }
  0x30   :  { %370 = vmatpush.bf16.msrb.mxu0 %v1927_v44 }
  0x31   :  { %383 = vmatpush.bf16.msrb.mxu1 %v1931_v45 }
  0x32   :  { %396 = vmatpush.bf16.msrb.mxu2 %v1933_v46 }
  0x33   :  { %409 = vmatpush.bf16.msrb.mxu3 %v1945_v50 }
  0x34   :  { %371 = vmatpush.bf16.msrb.mxu0 %v1963_v56 }
  0x35   :  { %384 = vmatpush.bf16.msrb.mxu1 %v1967_v57 }
  0x36   :  { %397 = vmatpush.bf16.msrb.mxu2 %v1969_v58 }
  0x37   :  { %410 = vmatpush.bf16.msrb.mxu3 %v1981_v62 }
  0x38   :  { %372 = vmatpush.bf16.msrb.mxu0 %v1999_v5 }
  0x39   :  { %385 = vmatpush.bf16.msrb.mxu1 %v2009_v10 }
  0x3a   :  { %398 = vmatpush.bf16.msrb.mxu2 %v2011_v11 }
  0x3b   :  { %411 = vmatpush.bf16.msrb.mxu3 %v2023_v18 }
  0x3c   :  { %373 = vmatpush.bf16.msrb.mxu0 %v2038_v24 }
  0x3d   :  { %386 = vmatpush.bf16.msrb.mxu1 %v2042_v26 }
  0x3e   :  { %399 = vmatpush.bf16.msrb.mxu2 %v2044_v27 }
  0x3f   :  { %412 = vmatpush.bf16.msrb.mxu3 %v2056_v32 }
  0x40   :  { %374 = vmatpush.bf16.msrb.mxu0 %v2074_v41 }
  0x41   :  { %387 = vmatpush.bf16.msrb.mxu1 %v2078_v42 }
  0x42   :  { %400 = vmatpush.bf16.msrb.mxu2 %v2080_v43 }
  0x43   :  { %413 = vmatpush.bf16.msrb.mxu3 %v2083_v47 }
  0x44   :  { %506 = vmatpush.bf16.msra.mxu0 %v1807_v3 }
  0x45   :  { %519 = vmatpush.bf16.msra.mxu1 %v1818_v7 }
  0x46   :  { %532 = vmatpush.bf16.msra.mxu2 %v1820_v8 }
  0x47   :  { %545 = vmatpush.bf16.msra.mxu3 %v1832_v12 }
  0x48   :  { %507 = vmatpush.bf16.msra.mxu0 %v1845_v16 }
  0x49   :  { %520 = vmatpush.bf16.msra.mxu1 %v1847_v17 }
  0x4a   :  { %533 = vmatpush.bf16.msra.mxu2 %v1859_v21 }
  0x4b   :  { %546 = vmatpush.bf16.msra.mxu3 %v1870_v25 }
  0x4c   :  { %508 = vmatpush.bf16.msra.mxu0 %v1882_v29 }
  0x4d   :  { %521 = vmatpush.bf16.msra.mxu1 %v1895_v33 }
  0x4e   :  { %534 = vmatpush.bf16.msra.mxu2 %v1897_v34 }
  0x4f   :  { %547 = vmatpush.bf16.msra.mxu3 %v1909_v38 }
  0x50   :  { %509 = vmatpush.bf16.msra.mxu0 %v1927_v44 }
  0x51   :  { %522 = vmatpush.bf16.msra.mxu1 %v1931_v45 }
  0x52   :  { %535 = vmatpush.bf16.msra.mxu2 %v1933_v46 }
  0x53   :  { %548 = vmatpush.bf16.msra.mxu3 %v1945_v50 }
  0x54   :  { %510 = vmatpush.bf16.msra.mxu0 %v1963_v56 }
  0x55   :  { %523 = vmatpush.bf16.msra.mxu1 %v1967_v57 }
  0x56   :  { %536 = vmatpush.bf16.msra.mxu2 %v1969_v58 }
  0x57   :  { %549 = vmatpush.bf16.msra.mxu3 %v1981_v62 }
  0x58   :  { %511 = vmatpush.bf16.msra.mxu0 %v1999_v5 }
  0x59   :  { %524 = vmatpush.bf16.msra.mxu1 %v2009_v10 }
  0x5a   :  { %537 = vmatpush.bf16.msra.mxu2 %v2011_v11 }
  0x5b   :  { %550 = vmatpush.bf16.msra.mxu3 %v2023_v18 }
  0x5c   :  { %512 = vmatpush.bf16.msra.mxu0 %v2038_v24 }
  0x5d   :  { %525 = vmatpush.bf16.msra.mxu1 %v2042_v26 }
  0x5e   :  { %538 = vmatpush.bf16.msra.mxu2 %v2044_v27 }
  0x5f   :  { %551 = vmatpush.bf16.msra.mxu3 %v2056_v32 }
  0x60   :  { %513 = vmatpush.bf16.msra.mxu0 %v2074_v41 }
  0x61   :  { %526 = vmatpush.bf16.msra.mxu1 %v2078_v42 }
  0x62   :  { %539 = vmatpush.bf16.msra.mxu2 %v2080_v43 }
  0x63   :  { %552 = vmatpush.bf16.msra.mxu3 %v2083_v47 }
  0xa0   :  { %v235_v51 = vpop.f32.mrf.mxu0 }
  0xa1   :  { %v248_v52 = vpop.f32.mrf.mxu1 }
  0xa2   :  { %v282_v53 = vrot.slane %v248_v52, 6 }
  0xa4   :  { %v286_v63 = vsel %vm285_vm0, %v235_v51, %v282_v53 }
  0xa8   :  { %v261_v55 = vpop.f32.mrf.mxu2  ;;  %v237_v61 = vpop.f32.mrf.mxu0 }
  0xa9   :  { %v283_v59 = vrot.slane %v261_v55, 4  ;;  %v274_v60 = vpop.f32.mrf.mxu3  ;;  %v250_v1 = vpop.f32.mrf.mxu1 }
  0xaa   :  { %v284_v0 = vrot.slane %v274_v60, 2 }
  0xac   :  { %v288_v4 = vsel %vm287_vm1, %v283_v59, %v284_v0 }
  0xad   :  { %v290_v6 = vsel %vm289_vm2, %v286_v63, %v288_v4 }
  0xae   :  { %v292_v9 = vadd.f32 %v290_v6, %v64_v2 }
  0xb0   :  { %v1509_v13 = vmul.f32 -1.442695, %v292_v9  ;;  %v313_v14 = vrot.slane %v292_v9, 2  ;;  %v337_v15 = vrot.slane %v292_v9, 6  ;;  %v263_v19 = vpop.f32.mrf.mxu2  ;;  %v334_v49 = vrot.slane %v292_v9, 4 }
  0xb1   :  { %v276_v20 = vpop.f32.mrf.mxu3 }
  0xb2   :  { %1581 = vpow2.f32 %v1509_v13  ;;  %v1510_v22 = vmul.f32 -1.442695, %v313_v14  ;;  %v1511_v23 = vmul.f32 -1.442695, %v337_v15  ;;  %v63_v14 = vld [vmem:[#allocation3] sm:$0x3] }
  0xb4   :  { %1583 = vpow2.f32 %v1510_v22 }
  0xb5   :  { %1585 = vpow2.f32 %v1511_v23 }
  0xb8   :  { %v1582_v28 = vpop.eup %1581 }
  0xb9   :  { %v296_v30 = vadd.f32 1.0, %v1582_v28 }
  0xba   :  { %v1584_v31 = vpop.eup %1583 }
  0xbb   :  { %v1586_v35 = vpop.eup %1585  ;;  %1587 = vrcp.f32 %v296_v30  ;;  %v318_v36 = vadd.f32 1.0, %v1584_v31  ;;  %v308_v54 = vand.u32 2147483648, %v296_v30  ;;  %v306_v61 = vand.u32 2147483647, %v296_v30 }
  0xbc   :  { %v342_v37 = vadd.f32 1.0, %v1586_v35  ;;  %vm302_vm4 = vweird.f32 %v296_v30 }
  0xbd   :  { %1589 = vrcp.f32 %v318_v36  ;;  %v330_v63 = vand.u32 2147483648, %v318_v36  ;;  %v328_v2 = vand.u32 2147483647, %v318_v36  ;;  %v309_v4 = vor.u32 1.1754944e-38, %v308_v54 }
  0xbe   :  { %1591 = vrcp.f32 %v342_v37  ;;  %vm307_vm7 = vcmp.eq.f32.partialorder %v306_v61, 8.507059e+37  ;;  %vm324_vm8 = vweird.f32 %v318_v36  ;;  %vm348_vm12 = vweird.f32 %v342_v37 }
  0xbf   :  { %1593 = vtanh.f32 %v334_v49  ;;  %v331_v19 = vor.u32 1.1754944e-38, %v330_v63  ;;  %vm329_vm10 = vcmp.eq.f32.partialorder %v328_v2, 8.507059e+37  ;;  %v354_v49 = vand.u32 2147483648, %v342_v37 }
  0xc1   :  { %v1588_v39 = vpop.eup %1587 }
  0xc2   :  { %v298_v40 = vmul.f32 %v1588_v39, %v296_v30  ;;  %vm303_vm3 = vweird.f32 %v1588_v39 }
  0xc3   :  { %v1590_v48 = vpop.eup %1589  ;;  %vm304_vm6 = vmor %vm302_vm4, %vm303_vm3 }
  0xc4   :  { %v1592_v51 = vpop.eup %1591  ;;  %v299_v52 = vsub.f32 1.0, %v298_v40  ;;  %v320_v53 = vmul.f32 %v1590_v48, %v318_v36  ;;  %vm325_vm5 = vweird.f32 %v1590_v48  ;;  %v352_v36 = vand.u32 2147483647, %v342_v37 }
  0xc5   :  { %v344_v55 = vmul.f32 %v1592_v51, %v342_v37  ;;  %vm326_vm9 = vmor %vm324_vm8, %vm325_vm5  ;;  %v1594_v22 = vpop.eup %1593  ;;  %vm349_vm11 = vweird.f32 %v1592_v51 }
  0xc6   :  { %v321_v59 = vsub.f32 1.0, %v320_v53  ;;  %v300_v60 = vmul.f32 %v1588_v39, %v299_v52  ;;  %vm350_vm13 = vmor %vm348_vm12, %vm349_vm11  ;;  %v355_v52 = vor.u32 1.1754944e-38, %v354_v49  ;;  %vm353_vm14 = vcmp.eq.f32.partialorder %v352_v36, 8.507059e+37 }
  0xc7   :  { %v345_v6 = vsub.f32 1.0, %v344_v55 }
  0xc8   :  { %v301_v0 = vadd.f32 %v1588_v39, %v300_v60  ;;  %v322_v1 = vmul.f32 %v1590_v48, %v321_v59 }
  0xc9   :  { %v346_v28 = vmul.f32 %v1592_v51, %v345_v6 }
  0xca   :  { %v305_v9 = vsel %vm304_vm6, %v1588_v39, %v301_v0  ;;  %v323_v13 = vadd.f32 %v1590_v48, %v322_v1 }
  0xcb   :  { %v310_v15 = vsel %vm307_vm7, %v309_v4, %v305_v9  ;;  %v347_v40 = vadd.f32 %v1592_v51, %v346_v28  ;;  %v1512_v4 = vld [vmem:[%s2422_s0 + $0x8] sm:$0xff] }
  0xcc   :  { %v327_v20 = vsel %vm326_vm9, %v1590_v48, %v323_v13  ;;  %v359_v31 = vmul.f32 %v1594_v22, %v310_v15 }
  0xcd   :  { %v332_v23 = vsel %vm329_vm10, %v331_v19, %v327_v20  ;;  %v351_v39 = vsel %vm350_vm13, %v1592_v51, %v347_v40 }
  0xce   :  { %v358_v30 = vmul.f32 %v332_v23, %v63_v14  ;;  %v356_v53 = vsel %vm353_vm14, %v355_v52, %v351_v39 }
  0xd0   :  { %v2162_v35 = vadd.f32 %v359_v31, %v358_v30 }
  0xd2   :  { %1595 = vtanh.f32 %v2162_v35 }
  0xd8   :  { %v1596_v48 = vpop.eup %1595 }
  0xd9   :  { %v362_v54 = vmul.f32 %v1596_v48, %v356_v53 }
  0xdb   :  { %v363_v55 = vpack.c.bf16 %v362_v54, %v362_v54 }
  0xdd   :  { %364 = vst [vmem:[%s2426_s4] sm:$0x1] %v363_v55  ;;  %375 = vmatmul.bf16.vlgmr.msrb.gmra.mxu0 %v363_v55  ;;  %388 = vmatmul.bf16.vlgmr.msrb.gmra.mxu1 %v363_v55 }
  0xde   :  { %401 = vmatmul.bf16.vlgmr.msrb.gmra.mxu2 %v363_v55  ;;  %414 = vmatmul.bf16.vlgmr.msrb.gmra.mxu3 %v363_v55 }
  0xdf   :  { %645 = vmatpush.bf16.msrb.mxu0 %v1807_v3  ;;  %658 = vmatpush.bf16.msrb.mxu1 %v1818_v7 }
  0xe0   :  { %671 = vmatpush.bf16.msrb.mxu2 %v1820_v8  ;;  %684 = vmatpush.bf16.msrb.mxu3 %v1832_v12 }
  0xe3   :  { %646 = vmatpush.bf16.msrb.mxu0 %v1845_v16  ;;  %659 = vmatpush.bf16.msrb.mxu1 %v1847_v17 }
  0xe4   :  { %672 = vmatpush.bf16.msrb.mxu2 %v1859_v21  ;;  %685 = vmatpush.bf16.msrb.mxu3 %v1870_v25 }
  0xe7   :  { %647 = vmatpush.bf16.msrb.mxu0 %v1882_v29  ;;  %660 = vmatpush.bf16.msrb.mxu1 %v1895_v33 }
  0xe8   :  { %673 = vmatpush.bf16.msrb.mxu2 %v1897_v34  ;;  %686 = vmatpush.bf16.msrb.mxu3 %v1909_v38 }
  0xeb   :  { %648 = vmatpush.bf16.msrb.mxu0 %v1927_v44  ;;  %661 = vmatpush.bf16.msrb.mxu1 %v1931_v45 }
  0xec   :  { %674 = vmatpush.bf16.msrb.mxu2 %v1933_v46  ;;  %687 = vmatpush.bf16.msrb.mxu3 %v1945_v50 }
  0xef   :  { %649 = vmatpush.bf16.msrb.mxu0 %v1963_v56  ;;  %662 = vmatpush.bf16.msrb.mxu1 %v1967_v57 }
  0xf0   :  { %675 = vmatpush.bf16.msrb.mxu2 %v1969_v58  ;;  %688 = vmatpush.bf16.msrb.mxu3 %v1981_v62 }
  0xf3   :  { %650 = vmatpush.bf16.msrb.mxu0 %v1999_v5  ;;  %663 = vmatpush.bf16.msrb.mxu1 %v2009_v10 }
  0xf4   :  { %676 = vmatpush.bf16.msrb.mxu2 %v2011_v11  ;;  %689 = vmatpush.bf16.msrb.mxu3 %v2023_v18 }
  0xf7   :  { %651 = vmatpush.bf16.msrb.mxu0 %v2038_v24  ;;  %664 = vmatpush.bf16.msrb.mxu1 %v2042_v26 }
  0xf8   :  { %677 = vmatpush.bf16.msrb.mxu2 %v2044_v27  ;;  %690 = vmatpush.bf16.msrb.mxu3 %v2056_v32 }
  0xfb   :  { %652 = vmatpush.bf16.msrb.mxu0 %v2074_v41  ;;  %665 = vmatpush.bf16.msrb.mxu1 %v2078_v42 }
  0xfc   :  { %678 = vmatpush.bf16.msrb.mxu2 %v2080_v43  ;;  %691 = vmatpush.bf16.msrb.mxu3 %v2083_v47 }
 0x15a   :  { %v376_v37 = vpop.f32.mrf.mxu0  ;;  %v389_v51 = vpop.f32.mrf.mxu1 }
 0x15b   :  { %v423_v59 = vrot.slane %v389_v51, 6 }
 0x15d   :  { %v426_v6 = vsel %vm285_vm0, %v376_v37, %v423_v59 }
 0x161   :  { %v402_v60 = vpop.f32.mrf.mxu2  ;;  %v415_v61 = vpop.f32.mrf.mxu3 }
 0x162   :  { %v424_v63 = vrot.slane %v402_v60, 4  ;;  %v425_v0 = vrot.slane %v415_v61, 2  ;;  %v378_v1 = vpop.f32.mrf.mxu0  ;;  %v391_v2 = vpop.f32.mrf.mxu1 }
 0x164   :  { %v427_v9 = vsel %vm287_vm1, %v424_v63, %v425_v0 }
 0x165   :  { %v428_v13 = vsel %vm289_vm2, %v426_v6, %v427_v9 }
 0x166   :  { %v430_v14 = vadd.f32 %v1512_v4, %v428_v13 }
 0x168   :  { %v1513_v15 = vmul.f32 -1.442695, %v430_v14  ;;  %v451_v19 = vrot.slane %v430_v14, 2  ;;  %v475_v20 = vrot.slane %v430_v14, 6  ;;  %v472_v55 = vrot.slane %v430_v14, 4 }
 0x169   :  { %v404_v22 = vpop.f32.mrf.mxu2  ;;  %v417_v23 = vpop.f32.mrf.mxu3 }
 0x16a   :  { %1597 = vpow2.f32 %v1513_v15  ;;  %v1514_v28 = vmul.f32 -1.442695, %v451_v19  ;;  %v1515_v30 = vmul.f32 -1.442695, %v475_v20 }
 0x16c   :  { %1599 = vpow2.f32 %v1514_v28 }
 0x16d   :  { %1601 = vpow2.f32 %v1515_v30 }
 0x170   :  { %v1598_v31 = vpop.eup %1597 }
 0x171   :  { %v434_v40 = vadd.f32 1.0, %v1598_v31 }
 0x172   :  { %v1600_v49 = vpop.eup %1599 }
 0x173   :  { %v1602_v36 = vpop.eup %1601  ;;  %1603 = vrcp.f32 %v434_v40  ;;  %v456_v39 = vadd.f32 1.0, %v1600_v49  ;;  %v446_v60 = vand.u32 2147483648, %v434_v40  ;;  %v444_v1 = vand.u32 2147483647, %v434_v40 }
 0x174   :  { %v480_v52 = vadd.f32 1.0, %v1602_v36  ;;  %vm440_vm3 = vweird.f32 %v434_v40 }
 0x175   :  { %1605 = vrcp.f32 %v456_v39  ;;  %v468_v2 = vand.u32 2147483648, %v456_v39  ;;  %v466_v9 = vand.u32 2147483647, %v456_v39  ;;  %v447_v13 = vor.u32 1.1754944e-38, %v446_v60 }
 0x176   :  { %1607 = vrcp.f32 %v480_v52  ;;  %vm445_vm6 = vcmp.eq.f32.partialorder %v444_v1, 8.507059e+37  ;;  %vm462_vm7 = vweird.f32 %v456_v39  ;;  %vm486_vm11 = vweird.f32 %v480_v52 }
 0x177   :  { %1609 = vtanh.f32 %v472_v55  ;;  %v469_v22 = vor.u32 1.1754944e-38, %v468_v2  ;;  %vm467_vm9 = vcmp.eq.f32.partialorder %v466_v9, 8.507059e+37  ;;  %v492_v55 = vand.u32 2147483648, %v480_v52  ;;  %v1517_v9 = vld [vmem:[%s2422_s0 + $0x10] sm:$0xff] }
 0x179   :  { %v1604_v48 = vpop.eup %1603 }
 0x17a   :  { %v436_v53 = vmul.f32 %v1604_v48, %v434_v40  ;;  %vm441_vm15 = vweird.f32 %v1604_v48 }
 0x17b   :  { %v1606_v54 = vpop.eup %1605  ;;  %vm442_vm5 = vmor %vm440_vm3, %vm441_vm15 }
 0x17c   :  { %v1608_v37 = vpop.eup %1607  ;;  %v437_v51 = vsub.f32 1.0, %v436_v53  ;;  %v458_v59 = vmul.f32 %v1606_v54, %v456_v39  ;;  %vm463_vm4 = vweird.f32 %v1606_v54  ;;  %v490_v39 = vand.u32 2147483647, %v480_v52 }
 0x17d   :  { %v482_v61 = vmul.f32 %v1608_v37, %v480_v52  ;;  %vm464_vm8 = vmor %vm462_vm7, %vm463_vm4  ;;  %v1610_v28 = vpop.eup %1609  ;;  %vm487_vm10 = vweird.f32 %v1608_v37 }
 0x17e   :  { %v459_v63 = vsub.f32 1.0, %v458_v59  ;;  %v438_v0 = vmul.f32 %v1604_v48, %v437_v51  ;;  %vm488_vm12 = vmor %vm486_vm11, %vm487_vm10  ;;  %v493_v51 = vor.u32 1.1754944e-38, %v492_v55  ;;  %vm491_vm13 = vcmp.eq.f32.partialorder %v490_v39, 8.507059e+37 }
 0x17f   :  { %v483_v15 = vsub.f32 1.0, %v482_v61 }
 0x180   :  { %v439_v4 = vadd.f32 %v1604_v48, %v438_v0  ;;  %v460_v6 = vmul.f32 %v1606_v54, %v459_v63 }
 0x181   :  { %v484_v31 = vmul.f32 %v1608_v37, %v483_v15 }
 0x182   :  { %v443_v14 = vsel %vm442_vm5, %v1604_v48, %v439_v4  ;;  %v461_v19 = vadd.f32 %v1606_v54, %v460_v6 }
 0x183   :  { %v448_v20 = vsel %vm445_vm6, %v447_v13, %v443_v14  ;;  %v485_v53 = vadd.f32 %v1608_v37, %v484_v31 }
 0x184   :  { %v465_v23 = vsel %vm464_vm8, %v1606_v54, %v461_v19  ;;  %v497_v49 = vmul.f32 %v1610_v28, %v448_v20 }
 0x185   :  { %v470_v30 = vsel %vm467_vm9, %v469_v22, %v465_v23  ;;  %v489_v48 = vsel %vm488_vm12, %v1608_v37, %v485_v53 }
 0x186   :  { %v496_v40 = vmul.f32 %v470_v30, %v2162_v35  ;;  %v494_v59 = vsel %vm491_vm13, %v493_v51, %v489_v48 }
 0x188   :  { %v2207_v36 = vadd.f32 %v497_v49, %v496_v40 }
 0x18a   :  { %1611 = vtanh.f32 %v2207_v36 }
 0x190   :  { %v1612_v54 = vpop.eup %1611 }
 0x191   :  { %v500_v60 = vmul.f32 %v1612_v54, %v494_v59 }
 0x193   :  { %v501_v61 = vpack.c.bf16 %v500_v60, %v500_v60 }
 0x195   :  { %1516 = vst [vmem:[%s2426_s4 + $0x1] sm:$0x1] %v501_v61  ;;  %514 = vmatmul.bf16.vlgmr.msra.gmra.mxu0 %v501_v61  ;;  %527 = vmatmul.bf16.vlgmr.msra.gmra.mxu1 %v501_v61 }
 0x196   :  { %540 = vmatmul.bf16.vlgmr.msra.gmra.mxu2 %v501_v61  ;;  %553 = vmatmul.bf16.vlgmr.msra.gmra.mxu3 %v501_v61 }
 0x197   :  { %784 = vmatpush.bf16.msra.mxu0 %v1807_v3  ;;  %797 = vmatpush.bf16.msra.mxu1 %v1818_v7 }
 0x198   :  { %810 = vmatpush.bf16.msra.mxu2 %v1820_v8  ;;  %823 = vmatpush.bf16.msra.mxu3 %v1832_v12 }
 0x19b   :  { %785 = vmatpush.bf16.msra.mxu0 %v1845_v16  ;;  %798 = vmatpush.bf16.msra.mxu1 %v1847_v17 }
 0x19c   :  { %811 = vmatpush.bf16.msra.mxu2 %v1859_v21  ;;  %824 = vmatpush.bf16.msra.mxu3 %v1870_v25 }
 0x19f   :  { %786 = vmatpush.bf16.msra.mxu0 %v1882_v29  ;;  %799 = vmatpush.bf16.msra.mxu1 %v1895_v33 }
 0x1a0   :  { %812 = vmatpush.bf16.msra.mxu2 %v1897_v34  ;;  %825 = vmatpush.bf16.msra.mxu3 %v1909_v38 }
 0x1a3   :  { %787 = vmatpush.bf16.msra.mxu0 %v1927_v44  ;;  %800 = vmatpush.bf16.msra.mxu1 %v1931_v45 }
 0x1a4   :  { %813 = vmatpush.bf16.msra.mxu2 %v1933_v46  ;;  %826 = vmatpush.bf16.msra.mxu3 %v1945_v50 }
 0x1a7   :  { %788 = vmatpush.bf16.msra.mxu0 %v1963_v56  ;;  %801 = vmatpush.bf16.msra.mxu1 %v1967_v57 }
 0x1a8   :  { %814 = vmatpush.bf16.msra.mxu2 %v1969_v58  ;;  %827 = vmatpush.bf16.msra.mxu3 %v1981_v62 }
 0x1ab   :  { %789 = vmatpush.bf16.msra.mxu0 %v1999_v5  ;;  %802 = vmatpush.bf16.msra.mxu1 %v2009_v10 }
 0x1ac   :  { %815 = vmatpush.bf16.msra.mxu2 %v2011_v11  ;;  %828 = vmatpush.bf16.msra.mxu3 %v2023_v18 }
 0x1af   :  { %790 = vmatpush.bf16.msra.mxu0 %v2038_v24  ;;  %803 = vmatpush.bf16.msra.mxu1 %v2042_v26 }
 0x1b0   :  { %816 = vmatpush.bf16.msra.mxu2 %v2044_v27  ;;  %829 = vmatpush.bf16.msra.mxu3 %v2056_v32 }
 0x1b3   :  { %791 = vmatpush.bf16.msra.mxu0 %v2074_v41  ;;  %804 = vmatpush.bf16.msra.mxu1 %v2078_v42 }
 0x1b4   :  { %817 = vmatpush.bf16.msra.mxu2 %v2080_v43  ;;  %830 = vmatpush.bf16.msra.mxu3 %v2083_v47 }
 0x212   :  { %v515_v35 = vpop.f32.mrf.mxu0  ;;  %v528_v52 = vpop.f32.mrf.mxu1 }
 0x213   :  { %v562_v37 = vrot.slane %v528_v52, 6 }
 0x215   :  { %v565_v13 = vsel %vm285_vm0, %v515_v35, %v562_v37 }
 0x219   :  { %v541_v63 = vpop.f32.mrf.mxu2  ;;  %v554_v0 = vpop.f32.mrf.mxu3 }
 0x21a   :  { %v563_v1 = vrot.slane %v541_v63, 4  ;;  %v564_v2 = vrot.slane %v554_v0, 2  ;;  %v517_v4 = vpop.f32.mrf.mxu0  ;;  %v530_v6 = vpop.f32.mrf.mxu1 }
 0x21c   :  { %v566_v15 = vsel %vm287_vm1, %v563_v1, %v564_v2 }
 0x21d   :  { %v567_v14 = vsel %vm289_vm2, %v565_v13, %v566_v15 }
 0x21e   :  { %v569_v19 = vadd.f32 %v1517_v9, %v567_v14 }
 0x220   :  { %v1518_v20 = vmul.f32 -1.442695, %v569_v19  ;;  %v590_v22 = vrot.slane %v569_v19, 2  ;;  %v614_v23 = vrot.slane %v569_v19, 6  ;;  %v611_v61 = vrot.slane %v569_v19, 4 }
 0x221   :  { %v543_v28 = vpop.f32.mrf.mxu2  ;;  %v556_v30 = vpop.f32.mrf.mxu3 }
 0x222   :  { %1613 = vpow2.f32 %v1518_v20  ;;  %v1519_v31 = vmul.f32 -1.442695, %v590_v22  ;;  %v1520_v40 = vmul.f32 -1.442695, %v614_v23 }
 0x224   :  { %1615 = vpow2.f32 %v1519_v31 }
 0x225   :  { %1617 = vpow2.f32 %v1520_v40 }
 0x228   :  { %v1614_v49 = vpop.eup %1613 }
 0x229   :  { %v573_v53 = vadd.f32 1.0, %v1614_v49 }
 0x22a   :  { %v1616_v55 = vpop.eup %1615 }
 0x22b   :  { %v1618_v39 = vpop.eup %1617  ;;  %1619 = vrcp.f32 %v573_v53  ;;  %v595_v48 = vadd.f32 1.0, %v1616_v55  ;;  %v585_v63 = vand.u32 2147483648, %v573_v53  ;;  %v583_v4 = vand.u32 2147483647, %v573_v53 }
 0x22c   :  { %v619_v51 = vadd.f32 1.0, %v1618_v39  ;;  %vm579_vm15 = vweird.f32 %v573_v53 }
 0x22d   :  { %1621 = vrcp.f32 %v595_v48  ;;  %v607_v6 = vand.u32 2147483648, %v595_v48  ;;  %v605_v15 = vand.u32 2147483647, %v595_v48  ;;  %v586_v14 = vor.u32 1.1754944e-38, %v585_v63 }
 0x22e   :  { %1623 = vrcp.f32 %v619_v51  ;;  %vm584_vm5 = vcmp.eq.f32.partialorder %v583_v4, 8.507059e+37  ;;  %vm601_vm6 = vweird.f32 %v595_v48  ;;  %vm625_vm10 = vweird.f32 %v619_v51 }
 0x22f   :  { %1625 = vtanh.f32 %v611_v61  ;;  %v608_v28 = vor.u32 1.1754944e-38, %v607_v6  ;;  %vm606_vm8 = vcmp.eq.f32.partialorder %v605_v15, 8.507059e+37  ;;  %v631_v61 = vand.u32 2147483648, %v619_v51  ;;  %v1522_v15 = vld [vmem:[%s2422_s0 + $0x18] sm:$0xff] }
 0x231   :  { %v1620_v54 = vpop.eup %1619 }
 0x232   :  { %v575_v59 = vmul.f32 %v1620_v54, %v573_v53  ;;  %vm580_vm14 = vweird.f32 %v1620_v54 }
 0x233   :  { %v1622_v60 = vpop.eup %1621  ;;  %vm581_vm4 = vmor %vm579_vm15, %vm580_vm14 }
 0x234   :  { %v1624_v35 = vpop.eup %1623  ;;  %v576_v52 = vsub.f32 1.0, %v575_v59  ;;  %v597_v37 = vmul.f32 %v1622_v60, %v595_v48  ;;  %vm602_vm3 = vweird.f32 %v1622_v60  ;;  %v629_v48 = vand.u32 2147483647, %v619_v51 }
 0x235   :  { %v621_v0 = vmul.f32 %v1624_v35, %v619_v51  ;;  %vm603_vm7 = vmor %vm601_vm6, %vm602_vm3  ;;  %v1626_v31 = vpop.eup %1625  ;;  %vm626_vm9 = vweird.f32 %v1624_v35 }
 0x236   :  { %v598_v1 = vsub.f32 1.0, %v597_v37  ;;  %v577_v2 = vmul.f32 %v1620_v54, %v576_v52  ;;  %vm627_vm11 = vmor %vm625_vm10, %vm626_vm9  ;;  %v632_v52 = vor.u32 1.1754944e-38, %v631_v61  ;;  %vm630_vm12 = vcmp.eq.f32.partialorder %v629_v48, 8.507059e+37 }
 0x237   :  { %v622_v20 = vsub.f32 1.0, %v621_v0 }
 0x238   :  { %v578_v9 = vadd.f32 %v1620_v54, %v577_v2  ;;  %v599_v13 = vmul.f32 %v1622_v60, %v598_v1 }
 0x239   :  { %v623_v49 = vmul.f32 %v1624_v35, %v622_v20 }
 0x23a   :  { %v582_v19 = vsel %vm581_vm4, %v1620_v54, %v578_v9  ;;  %v600_v22 = vadd.f32 %v1622_v60, %v599_v13 }
 0x23b   :  { %v587_v23 = vsel %vm584_vm5, %v586_v14, %v582_v19  ;;  %v624_v59 = vadd.f32 %v1624_v35, %v623_v49 }
 0x23c   :  { %v604_v30 = vsel %vm603_vm7, %v1622_v60, %v600_v22  ;;  %v636_v55 = vmul.f32 %v1626_v31, %v587_v23 }
 0x23d   :  { %v609_v40 = vsel %vm606_vm8, %v608_v28, %v604_v30  ;;  %v628_v54 = vsel %vm627_vm11, %v1624_v35, %v624_v59 }
 0x23e   :  { %v635_v53 = vmul.f32 %v609_v40, %v2207_v36  ;;  %v633_v37 = vsel %vm630_vm12, %v632_v52, %v628_v54 }
 0x240   :  { %v2252_v39 = vadd.f32 %v636_v55, %v635_v53 }
 0x242   :  { %1627 = vtanh.f32 %v2252_v39 }
 0x248   :  { %v1628_v60 = vpop.eup %1627 }
 0x249   :  { %v639_v63 = vmul.f32 %v1628_v60, %v633_v37 }
 0x24b   :  { %v640_v0 = vpack.c.bf16 %v639_v63, %v639_v63 }
 0x24d   :  { %1521 = vst [vmem:[%s2426_s4 + $0x2] sm:$0x1] %v640_v0  ;;  %653 = vmatmul.bf16.vlgmr.msrb.gmra.mxu0 %v640_v0  ;;  %666 = vmatmul.bf16.vlgmr.msrb.gmra.mxu1 %v640_v0 }
 0x24e   :  { %679 = vmatmul.bf16.vlgmr.msrb.gmra.mxu2 %v640_v0  ;;  %692 = vmatmul.bf16.vlgmr.msrb.gmra.mxu3 %v640_v0 }
 0x24f   :  { %923 = vmatpush.bf16.msrb.mxu0 %v1807_v3  ;;  %936 = vmatpush.bf16.msrb.mxu1 %v1818_v7 }
 0x250   :  { %949 = vmatpush.bf16.msrb.mxu2 %v1820_v8  ;;  %962 = vmatpush.bf16.msrb.mxu3 %v1832_v12 }
 0x253   :  { %924 = vmatpush.bf16.msrb.mxu0 %v1845_v16  ;;  %937 = vmatpush.bf16.msrb.mxu1 %v1847_v17 }
 0x254   :  { %950 = vmatpush.bf16.msrb.mxu2 %v1859_v21  ;;  %963 = vmatpush.bf16.msrb.mxu3 %v1870_v25 }
 0x257   :  { %925 = vmatpush.bf16.msrb.mxu0 %v1882_v29  ;;  %938 = vmatpush.bf16.msrb.mxu1 %v1895_v33 }
 0x258   :  { %951 = vmatpush.bf16.msrb.mxu2 %v1897_v34  ;;  %964 = vmatpush.bf16.msrb.mxu3 %v1909_v38 }
 0x25b   :  { %926 = vmatpush.bf16.msrb.mxu0 %v1927_v44  ;;  %939 = vmatpush.bf16.msrb.mxu1 %v1931_v45 }
 0x25c   :  { %952 = vmatpush.bf16.msrb.mxu2 %v1933_v46  ;;  %965 = vmatpush.bf16.msrb.mxu3 %v1945_v50 }
 0x25f   :  { %927 = vmatpush.bf16.msrb.mxu0 %v1963_v56  ;;  %940 = vmatpush.bf16.msrb.mxu1 %v1967_v57 }
 0x260   :  { %953 = vmatpush.bf16.msrb.mxu2 %v1969_v58  ;;  %966 = vmatpush.bf16.msrb.mxu3 %v1981_v62 }
 0x263   :  { %928 = vmatpush.bf16.msrb.mxu0 %v1999_v5  ;;  %941 = vmatpush.bf16.msrb.mxu1 %v2009_v10 }
 0x264   :  { %954 = vmatpush.bf16.msrb.mxu2 %v2011_v11  ;;  %967 = vmatpush.bf16.msrb.mxu3 %v2023_v18 }
 0x267   :  { %929 = vmatpush.bf16.msrb.mxu0 %v2038_v24  ;;  %942 = vmatpush.bf16.msrb.mxu1 %v2042_v26 }
 0x268   :  { %955 = vmatpush.bf16.msrb.mxu2 %v2044_v27  ;;  %968 = vmatpush.bf16.msrb.mxu3 %v2056_v32 }
 0x26b   :  { %930 = vmatpush.bf16.msrb.mxu0 %v2074_v41  ;;  %943 = vmatpush.bf16.msrb.mxu1 %v2078_v42 }
 0x26c   :  { %956 = vmatpush.bf16.msrb.mxu2 %v2080_v43  ;;  %969 = vmatpush.bf16.msrb.mxu3 %v2083_v47 }
 0x2ca   :  { %v654_v36 = vpop.f32.mrf.mxu0  ;;  %v667_v51 = vpop.f32.mrf.mxu1 }
 0x2cb   :  { %v701_v35 = vrot.slane %v667_v51, 6 }
 0x2cd   :  { %v704_v14 = vsel %vm285_vm0, %v654_v36, %v701_v35 }
 0x2d1   :  { %v680_v1 = vpop.f32.mrf.mxu2  ;;  %v693_v2 = vpop.f32.mrf.mxu3 }
 0x2d2   :  { %v702_v4 = vrot.slane %v680_v1, 4  ;;  %v703_v6 = vrot.slane %v693_v2, 2  ;;  %v656_v9 = vpop.f32.mrf.mxu0  ;;  %v669_v13 = vpop.f32.mrf.mxu1 }
 0x2d4   :  { %v705_v20 = vsel %vm287_vm1, %v702_v4, %v703_v6 }
 0x2d5   :  { %v706_v19 = vsel %vm289_vm2, %v704_v14, %v705_v20 }
 0x2d6   :  { %v708_v22 = vadd.f32 %v1522_v15, %v706_v19 }
 0x2d8   :  { %v1523_v23 = vmul.f32 -1.442695, %v708_v22  ;;  %v729_v28 = vrot.slane %v708_v22, 2  ;;  %v753_v30 = vrot.slane %v708_v22, 6  ;;  %v750_v0 = vrot.slane %v708_v22, 4 }
 0x2d9   :  { %v682_v31 = vpop.f32.mrf.mxu2  ;;  %v695_v40 = vpop.f32.mrf.mxu3 }
 0x2da   :  { %1629 = vpow2.f32 %v1523_v23  ;;  %v1524_v49 = vmul.f32 -1.442695, %v729_v28  ;;  %v1525_v53 = vmul.f32 -1.442695, %v753_v30 }
 0x2dc   :  { %1631 = vpow2.f32 %v1524_v49 }
 0x2dd   :  { %1633 = vpow2.f32 %v1525_v53 }
 0x2e0   :  { %v1630_v55 = vpop.eup %1629 }
 0x2e1   :  { %v712_v59 = vadd.f32 1.0, %v1630_v55 }
 0x2e2   :  { %v1632_v61 = vpop.eup %1631 }
 0x2e3   :  { %v1634_v48 = vpop.eup %1633  ;;  %1635 = vrcp.f32 %v712_v59  ;;  %v734_v54 = vadd.f32 1.0, %v1632_v61  ;;  %v724_v1 = vand.u32 2147483648, %v712_v59  ;;  %v722_v9 = vand.u32 2147483647, %v712_v59 }
 0x2e4   :  { %v758_v52 = vadd.f32 1.0, %v1634_v48  ;;  %vm718_vm14 = vweird.f32 %v712_v59 }
 0x2e5   :  { %1637 = vrcp.f32 %v734_v54  ;;  %v746_v13 = vand.u32 2147483648, %v734_v54  ;;  %v744_v20 = vand.u32 2147483647, %v734_v54  ;;  %v725_v19 = vor.u32 1.1754944e-38, %v724_v1 }
 0x2e6   :  { %1639 = vrcp.f32 %v758_v52  ;;  %vm723_vm4 = vcmp.eq.f32.partialorder %v722_v9, 8.507059e+37  ;;  %vm740_vm5 = vweird.f32 %v734_v54  ;;  %vm764_vm9 = vweird.f32 %v758_v52 }
 0x2e7   :  { %1641 = vtanh.f32 %v750_v0  ;;  %v747_v31 = vor.u32 1.1754944e-38, %v746_v13  ;;  %vm745_vm7 = vcmp.eq.f32.partialorder %v744_v20, 8.507059e+37  ;;  %v770_v0 = vand.u32 2147483648, %v758_v52  ;;  %v1527_v20 = vld [vmem:[%s2422_s0 + $0x20] sm:$0xff] }
 0x2e9   :  { %v1636_v60 = vpop.eup %1635 }
 0x2ea   :  { %v714_v37 = vmul.f32 %v1636_v60, %v712_v59  ;;  %vm719_vm13 = vweird.f32 %v1636_v60 }
 0x2eb   :  { %v1638_v63 = vpop.eup %1637  ;;  %vm720_vm3 = vmor %vm718_vm14, %vm719_vm13 }
 0x2ec   :  { %v1640_v36 = vpop.eup %1639  ;;  %v715_v51 = vsub.f32 1.0, %v714_v37  ;;  %v736_v35 = vmul.f32 %v1638_v63, %v734_v54  ;;  %vm741_vm15 = vweird.f32 %v1638_v63  ;;  %v768_v54 = vand.u32 2147483647, %v758_v52 }
 0x2ed   :  { %v760_v2 = vmul.f32 %v1640_v36, %v758_v52  ;;  %vm742_vm6 = vmor %vm740_vm5, %vm741_vm15  ;;  %v1642_v49 = vpop.eup %1641  ;;  %vm765_vm8 = vweird.f32 %v1640_v36 }
 0x2ee   :  { %v737_v4 = vsub.f32 1.0, %v736_v35  ;;  %v716_v6 = vmul.f32 %v1636_v60, %v715_v51  ;;  %vm766_vm10 = vmor %vm764_vm9, %vm765_vm8  ;;  %v771_v51 = vor.u32 1.1754944e-38, %v770_v0  ;;  %vm769_vm11 = vcmp.eq.f32.partialorder %v768_v54, 8.507059e+37 }
 0x2ef   :  { %v761_v23 = vsub.f32 1.0, %v760_v2 }
 0x2f0   :  { %v717_v15 = vadd.f32 %v1636_v60, %v716_v6  ;;  %v738_v14 = vmul.f32 %v1638_v63, %v737_v4 }
 0x2f1   :  { %v762_v55 = vmul.f32 %v1640_v36, %v761_v23 }
 0x2f2   :  { %v721_v22 = vsel %vm720_vm3, %v1636_v60, %v717_v15  ;;  %v739_v28 = vadd.f32 %v1638_v63, %v738_v14 }
 0x2f3   :  { %v726_v30 = vsel %vm723_vm4, %v725_v19, %v721_v22  ;;  %v763_v37 = vadd.f32 %v1640_v36, %v762_v55 }
 0x2f4   :  { %v743_v40 = vsel %vm742_vm6, %v1638_v63, %v739_v28  ;;  %v775_v61 = vmul.f32 %v1642_v49, %v726_v30 }
 0x2f5   :  { %v748_v53 = vsel %vm745_vm7, %v747_v31, %v743_v40  ;;  %v767_v60 = vsel %vm766_vm10, %v1640_v36, %v763_v37 }
 0x2f6   :  { %v774_v59 = vmul.f32 %v748_v53, %v2252_v39  ;;  %v772_v35 = vsel %vm769_vm11, %v771_v51, %v767_v60 }
 0x2f8   :  { %v2297_v48 = vadd.f32 %v775_v61, %v774_v59 }
 0x2fa   :  { %1643 = vtanh.f32 %v2297_v48 }
 0x300   :  { %v1644_v63 = vpop.eup %1643 }
 0x301   :  { %v778_v1 = vmul.f32 %v1644_v63, %v772_v35 }
 0x303   :  { %v779_v2 = vpack.c.bf16 %v778_v1, %v778_v1 }
 0x305   :  { %1526 = vst [vmem:[%s2426_s4 + $0x3] sm:$0x1] %v779_v2  ;;  %792 = vmatmul.bf16.vlgmr.msra.gmra.mxu0 %v779_v2  ;;  %805 = vmatmul.bf16.vlgmr.msra.gmra.mxu1 %v779_v2 }
 0x306   :  { %818 = vmatmul.bf16.vlgmr.msra.gmra.mxu2 %v779_v2  ;;  %831 = vmatmul.bf16.vlgmr.msra.gmra.mxu3 %v779_v2 }
 0x307   :  { %1062 = vmatpush.bf16.msra.mxu0 %v1807_v3  ;;  %1075 = vmatpush.bf16.msra.mxu1 %v1818_v7 }
 0x308   :  { %1088 = vmatpush.bf16.msra.mxu2 %v1820_v8  ;;  %1101 = vmatpush.bf16.msra.mxu3 %v1832_v12 }
 0x30b   :  { %1063 = vmatpush.bf16.msra.mxu0 %v1845_v16  ;;  %1076 = vmatpush.bf16.msra.mxu1 %v1847_v17 }
 0x30c   :  { %1089 = vmatpush.bf16.msra.mxu2 %v1859_v21  ;;  %1102 = vmatpush.bf16.msra.mxu3 %v1870_v25 }
 0x30f   :  { %1064 = vmatpush.bf16.msra.mxu0 %v1882_v29  ;;  %1077 = vmatpush.bf16.msra.mxu1 %v1895_v33 }
 0x310   :  { %1090 = vmatpush.bf16.msra.mxu2 %v1897_v34  ;;  %1103 = vmatpush.bf16.msra.mxu3 %v1909_v38 }
 0x313   :  { %1065 = vmatpush.bf16.msra.mxu0 %v1927_v44  ;;  %1078 = vmatpush.bf16.msra.mxu1 %v1931_v45 }
 0x314   :  { %1091 = vmatpush.bf16.msra.mxu2 %v1933_v46  ;;  %1104 = vmatpush.bf16.msra.mxu3 %v1945_v50 }
 0x317   :  { %1066 = vmatpush.bf16.msra.mxu0 %v1963_v56  ;;  %1079 = vmatpush.bf16.msra.mxu1 %v1967_v57 }
 0x318   :  { %1092 = vmatpush.bf16.msra.mxu2 %v1969_v58  ;;  %1105 = vmatpush.bf16.msra.mxu3 %v1981_v62 }
 0x31b   :  { %1067 = vmatpush.bf16.msra.mxu0 %v1999_v5  ;;  %1080 = vmatpush.bf16.msra.mxu1 %v2009_v10 }
 0x31c   :  { %1093 = vmatpush.bf16.msra.mxu2 %v2011_v11  ;;  %1106 = vmatpush.bf16.msra.mxu3 %v2023_v18 }
 0x31f   :  { %1068 = vmatpush.bf16.msra.mxu0 %v2038_v24  ;;  %1081 = vmatpush.bf16.msra.mxu1 %v2042_v26 }
 0x320   :  { %1094 = vmatpush.bf16.msra.mxu2 %v2044_v27  ;;  %1107 = vmatpush.bf16.msra.mxu3 %v2056_v32 }
 0x323   :  { %1069 = vmatpush.bf16.msra.mxu0 %v2074_v41  ;;  %1082 = vmatpush.bf16.msra.mxu1 %v2078_v42 }
 0x324   :  { %1095 = vmatpush.bf16.msra.mxu2 %v2080_v43  ;;  %1108 = vmatpush.bf16.msra.mxu3 %v2083_v47 }
 0x382   :  { %v793_v39 = vpop.f32.mrf.mxu0  ;;  %v806_v52 = vpop.f32.mrf.mxu1 }
 0x383   :  { %v840_v36 = vrot.slane %v806_v52, 6 }
 0x385   :  { %v843_v19 = vsel %vm285_vm0, %v793_v39, %v840_v36 }
 0x389   :  { %v819_v4 = vpop.f32.mrf.mxu2  ;;  %v832_v6 = vpop.f32.mrf.mxu3 }
 0x38a   :  { %v841_v9 = vrot.slane %v819_v4, 4  ;;  %v842_v13 = vrot.slane %v832_v6, 2  ;;  %v795_v15 = vpop.f32.mrf.mxu0  ;;  %v808_v14 = vpop.f32.mrf.mxu1 }
 0x38c   :  { %v844_v23 = vsel %vm287_vm1, %v841_v9, %v842_v13 }
 0x38d   :  { %v845_v22 = vsel %vm289_vm2, %v843_v19, %v844_v23 }
 0x38e   :  { %v847_v28 = vadd.f32 %v1527_v20, %v845_v22 }
 0x390   :  { %v1528_v30 = vmul.f32 -1.442695, %v847_v28  ;;  %v868_v31 = vrot.slane %v847_v28, 2  ;;  %v892_v40 = vrot.slane %v847_v28, 6  ;;  %v889_v2 = vrot.slane %v847_v28, 4 }
 0x391   :  { %v821_v49 = vpop.f32.mrf.mxu2  ;;  %v834_v53 = vpop.f32.mrf.mxu3 }
 0x392   :  { %1645 = vpow2.f32 %v1528_v30  ;;  %v1529_v55 = vmul.f32 -1.442695, %v868_v31  ;;  %v1530_v59 = vmul.f32 -1.442695, %v892_v40 }
 0x394   :  { %1647 = vpow2.f32 %v1529_v55 }
 0x395   :  { %1649 = vpow2.f32 %v1530_v59 }
 0x398   :  { %v1646_v61 = vpop.eup %1645 }
 0x399   :  { %v851_v37 = vadd.f32 1.0, %v1646_v61 }
 0x39a   :  { %v1648_v0 = vpop.eup %1647 }
 0x39b   :  { %v1650_v54 = vpop.eup %1649  ;;  %1651 = vrcp.f32 %v851_v37  ;;  %v873_v60 = vadd.f32 1.0, %v1648_v0  ;;  %v863_v4 = vand.u32 2147483648, %v851_v37  ;;  %v861_v15 = vand.u32 2147483647, %v851_v37 }
 0x39c   :  { %v897_v51 = vadd.f32 1.0, %v1650_v54  ;;  %vm857_vm13 = vweird.f32 %v851_v37 }
 0x39d   :  { %1653 = vrcp.f32 %v873_v60  ;;  %v885_v14 = vand.u32 2147483648, %v873_v60  ;;  %v883_v23 = vand.u32 2147483647, %v873_v60  ;;  %v864_v22 = vor.u32 1.1754944e-38, %v863_v4 }
 0x39e   :  { %1655 = vrcp.f32 %v897_v51  ;;  %vm862_vm3 = vcmp.eq.f32.partialorder %v861_v15, 8.507059e+37  ;;  %vm879_vm4 = vweird.f32 %v873_v60  ;;  %vm903_vm8 = vweird.f32 %v897_v51 }
 0x39f   :  { %1657 = vtanh.f32 %v889_v2  ;;  %v886_v49 = vor.u32 1.1754944e-38, %v885_v14  ;;  %vm884_vm6 = vcmp.eq.f32.partialorder %v883_v23, 8.507059e+37  ;;  %v909_v2 = vand.u32 2147483648, %v897_v51 }
 0x3a1   :  { %v1652_v63 = vpop.eup %1651 }
 0x3a2   :  { %v853_v35 = vmul.f32 %v1652_v63, %v851_v37  ;;  %vm858_vm12 = vweird.f32 %v1652_v63 }
 0x3a3   :  { %v1654_v1 = vpop.eup %1653  ;;  %vm859_vm15 = vmor %vm857_vm13, %vm858_vm12 }
 0x3a4   :  { %v1656_v39 = vpop.eup %1655  ;;  %v854_v52 = vsub.f32 1.0, %v853_v35  ;;  %v875_v36 = vmul.f32 %v1654_v1, %v873_v60  ;;  %vm880_vm14 = vweird.f32 %v1654_v1  ;;  %v907_v60 = vand.u32 2147483647, %v897_v51 }
 0x3a5   :  { %v899_v6 = vmul.f32 %v1656_v39, %v897_v51  ;;  %vm881_vm5 = vmor %vm879_vm4, %vm880_vm14  ;;  %v1658_v55 = vpop.eup %1657  ;;  %vm904_vm7 = vweird.f32 %v1656_v39 }
 0x3a6   :  { %v876_v9 = vsub.f32 1.0, %v875_v36  ;;  %v855_v13 = vmul.f32 %v1652_v63, %v854_v52  ;;  %vm905_vm9 = vmor %vm903_vm8, %vm904_vm7  ;;  %v910_v52 = vor.u32 1.1754944e-38, %v909_v2  ;;  %vm908_vm10 = vcmp.eq.f32.partialorder %v907_v60, 8.507059e+37 }
 0x3a7   :  { %v900_v30 = vsub.f32 1.0, %v899_v6 }
 0x3a8   :  { %v856_v20 = vadd.f32 %v1652_v63, %v855_v13  ;;  %v877_v19 = vmul.f32 %v1654_v1, %v876_v9 }
 0x3a9   :  { %v901_v61 = vmul.f32 %v1656_v39, %v900_v30 }
 0x3aa   :  { %v860_v28 = vsel %vm859_vm15, %v1652_v63, %v856_v20  ;;  %v878_v31 = vadd.f32 %v1654_v1, %v877_v19 }
 0x3ab   :  { %v865_v40 = vsel %vm862_vm3, %v864_v22, %v860_v28  ;;  %v902_v35 = vadd.f32 %v1656_v39, %v901_v61 }
 0x3ac   :  { %v882_v53 = vsel %vm881_vm5, %v1654_v1, %v878_v31  ;;  %v914_v0 = vmul.f32 %v1658_v55, %v865_v40 }
 0x3ad   :  { %v887_v59 = vsel %vm884_vm6, %v886_v49, %v882_v53  ;;  %v906_v63 = vsel %vm905_vm9, %v1656_v39, %v902_v35 }
 0x3ae   :  { %v913_v37 = vmul.f32 %v887_v59, %v2297_v48  ;;  %v911_v36 = vsel %vm908_vm10, %v910_v52, %v906_v63 }
 0x3b0   :  { %v2342_v54 = vadd.f32 %v914_v0, %v913_v37 }
 0x3b2   :  { %1659 = vtanh.f32 %v2342_v54 }
 0x3b8   :  { %v1660_v1 = vpop.eup %1659 }
 0x3b9   :  { %v917_v4 = vmul.f32 %v1660_v1, %v911_v36 }
 0x3bb   :  { %v918_v6 = vpack.c.bf16 %v917_v4, %v917_v4 }
 0x3bd   :  { %1531 = vst [vmem:[%s2426_s4 + $0x4] sm:$0x1] %v918_v6  ;;  %931 = vmatmul.bf16.vlgmr.msrb.gmra.mxu0 %v918_v6  ;;  %944 = vmatmul.bf16.vlgmr.msrb.gmra.mxu1 %v918_v6 }
 0x3be   :  { %957 = vmatmul.bf16.vlgmr.msrb.gmra.mxu2 %v918_v6  ;;  %970 = vmatmul.bf16.vlgmr.msrb.gmra.mxu3 %v918_v6 }
 0x3bf   :  { %1201 = vmatpush.bf16.msrb.mxu0 %v1807_v3  ;;  %1214 = vmatpush.bf16.msrb.mxu1 %v1818_v7 }
 0x3c0   :  { %1227 = vmatpush.bf16.msrb.mxu2 %v1820_v8  ;;  %1240 = vmatpush.bf16.msrb.mxu3 %v1832_v12 }
 0x3c3   :  { %1202 = vmatpush.bf16.msrb.mxu0 %v1845_v16  ;;  %1215 = vmatpush.bf16.msrb.mxu1 %v1847_v17 }
 0x3c4   :  { %1228 = vmatpush.bf16.msrb.mxu2 %v1859_v21  ;;  %1241 = vmatpush.bf16.msrb.mxu3 %v1870_v25 }
 0x3c7   :  { %1203 = vmatpush.bf16.msrb.mxu0 %v1882_v29  ;;  %1216 = vmatpush.bf16.msrb.mxu1 %v1895_v33  ;;  %v1532_v33 = vld [vmem:[%s2422_s0 + $0x28] sm:$0xff] }
 0x3c8   :  { %1229 = vmatpush.bf16.msrb.mxu2 %v1897_v34  ;;  %1242 = vmatpush.bf16.msrb.mxu3 %v1909_v38 }
 0x3cb   :  { %1204 = vmatpush.bf16.msrb.mxu0 %v1927_v44  ;;  %1217 = vmatpush.bf16.msrb.mxu1 %v1931_v45 }
 0x3cc   :  { %1230 = vmatpush.bf16.msrb.mxu2 %v1933_v46  ;;  %1243 = vmatpush.bf16.msrb.mxu3 %v1945_v50 }
 0x3cf   :  { %1205 = vmatpush.bf16.msrb.mxu0 %v1963_v56  ;;  %1218 = vmatpush.bf16.msrb.mxu1 %v1967_v57 }
 0x3d0   :  { %1231 = vmatpush.bf16.msrb.mxu2 %v1969_v58  ;;  %1244 = vmatpush.bf16.msrb.mxu3 %v1981_v62 }
 0x3d3   :  { %1206 = vmatpush.bf16.msrb.mxu0 %v1999_v5  ;;  %1219 = vmatpush.bf16.msrb.mxu1 %v2009_v10 }
 0x3d4   :  { %1232 = vmatpush.bf16.msrb.mxu2 %v2011_v11  ;;  %1245 = vmatpush.bf16.msrb.mxu3 %v2023_v18 }
 0x3d7   :  { %1207 = vmatpush.bf16.msrb.mxu0 %v2038_v24  ;;  %1220 = vmatpush.bf16.msrb.mxu1 %v2042_v26 }
 0x3d8   :  { %1233 = vmatpush.bf16.msrb.mxu2 %v2044_v27  ;;  %1246 = vmatpush.bf16.msrb.mxu3 %v2056_v32 }
 0x3db   :  { %1208 = vmatpush.bf16.msrb.mxu0 %v2074_v41  ;;  %1221 = vmatpush.bf16.msrb.mxu1 %v2078_v42 }
 0x3dc   :  { %1234 = vmatpush.bf16.msrb.mxu2 %v2080_v43  ;;  %1247 = vmatpush.bf16.msrb.mxu3 %v2083_v47 }
 0x43a   :  { %v932_v3 = vpop.f32.mrf.mxu0  ;;  %v945_v7 = vpop.f32.mrf.mxu1 }
 0x43b   :  { %v979_v8 = vrot.slane %v945_v7, 6 }
 0x43d   :  { %v982_v34 = vsel %vm285_vm0, %v932_v3, %v979_v8 }
 0x441   :  { %v958_v12 = vpop.f32.mrf.mxu2  ;;  %v971_v16 = vpop.f32.mrf.mxu3 }
 0x442   :  { %v980_v17 = vrot.slane %v958_v12, 4  ;;  %v981_v21 = vrot.slane %v971_v16, 2  ;;  %v934_v25 = vpop.f32.mrf.mxu0  ;;  %v947_v29 = vpop.f32.mrf.mxu1 }
 0x444   :  { %v983_v38 = vsel %vm287_vm1, %v980_v17, %v981_v21 }
 0x445   :  { %v984_v44 = vsel %vm289_vm2, %v982_v34, %v983_v38  ;;  %v1537_v34 = vld [vmem:[%s2422_s0 + $0x30] sm:$0xff] }
 0x446   :  { %v986_v45 = vadd.f32 %v1532_v33, %v984_v44 }
 0x448   :  { %v1533_v46 = vmul.f32 -1.442695, %v986_v45  ;;  %v1007_v50 = vrot.slane %v986_v45, 2  ;;  %v1031_v56 = vrot.slane %v986_v45, 6  ;;  %v1028_v43 = vrot.slane %v986_v45, 4 }
 0x449   :  { %v960_v57 = vpop.f32.mrf.mxu2  ;;  %v973_v58 = vpop.f32.mrf.mxu3 }
 0x44a   :  { %1661 = vpow2.f32 %v1533_v46  ;;  %v1534_v62 = vmul.f32 -1.442695, %v1007_v50  ;;  %v1535_v5 = vmul.f32 -1.442695, %v1031_v56 }
 0x44c   :  { %1663 = vpow2.f32 %v1534_v62 }
 0x44d   :  { %1665 = vpow2.f32 %v1535_v5 }
 0x450   :  { %v1662_v10 = vpop.eup %1661 }
 0x451   :  { %v990_v11 = vadd.f32 1.0, %v1662_v10 }
 0x452   :  { %v1664_v18 = vpop.eup %1663 }
 0x453   :  { %v1666_v24 = vpop.eup %1665  ;;  %1667 = vrcp.f32 %v990_v11  ;;  %v1012_v26 = vadd.f32 1.0, %v1664_v18  ;;  %v1002_v39 = vand.u32 2147483648, %v990_v11  ;;  %v1000_v14 = vand.u32 2147483647, %v990_v11 }
 0x454   :  { %v1036_v27 = vadd.f32 1.0, %v1666_v24  ;;  %vm996_vm12 = vweird.f32 %v990_v11 }
 0x455   :  { %1669 = vrcp.f32 %v1012_v26  ;;  %v1024_v20 = vand.u32 2147483648, %v1012_v26  ;;  %v1022_v22 = vand.u32 2147483647, %v1012_v26  ;;  %v1003_v30 = vor.u32 1.1754944e-38, %v1002_v39 }
 0x456   :  { %1671 = vrcp.f32 %v1036_v27  ;;  %vm1001_vm15 = vcmp.eq.f32.partialorder %v1000_v14, 8.507059e+37  ;;  %vm1018_vm3 = vweird.f32 %v1012_v26  ;;  %v1048_v63 = vand.u32 2147483648, %v1036_v27 }
 0x457   :  { %1673 = vtanh.f32 %v1028_v43  ;;  %v1025_v53 = vor.u32 1.1754944e-38, %v1024_v20  ;;  %vm1023_vm5 = vcmp.eq.f32.partialorder %v1022_v22, 8.507059e+37  ;;  %vm1042_vm7 = vweird.f32 %v1036_v27 }
 0x458   :  { %v1046_v52 = vand.u32 2147483647, %v1036_v27  ;;  %v1049_v36 = vor.u32 1.1754944e-38, %v1048_v63 }
 0x459   :  { %v1668_v32 = vpop.eup %1667 }
 0x45a   :  { %v992_v41 = vmul.f32 %v1668_v32, %v990_v11  ;;  %vm997_vm11 = vweird.f32 %v1668_v32  ;;  %vm1047_vm9 = vcmp.eq.f32.partialorder %v1046_v52, 8.507059e+37 }
 0x45b   :  { %v1670_v42 = vpop.eup %1669  ;;  %vm998_vm14 = vmor %vm996_vm12, %vm997_vm11 }
 0x45c   :  { %v1672_v47 = vpop.eup %1671  ;;  %v993_v48 = vsub.f32 1.0, %v992_v41  ;;  %v1014_v51 = vmul.f32 %v1670_v42, %v1012_v26  ;;  %vm1019_vm13 = vweird.f32 %v1670_v42 }
 0x45d   :  { %v1038_v9 = vmul.f32 %v1672_v47, %v1036_v27  ;;  %vm1020_vm4 = vmor %vm1018_vm3, %vm1019_vm13  ;;  %v1674_v59 = vpop.eup %1673  ;;  %vm1043_vm6 = vweird.f32 %v1672_v47 }
 0x45e   :  { %v1015_v13 = vsub.f32 1.0, %v1014_v51  ;;  %v994_v15 = vmul.f32 %v1668_v32, %v993_v48  ;;  %vm1044_vm8 = vmor %vm1042_vm7, %vm1043_vm6 }
 0x45f   :  { %v1039_v28 = vsub.f32 1.0, %v1038_v9 }
 0x460   :  { %v995_v19 = vadd.f32 %v1668_v32, %v994_v15  ;;  %v1016_v23 = vmul.f32 %v1670_v42, %v1015_v13 }
 0x461   :  { %v1040_v37 = vmul.f32 %v1672_v47, %v1039_v28 }
 0x462   :  { %v999_v31 = vsel %vm998_vm14, %v1668_v32, %v995_v19  ;;  %v1017_v40 = vadd.f32 %v1670_v42, %v1016_v23 }
 0x463   :  { %v1004_v49 = vsel %vm1001_vm15, %v1003_v30, %v999_v31  ;;  %v1041_v60 = vadd.f32 %v1672_v47, %v1040_v37 }
 0x464   :  { %v1021_v55 = vsel %vm1020_vm4, %v1670_v42, %v1017_v40  ;;  %v1053_v35 = vmul.f32 %v1674_v59, %v1004_v49 }
 0x465   :  { %v1026_v61 = vsel %vm1023_vm5, %v1025_v53, %v1021_v55  ;;  %v1045_v1 = vsel %vm1044_vm8, %v1672_v47, %v1041_v60 }
 0x466   :  { %v1052_v0 = vmul.f32 %v1026_v61, %v2342_v54  ;;  %v1050_v6 = vsel %vm1047_vm9, %v1049_v36, %v1045_v1 }
 0x468   :  { %v2387_v2 = vadd.f32 %v1053_v35, %v1052_v0 }
 0x46a   :  { %1675 = vtanh.f32 %v2387_v2 }
 0x470   :  { %v1676_v4 = vpop.eup %1675 }
 0x471   :  { %v1056_v3 = vmul.f32 %v1676_v4, %v1050_v6 }
 0x473   :  { %v1057_v7 = vpack.c.bf16 %v1056_v3, %v1056_v3 }
 0x475   :  { %1536 = vst [vmem:[%s2426_s4 + $0x5] sm:$0x1] %v1057_v7  ;;  %1070 = vmatmul.bf16.vlgmr.msra.gmra.mxu0 %v1057_v7  ;;  %1083 = vmatmul.bf16.vlgmr.msra.gmra.mxu1 %v1057_v7 }
 0x476   :  { %1096 = vmatmul.bf16.vlgmr.msra.gmra.mxu2 %v1057_v7  ;;  %1109 = vmatmul.bf16.vlgmr.msra.gmra.mxu3 %v1057_v7 }
 0x4f2   :  { %v1071_v54 = vpop.f32.mrf.mxu0  ;;  %v1084_v8 = vpop.f32.mrf.mxu1 }
 0x4f3   :  { %v1118_v12 = vrot.slane %v1084_v8, 6 }
 0x4f5   :  { %v1121_v38 = vsel %vm285_vm0, %v1071_v54, %v1118_v12 }
 0x4f9   :  { %v1097_v16 = vpop.f32.mrf.mxu2  ;;  %v1110_v17 = vpop.f32.mrf.mxu3 }
 0x4fa   :  { %v1119_v21 = vrot.slane %v1097_v16, 4  ;;  %v1120_v25 = vrot.slane %v1110_v17, 2  ;;  %v1073_v29 = vpop.f32.mrf.mxu0  ;;  %v1086_v33 = vpop.f32.mrf.mxu1 }
 0x4fc   :  { %v1122_v44 = vsel %vm287_vm1, %v1119_v21, %v1120_v25 }
 0x4fd   :  { %v1123_v45 = vsel %vm289_vm2, %v1121_v38, %v1122_v44  ;;  %v1542_v38 = vld [vmem:[%s2422_s0 + $0x38] sm:$0xff]  ;;  %s1761_s0 = smov [#allocation6]  }
 0x4fe   :  { %v1125_v46 = vadd.f32 %v1537_v34, %v1123_v45  ;;  %s1363_s9 = sshll.u32 %s1761_s0, 4  ;;  %s1364_s9 = int_to_ptr.vmem [resolvable:$true] %s1363_s9 }
 0x500   :  { %v1538_v50 = vmul.f32 -1.442695, %v1125_v46  ;;  %v1146_v56 = vrot.slane %v1125_v46, 2  ;;  %v1170_v57 = vrot.slane %v1125_v46, 6  ;;  %v1167_v47 = vrot.slane %v1125_v46, 4 }
 0x501   :  { %v1099_v58 = vpop.f32.mrf.mxu2  ;;  %v1112_v62 = vpop.f32.mrf.mxu3 }
 0x502   :  { %1677 = vpow2.f32 %v1538_v50  ;;  %v1539_v5 = vmul.f32 -1.442695, %v1146_v56  ;;  %v1540_v10 = vmul.f32 -1.442695, %v1170_v57 }
 0x504   :  { %1679 = vpow2.f32 %v1539_v5 }
 0x505   :  { %1681 = vpow2.f32 %v1540_v10 }
 0x508   :  { %v1678_v11 = vpop.eup %1677 }
 0x509   :  { %v1129_v18 = vadd.f32 1.0, %v1678_v11 }
 0x50a   :  { %v1680_v24 = vpop.eup %1679 }
 0x50b   :  { %v1682_v26 = vpop.eup %1681  ;;  %1683 = vrcp.f32 %v1129_v18  ;;  %v1151_v27 = vadd.f32 1.0, %v1680_v24  ;;  %v1141_v9 = vand.u32 2147483648, %v1129_v18  ;;  %v1139_v20 = vand.u32 2147483647, %v1129_v18 }
 0x50c   :  { %v1175_v32 = vadd.f32 1.0, %v1682_v26  ;;  %vm1135_vm11 = vweird.f32 %v1129_v18 }
 0x50d   :  { %1685 = vrcp.f32 %v1151_v27  ;;  %v1163_v19 = vand.u32 2147483648, %v1151_v27  ;;  %v1161_v30 = vand.u32 2147483647, %v1151_v27  ;;  %v1142_v28 = vor.u32 1.1754944e-38, %v1141_v9 }
 0x50e   :  { %1687 = vrcp.f32 %v1175_v32  ;;  %vm1140_vm14 = vcmp.eq.f32.partialorder %v1139_v20, 8.507059e+37  ;;  %vm1157_vm15 = vweird.f32 %v1151_v27  ;;  %v1187_v1 = vand.u32 2147483648, %v1175_v32 }
 0x50f   :  { %1689 = vtanh.f32 %v1167_v47  ;;  %v1164_v55 = vor.u32 1.1754944e-38, %v1163_v19  ;;  %vm1162_vm4 = vcmp.eq.f32.partialorder %v1161_v30, 8.507059e+37  ;;  %vm1181_vm6 = vweird.f32 %v1175_v32 }
 0x510   :  { %v1185_v36 = vand.u32 2147483647, %v1175_v32  ;;  %v1188_v6 = vor.u32 1.1754944e-38, %v1187_v1 }
 0x511   :  { %v1684_v41 = vpop.eup %1683 }
 0x512   :  { %v1131_v42 = vmul.f32 %v1684_v41, %v1129_v18  ;;  %vm1136_vm10 = vweird.f32 %v1684_v41  ;;  %vm1186_vm8 = vcmp.eq.f32.partialorder %v1185_v36, 8.507059e+37 }
 0x513   :  { %v1686_v43 = vpop.eup %1685  ;;  %vm1137_vm13 = vmor %vm1135_vm11, %vm1136_vm10 }
 0x514   :  { %v1688_v48 = vpop.eup %1687  ;;  %v1132_v51 = vsub.f32 1.0, %v1131_v42  ;;  %v1153_v39 = vmul.f32 %v1686_v43, %v1151_v27  ;;  %vm1158_vm12 = vweird.f32 %v1686_v43 }
 0x515   :  { %v1177_v13 = vmul.f32 %v1688_v48, %v1175_v32  ;;  %vm1159_vm3 = vmor %vm1157_vm15, %vm1158_vm12  ;;  %v1690_v61 = vpop.eup %1689  ;;  %vm1182_vm5 = vweird.f32 %v1688_v48 }
 0x516   :  { %v1154_v15 = vsub.f32 1.0, %v1153_v39  ;;  %v1133_v14 = vmul.f32 %v1684_v41, %v1132_v51  ;;  %vm1183_vm7 = vmor %vm1181_vm6, %vm1182_vm5 }
 0x517   :  { %v1178_v31 = vsub.f32 1.0, %v1177_v13 }
 0x518   :  { %v1134_v23 = vadd.f32 %v1684_v41, %v1133_v14  ;;  %v1155_v22 = vmul.f32 %v1686_v43, %v1154_v15 }
 0x519   :  { %v1179_v0 = vmul.f32 %v1688_v48, %v1178_v31 }
 0x51a   :  { %v1138_v40 = vsel %vm1137_vm13, %v1684_v41, %v1134_v23  ;;  %v1156_v49 = vadd.f32 %v1686_v43, %v1155_v22 }
 0x51b   :  { %v1143_v53 = vsel %vm1140_vm14, %v1142_v28, %v1138_v40  ;;  %v1180_v52 = vadd.f32 %v1688_v48, %v1179_v0 }
 0x51c   :  { %v1160_v59 = vsel %vm1159_vm3, %v1686_v43, %v1156_v49  ;;  %v1192_v60 = vmul.f32 %v1690_v61, %v1143_v53 }
 0x51d   :  { %v1165_v37 = vsel %vm1162_vm4, %v1164_v55, %v1160_v59  ;;  %v1184_v4 = vsel %vm1183_vm7, %v1688_v48, %v1180_v52 }
 0x51e   :  { %v1191_v35 = vmul.f32 %v1165_v37, %v2387_v2  ;;  %v1189_v7 = vsel %vm1186_vm8, %v1188_v6, %v1184_v4 }
 0x520   :  { %v2400_v63 = vadd.f32 %v1192_v60, %v1191_v35 }
 0x522   :  { %1691 = vtanh.f32 %v2400_v63 }
 0x528   :  { %v1692_v3 = vpop.eup %1691 }
 0x529   :  { %v1195_v54 = vmul.f32 %v1692_v3, %v1189_v7 }
 0x52b   :  { %v1196_v8 = vpack.c.bf16 %v1195_v54, %v1195_v54 }
 0x52d   :  { %1541 = vst [vmem:[%s2426_s4 + $0x6] sm:$0x1] %v1196_v8  ;;  %1209 = vmatmul.bf16.vlgmr.msrb.gmra.mxu0 %v1196_v8  ;;  %1222 = vmatmul.bf16.vlgmr.msrb.gmra.mxu1 %v1196_v8 }
 0x52e   :  { %1235 = vmatmul.bf16.vlgmr.msrb.gmra.mxu2 %v1196_v8  ;;  %1248 = vmatmul.bf16.vlgmr.msrb.gmra.mxu3 %v1196_v8 }
 0x5aa   :  { %v1210_v2 = vpop.f32.mrf.mxu0  ;;  %v1223_v12 = vpop.f32.mrf.mxu1 }
 0x5ab   :  { %v1257_v16 = vrot.slane %v1223_v12, 6 }
 0x5ad   :  { %v1260_v44 = vsel %vm285_vm0, %v1210_v2, %v1257_v16 }
 0x5b1   :  { %v1236_v17 = vpop.f32.mrf.mxu2  ;;  %v1249_v21 = vpop.f32.mrf.mxu3 }
 0x5b2   :  { %v1258_v25 = vrot.slane %v1236_v17, 4  ;;  %v1259_v29 = vrot.slane %v1249_v21, 2  ;;  %v1212_v33 = vpop.f32.mrf.mxu0  ;;  %v1225_v34 = vpop.f32.mrf.mxu1 }
 0x5b4   :  { %v1261_v45 = vsel %vm287_vm1, %v1258_v25, %v1259_v29 }
 0x5b5   :  { %v1262_v46 = vsel %vm289_vm2, %v1260_v44, %v1261_v45 }
 0x5b6   :  { %v1264_v50 = vadd.f32 %v1542_v38, %v1262_v46 }
 0x5b8   :  { %v1543_v56 = vmul.f32 -1.442695, %v1264_v50  ;;  %v1285_v57 = vrot.slane %v1264_v50, 2  ;;  %v1309_v58 = vrot.slane %v1264_v50, 6  ;;  %v1306_v48 = vrot.slane %v1264_v50, 4 }
 0x5b9   :  { %v1238_v62 = vpop.f32.mrf.mxu2  ;;  %v1251_v5 = vpop.f32.mrf.mxu3 }
 0x5ba   :  { %1693 = vpow2.f32 %v1543_v56  ;;  %v1544_v10 = vmul.f32 -1.442695, %v1285_v57  ;;  %v1545_v11 = vmul.f32 -1.442695, %v1309_v58 }
 0x5bc   :  { %1695 = vpow2.f32 %v1544_v10 }
 0x5bd   :  { %1697 = vpow2.f32 %v1545_v11 }
 0x5c0   :  { %v1694_v18 = vpop.eup %1693 }
 0x5c1   :  { %v1268_v24 = vadd.f32 1.0, %v1694_v18 }
 0x5c2   :  { %v1696_v26 = vpop.eup %1695 }
 0x5c3   :  { %v1698_v27 = vpop.eup %1697  ;;  %1699 = vrcp.f32 %v1268_v24  ;;  %v1290_v32 = vadd.f32 1.0, %v1696_v26  ;;  %v1280_v13 = vand.u32 2147483648, %v1268_v24  ;;  %v1278_v20 = vand.u32 2147483647, %v1268_v24 }
 0x5c4   :  { %v1314_v41 = vadd.f32 1.0, %v1698_v27  ;;  %vm1274_vm1 = vweird.f32 %v1268_v24 }
 0x5c5   :  { %1701 = vrcp.f32 %v1290_v32  ;;  %v1302_v23 = vand.u32 2147483648, %v1290_v32  ;;  %v1300_v28 = vand.u32 2147483647, %v1290_v32  ;;  %v1281_v31 = vor.u32 1.1754944e-38, %v1280_v13 }
 0x5c6   :  { %1703 = vrcp.f32 %v1314_v41  ;;  %vm1279_vm10 = vcmp.eq.f32.partialorder %v1278_v20, 8.507059e+37  ;;  %vm1296_vm11 = vweird.f32 %v1290_v32  ;;  %v1326_v4 = vand.u32 2147483648, %v1314_v41 }
 0x5c7   :  { %1705 = vtanh.f32 %v1306_v48  ;;  %v1303_v59 = vor.u32 1.1754944e-38, %v1302_v23  ;;  %vm1301_vm13 = vcmp.eq.f32.partialorder %v1300_v28, 8.507059e+37  ;;  %vm1320_vm15 = vweird.f32 %v1314_v41 }
 0x5c8   :  { %v1324_v6 = vand.u32 2147483647, %v1314_v41  ;;  %v1327_v3 = vor.u32 1.1754944e-38, %v1326_v4 }
 0x5c9   :  { %v1700_v42 = vpop.eup %1699 }
 0x5ca   :  { %v1270_v43 = vmul.f32 %v1700_v42, %v1268_v24  ;;  %vm1275_vm0 = vweird.f32 %v1700_v42  ;;  %vm1325_vm4 = vcmp.eq.f32.partialorder %v1324_v6, 8.507059e+37 }
 0x5cb   :  { %v1702_v47 = vpop.eup %1701  ;;  %vm1276_vm9 = vmor %vm1274_vm1, %vm1275_vm0 }
 0x5cc   :  { %v1704_v51 = vpop.eup %1703  ;;  %v1292_v39 = vmul.f32 %v1702_v47, %v1290_v32  ;;  %v1271_v9 = vsub.f32 1.0, %v1270_v43  ;;  %vm1297_vm2 = vweird.f32 %v1702_v47 }
 0x5cd   :  { %v1316_v15 = vmul.f32 %v1704_v51, %v1314_v41  ;;  %vm1298_vm12 = vmor %vm1296_vm11, %vm1297_vm2  ;;  %v1706_v37 = vpop.eup %1705  ;;  %vm1321_vm14 = vweird.f32 %v1704_v51 }
 0x5ce   :  { %v1272_v14 = vmul.f32 %v1700_v42, %v1271_v9  ;;  %v1293_v19 = vsub.f32 1.0, %v1292_v39  ;;  %vm1322_vm3 = vmor %vm1320_vm15, %vm1321_vm14 }
 0x5cf   :  { %v1317_v40 = vsub.f32 1.0, %v1316_v15 }
 0x5d0   :  { %v1273_v22 = vadd.f32 %v1700_v42, %v1272_v14  ;;  %v1294_v30 = vmul.f32 %v1702_v47, %v1293_v19 }
 0x5d1   :  { %v1318_v35 = vmul.f32 %v1704_v51, %v1317_v40 }
 0x5d2   :  { %v1277_v49 = vsel %vm1276_vm9, %v1700_v42, %v1273_v22  ;;  %v1295_v53 = vadd.f32 %v1702_v47, %v1294_v30 }
 0x5d3   :  { %v1282_v55 = vsel %vm1279_vm10, %v1281_v31, %v1277_v49  ;;  %v1319_v36 = vadd.f32 %v1704_v51, %v1318_v35 }
 0x5d4   :  { %v1299_v61 = vsel %vm1298_vm12, %v1702_v47, %v1295_v53  ;;  %v1331_v52 = vmul.f32 %v1706_v37, %v1282_v55 }
 0x5d5   :  { %v1304_v0 = vsel %vm1301_vm13, %v1303_v59, %v1299_v61 }
 0x5d6   :  { %v1330_v60 = vmul.f32 %v1304_v0, %v2400_v63  ;;  %v1323_v63 = vsel %vm1322_vm3, %v1704_v51, %v1319_v36 }
 0x5d7   :  { %v1328_v54 = vsel %vm1325_vm4, %v1327_v3, %v1323_v63 }
 0x5d8   :  { %v1332_v1 = vadd.f32 %v1331_v52, %v1330_v60 }
 0x5da   :  { %1707 = vtanh.f32 %v1332_v1  ;;  %1339 = vst [vmem:[#allocation3] sm:$0x3] %v1332_v1 }
 0x5db   :  { %1344 = vst [vmem:[#allocation6] sm:$0x3] %v1332_v1 }
 0x5dc   :  { %1368 = dma.vmem_to_hbm [thread:$0]  %s1364_s9, 32, %s1366_s12, [#allocation7]  }
 0x5e0   :  { %v1708_v7 = vpop.eup %1707 }
 0x5e1   :  { %v1334_v8 = vmul.f32 %v1708_v7, %v1328_v54 }
 0x5e3   :  { %v1335_v2 = vpack.c.bf16 %v1334_v8, %v1334_v8  ;;  %1338 = vst [vmem:[#allocation2] sm:$0x3] %v1334_v8 }
 0x5e4   :  { %1343 = vst [vmem:[#allocation4] sm:$0x3] %v1334_v8 }
 0x5e5   :  { %1546 = vst [vmem:[%s2426_s4 + $0x7] sm:$0x1] %v1335_v2  ;;  %1357 = dma.vmem_to_hbm [thread:$0]  %s1353_s14, 32, %s1355_s15, [#allocation5]  }
 0x5e6   :  { %1757 = dma.done.wait [#allocation5], 32  }
 0x5e7   :  { %1758 = vsyncadd [#allocation5], 4294967264 }
 0x5e8   :  { %1759 = dma.done.wait [#allocation7], 32  }
 0x5e9   :  { %1760 = vsyncadd [#allocation7], 4294967264 }
 0x5ea   :  { %1379 = vsyncpa [#allocation5], 1 }
 0x5eb   :  { %1380 = vsyncpa [#allocation7], 1 }

// kernel: seq2seq_forward.12
= control target key start
LH: loop header
LB: loop body
LE: loop exit
PB: predicated region body
PF: predicated region fallthrough
CT: control target
= control target key end

     0   :  { %s2359_s0 = inlined_call_operand.vmem [shape: f32[8,2,512], index: 0, kind: input, shape index: {}]   ;;  %s2360_s1 = inlined_call_operand.vmem [shape: f32[2,128], index: 1, kind: input, shape index: {}, may-alias: {1,2}]   ;;  %s2361_s2 = inlined_call_operand.vmem [shape: f32[2,128], index: 2, kind: input, shape index: {}, may-alias: {1,2}]   ;;  %s2362_s3 = inlined_call_operand.vmem [shape: bf16[128,512], index: 3, kind: input, shape index: {}]   ;;  %s2363_s4 = inlined_call_operand.hbm [shape: bf16[8,2,128], index: 4, kind: output, shape index: {0}]   ;;  %s2364_s5 = inlined_call_operand.vmem [shape: f32[2,128], index: 5, kind: output, shape index: {1}]   ;;  %s2365_s6 = inlined_call_operand.vmem [shape: f32[2,128], index: 6, kind: output, shape index: {2}]  }
   0x1   :  { %v1484_v0 = vld [vmem:[%s2362_s3 + $0xe0] sm:$0xf]  ;;  %v1559_v1 = vld [vmem:[%s2362_s3 + $0xec] sm:$0xf0]  ;;  %v1557_v2 = vld [vmem:[%s2362_s3 + $0xe4] sm:$0xf] }
   0x2   :  { %v1765_v3 = vor.u32 %v1559_v1, %v1484_v0  ;;  %v1486_v4 = vld [vmem:[%s2362_s3 + $0xf0] sm:$0xf0]  ;;  %v1492_v5 = vld [vmem:[%s2362_s3 + $0xe8] sm:$0xf]  ;;  %v1560_v6 = vld [vmem:[%s2362_s3 + $0xf4] sm:$0xf0] }
   0x3   :  { %v1776_v7 = vor.u32 %v1557_v2, %v1486_v4  ;;  %v1778_v8 = vor.u32 %v1560_v6, %v1492_v5  ;;  %v1558_v9 = vld [vmem:[%s2362_s3 + $0xec] sm:$0xf]  ;;  %v1494_v10 = vld [vmem:[%s2362_s3 + $0xf8] sm:$0xf0]  ;;  %v1468_v11 = vld [vmem:[%s2362_s3 + $0xc0] sm:$0xf] }
   0x4   :  { %225 = vmatpush.bf16.msra.mxu0 %v1765_v3  ;;  %v1790_v12 = vor.u32 %v1558_v9, %v1494_v10  ;;  %v1555_v13 = vld [vmem:[%s2362_s3 + $0xcc] sm:$0xf0]  ;;  %v1553_v14 = vld [vmem:[%s2362_s3 + $0xc4] sm:$0xf]  ;;  %v1470_v15 = vld [vmem:[%s2362_s3 + $0xd0] sm:$0xf0] }
   0x5   :  { %238 = vmatpush.bf16.msra.mxu1 %v1776_v7  ;;  %251 = vmatpush.bf16.msra.mxu2 %v1778_v8  ;;  %v1803_v16 = vor.u32 %v1555_v13, %v1468_v11  ;;  %v1805_v17 = vor.u32 %v1553_v14, %v1470_v15  ;;  %v1476_v18 = vld [vmem:[%s2362_s3 + $0xc8] sm:$0xf]  ;;  %v1556_v19 = vld [vmem:[%s2362_s3 + $0xd4] sm:$0xf0]  ;;  %v1554_v20 = vld [vmem:[%s2362_s3 + $0xcc] sm:$0xf] }
   0x6   :  { %264 = vmatpush.bf16.msra.mxu3 %v1790_v12  ;;  %v1817_v21 = vor.u32 %v1556_v19, %v1476_v18  ;;  %v1478_v22 = vld [vmem:[%s2362_s3 + $0xd8] sm:$0xf0]  ;;  %v1452_v23 = vld [vmem:[%s2362_s3 + $0xa0] sm:$0xf]  ;;  %v1551_v24 = vld [vmem:[%s2362_s3 + $0xac] sm:$0xf0] }
   0x7   :  { %v1828_v25 = vor.u32 %v1554_v20, %v1478_v22  ;;  %v1549_v26 = vld [vmem:[%s2362_s3 + $0xa4] sm:$0xf]  ;;  %v1454_v27 = vld [vmem:[%s2362_s3 + $0xb0] sm:$0xf0]  ;;  %v1460_v28 = vld [vmem:[%s2362_s3 + $0xa8] sm:$0xf]  ;;  %v1840_v29 = vor.u32 %v1551_v24, %v1452_v23 }
   0x8   :  { %226 = vmatpush.bf16.msra.mxu0 %v1803_v16  ;;  %v1552_v30 = vld [vmem:[%s2362_s3 + $0xb4] sm:$0xf0]  ;;  %v1550_v31 = vld [vmem:[%s2362_s3 + $0xac] sm:$0xf]  ;;  %v1462_v32 = vld [vmem:[%s2362_s3 + $0xb8] sm:$0xf0]  ;;  %v1853_v33 = vor.u32 %v1549_v26, %v1454_v27 }
   0x9   :  { %239 = vmatpush.bf16.msra.mxu1 %v1805_v17  ;;  %252 = vmatpush.bf16.msra.mxu2 %v1817_v21  ;;  %v1855_v34 = vor.u32 %v1552_v30, %v1460_v28  ;;  %v1436_v35 = vld [vmem:[%s2362_s3 + $0x80] sm:$0xf]  ;;  %v1547_v36 = vld [vmem:[%s2362_s3 + $0x8c] sm:$0xf0]  ;;  %v1545_v37 = vld [vmem:[%s2362_s3 + $0x84] sm:$0xf]  ;;  %v1867_v38 = vor.u32 %v1550_v31, %v1462_v32 }
   0xa   :  { %265 = vmatpush.bf16.msra.mxu3 %v1828_v25  ;;  %v1438_v39 = vld [vmem:[%s2362_s3 + $0x90] sm:$0xf0]  ;;  %v1444_v40 = vld [vmem:[%s2362_s3 + $0x88] sm:$0xf]  ;;  %v1548_v41 = vld [vmem:[%s2362_s3 + $0x94] sm:$0xf0]  ;;  %v1885_v44 = vor.u32 %v1547_v36, %v1436_v35 }
   0xb   :  { %v1546_v42 = vld [vmem:[%s2362_s3 + $0x8c] sm:$0xf]  ;;  %v1446_v43 = vld [vmem:[%s2362_s3 + $0x98] sm:$0xf0]  ;;  %v1889_v45 = vor.u32 %v1545_v37, %v1438_v39  ;;  %v1891_v46 = vor.u32 %v1548_v41, %v1444_v40  ;;  %v1420_v47 = vld [vmem:[%s2362_s3 + $0x60] sm:$0xf] }
   0xc   :  { %227 = vmatpush.bf16.msra.mxu0 %v1840_v29  ;;  %v1543_v48 = vld [vmem:[%s2362_s3 + $0x6c] sm:$0xf0]  ;;  %v1541_v49 = vld [vmem:[%s2362_s3 + $0x64] sm:$0xf]  ;;  %v1903_v50 = vor.u32 %v1546_v42, %v1446_v43  ;;  %v1422_v51 = vld [vmem:[%s2362_s3 + $0x70] sm:$0xf0] }
   0xd   :  { %240 = vmatpush.bf16.msra.mxu1 %v1853_v33  ;;  %253 = vmatpush.bf16.msra.mxu2 %v1855_v34  ;;  %v1428_v52 = vld [vmem:[%s2362_s3 + $0x68] sm:$0xf]  ;;  %v1544_v53 = vld [vmem:[%s2362_s3 + $0x74] sm:$0xf0]  ;;  %v1542_v54 = vld [vmem:[%s2362_s3 + $0x6c] sm:$0xf]  ;;  %v1921_v56 = vor.u32 %v1543_v48, %v1420_v47  ;;  %v1925_v57 = vor.u32 %v1541_v49, %v1422_v51 }
   0xe   :  { %266 = vmatpush.bf16.msra.mxu3 %v1867_v38  ;;  %v1430_v55 = vld [vmem:[%s2362_s3 + $0x78] sm:$0xf0]  ;;  %v1927_v58 = vor.u32 %v1544_v53, %v1428_v52  ;;  %v1404_v59 = vld [vmem:[%s2362_s3 + $0x40] sm:$0xf]  ;;  %v1539_v60 = vld [vmem:[%s2362_s3 + $0x4c] sm:$0xf0] }
   0xf   :  { %v1537_v61 = vld [vmem:[%s2362_s3 + $0x44] sm:$0xf]  ;;  %v1939_v62 = vor.u32 %v1542_v54, %v1430_v55  ;;  %v1406_v63 = vld [vmem:[%s2362_s3 + $0x50] sm:$0xf0]  ;;  %v1412_v0 = vld [vmem:[%s2362_s3 + $0x48] sm:$0xf]  ;;  %v1957_v5 = vor.u32 %v1539_v60, %v1404_v59 }
  0x10   :  { %228 = vmatpush.bf16.msra.mxu0 %v1885_v44  ;;  %v1540_v1 = vld [vmem:[%s2362_s3 + $0x54] sm:$0xf0]  ;;  %v1538_v2 = vld [vmem:[%s2362_s3 + $0x4c] sm:$0xf]  ;;  %v1414_v4 = vld [vmem:[%s2362_s3 + $0x58] sm:$0xf0]  ;;  %v1967_v10 = vor.u32 %v1537_v61, %v1406_v63 }
  0x11   :  { %241 = vmatpush.bf16.msra.mxu1 %v1889_v45  ;;  %254 = vmatpush.bf16.msra.mxu2 %v1891_v46  ;;  %v1388_v6 = vld [vmem:[%s2362_s3 + $0x20] sm:$0xf]  ;;  %v1535_v9 = vld [vmem:[%s2362_s3 + $0x2c] sm:$0xf0]  ;;  %v1969_v11 = vor.u32 %v1540_v1, %v1412_v0  ;;  %v1533_v13 = vld [vmem:[%s2362_s3 + $0x24] sm:$0xf]  ;;  %v1981_v18 = vor.u32 %v1538_v2, %v1414_v4 }
  0x12   :  { %267 = vmatpush.bf16.msra.mxu3 %v1903_v50  ;;  %v1390_v14 = vld [vmem:[%s2362_s3 + $0x30] sm:$0xf0]  ;;  %v1396_v15 = vld [vmem:[%s2362_s3 + $0x28] sm:$0xf]  ;;  %v1536_v19 = vld [vmem:[%s2362_s3 + $0x34] sm:$0xf0] }
  0x13   :  { %v25_v20 = vld [vmem:[%s2360_s1] sm:$0x3] }
  0x14   :  { %229 = vmatpush.bf16.msra.mxu0 %v1921_v56 }
  0x15   :  { %242 = vmatpush.bf16.msra.mxu1 %v1925_v57  ;;  %255 = vmatpush.bf16.msra.mxu2 %v1927_v58 }
  0x16   :  { %268 = vmatpush.bf16.msra.mxu3 %v1939_v62 }
  0x17   :  { %12 = vsyncpa [#allocation5], 0  ;;  %v1534_v22 = vld [vmem:[%s2362_s3 + $0x2c] sm:$0xf]  ;;  %v1398_v23 = vld [vmem:[%s2362_s3 + $0x38] sm:$0xf0]  ;;  %v1996_v24 = vor.u32 %v1535_v9, %v1388_v6  ;;  %v2000_v26 = vor.u32 %v1533_v13, %v1390_v14  ;;  %v2002_v27 = vor.u32 %v1536_v19, %v1396_v15 }
  0x18   :  { %26 = vst [vmem:[#allocation2] sm:$0x3] %v25_v20  ;;  %230 = vmatpush.bf16.msra.mxu0 %v1957_v5  ;;  %v1372_v28 = vld [vmem:[%s2362_s3] sm:$0xf]  ;;  %v1531_v30 = vld [vmem:[%s2362_s3 + $0xc] sm:$0xf0]  ;;  %v2014_v32 = vor.u32 %v1534_v22, %v1398_v23 }
  0x19   :  { %243 = vmatpush.bf16.msra.mxu1 %v1967_v10  ;;  %256 = vmatpush.bf16.msra.mxu2 %v1969_v11  ;;  %v1529_v31 = vld [vmem:[%s2362_s3 + $0x4] sm:$0xf]  ;;  %v1374_v35 = vld [vmem:[%s2362_s3 + $0x10] sm:$0xf0]  ;;  %v1380_v36 = vld [vmem:[%s2362_s3 + $0x8] sm:$0xf]  ;;  %v2032_v41 = vor.u32 %v1531_v30, %v1372_v28 }
  0x1a   :  { %269 = vmatpush.bf16.msra.mxu3 %v1981_v18  ;;  %v1532_v37 = vld [vmem:[%s2362_s3 + $0x14] sm:$0xf0]  ;;  %v1530_v39 = vld [vmem:[%s2362_s3 + $0xc] sm:$0xf]  ;;  %v1382_v40 = vld [vmem:[%s2362_s3 + $0x18] sm:$0xf0]  ;;  %v2036_v42 = vor.u32 %v1529_v31, %v1374_v35 }
  0x1b   :  { %v2038_v43 = vor.u32 %v1532_v37, %v1380_v36  ;;  %v2041_v47 = vor.u32 %v1530_v39, %v1382_v40  ;;  %v27_v54 = vld [vmem:[%s2361_s2] sm:$0x3]  ;;  %vm284_vm0 = vcmask 1041408   ;;  %vm286_vm1 = vcmask 1045508   ;;  %s1718_s22 = smov [#allocation4]   ;;  %s1350_s26 = sshll.u32 %s2363_s4, 4  ;;  %s1351_s26 = int_to_ptr.hbm [resolvable:$true] %s1350_s26 }
  0x1c   :  { %231 = vmatpush.bf16.msra.mxu0 %v1996_v24  ;;  %28 = vst [vmem:[#allocation3] sm:$0x3] %v27_v54  ;;  %vm288_vm2 = vcmask 1043456   ;;  %v63_v2 = vld [vmem:[%s2359_s0] sm:$0xff]  ;;  %s1348_s23 = sshll.u32 %s1718_s22, 4  ;;  %s1720_s29 = smov 1   ;;  %s1349_s23 = int_to_ptr.vmem [resolvable:$true] %s1348_s23 }
  0x1d   :  { %244 = vmatpush.bf16.msra.mxu1 %v2000_v26  ;;  %257 = vmatpush.bf16.msra.mxu2 %v2002_v27 }
  0x1e   :  { %270 = vmatpush.bf16.msra.mxu3 %v2014_v32 }
  0x1f   :  { %v61_v48 = vld [vmem:[#allocation2] sm:$0x3] }
  0x20   :  { %v64_v49 = vpack.c.bf16 %v61_v48, %v61_v48  ;;  %232 = vmatpush.bf16.msra.mxu0 %v2032_v41 }
  0x21   :  { %245 = vmatpush.bf16.msra.mxu1 %v2036_v42  ;;  %258 = vmatpush.bf16.msra.mxu2 %v2038_v43 }
  0x22   :  { %271 = vmatpush.bf16.msra.mxu3 %v2041_v47 }
  0x23   :  { %233 = vmatmul.bf16.vlgmr.msra.gmra.mxu0 %v64_v49 }
  0x24   :  { %366 = vmatpush.bf16.msrb.mxu0 %v1765_v3  ;;  %246 = vmatmul.bf16.vlgmr.msra.gmra.mxu1 %v64_v49 }
  0x25   :  { %379 = vmatpush.bf16.msrb.mxu1 %v1776_v7  ;;  %259 = vmatmul.bf16.vlgmr.msra.gmra.mxu2 %v64_v49 }
  0x26   :  { %272 = vmatmul.bf16.vlgmr.msra.gmra.mxu3 %v64_v49  ;;  %392 = vmatpush.bf16.msrb.mxu2 %v1778_v8 }
  0x27   :  { %405 = vmatpush.bf16.msrb.mxu3 %v1790_v12 }
  0x28   :  { %367 = vmatpush.bf16.msrb.mxu0 %v1803_v16 }
  0x29   :  { %380 = vmatpush.bf16.msrb.mxu1 %v1805_v17 }
  0x2a   :  { %393 = vmatpush.bf16.msrb.mxu2 %v1817_v21 }
  0x2b   :  { %406 = vmatpush.bf16.msrb.mxu3 %v1828_v25 }
  0x2c   :  { %368 = vmatpush.bf16.msrb.mxu0 %v1840_v29 }
  0x2d   :  { %381 = vmatpush.bf16.msrb.mxu1 %v1853_v33 }
  0x2e   :  { %394 = vmatpush.bf16.msrb.mxu2 %v1855_v34 }
  0x2f   :  { %407 = vmatpush.bf16.msrb.mxu3 %v1867_v38 }
  0x30   :  { %369 = vmatpush.bf16.msrb.mxu0 %v1885_v44 }
  0x31   :  { %382 = vmatpush.bf16.msrb.mxu1 %v1889_v45 }
  0x32   :  { %395 = vmatpush.bf16.msrb.mxu2 %v1891_v46 }
  0x33   :  { %408 = vmatpush.bf16.msrb.mxu3 %v1903_v50 }
  0x34   :  { %370 = vmatpush.bf16.msrb.mxu0 %v1921_v56 }
  0x35   :  { %383 = vmatpush.bf16.msrb.mxu1 %v1925_v57 }
  0x36   :  { %396 = vmatpush.bf16.msrb.mxu2 %v1927_v58 }
  0x37   :  { %409 = vmatpush.bf16.msrb.mxu3 %v1939_v62 }
  0x38   :  { %371 = vmatpush.bf16.msrb.mxu0 %v1957_v5 }
  0x39   :  { %384 = vmatpush.bf16.msrb.mxu1 %v1967_v10 }
  0x3a   :  { %397 = vmatpush.bf16.msrb.mxu2 %v1969_v11 }
  0x3b   :  { %410 = vmatpush.bf16.msrb.mxu3 %v1981_v18 }
  0x3c   :  { %372 = vmatpush.bf16.msrb.mxu0 %v1996_v24 }
  0x3d   :  { %385 = vmatpush.bf16.msrb.mxu1 %v2000_v26 }
  0x3e   :  { %398 = vmatpush.bf16.msrb.mxu2 %v2002_v27 }
  0x3f   :  { %411 = vmatpush.bf16.msrb.mxu3 %v2014_v32 }
  0x40   :  { %373 = vmatpush.bf16.msrb.mxu0 %v2032_v41 }
  0x41   :  { %386 = vmatpush.bf16.msrb.mxu1 %v2036_v42 }
  0x42   :  { %399 = vmatpush.bf16.msrb.mxu2 %v2038_v43 }
  0x43   :  { %412 = vmatpush.bf16.msrb.mxu3 %v2041_v47 }
  0x44   :  { %505 = vmatpush.bf16.msra.mxu0 %v1765_v3 }
  0x45   :  { %518 = vmatpush.bf16.msra.mxu1 %v1776_v7 }
  0x46   :  { %531 = vmatpush.bf16.msra.mxu2 %v1778_v8 }
  0x47   :  { %544 = vmatpush.bf16.msra.mxu3 %v1790_v12 }
  0x48   :  { %506 = vmatpush.bf16.msra.mxu0 %v1803_v16 }
  0x49   :  { %519 = vmatpush.bf16.msra.mxu1 %v1805_v17 }
  0x4a   :  { %532 = vmatpush.bf16.msra.mxu2 %v1817_v21 }
  0x4b   :  { %545 = vmatpush.bf16.msra.mxu3 %v1828_v25 }
  0x4c   :  { %507 = vmatpush.bf16.msra.mxu0 %v1840_v29 }
  0x4d   :  { %520 = vmatpush.bf16.msra.mxu1 %v1853_v33 }
  0x4e   :  { %533 = vmatpush.bf16.msra.mxu2 %v1855_v34 }
  0x4f   :  { %546 = vmatpush.bf16.msra.mxu3 %v1867_v38 }
  0x50   :  { %508 = vmatpush.bf16.msra.mxu0 %v1885_v44 }
  0x51   :  { %521 = vmatpush.bf16.msra.mxu1 %v1889_v45 }
  0x52   :  { %534 = vmatpush.bf16.msra.mxu2 %v1891_v46 }
  0x53   :  { %547 = vmatpush.bf16.msra.mxu3 %v1903_v50 }
  0x54   :  { %509 = vmatpush.bf16.msra.mxu0 %v1921_v56 }
  0x55   :  { %522 = vmatpush.bf16.msra.mxu1 %v1925_v57 }
  0x56   :  { %535 = vmatpush.bf16.msra.mxu2 %v1927_v58 }
  0x57   :  { %548 = vmatpush.bf16.msra.mxu3 %v1939_v62 }
  0x58   :  { %510 = vmatpush.bf16.msra.mxu0 %v1957_v5 }
  0x59   :  { %523 = vmatpush.bf16.msra.mxu1 %v1967_v10 }
  0x5a   :  { %536 = vmatpush.bf16.msra.mxu2 %v1969_v11 }
  0x5b   :  { %549 = vmatpush.bf16.msra.mxu3 %v1981_v18 }
  0x5c   :  { %511 = vmatpush.bf16.msra.mxu0 %v1996_v24 }
  0x5d   :  { %524 = vmatpush.bf16.msra.mxu1 %v2000_v26 }
  0x5e   :  { %537 = vmatpush.bf16.msra.mxu2 %v2002_v27 }
  0x5f   :  { %550 = vmatpush.bf16.msra.mxu3 %v2014_v32 }
  0x60   :  { %512 = vmatpush.bf16.msra.mxu0 %v2032_v41 }
  0x61   :  { %525 = vmatpush.bf16.msra.mxu1 %v2036_v42 }
  0x62   :  { %538 = vmatpush.bf16.msra.mxu2 %v2038_v43 }
  0x63   :  { %551 = vmatpush.bf16.msra.mxu3 %v2041_v47 }
  0xa0   :  { %v234_v51 = vpop.f32.mrf.mxu0 }
  0xa1   :  { %v247_v52 = vpop.f32.mrf.mxu1 }
  0xa2   :  { %v281_v53 = vrot.slane %v247_v52, 6 }
  0xa4   :  { %v285_v63 = vsel %vm284_vm0, %v234_v51, %v281_v53 }
  0xa8   :  { %v260_v55 = vpop.f32.mrf.mxu2  ;;  %v236_v61 = vpop.f32.mrf.mxu0 }
  0xa9   :  { %v282_v59 = vrot.slane %v260_v55, 4  ;;  %v273_v60 = vpop.f32.mrf.mxu3  ;;  %v249_v1 = vpop.f32.mrf.mxu1 }
  0xaa   :  { %v283_v0 = vrot.slane %v273_v60, 2 }
  0xac   :  { %v287_v4 = vsel %vm286_vm1, %v282_v59, %v283_v0 }
  0xad   :  { %v289_v6 = vsel %vm288_vm2, %v285_v63, %v287_v4 }
  0xae   :  { %v291_v9 = vadd.f32 %v289_v6, %v63_v2 }
  0xb0   :  { %v1498_v13 = vmul.f32 -1.442695, %v291_v9  ;;  %v312_v14 = vrot.slane %v291_v9, 2  ;;  %v336_v15 = vrot.slane %v291_v9, 6  ;;  %v262_v19 = vpop.f32.mrf.mxu2  ;;  %v333_v49 = vrot.slane %v291_v9, 4 }
  0xb1   :  { %v275_v20 = vpop.f32.mrf.mxu3 }
  0xb2   :  { %1564 = vpow2.f32 %v1498_v13  ;;  %v1499_v22 = vmul.f32 -1.442695, %v312_v14  ;;  %v1500_v23 = vmul.f32 -1.442695, %v336_v15  ;;  %v62_v14 = vld [vmem:[#allocation3] sm:$0x3] }
  0xb4   :  { %1566 = vpow2.f32 %v1499_v22 }
  0xb5   :  { %1568 = vpow2.f32 %v1500_v23 }
  0xb8   :  { %v1565_v28 = vpop.eup %1564 }
  0xb9   :  { %v295_v30 = vadd.f32 1.0, %v1565_v28 }
  0xba   :  { %v1567_v31 = vpop.eup %1566 }
  0xbb   :  { %v1569_v35 = vpop.eup %1568  ;;  %1570 = vrcp.f32 %v295_v30  ;;  %v317_v36 = vadd.f32 1.0, %v1567_v31  ;;  %v307_v54 = vand.u32 2147483648, %v295_v30  ;;  %v305_v61 = vand.u32 2147483647, %v295_v30 }
  0xbc   :  { %v341_v37 = vadd.f32 1.0, %v1569_v35  ;;  %vm301_vm4 = vweird.f32 %v295_v30 }
  0xbd   :  { %1572 = vrcp.f32 %v317_v36  ;;  %v329_v63 = vand.u32 2147483648, %v317_v36  ;;  %v327_v2 = vand.u32 2147483647, %v317_v36  ;;  %v308_v4 = vor.u32 1.1754944e-38, %v307_v54 }
  0xbe   :  { %1574 = vrcp.f32 %v341_v37  ;;  %vm306_vm7 = vcmp.eq.f32.partialorder %v305_v61, 8.507059e+37  ;;  %vm323_vm8 = vweird.f32 %v317_v36  ;;  %vm347_vm12 = vweird.f32 %v341_v37 }
  0xbf   :  { %1576 = vtanh.f32 %v333_v49  ;;  %v330_v19 = vor.u32 1.1754944e-38, %v329_v63  ;;  %vm328_vm10 = vcmp.eq.f32.partialorder %v327_v2, 8.507059e+37  ;;  %v353_v49 = vand.u32 2147483648, %v341_v37 }
  0xc1   :  { %v1571_v39 = vpop.eup %1570 }
  0xc2   :  { %v297_v40 = vmul.f32 %v1571_v39, %v295_v30  ;;  %vm302_vm3 = vweird.f32 %v1571_v39 }
  0xc3   :  { %v1573_v48 = vpop.eup %1572  ;;  %vm303_vm6 = vmor %vm301_vm4, %vm302_vm3 }
  0xc4   :  { %v1575_v51 = vpop.eup %1574  ;;  %v298_v52 = vsub.f32 1.0, %v297_v40  ;;  %v319_v53 = vmul.f32 %v1573_v48, %v317_v36  ;;  %vm324_vm5 = vweird.f32 %v1573_v48  ;;  %v351_v36 = vand.u32 2147483647, %v341_v37 }
  0xc5   :  { %v343_v55 = vmul.f32 %v1575_v51, %v341_v37  ;;  %vm325_vm9 = vmor %vm323_vm8, %vm324_vm5  ;;  %v1577_v22 = vpop.eup %1576  ;;  %vm348_vm11 = vweird.f32 %v1575_v51 }
  0xc6   :  { %v320_v59 = vsub.f32 1.0, %v319_v53  ;;  %v299_v60 = vmul.f32 %v1571_v39, %v298_v52  ;;  %vm349_vm13 = vmor %vm347_vm12, %vm348_vm11  ;;  %v354_v52 = vor.u32 1.1754944e-38, %v353_v49  ;;  %vm352_vm14 = vcmp.eq.f32.partialorder %v351_v36, 8.507059e+37 }
  0xc7   :  { %v344_v6 = vsub.f32 1.0, %v343_v55 }
  0xc8   :  { %v300_v0 = vadd.f32 %v1571_v39, %v299_v60  ;;  %v321_v1 = vmul.f32 %v1573_v48, %v320_v59 }
  0xc9   :  { %v345_v28 = vmul.f32 %v1575_v51, %v344_v6 }
  0xca   :  { %v304_v9 = vsel %vm303_vm6, %v1571_v39, %v300_v0  ;;  %v322_v13 = vadd.f32 %v1573_v48, %v321_v1 }
  0xcb   :  { %v309_v15 = vsel %vm306_vm7, %v308_v4, %v304_v9  ;;  %v346_v40 = vadd.f32 %v1575_v51, %v345_v28  ;;  %v1501_v4 = vld [vmem:[%s2359_s0 + $0x8] sm:$0xff] }
  0xcc   :  { %v326_v20 = vsel %vm325_vm9, %v1573_v48, %v322_v13  ;;  %v358_v31 = vmul.f32 %v1577_v22, %v309_v15 }
  0xcd   :  { %v331_v23 = vsel %vm328_vm10, %v330_v19, %v326_v20  ;;  %v350_v39 = vsel %vm349_vm13, %v1575_v51, %v346_v40 }
  0xce   :  { %v357_v30 = vmul.f32 %v331_v23, %v62_v14  ;;  %v355_v53 = vsel %vm352_vm14, %v354_v52, %v350_v39 }
  0xd0   :  { %v2120_v35 = vadd.f32 %v358_v31, %v357_v30 }
  0xd2   :  { %1578 = vtanh.f32 %v2120_v35 }
  0xd8   :  { %v1579_v48 = vpop.eup %1578 }
  0xd9   :  { %v361_v54 = vmul.f32 %v1579_v48, %v355_v53 }
  0xdb   :  { %v362_v55 = vpack.c.bf16 %v361_v54, %v361_v54 }
  0xdd   :  { %363 = vst [vmem:[#allocation4] sm:$0x1] %v362_v55  ;;  %374 = vmatmul.bf16.vlgmr.msrb.gmra.mxu0 %v362_v55  ;;  %387 = vmatmul.bf16.vlgmr.msrb.gmra.mxu1 %v362_v55 }
  0xde   :  { %400 = vmatmul.bf16.vlgmr.msrb.gmra.mxu2 %v362_v55  ;;  %413 = vmatmul.bf16.vlgmr.msrb.gmra.mxu3 %v362_v55 }
  0xdf   :  { %644 = vmatpush.bf16.msrb.mxu0 %v1765_v3  ;;  %657 = vmatpush.bf16.msrb.mxu1 %v1776_v7 }
  0xe0   :  { %670 = vmatpush.bf16.msrb.mxu2 %v1778_v8  ;;  %683 = vmatpush.bf16.msrb.mxu3 %v1790_v12 }
  0xe3   :  { %645 = vmatpush.bf16.msrb.mxu0 %v1803_v16  ;;  %658 = vmatpush.bf16.msrb.mxu1 %v1805_v17 }
  0xe4   :  { %671 = vmatpush.bf16.msrb.mxu2 %v1817_v21  ;;  %684 = vmatpush.bf16.msrb.mxu3 %v1828_v25 }
  0xe7   :  { %646 = vmatpush.bf16.msrb.mxu0 %v1840_v29  ;;  %659 = vmatpush.bf16.msrb.mxu1 %v1853_v33 }
  0xe8   :  { %672 = vmatpush.bf16.msrb.mxu2 %v1855_v34  ;;  %685 = vmatpush.bf16.msrb.mxu3 %v1867_v38 }
  0xeb   :  { %647 = vmatpush.bf16.msrb.mxu0 %v1885_v44  ;;  %660 = vmatpush.bf16.msrb.mxu1 %v1889_v45 }
  0xec   :  { %673 = vmatpush.bf16.msrb.mxu2 %v1891_v46  ;;  %686 = vmatpush.bf16.msrb.mxu3 %v1903_v50 }
  0xef   :  { %648 = vmatpush.bf16.msrb.mxu0 %v1921_v56  ;;  %661 = vmatpush.bf16.msrb.mxu1 %v1925_v57 }
  0xf0   :  { %674 = vmatpush.bf16.msrb.mxu2 %v1927_v58  ;;  %687 = vmatpush.bf16.msrb.mxu3 %v1939_v62 }
  0xf3   :  { %649 = vmatpush.bf16.msrb.mxu0 %v1957_v5  ;;  %662 = vmatpush.bf16.msrb.mxu1 %v1967_v10 }
  0xf4   :  { %675 = vmatpush.bf16.msrb.mxu2 %v1969_v11  ;;  %688 = vmatpush.bf16.msrb.mxu3 %v1981_v18 }
  0xf7   :  { %650 = vmatpush.bf16.msrb.mxu0 %v1996_v24  ;;  %663 = vmatpush.bf16.msrb.mxu1 %v2000_v26 }
  0xf8   :  { %676 = vmatpush.bf16.msrb.mxu2 %v2002_v27  ;;  %689 = vmatpush.bf16.msrb.mxu3 %v2014_v32 }
  0xfb   :  { %651 = vmatpush.bf16.msrb.mxu0 %v2032_v41  ;;  %664 = vmatpush.bf16.msrb.mxu1 %v2036_v42 }
  0xfc   :  { %677 = vmatpush.bf16.msrb.mxu2 %v2038_v43  ;;  %690 = vmatpush.bf16.msrb.mxu3 %v2041_v47 }
 0x15a   :  { %v375_v37 = vpop.f32.mrf.mxu0  ;;  %v388_v51 = vpop.f32.mrf.mxu1 }
 0x15b   :  { %v422_v59 = vrot.slane %v388_v51, 6 }
 0x15d   :  { %v425_v6 = vsel %vm284_vm0, %v375_v37, %v422_v59 }
 0x161   :  { %v401_v60 = vpop.f32.mrf.mxu2  ;;  %v414_v61 = vpop.f32.mrf.mxu3 }
 0x162   :  { %v423_v63 = vrot.slane %v401_v60, 4  ;;  %v424_v0 = vrot.slane %v414_v61, 2  ;;  %v377_v1 = vpop.f32.mrf.mxu0  ;;  %v390_v2 = vpop.f32.mrf.mxu1 }
 0x164   :  { %v426_v9 = vsel %vm286_vm1, %v423_v63, %v424_v0 }
 0x165   :  { %v427_v13 = vsel %vm288_vm2, %v425_v6, %v426_v9 }
 0x166   :  { %v429_v14 = vadd.f32 %v1501_v4, %v427_v13 }
 0x168   :  { %v1502_v15 = vmul.f32 -1.442695, %v429_v14  ;;  %v450_v19 = vrot.slane %v429_v14, 2  ;;  %v474_v20 = vrot.slane %v429_v14, 6  ;;  %v471_v55 = vrot.slane %v429_v14, 4 }
 0x169   :  { %v403_v22 = vpop.f32.mrf.mxu2  ;;  %v416_v23 = vpop.f32.mrf.mxu3 }
 0x16a   :  { %1580 = vpow2.f32 %v1502_v15  ;;  %v1503_v28 = vmul.f32 -1.442695, %v450_v19  ;;  %v1504_v30 = vmul.f32 -1.442695, %v474_v20 }
 0x16c   :  { %1582 = vpow2.f32 %v1503_v28 }
 0x16d   :  { %1584 = vpow2.f32 %v1504_v30 }
 0x170   :  { %v1581_v31 = vpop.eup %1580 }
 0x171   :  { %v433_v40 = vadd.f32 1.0, %v1581_v31 }
 0x172   :  { %v1583_v49 = vpop.eup %1582 }
 0x173   :  { %v1585_v36 = vpop.eup %1584  ;;  %1586 = vrcp.f32 %v433_v40  ;;  %v455_v39 = vadd.f32 1.0, %v1583_v49  ;;  %v445_v60 = vand.u32 2147483648, %v433_v40  ;;  %v443_v1 = vand.u32 2147483647, %v433_v40 }
 0x174   :  { %v479_v52 = vadd.f32 1.0, %v1585_v36  ;;  %vm439_vm3 = vweird.f32 %v433_v40 }
 0x175   :  { %1588 = vrcp.f32 %v455_v39  ;;  %v467_v2 = vand.u32 2147483648, %v455_v39  ;;  %v465_v9 = vand.u32 2147483647, %v455_v39  ;;  %v446_v13 = vor.u32 1.1754944e-38, %v445_v60 }
 0x176   :  { %1590 = vrcp.f32 %v479_v52  ;;  %vm444_vm6 = vcmp.eq.f32.partialorder %v443_v1, 8.507059e+37  ;;  %vm461_vm7 = vweird.f32 %v455_v39  ;;  %vm485_vm11 = vweird.f32 %v479_v52 }
 0x177   :  { %1592 = vtanh.f32 %v471_v55  ;;  %v468_v22 = vor.u32 1.1754944e-38, %v467_v2  ;;  %vm466_vm9 = vcmp.eq.f32.partialorder %v465_v9, 8.507059e+37  ;;  %v491_v55 = vand.u32 2147483648, %v479_v52  ;;  %v1505_v9 = vld [vmem:[%s2359_s0 + $0x10] sm:$0xff] }
 0x179   :  { %v1587_v48 = vpop.eup %1586 }
 0x17a   :  { %v435_v53 = vmul.f32 %v1587_v48, %v433_v40  ;;  %vm440_vm15 = vweird.f32 %v1587_v48 }
 0x17b   :  { %v1589_v54 = vpop.eup %1588  ;;  %vm441_vm5 = vmor %vm439_vm3, %vm440_vm15 }
 0x17c   :  { %v1591_v37 = vpop.eup %1590  ;;  %v436_v51 = vsub.f32 1.0, %v435_v53  ;;  %v457_v59 = vmul.f32 %v1589_v54, %v455_v39  ;;  %vm462_vm4 = vweird.f32 %v1589_v54  ;;  %v489_v39 = vand.u32 2147483647, %v479_v52 }
 0x17d   :  { %v481_v61 = vmul.f32 %v1591_v37, %v479_v52  ;;  %vm463_vm8 = vmor %vm461_vm7, %vm462_vm4  ;;  %v1593_v28 = vpop.eup %1592  ;;  %vm486_vm10 = vweird.f32 %v1591_v37 }
 0x17e   :  { %v458_v63 = vsub.f32 1.0, %v457_v59  ;;  %v437_v0 = vmul.f32 %v1587_v48, %v436_v51  ;;  %vm487_vm12 = vmor %vm485_vm11, %vm486_vm10  ;;  %v492_v51 = vor.u32 1.1754944e-38, %v491_v55  ;;  %vm490_vm13 = vcmp.eq.f32.partialorder %v489_v39, 8.507059e+37 }
 0x17f   :  { %v482_v15 = vsub.f32 1.0, %v481_v61 }
 0x180   :  { %v438_v4 = vadd.f32 %v1587_v48, %v437_v0  ;;  %v459_v6 = vmul.f32 %v1589_v54, %v458_v63 }
 0x181   :  { %v483_v31 = vmul.f32 %v1591_v37, %v482_v15 }
 0x182   :  { %v442_v14 = vsel %vm441_vm5, %v1587_v48, %v438_v4  ;;  %v460_v19 = vadd.f32 %v1589_v54, %v459_v6 }
 0x183   :  { %v447_v20 = vsel %vm444_vm6, %v446_v13, %v442_v14  ;;  %v484_v53 = vadd.f32 %v1591_v37, %v483_v31 }
 0x184   :  { %v464_v23 = vsel %vm463_vm8, %v1589_v54, %v460_v19  ;;  %v496_v49 = vmul.f32 %v1593_v28, %v447_v20 }
 0x185   :  { %v469_v30 = vsel %vm466_vm9, %v468_v22, %v464_v23  ;;  %v488_v48 = vsel %vm487_vm12, %v1591_v37, %v484_v53 }
 0x186   :  { %v495_v40 = vmul.f32 %v469_v30, %v2120_v35  ;;  %v493_v59 = vsel %vm490_vm13, %v492_v51, %v488_v48 }
 0x188   :  { %v2162_v36 = vadd.f32 %v496_v49, %v495_v40 }
 0x18a   :  { %1594 = vtanh.f32 %v2162_v36 }
 0x190   :  { %v1595_v54 = vpop.eup %1594 }
 0x191   :  { %v499_v60 = vmul.f32 %v1595_v54, %v493_v59 }
 0x193   :  { %v500_v61 = vpack.c.bf16 %v499_v60, %v499_v60 }
 0x195   :  { %502 = vst [vmem:[#allocation4 + $0x1] sm:$0x1] %v500_v61  ;;  %513 = vmatmul.bf16.vlgmr.msra.gmra.mxu0 %v500_v61  ;;  %526 = vmatmul.bf16.vlgmr.msra.gmra.mxu1 %v500_v61 }
 0x196   :  { %539 = vmatmul.bf16.vlgmr.msra.gmra.mxu2 %v500_v61  ;;  %552 = vmatmul.bf16.vlgmr.msra.gmra.mxu3 %v500_v61 }
 0x197   :  { %783 = vmatpush.bf16.msra.mxu0 %v1765_v3  ;;  %796 = vmatpush.bf16.msra.mxu1 %v1776_v7 }
 0x198   :  { %809 = vmatpush.bf16.msra.mxu2 %v1778_v8  ;;  %822 = vmatpush.bf16.msra.mxu3 %v1790_v12 }
 0x19b   :  { %784 = vmatpush.bf16.msra.mxu0 %v1803_v16  ;;  %797 = vmatpush.bf16.msra.mxu1 %v1805_v17 }
 0x19c   :  { %810 = vmatpush.bf16.msra.mxu2 %v1817_v21  ;;  %823 = vmatpush.bf16.msra.mxu3 %v1828_v25 }
 0x19f   :  { %785 = vmatpush.bf16.msra.mxu0 %v1840_v29  ;;  %798 = vmatpush.bf16.msra.mxu1 %v1853_v33 }
 0x1a0   :  { %811 = vmatpush.bf16.msra.mxu2 %v1855_v34  ;;  %824 = vmatpush.bf16.msra.mxu3 %v1867_v38 }
 0x1a3   :  { %786 = vmatpush.bf16.msra.mxu0 %v1885_v44  ;;  %799 = vmatpush.bf16.msra.mxu1 %v1889_v45 }
 0x1a4   :  { %812 = vmatpush.bf16.msra.mxu2 %v1891_v46  ;;  %825 = vmatpush.bf16.msra.mxu3 %v1903_v50 }
 0x1a7   :  { %787 = vmatpush.bf16.msra.mxu0 %v1921_v56  ;;  %800 = vmatpush.bf16.msra.mxu1 %v1925_v57 }
 0x1a8   :  { %813 = vmatpush.bf16.msra.mxu2 %v1927_v58  ;;  %826 = vmatpush.bf16.msra.mxu3 %v1939_v62 }
 0x1ab   :  { %788 = vmatpush.bf16.msra.mxu0 %v1957_v5  ;;  %801 = vmatpush.bf16.msra.mxu1 %v1967_v10 }
 0x1ac   :  { %814 = vmatpush.bf16.msra.mxu2 %v1969_v11  ;;  %827 = vmatpush.bf16.msra.mxu3 %v1981_v18 }
 0x1af   :  { %789 = vmatpush.bf16.msra.mxu0 %v1996_v24  ;;  %802 = vmatpush.bf16.msra.mxu1 %v2000_v26 }
 0x1b0   :  { %815 = vmatpush.bf16.msra.mxu2 %v2002_v27  ;;  %828 = vmatpush.bf16.msra.mxu3 %v2014_v32 }
 0x1b3   :  { %790 = vmatpush.bf16.msra.mxu0 %v2032_v41  ;;  %803 = vmatpush.bf16.msra.mxu1 %v2036_v42 }
 0x1b4   :  { %816 = vmatpush.bf16.msra.mxu2 %v2038_v43  ;;  %829 = vmatpush.bf16.msra.mxu3 %v2041_v47 }
 0x212   :  { %v514_v35 = vpop.f32.mrf.mxu0  ;;  %v527_v52 = vpop.f32.mrf.mxu1 }
 0x213   :  { %v561_v37 = vrot.slane %v527_v52, 6 }
 0x215   :  { %v564_v13 = vsel %vm284_vm0, %v514_v35, %v561_v37 }
 0x219   :  { %v540_v63 = vpop.f32.mrf.mxu2  ;;  %v553_v0 = vpop.f32.mrf.mxu3 }
 0x21a   :  { %v562_v1 = vrot.slane %v540_v63, 4  ;;  %v563_v2 = vrot.slane %v553_v0, 2  ;;  %v516_v4 = vpop.f32.mrf.mxu0  ;;  %v529_v6 = vpop.f32.mrf.mxu1 }
 0x21c   :  { %v565_v15 = vsel %vm286_vm1, %v562_v1, %v563_v2 }
 0x21d   :  { %v566_v14 = vsel %vm288_vm2, %v564_v13, %v565_v15 }
 0x21e   :  { %v568_v19 = vadd.f32 %v1505_v9, %v566_v14 }
 0x220   :  { %v1506_v20 = vmul.f32 -1.442695, %v568_v19  ;;  %v589_v22 = vrot.slane %v568_v19, 2  ;;  %v613_v23 = vrot.slane %v568_v19, 6  ;;  %v610_v61 = vrot.slane %v568_v19, 4 }
 0x221   :  { %v542_v28 = vpop.f32.mrf.mxu2  ;;  %v555_v30 = vpop.f32.mrf.mxu3 }
 0x222   :  { %1596 = vpow2.f32 %v1506_v20  ;;  %v1507_v31 = vmul.f32 -1.442695, %v589_v22  ;;  %v1508_v40 = vmul.f32 -1.442695, %v613_v23 }
 0x224   :  { %1598 = vpow2.f32 %v1507_v31 }
 0x225   :  { %1600 = vpow2.f32 %v1508_v40 }
 0x228   :  { %v1597_v49 = vpop.eup %1596 }
 0x229   :  { %v572_v53 = vadd.f32 1.0, %v1597_v49 }
 0x22a   :  { %v1599_v55 = vpop.eup %1598 }
 0x22b   :  { %v1601_v39 = vpop.eup %1600  ;;  %1602 = vrcp.f32 %v572_v53  ;;  %v594_v48 = vadd.f32 1.0, %v1599_v55  ;;  %v584_v63 = vand.u32 2147483648, %v572_v53  ;;  %v582_v4 = vand.u32 2147483647, %v572_v53 }
 0x22c   :  { %v618_v51 = vadd.f32 1.0, %v1601_v39  ;;  %vm578_vm15 = vweird.f32 %v572_v53 }
 0x22d   :  { %1604 = vrcp.f32 %v594_v48  ;;  %v606_v6 = vand.u32 2147483648, %v594_v48  ;;  %v604_v15 = vand.u32 2147483647, %v594_v48  ;;  %v585_v14 = vor.u32 1.1754944e-38, %v584_v63 }
 0x22e   :  { %1606 = vrcp.f32 %v618_v51  ;;  %vm583_vm5 = vcmp.eq.f32.partialorder %v582_v4, 8.507059e+37  ;;  %vm600_vm6 = vweird.f32 %v594_v48  ;;  %vm624_vm10 = vweird.f32 %v618_v51 }
 0x22f   :  { %1608 = vtanh.f32 %v610_v61  ;;  %v607_v28 = vor.u32 1.1754944e-38, %v606_v6  ;;  %vm605_vm8 = vcmp.eq.f32.partialorder %v604_v15, 8.507059e+37  ;;  %v630_v61 = vand.u32 2147483648, %v618_v51  ;;  %v1509_v15 = vld [vmem:[%s2359_s0 + $0x18] sm:$0xff] }
 0x231   :  { %v1603_v54 = vpop.eup %1602 }
 0x232   :  { %v574_v59 = vmul.f32 %v1603_v54, %v572_v53  ;;  %vm579_vm14 = vweird.f32 %v1603_v54 }
 0x233   :  { %v1605_v60 = vpop.eup %1604  ;;  %vm580_vm4 = vmor %vm578_vm15, %vm579_vm14 }
 0x234   :  { %v1607_v35 = vpop.eup %1606  ;;  %v575_v52 = vsub.f32 1.0, %v574_v59  ;;  %v596_v37 = vmul.f32 %v1605_v60, %v594_v48  ;;  %vm601_vm3 = vweird.f32 %v1605_v60  ;;  %v628_v48 = vand.u32 2147483647, %v618_v51 }
 0x235   :  { %v620_v0 = vmul.f32 %v1607_v35, %v618_v51  ;;  %vm602_vm7 = vmor %vm600_vm6, %vm601_vm3  ;;  %v1609_v31 = vpop.eup %1608  ;;  %vm625_vm9 = vweird.f32 %v1607_v35 }
 0x236   :  { %v597_v1 = vsub.f32 1.0, %v596_v37  ;;  %v576_v2 = vmul.f32 %v1603_v54, %v575_v52  ;;  %vm626_vm11 = vmor %vm624_vm10, %vm625_vm9  ;;  %v631_v52 = vor.u32 1.1754944e-38, %v630_v61  ;;  %vm629_vm12 = vcmp.eq.f32.partialorder %v628_v48, 8.507059e+37 }
 0x237   :  { %v621_v20 = vsub.f32 1.0, %v620_v0 }
 0x238   :  { %v577_v9 = vadd.f32 %v1603_v54, %v576_v2  ;;  %v598_v13 = vmul.f32 %v1605_v60, %v597_v1 }
 0x239   :  { %v622_v49 = vmul.f32 %v1607_v35, %v621_v20 }
 0x23a   :  { %v581_v19 = vsel %vm580_vm4, %v1603_v54, %v577_v9  ;;  %v599_v22 = vadd.f32 %v1605_v60, %v598_v13 }
 0x23b   :  { %v586_v23 = vsel %vm583_vm5, %v585_v14, %v581_v19  ;;  %v623_v59 = vadd.f32 %v1607_v35, %v622_v49 }
 0x23c   :  { %v603_v30 = vsel %vm602_vm7, %v1605_v60, %v599_v22  ;;  %v635_v55 = vmul.f32 %v1609_v31, %v586_v23 }
 0x23d   :  { %v608_v40 = vsel %vm605_vm8, %v607_v28, %v603_v30  ;;  %v627_v54 = vsel %vm626_vm11, %v1607_v35, %v623_v59 }
 0x23e   :  { %v634_v53 = vmul.f32 %v608_v40, %v2162_v36  ;;  %v632_v37 = vsel %vm629_vm12, %v631_v52, %v627_v54 }
 0x240   :  { %v2204_v39 = vadd.f32 %v635_v55, %v634_v53 }
 0x242   :  { %1610 = vtanh.f32 %v2204_v39 }
 0x248   :  { %v1611_v60 = vpop.eup %1610 }
 0x249   :  { %v638_v63 = vmul.f32 %v1611_v60, %v632_v37 }
 0x24b   :  { %v639_v0 = vpack.c.bf16 %v638_v63, %v638_v63 }
 0x24d   :  { %641 = vst [vmem:[#allocation4 + $0x2] sm:$0x1] %v639_v0  ;;  %652 = vmatmul.bf16.vlgmr.msrb.gmra.mxu0 %v639_v0  ;;  %665 = vmatmul.bf16.vlgmr.msrb.gmra.mxu1 %v639_v0 }
 0x24e   :  { %678 = vmatmul.bf16.vlgmr.msrb.gmra.mxu2 %v639_v0  ;;  %691 = vmatmul.bf16.vlgmr.msrb.gmra.mxu3 %v639_v0 }
 0x24f   :  { %922 = vmatpush.bf16.msrb.mxu0 %v1765_v3  ;;  %935 = vmatpush.bf16.msrb.mxu1 %v1776_v7 }
 0x250   :  { %948 = vmatpush.bf16.msrb.mxu2 %v1778_v8  ;;  %961 = vmatpush.bf16.msrb.mxu3 %v1790_v12 }
 0x253   :  { %923 = vmatpush.bf16.msrb.mxu0 %v1803_v16  ;;  %936 = vmatpush.bf16.msrb.mxu1 %v1805_v17 }
 0x254   :  { %949 = vmatpush.bf16.msrb.mxu2 %v1817_v21  ;;  %962 = vmatpush.bf16.msrb.mxu3 %v1828_v25 }
 0x257   :  { %924 = vmatpush.bf16.msrb.mxu0 %v1840_v29  ;;  %937 = vmatpush.bf16.msrb.mxu1 %v1853_v33 }
 0x258   :  { %950 = vmatpush.bf16.msrb.mxu2 %v1855_v34  ;;  %963 = vmatpush.bf16.msrb.mxu3 %v1867_v38 }
 0x25b   :  { %925 = vmatpush.bf16.msrb.mxu0 %v1885_v44  ;;  %938 = vmatpush.bf16.msrb.mxu1 %v1889_v45 }
 0x25c   :  { %951 = vmatpush.bf16.msrb.mxu2 %v1891_v46  ;;  %964 = vmatpush.bf16.msrb.mxu3 %v1903_v50 }
 0x25f   :  { %926 = vmatpush.bf16.msrb.mxu0 %v1921_v56  ;;  %939 = vmatpush.bf16.msrb.mxu1 %v1925_v57 }
 0x260   :  { %952 = vmatpush.bf16.msrb.mxu2 %v1927_v58  ;;  %965 = vmatpush.bf16.msrb.mxu3 %v1939_v62 }
 0x263   :  { %927 = vmatpush.bf16.msrb.mxu0 %v1957_v5  ;;  %940 = vmatpush.bf16.msrb.mxu1 %v1967_v10 }
 0x264   :  { %953 = vmatpush.bf16.msrb.mxu2 %v1969_v11  ;;  %966 = vmatpush.bf16.msrb.mxu3 %v1981_v18 }
 0x267   :  { %928 = vmatpush.bf16.msrb.mxu0 %v1996_v24  ;;  %941 = vmatpush.bf16.msrb.mxu1 %v2000_v26 }
 0x268   :  { %954 = vmatpush.bf16.msrb.mxu2 %v2002_v27  ;;  %967 = vmatpush.bf16.msrb.mxu3 %v2014_v32 }
 0x26b   :  { %929 = vmatpush.bf16.msrb.mxu0 %v2032_v41  ;;  %942 = vmatpush.bf16.msrb.mxu1 %v2036_v42 }
 0x26c   :  { %955 = vmatpush.bf16.msrb.mxu2 %v2038_v43  ;;  %968 = vmatpush.bf16.msrb.mxu3 %v2041_v47 }
 0x2ca   :  { %v653_v36 = vpop.f32.mrf.mxu0  ;;  %v666_v51 = vpop.f32.mrf.mxu1 }
 0x2cb   :  { %v700_v35 = vrot.slane %v666_v51, 6 }
 0x2cd   :  { %v703_v14 = vsel %vm284_vm0, %v653_v36, %v700_v35 }
 0x2d1   :  { %v679_v1 = vpop.f32.mrf.mxu2  ;;  %v692_v2 = vpop.f32.mrf.mxu3 }
 0x2d2   :  { %v701_v4 = vrot.slane %v679_v1, 4  ;;  %v702_v6 = vrot.slane %v692_v2, 2  ;;  %v655_v9 = vpop.f32.mrf.mxu0  ;;  %v668_v13 = vpop.f32.mrf.mxu1 }
 0x2d4   :  { %v704_v20 = vsel %vm286_vm1, %v701_v4, %v702_v6 }
 0x2d5   :  { %v705_v19 = vsel %vm288_vm2, %v703_v14, %v704_v20 }
 0x2d6   :  { %v707_v22 = vadd.f32 %v1509_v15, %v705_v19 }
 0x2d8   :  { %v1510_v23 = vmul.f32 -1.442695, %v707_v22  ;;  %v728_v28 = vrot.slane %v707_v22, 2  ;;  %v752_v30 = vrot.slane %v707_v22, 6  ;;  %v749_v0 = vrot.slane %v707_v22, 4 }
 0x2d9   :  { %v681_v31 = vpop.f32.mrf.mxu2  ;;  %v694_v40 = vpop.f32.mrf.mxu3 }
 0x2da   :  { %1612 = vpow2.f32 %v1510_v23  ;;  %v1511_v49 = vmul.f32 -1.442695, %v728_v28  ;;  %v1512_v53 = vmul.f32 -1.442695, %v752_v30 }
 0x2dc   :  { %1614 = vpow2.f32 %v1511_v49 }
 0x2dd   :  { %1616 = vpow2.f32 %v1512_v53 }
 0x2e0   :  { %v1613_v55 = vpop.eup %1612 }
 0x2e1   :  { %v711_v59 = vadd.f32 1.0, %v1613_v55 }
 0x2e2   :  { %v1615_v61 = vpop.eup %1614 }
 0x2e3   :  { %v1617_v48 = vpop.eup %1616  ;;  %1618 = vrcp.f32 %v711_v59  ;;  %v733_v54 = vadd.f32 1.0, %v1615_v61  ;;  %v723_v1 = vand.u32 2147483648, %v711_v59  ;;  %v721_v9 = vand.u32 2147483647, %v711_v59 }
 0x2e4   :  { %v757_v52 = vadd.f32 1.0, %v1617_v48  ;;  %vm717_vm14 = vweird.f32 %v711_v59 }
 0x2e5   :  { %1620 = vrcp.f32 %v733_v54  ;;  %v745_v13 = vand.u32 2147483648, %v733_v54  ;;  %v743_v20 = vand.u32 2147483647, %v733_v54  ;;  %v724_v19 = vor.u32 1.1754944e-38, %v723_v1 }
 0x2e6   :  { %1622 = vrcp.f32 %v757_v52  ;;  %vm722_vm4 = vcmp.eq.f32.partialorder %v721_v9, 8.507059e+37  ;;  %vm739_vm5 = vweird.f32 %v733_v54  ;;  %vm763_vm9 = vweird.f32 %v757_v52 }
 0x2e7   :  { %1624 = vtanh.f32 %v749_v0  ;;  %v746_v31 = vor.u32 1.1754944e-38, %v745_v13  ;;  %vm744_vm7 = vcmp.eq.f32.partialorder %v743_v20, 8.507059e+37  ;;  %v769_v0 = vand.u32 2147483648, %v757_v52  ;;  %v1513_v20 = vld [vmem:[%s2359_s0 + $0x20] sm:$0xff] }
 0x2e9   :  { %v1619_v60 = vpop.eup %1618 }
 0x2ea   :  { %v713_v37 = vmul.f32 %v1619_v60, %v711_v59  ;;  %vm718_vm13 = vweird.f32 %v1619_v60 }
 0x2eb   :  { %v1621_v63 = vpop.eup %1620  ;;  %vm719_vm3 = vmor %vm717_vm14, %vm718_vm13 }
 0x2ec   :  { %v1623_v36 = vpop.eup %1622  ;;  %v714_v51 = vsub.f32 1.0, %v713_v37  ;;  %v735_v35 = vmul.f32 %v1621_v63, %v733_v54  ;;  %vm740_vm15 = vweird.f32 %v1621_v63  ;;  %v767_v54 = vand.u32 2147483647, %v757_v52 }
 0x2ed   :  { %v759_v2 = vmul.f32 %v1623_v36, %v757_v52  ;;  %vm741_vm6 = vmor %vm739_vm5, %vm740_vm15  ;;  %v1625_v49 = vpop.eup %1624  ;;  %vm764_vm8 = vweird.f32 %v1623_v36 }
 0x2ee   :  { %v736_v4 = vsub.f32 1.0, %v735_v35  ;;  %v715_v6 = vmul.f32 %v1619_v60, %v714_v51  ;;  %vm765_vm10 = vmor %vm763_vm9, %vm764_vm8  ;;  %v770_v51 = vor.u32 1.1754944e-38, %v769_v0  ;;  %vm768_vm11 = vcmp.eq.f32.partialorder %v767_v54, 8.507059e+37 }
 0x2ef   :  { %v760_v23 = vsub.f32 1.0, %v759_v2 }
 0x2f0   :  { %v716_v15 = vadd.f32 %v1619_v60, %v715_v6  ;;  %v737_v14 = vmul.f32 %v1621_v63, %v736_v4 }
 0x2f1   :  { %v761_v55 = vmul.f32 %v1623_v36, %v760_v23 }
 0x2f2   :  { %v720_v22 = vsel %vm719_vm3, %v1619_v60, %v716_v15  ;;  %v738_v28 = vadd.f32 %v1621_v63, %v737_v14 }
 0x2f3   :  { %v725_v30 = vsel %vm722_vm4, %v724_v19, %v720_v22  ;;  %v762_v37 = vadd.f32 %v1623_v36, %v761_v55 }
 0x2f4   :  { %v742_v40 = vsel %vm741_vm6, %v1621_v63, %v738_v28  ;;  %v774_v61 = vmul.f32 %v1625_v49, %v725_v30 }
 0x2f5   :  { %v747_v53 = vsel %vm744_vm7, %v746_v31, %v742_v40  ;;  %v766_v60 = vsel %vm765_vm10, %v1623_v36, %v762_v37 }
 0x2f6   :  { %v773_v59 = vmul.f32 %v747_v53, %v2204_v39  ;;  %v771_v35 = vsel %vm768_vm11, %v770_v51, %v766_v60 }
 0x2f8   :  { %v2246_v48 = vadd.f32 %v774_v61, %v773_v59 }
 0x2fa   :  { %1626 = vtanh.f32 %v2246_v48 }
 0x300   :  { %v1627_v63 = vpop.eup %1626 }
 0x301   :  { %v777_v1 = vmul.f32 %v1627_v63, %v771_v35 }
 0x303   :  { %v778_v2 = vpack.c.bf16 %v777_v1, %v777_v1 }
 0x305   :  { %780 = vst [vmem:[#allocation4 + $0x3] sm:$0x1] %v778_v2  ;;  %791 = vmatmul.bf16.vlgmr.msra.gmra.mxu0 %v778_v2  ;;  %804 = vmatmul.bf16.vlgmr.msra.gmra.mxu1 %v778_v2 }
 0x306   :  { %817 = vmatmul.bf16.vlgmr.msra.gmra.mxu2 %v778_v2  ;;  %830 = vmatmul.bf16.vlgmr.msra.gmra.mxu3 %v778_v2 }
 0x307   :  { %1061 = vmatpush.bf16.msra.mxu0 %v1765_v3  ;;  %1074 = vmatpush.bf16.msra.mxu1 %v1776_v7 }
 0x308   :  { %1087 = vmatpush.bf16.msra.mxu2 %v1778_v8  ;;  %1100 = vmatpush.bf16.msra.mxu3 %v1790_v12 }
 0x30b   :  { %1062 = vmatpush.bf16.msra.mxu0 %v1803_v16  ;;  %1075 = vmatpush.bf16.msra.mxu1 %v1805_v17 }
 0x30c   :  { %1088 = vmatpush.bf16.msra.mxu2 %v1817_v21  ;;  %1101 = vmatpush.bf16.msra.mxu3 %v1828_v25 }
 0x30f   :  { %1063 = vmatpush.bf16.msra.mxu0 %v1840_v29  ;;  %1076 = vmatpush.bf16.msra.mxu1 %v1853_v33 }
 0x310   :  { %1089 = vmatpush.bf16.msra.mxu2 %v1855_v34  ;;  %1102 = vmatpush.bf16.msra.mxu3 %v1867_v38 }
 0x313   :  { %1064 = vmatpush.bf16.msra.mxu0 %v1885_v44  ;;  %1077 = vmatpush.bf16.msra.mxu1 %v1889_v45 }
 0x314   :  { %1090 = vmatpush.bf16.msra.mxu2 %v1891_v46  ;;  %1103 = vmatpush.bf16.msra.mxu3 %v1903_v50 }
 0x317   :  { %1065 = vmatpush.bf16.msra.mxu0 %v1921_v56  ;;  %1078 = vmatpush.bf16.msra.mxu1 %v1925_v57 }
 0x318   :  { %1091 = vmatpush.bf16.msra.mxu2 %v1927_v58  ;;  %1104 = vmatpush.bf16.msra.mxu3 %v1939_v62 }
 0x31b   :  { %1066 = vmatpush.bf16.msra.mxu0 %v1957_v5  ;;  %1079 = vmatpush.bf16.msra.mxu1 %v1967_v10 }
 0x31c   :  { %1092 = vmatpush.bf16.msra.mxu2 %v1969_v11  ;;  %1105 = vmatpush.bf16.msra.mxu3 %v1981_v18 }
 0x31f   :  { %1067 = vmatpush.bf16.msra.mxu0 %v1996_v24  ;;  %1080 = vmatpush.bf16.msra.mxu1 %v2000_v26 }
 0x320   :  { %1093 = vmatpush.bf16.msra.mxu2 %v2002_v27  ;;  %1106 = vmatpush.bf16.msra.mxu3 %v2014_v32 }
 0x323   :  { %1068 = vmatpush.bf16.msra.mxu0 %v2032_v41  ;;  %1081 = vmatpush.bf16.msra.mxu1 %v2036_v42 }
 0x324   :  { %1094 = vmatpush.bf16.msra.mxu2 %v2038_v43  ;;  %1107 = vmatpush.bf16.msra.mxu3 %v2041_v47 }
 0x382   :  { %v792_v39 = vpop.f32.mrf.mxu0  ;;  %v805_v52 = vpop.f32.mrf.mxu1 }
 0x383   :  { %v839_v36 = vrot.slane %v805_v52, 6 }
 0x385   :  { %v842_v19 = vsel %vm284_vm0, %v792_v39, %v839_v36 }
 0x389   :  { %v818_v4 = vpop.f32.mrf.mxu2  ;;  %v831_v6 = vpop.f32.mrf.mxu3 }
 0x38a   :  { %v840_v9 = vrot.slane %v818_v4, 4  ;;  %v841_v13 = vrot.slane %v831_v6, 2  ;;  %v794_v15 = vpop.f32.mrf.mxu0  ;;  %v807_v14 = vpop.f32.mrf.mxu1 }
 0x38c   :  { %v843_v23 = vsel %vm286_vm1, %v840_v9, %v841_v13 }
 0x38d   :  { %v844_v22 = vsel %vm288_vm2, %v842_v19, %v843_v23 }
 0x38e   :  { %v846_v28 = vadd.f32 %v1513_v20, %v844_v22 }
 0x390   :  { %v1514_v30 = vmul.f32 -1.442695, %v846_v28  ;;  %v867_v31 = vrot.slane %v846_v28, 2  ;;  %v891_v40 = vrot.slane %v846_v28, 6  ;;  %v888_v2 = vrot.slane %v846_v28, 4 }
 0x391   :  { %v820_v49 = vpop.f32.mrf.mxu2  ;;  %v833_v53 = vpop.f32.mrf.mxu3 }
 0x392   :  { %1628 = vpow2.f32 %v1514_v30  ;;  %v1515_v55 = vmul.f32 -1.442695, %v867_v31  ;;  %v1516_v59 = vmul.f32 -1.442695, %v891_v40 }
 0x394   :  { %1630 = vpow2.f32 %v1515_v55 }
 0x395   :  { %1632 = vpow2.f32 %v1516_v59 }
 0x398   :  { %v1629_v61 = vpop.eup %1628 }
 0x399   :  { %v850_v37 = vadd.f32 1.0, %v1629_v61 }
 0x39a   :  { %v1631_v0 = vpop.eup %1630 }
 0x39b   :  { %v1633_v54 = vpop.eup %1632  ;;  %1634 = vrcp.f32 %v850_v37  ;;  %v872_v60 = vadd.f32 1.0, %v1631_v0  ;;  %v862_v4 = vand.u32 2147483648, %v850_v37  ;;  %v860_v15 = vand.u32 2147483647, %v850_v37 }
 0x39c   :  { %v896_v51 = vadd.f32 1.0, %v1633_v54  ;;  %vm856_vm13 = vweird.f32 %v850_v37 }
 0x39d   :  { %1636 = vrcp.f32 %v872_v60  ;;  %v884_v14 = vand.u32 2147483648, %v872_v60  ;;  %v882_v23 = vand.u32 2147483647, %v872_v60  ;;  %v863_v22 = vor.u32 1.1754944e-38, %v862_v4 }
 0x39e   :  { %1638 = vrcp.f32 %v896_v51  ;;  %vm861_vm3 = vcmp.eq.f32.partialorder %v860_v15, 8.507059e+37  ;;  %vm878_vm4 = vweird.f32 %v872_v60  ;;  %vm902_vm8 = vweird.f32 %v896_v51 }
 0x39f   :  { %1640 = vtanh.f32 %v888_v2  ;;  %v885_v49 = vor.u32 1.1754944e-38, %v884_v14  ;;  %vm883_vm6 = vcmp.eq.f32.partialorder %v882_v23, 8.507059e+37  ;;  %v908_v2 = vand.u32 2147483648, %v896_v51 }
 0x3a1   :  { %v1635_v63 = vpop.eup %1634 }
 0x3a2   :  { %v852_v35 = vmul.f32 %v1635_v63, %v850_v37  ;;  %vm857_vm12 = vweird.f32 %v1635_v63 }
 0x3a3   :  { %v1637_v1 = vpop.eup %1636  ;;  %vm858_vm15 = vmor %vm856_vm13, %vm857_vm12 }
 0x3a4   :  { %v1639_v39 = vpop.eup %1638  ;;  %v853_v52 = vsub.f32 1.0, %v852_v35  ;;  %v874_v36 = vmul.f32 %v1637_v1, %v872_v60  ;;  %vm879_vm14 = vweird.f32 %v1637_v1  ;;  %v906_v60 = vand.u32 2147483647, %v896_v51 }
 0x3a5   :  { %v898_v6 = vmul.f32 %v1639_v39, %v896_v51  ;;  %vm880_vm5 = vmor %vm878_vm4, %vm879_vm14  ;;  %v1641_v55 = vpop.eup %1640  ;;  %vm903_vm7 = vweird.f32 %v1639_v39 }
 0x3a6   :  { %v875_v9 = vsub.f32 1.0, %v874_v36  ;;  %v854_v13 = vmul.f32 %v1635_v63, %v853_v52  ;;  %vm904_vm9 = vmor %vm902_vm8, %vm903_vm7  ;;  %v909_v52 = vor.u32 1.1754944e-38, %v908_v2  ;;  %vm907_vm10 = vcmp.eq.f32.partialorder %v906_v60, 8.507059e+37 }
 0x3a7   :  { %v899_v30 = vsub.f32 1.0, %v898_v6 }
 0x3a8   :  { %v855_v20 = vadd.f32 %v1635_v63, %v854_v13  ;;  %v876_v19 = vmul.f32 %v1637_v1, %v875_v9 }
 0x3a9   :  { %v900_v61 = vmul.f32 %v1639_v39, %v899_v30 }
 0x3aa   :  { %v859_v28 = vsel %vm858_vm15, %v1635_v63, %v855_v20  ;;  %v877_v31 = vadd.f32 %v1637_v1, %v876_v19 }
 0x3ab   :  { %v864_v40 = vsel %vm861_vm3, %v863_v22, %v859_v28  ;;  %v901_v35 = vadd.f32 %v1639_v39, %v900_v61 }
 0x3ac   :  { %v881_v53 = vsel %vm880_vm5, %v1637_v1, %v877_v31  ;;  %v913_v0 = vmul.f32 %v1641_v55, %v864_v40 }
 0x3ad   :  { %v886_v59 = vsel %vm883_vm6, %v885_v49, %v881_v53  ;;  %v905_v63 = vsel %vm904_vm9, %v1639_v39, %v901_v35 }
 0x3ae   :  { %v912_v37 = vmul.f32 %v886_v59, %v2246_v48  ;;  %v910_v36 = vsel %vm907_vm10, %v909_v52, %v905_v63 }
 0x3b0   :  { %v2288_v54 = vadd.f32 %v913_v0, %v912_v37 }
 0x3b2   :  { %1642 = vtanh.f32 %v2288_v54 }
 0x3b8   :  { %v1643_v1 = vpop.eup %1642 }
 0x3b9   :  { %v916_v4 = vmul.f32 %v1643_v1, %v910_v36 }
 0x3bb   :  { %v917_v6 = vpack.c.bf16 %v916_v4, %v916_v4 }
 0x3bd   :  { %919 = vst [vmem:[#allocation4 + $0x4] sm:$0x1] %v917_v6  ;;  %930 = vmatmul.bf16.vlgmr.msrb.gmra.mxu0 %v917_v6  ;;  %943 = vmatmul.bf16.vlgmr.msrb.gmra.mxu1 %v917_v6 }
 0x3be   :  { %956 = vmatmul.bf16.vlgmr.msrb.gmra.mxu2 %v917_v6  ;;  %969 = vmatmul.bf16.vlgmr.msrb.gmra.mxu3 %v917_v6 }
 0x3bf   :  { %1200 = vmatpush.bf16.msrb.mxu0 %v1765_v3  ;;  %1213 = vmatpush.bf16.msrb.mxu1 %v1776_v7 }
 0x3c0   :  { %1226 = vmatpush.bf16.msrb.mxu2 %v1778_v8  ;;  %1239 = vmatpush.bf16.msrb.mxu3 %v1790_v12 }
 0x3c3   :  { %1201 = vmatpush.bf16.msrb.mxu0 %v1803_v16  ;;  %1214 = vmatpush.bf16.msrb.mxu1 %v1805_v17 }
 0x3c4   :  { %1227 = vmatpush.bf16.msrb.mxu2 %v1817_v21  ;;  %1240 = vmatpush.bf16.msrb.mxu3 %v1828_v25 }
 0x3c7   :  { %1202 = vmatpush.bf16.msrb.mxu0 %v1840_v29  ;;  %1215 = vmatpush.bf16.msrb.mxu1 %v1853_v33  ;;  %v1517_v33 = vld [vmem:[%s2359_s0 + $0x28] sm:$0xff] }
 0x3c8   :  { %1228 = vmatpush.bf16.msrb.mxu2 %v1855_v34  ;;  %1241 = vmatpush.bf16.msrb.mxu3 %v1867_v38 }
 0x3cb   :  { %1203 = vmatpush.bf16.msrb.mxu0 %v1885_v44  ;;  %1216 = vmatpush.bf16.msrb.mxu1 %v1889_v45 }
 0x3cc   :  { %1229 = vmatpush.bf16.msrb.mxu2 %v1891_v46  ;;  %1242 = vmatpush.bf16.msrb.mxu3 %v1903_v50 }
 0x3cf   :  { %1204 = vmatpush.bf16.msrb.mxu0 %v1921_v56  ;;  %1217 = vmatpush.bf16.msrb.mxu1 %v1925_v57 }
 0x3d0   :  { %1230 = vmatpush.bf16.msrb.mxu2 %v1927_v58  ;;  %1243 = vmatpush.bf16.msrb.mxu3 %v1939_v62 }
 0x3d3   :  { %1205 = vmatpush.bf16.msrb.mxu0 %v1957_v5  ;;  %1218 = vmatpush.bf16.msrb.mxu1 %v1967_v10 }
 0x3d4   :  { %1231 = vmatpush.bf16.msrb.mxu2 %v1969_v11  ;;  %1244 = vmatpush.bf16.msrb.mxu3 %v1981_v18 }
 0x3d7   :  { %1206 = vmatpush.bf16.msrb.mxu0 %v1996_v24  ;;  %1219 = vmatpush.bf16.msrb.mxu1 %v2000_v26 }
 0x3d8   :  { %1232 = vmatpush.bf16.msrb.mxu2 %v2002_v27  ;;  %1245 = vmatpush.bf16.msrb.mxu3 %v2014_v32 }
 0x3db   :  { %1207 = vmatpush.bf16.msrb.mxu0 %v2032_v41  ;;  %1220 = vmatpush.bf16.msrb.mxu1 %v2036_v42 }
 0x3dc   :  { %1233 = vmatpush.bf16.msrb.mxu2 %v2038_v43  ;;  %1246 = vmatpush.bf16.msrb.mxu3 %v2041_v47 }
 0x43a   :  { %v931_v3 = vpop.f32.mrf.mxu0  ;;  %v944_v7 = vpop.f32.mrf.mxu1 }
 0x43b   :  { %v978_v8 = vrot.slane %v944_v7, 6 }
 0x43d   :  { %v981_v34 = vsel %vm284_vm0, %v931_v3, %v978_v8 }
 0x441   :  { %v957_v12 = vpop.f32.mrf.mxu2  ;;  %v970_v16 = vpop.f32.mrf.mxu3 }
 0x442   :  { %v979_v17 = vrot.slane %v957_v12, 4  ;;  %v980_v21 = vrot.slane %v970_v16, 2  ;;  %v933_v25 = vpop.f32.mrf.mxu0  ;;  %v946_v29 = vpop.f32.mrf.mxu1 }
 0x444   :  { %v982_v38 = vsel %vm286_vm1, %v979_v17, %v980_v21 }
 0x445   :  { %v983_v44 = vsel %vm288_vm2, %v981_v34, %v982_v38  ;;  %v1521_v34 = vld [vmem:[%s2359_s0 + $0x30] sm:$0xff] }
 0x446   :  { %v985_v45 = vadd.f32 %v1517_v33, %v983_v44 }
 0x448   :  { %v1518_v46 = vmul.f32 -1.442695, %v985_v45  ;;  %v1006_v50 = vrot.slane %v985_v45, 2  ;;  %v1030_v56 = vrot.slane %v985_v45, 6  ;;  %v1027_v43 = vrot.slane %v985_v45, 4 }
 0x449   :  { %v959_v57 = vpop.f32.mrf.mxu2  ;;  %v972_v58 = vpop.f32.mrf.mxu3 }
 0x44a   :  { %1644 = vpow2.f32 %v1518_v46  ;;  %v1519_v62 = vmul.f32 -1.442695, %v1006_v50  ;;  %v1520_v5 = vmul.f32 -1.442695, %v1030_v56 }
 0x44c   :  { %1646 = vpow2.f32 %v1519_v62 }
 0x44d   :  { %1648 = vpow2.f32 %v1520_v5 }
 0x450   :  { %v1645_v10 = vpop.eup %1644 }
 0x451   :  { %v989_v11 = vadd.f32 1.0, %v1645_v10 }
 0x452   :  { %v1647_v18 = vpop.eup %1646 }
 0x453   :  { %v1649_v24 = vpop.eup %1648  ;;  %1650 = vrcp.f32 %v989_v11  ;;  %v1011_v26 = vadd.f32 1.0, %v1647_v18  ;;  %v1001_v39 = vand.u32 2147483648, %v989_v11  ;;  %v999_v14 = vand.u32 2147483647, %v989_v11 }
 0x454   :  { %v1035_v27 = vadd.f32 1.0, %v1649_v24  ;;  %vm995_vm12 = vweird.f32 %v989_v11 }
 0x455   :  { %1652 = vrcp.f32 %v1011_v26  ;;  %v1023_v20 = vand.u32 2147483648, %v1011_v26  ;;  %v1021_v22 = vand.u32 2147483647, %v1011_v26  ;;  %v1002_v30 = vor.u32 1.1754944e-38, %v1001_v39 }
 0x456   :  { %1654 = vrcp.f32 %v1035_v27  ;;  %vm1000_vm15 = vcmp.eq.f32.partialorder %v999_v14, 8.507059e+37  ;;  %vm1017_vm3 = vweird.f32 %v1011_v26  ;;  %v1047_v63 = vand.u32 2147483648, %v1035_v27 }
 0x457   :  { %1656 = vtanh.f32 %v1027_v43  ;;  %v1024_v53 = vor.u32 1.1754944e-38, %v1023_v20  ;;  %vm1022_vm5 = vcmp.eq.f32.partialorder %v1021_v22, 8.507059e+37  ;;  %vm1041_vm7 = vweird.f32 %v1035_v27 }
 0x458   :  { %v1045_v52 = vand.u32 2147483647, %v1035_v27  ;;  %v1048_v36 = vor.u32 1.1754944e-38, %v1047_v63 }
 0x459   :  { %v1651_v32 = vpop.eup %1650 }
 0x45a   :  { %v991_v41 = vmul.f32 %v1651_v32, %v989_v11  ;;  %vm996_vm11 = vweird.f32 %v1651_v32  ;;  %vm1046_vm9 = vcmp.eq.f32.partialorder %v1045_v52, 8.507059e+37 }
 0x45b   :  { %v1653_v42 = vpop.eup %1652  ;;  %vm997_vm14 = vmor %vm995_vm12, %vm996_vm11 }
 0x45c   :  { %v1655_v47 = vpop.eup %1654  ;;  %v992_v48 = vsub.f32 1.0, %v991_v41  ;;  %v1013_v51 = vmul.f32 %v1653_v42, %v1011_v26  ;;  %vm1018_vm13 = vweird.f32 %v1653_v42 }
 0x45d   :  { %v1037_v9 = vmul.f32 %v1655_v47, %v1035_v27  ;;  %vm1019_vm4 = vmor %vm1017_vm3, %vm1018_vm13  ;;  %v1657_v59 = vpop.eup %1656  ;;  %vm1042_vm6 = vweird.f32 %v1655_v47 }
 0x45e   :  { %v1014_v13 = vsub.f32 1.0, %v1013_v51  ;;  %v993_v15 = vmul.f32 %v1651_v32, %v992_v48  ;;  %vm1043_vm8 = vmor %vm1041_vm7, %vm1042_vm6 }
 0x45f   :  { %v1038_v28 = vsub.f32 1.0, %v1037_v9 }
 0x460   :  { %v994_v19 = vadd.f32 %v1651_v32, %v993_v15  ;;  %v1015_v23 = vmul.f32 %v1653_v42, %v1014_v13 }
 0x461   :  { %v1039_v37 = vmul.f32 %v1655_v47, %v1038_v28 }
 0x462   :  { %v998_v31 = vsel %vm997_vm14, %v1651_v32, %v994_v19  ;;  %v1016_v40 = vadd.f32 %v1653_v42, %v1015_v23 }
 0x463   :  { %v1003_v49 = vsel %vm1000_vm15, %v1002_v30, %v998_v31  ;;  %v1040_v60 = vadd.f32 %v1655_v47, %v1039_v37 }
 0x464   :  { %v1020_v55 = vsel %vm1019_vm4, %v1653_v42, %v1016_v40  ;;  %v1052_v35 = vmul.f32 %v1657_v59, %v1003_v49 }
 0x465   :  { %v1025_v61 = vsel %vm1022_vm5, %v1024_v53, %v1020_v55  ;;  %v1044_v1 = vsel %vm1043_vm8, %v1655_v47, %v1040_v60 }
 0x466   :  { %v1051_v0 = vmul.f32 %v1025_v61, %v2288_v54  ;;  %v1049_v6 = vsel %vm1046_vm9, %v1048_v36, %v1044_v1 }
 0x468   :  { %v2330_v2 = vadd.f32 %v1052_v35, %v1051_v0 }
 0x46a   :  { %1658 = vtanh.f32 %v2330_v2 }
 0x470   :  { %v1659_v4 = vpop.eup %1658 }
 0x471   :  { %v1055_v3 = vmul.f32 %v1659_v4, %v1049_v6 }
 0x473   :  { %v1056_v7 = vpack.c.bf16 %v1055_v3, %v1055_v3 }
 0x475   :  { %1058 = vst [vmem:[#allocation4 + $0x5] sm:$0x1] %v1056_v7  ;;  %1069 = vmatmul.bf16.vlgmr.msra.gmra.mxu0 %v1056_v7  ;;  %1082 = vmatmul.bf16.vlgmr.msra.gmra.mxu1 %v1056_v7 }
 0x476   :  { %1095 = vmatmul.bf16.vlgmr.msra.gmra.mxu2 %v1056_v7  ;;  %1108 = vmatmul.bf16.vlgmr.msra.gmra.mxu3 %v1056_v7 }
 0x4f2   :  { %v1070_v54 = vpop.f32.mrf.mxu0  ;;  %v1083_v8 = vpop.f32.mrf.mxu1 }
 0x4f3   :  { %v1117_v12 = vrot.slane %v1083_v8, 6 }
 0x4f5   :  { %v1120_v38 = vsel %vm284_vm0, %v1070_v54, %v1117_v12 }
 0x4f9   :  { %v1096_v16 = vpop.f32.mrf.mxu2  ;;  %v1109_v17 = vpop.f32.mrf.mxu3 }
 0x4fa   :  { %v1118_v21 = vrot.slane %v1096_v16, 4  ;;  %v1119_v25 = vrot.slane %v1109_v17, 2  ;;  %v1072_v29 = vpop.f32.mrf.mxu0  ;;  %v1085_v33 = vpop.f32.mrf.mxu1 }
 0x4fc   :  { %v1121_v44 = vsel %vm286_vm1, %v1118_v21, %v1119_v25 }
 0x4fd   :  { %v1122_v45 = vsel %vm288_vm2, %v1120_v38, %v1121_v44  ;;  %v1525_v38 = vld [vmem:[%s2359_s0 + $0x38] sm:$0xff] }
 0x4fe   :  { %v1124_v46 = vadd.f32 %v1521_v34, %v1122_v45 }
 0x500   :  { %v1522_v50 = vmul.f32 -1.442695, %v1124_v46  ;;  %v1145_v56 = vrot.slane %v1124_v46, 2  ;;  %v1169_v57 = vrot.slane %v1124_v46, 6  ;;  %v1166_v47 = vrot.slane %v1124_v46, 4 }
 0x501   :  { %v1098_v58 = vpop.f32.mrf.mxu2  ;;  %v1111_v62 = vpop.f32.mrf.mxu3 }
 0x502   :  { %1660 = vpow2.f32 %v1522_v50  ;;  %v1523_v5 = vmul.f32 -1.442695, %v1145_v56  ;;  %v1524_v10 = vmul.f32 -1.442695, %v1169_v57 }
 0x504   :  { %1662 = vpow2.f32 %v1523_v5 }
 0x505   :  { %1664 = vpow2.f32 %v1524_v10 }
 0x508   :  { %v1661_v11 = vpop.eup %1660 }
 0x509   :  { %v1128_v18 = vadd.f32 1.0, %v1661_v11 }
 0x50a   :  { %v1663_v24 = vpop.eup %1662 }
 0x50b   :  { %v1665_v26 = vpop.eup %1664  ;;  %1666 = vrcp.f32 %v1128_v18  ;;  %v1150_v27 = vadd.f32 1.0, %v1663_v24  ;;  %v1140_v9 = vand.u32 2147483648, %v1128_v18  ;;  %v1138_v20 = vand.u32 2147483647, %v1128_v18 }
 0x50c   :  { %v1174_v32 = vadd.f32 1.0, %v1665_v26  ;;  %vm1134_vm11 = vweird.f32 %v1128_v18 }
 0x50d   :  { %1668 = vrcp.f32 %v1150_v27  ;;  %v1162_v19 = vand.u32 2147483648, %v1150_v27  ;;  %v1160_v30 = vand.u32 2147483647, %v1150_v27  ;;  %v1141_v28 = vor.u32 1.1754944e-38, %v1140_v9 }
 0x50e   :  { %1670 = vrcp.f32 %v1174_v32  ;;  %vm1139_vm14 = vcmp.eq.f32.partialorder %v1138_v20, 8.507059e+37  ;;  %vm1156_vm15 = vweird.f32 %v1150_v27  ;;  %v1186_v1 = vand.u32 2147483648, %v1174_v32 }
 0x50f   :  { %1672 = vtanh.f32 %v1166_v47  ;;  %v1163_v55 = vor.u32 1.1754944e-38, %v1162_v19  ;;  %vm1161_vm4 = vcmp.eq.f32.partialorder %v1160_v30, 8.507059e+37  ;;  %vm1180_vm6 = vweird.f32 %v1174_v32 }
 0x510   :  { %v1184_v36 = vand.u32 2147483647, %v1174_v32  ;;  %v1187_v6 = vor.u32 1.1754944e-38, %v1186_v1 }
 0x511   :  { %v1667_v41 = vpop.eup %1666 }
 0x512   :  { %v1130_v42 = vmul.f32 %v1667_v41, %v1128_v18  ;;  %vm1135_vm10 = vweird.f32 %v1667_v41  ;;  %vm1185_vm8 = vcmp.eq.f32.partialorder %v1184_v36, 8.507059e+37 }
 0x513   :  { %v1669_v43 = vpop.eup %1668  ;;  %vm1136_vm13 = vmor %vm1134_vm11, %vm1135_vm10 }
 0x514   :  { %v1671_v48 = vpop.eup %1670  ;;  %v1131_v51 = vsub.f32 1.0, %v1130_v42  ;;  %v1152_v39 = vmul.f32 %v1669_v43, %v1150_v27  ;;  %vm1157_vm12 = vweird.f32 %v1669_v43 }
 0x515   :  { %v1176_v13 = vmul.f32 %v1671_v48, %v1174_v32  ;;  %vm1158_vm3 = vmor %vm1156_vm15, %vm1157_vm12  ;;  %v1673_v61 = vpop.eup %1672  ;;  %vm1181_vm5 = vweird.f32 %v1671_v48 }
 0x516   :  { %v1153_v15 = vsub.f32 1.0, %v1152_v39  ;;  %v1132_v14 = vmul.f32 %v1667_v41, %v1131_v51  ;;  %vm1182_vm7 = vmor %vm1180_vm6, %vm1181_vm5 }
 0x517   :  { %v1177_v31 = vsub.f32 1.0, %v1176_v13 }
 0x518   :  { %v1133_v23 = vadd.f32 %v1667_v41, %v1132_v14  ;;  %v1154_v22 = vmul.f32 %v1669_v43, %v1153_v15 }
 0x519   :  { %v1178_v0 = vmul.f32 %v1671_v48, %v1177_v31 }
 0x51a   :  { %v1137_v40 = vsel %vm1136_vm13, %v1667_v41, %v1133_v23  ;;  %v1155_v49 = vadd.f32 %v1669_v43, %v1154_v22 }
 0x51b   :  { %v1142_v53 = vsel %vm1139_vm14, %v1141_v28, %v1137_v40  ;;  %v1179_v52 = vadd.f32 %v1671_v48, %v1178_v0 }
 0x51c   :  { %v1159_v59 = vsel %vm1158_vm3, %v1669_v43, %v1155_v49  ;;  %v1191_v60 = vmul.f32 %v1673_v61, %v1142_v53 }
 0x51d   :  { %v1164_v37 = vsel %vm1161_vm4, %v1163_v55, %v1159_v59  ;;  %v1183_v4 = vsel %vm1182_vm7, %v1671_v48, %v1179_v52 }
 0x51e   :  { %v1190_v35 = vmul.f32 %v1164_v37, %v2330_v2  ;;  %v1188_v7 = vsel %vm1185_vm8, %v1187_v6, %v1183_v4 }
 0x520   :  { %v2340_v63 = vadd.f32 %v1191_v60, %v1190_v35 }
 0x522   :  { %1674 = vtanh.f32 %v2340_v63 }
 0x528   :  { %v1675_v3 = vpop.eup %1674 }
 0x529   :  { %v1194_v54 = vmul.f32 %v1675_v3, %v1188_v7 }
 0x52b   :  { %v1195_v8 = vpack.c.bf16 %v1194_v54, %v1194_v54 }
 0x52d   :  { %1197 = vst [vmem:[#allocation4 + $0x6] sm:$0x1] %v1195_v8  ;;  %1208 = vmatmul.bf16.vlgmr.msrb.gmra.mxu0 %v1195_v8  ;;  %1221 = vmatmul.bf16.vlgmr.msrb.gmra.mxu1 %v1195_v8 }
 0x52e   :  { %1234 = vmatmul.bf16.vlgmr.msrb.gmra.mxu2 %v1195_v8  ;;  %1247 = vmatmul.bf16.vlgmr.msrb.gmra.mxu3 %v1195_v8 }
 0x5aa   :  { %v1209_v2 = vpop.f32.mrf.mxu0  ;;  %v1222_v12 = vpop.f32.mrf.mxu1 }
 0x5ab   :  { %v1256_v16 = vrot.slane %v1222_v12, 6 }
 0x5ad   :  { %v1259_v44 = vsel %vm284_vm0, %v1209_v2, %v1256_v16 }
 0x5b1   :  { %v1235_v17 = vpop.f32.mrf.mxu2  ;;  %v1248_v21 = vpop.f32.mrf.mxu3 }
 0x5b2   :  { %v1257_v25 = vrot.slane %v1235_v17, 4  ;;  %v1258_v29 = vrot.slane %v1248_v21, 2  ;;  %v1211_v33 = vpop.f32.mrf.mxu0  ;;  %v1224_v34 = vpop.f32.mrf.mxu1 }
 0x5b4   :  { %v1260_v45 = vsel %vm286_vm1, %v1257_v25, %v1258_v29 }
 0x5b5   :  { %v1261_v46 = vsel %vm288_vm2, %v1259_v44, %v1260_v45 }
 0x5b6   :  { %v1263_v50 = vadd.f32 %v1525_v38, %v1261_v46 }
 0x5b8   :  { %v1526_v56 = vmul.f32 -1.442695, %v1263_v50  ;;  %v1284_v57 = vrot.slane %v1263_v50, 2  ;;  %v1308_v58 = vrot.slane %v1263_v50, 6  ;;  %v1305_v51 = vrot.slane %v1263_v50, 4 }
 0x5b9   :  { %v1237_v62 = vpop.f32.mrf.mxu2  ;;  %v1250_v5 = vpop.f32.mrf.mxu3 }
 0x5ba   :  { %1676 = vpow2.f32 %v1526_v56  ;;  %v1527_v10 = vmul.f32 -1.442695, %v1284_v57  ;;  %v1528_v11 = vmul.f32 -1.442695, %v1308_v58 }
 0x5bc   :  { %1678 = vpow2.f32 %v1527_v10 }
 0x5bd   :  { %1680 = vpow2.f32 %v1528_v11 }
 0x5c0   :  { %v1677_v18 = vpop.eup %1676 }
 0x5c1   :  { %v1267_v24 = vadd.f32 1.0, %v1677_v18 }
 0x5c2   :  { %v1679_v26 = vpop.eup %1678 }
 0x5c3   :  { %v1681_v27 = vpop.eup %1680  ;;  %1682 = vrcp.f32 %v1267_v24  ;;  %v1289_v32 = vadd.f32 1.0, %v1679_v26  ;;  %v1279_v15 = vand.u32 2147483648, %v1267_v24  ;;  %v1277_v20 = vand.u32 2147483647, %v1267_v24 }
 0x5c4   :  { %v1313_v41 = vadd.f32 1.0, %v1681_v27  ;;  %vm1273_vm1 = vweird.f32 %v1267_v24 }
 0x5c5   :  { %1684 = vrcp.f32 %v1289_v32  ;;  %v1301_v22 = vand.u32 2147483648, %v1289_v32  ;;  %v1299_v28 = vand.u32 2147483647, %v1289_v32  ;;  %v1280_v40 = vor.u32 1.1754944e-38, %v1279_v15 }
 0x5c6   :  { %1686 = vrcp.f32 %v1313_v41  ;;  %vm1278_vm10 = vcmp.eq.f32.partialorder %v1277_v20, 8.507059e+37  ;;  %vm1295_vm11 = vweird.f32 %v1289_v32  ;;  %v1325_v4 = vand.u32 2147483648, %v1313_v41 }
 0x5c7   :  { %1688 = vtanh.f32 %v1305_v51  ;;  %v1302_v59 = vor.u32 1.1754944e-38, %v1301_v22  ;;  %vm1300_vm13 = vcmp.eq.f32.partialorder %v1299_v28, 8.507059e+37  ;;  %vm1319_vm15 = vweird.f32 %v1313_v41 }
 0x5c8   :  { %v1323_v6 = vand.u32 2147483647, %v1313_v41  ;;  %v1326_v7 = vor.u32 1.1754944e-38, %v1325_v4 }
 0x5c9   :  { %v1683_v42 = vpop.eup %1682 }
 0x5ca   :  { %v1269_v43 = vmul.f32 %v1683_v42, %v1267_v24  ;;  %vm1274_vm0 = vweird.f32 %v1683_v42  ;;  %vm1324_vm4 = vcmp.eq.f32.partialorder %v1323_v6, 8.507059e+37 }
 0x5cb   :  { %v1685_v47 = vpop.eup %1684  ;;  %vm1275_vm2 = vmor %vm1273_vm1, %vm1274_vm0 }
 0x5cc   :  { %v1270_v48 = vsub.f32 1.0, %v1269_v43  ;;  %v1687_v39 = vpop.eup %1686  ;;  %v1291_v9 = vmul.f32 %v1685_v47, %v1289_v32  ;;  %vm1296_vm9 = vweird.f32 %v1685_v47 }
 0x5cd   :  { %v1315_v14 = vmul.f32 %v1687_v39, %v1313_v41  ;;  %vm1297_vm12 = vmor %vm1295_vm11, %vm1296_vm9  ;;  %v1689_v37 = vpop.eup %1688  ;;  %vm1320_vm14 = vweird.f32 %v1687_v39 }
 0x5ce   :  { %v1271_v13 = vmul.f32 %v1683_v42, %v1270_v48  ;;  %v1292_v19 = vsub.f32 1.0, %v1291_v9  ;;  %vm1321_vm3 = vmor %vm1319_vm15, %vm1320_vm14 }
 0x5cf   :  { %v1316_v49 = vsub.f32 1.0, %v1315_v14 }
 0x5d0   :  { %v1272_v23 = vadd.f32 %v1683_v42, %v1271_v13  ;;  %v1293_v30 = vmul.f32 %v1685_v47, %v1292_v19 }
 0x5d1   :  { %v1317_v35 = vmul.f32 %v1687_v39, %v1316_v49 }
 0x5d2   :  { %v1276_v31 = vsel %vm1275_vm2, %v1683_v42, %v1272_v23  ;;  %v1294_v53 = vadd.f32 %v1685_v47, %v1293_v30 }
 0x5d3   :  { %v1281_v55 = vsel %vm1278_vm10, %v1280_v40, %v1276_v31  ;;  %v1318_v36 = vadd.f32 %v1687_v39, %v1317_v35 }
 0x5d4   :  { %v1298_v61 = vsel %vm1297_vm12, %v1685_v47, %v1294_v53  ;;  %v1330_v52 = vmul.f32 %v1689_v37, %v1281_v55 }
 0x5d5   :  { %v1303_v0 = vsel %vm1300_vm13, %v1302_v59, %v1298_v61  ;;  %v1322_v3 = vsel %vm1321_vm3, %v1687_v39, %v1318_v36 }
 0x5d6   :  { %v1329_v60 = vmul.f32 %v1303_v0, %v2340_v63  ;;  %v1327_v54 = vsel %vm1324_vm4, %v1326_v7, %v1322_v3 }
 0x5d8   :  { %v1331_v1 = vadd.f32 %v1330_v52, %v1329_v60 }
 0x5da   :  { %1690 = vtanh.f32 %v1331_v1  ;;  %1338 = vst [vmem:[#allocation3] sm:$0x3] %v1331_v1 }
 0x5db   :  { %1343 = vst [vmem:[%s2365_s6] sm:$0x3] %v1331_v1  ;;  %s1719_s6 = smov 16  }
 0x5e0   :  { %v1691_v63 = vpop.eup %1690 }
 0x5e1   :  { %v1333_v8 = vmul.f32 %v1691_v63, %v1327_v54 }
 0x5e3   :  { %v1334_v2 = vpack.c.bf16 %v1333_v8, %v1333_v8  ;;  %1337 = vst [vmem:[#allocation2] sm:$0x3] %v1333_v8 }
 0x5e4   :  { %1342 = vst [vmem:[%s2364_s5] sm:$0x3] %v1333_v8 }
 0x5e5   :  { %1336 = vst [vmem:[#allocation4 + $0x7] sm:$0x1] %v1334_v2 }
 0x5e6   :  { %1356 = dma.vmem_to_hbm [thread:$0]  %s1349_s23, 128, %s1351_s26, [#allocation5], %s1719_s6, %s1719_s6, %s1720_s29  }
 0x5e7   :  { %1716 = dma.done.wait [#allocation5], 128  }
 0x5e8   :  { %1717 = vsyncadd [#allocation5], 4294967168 }
 0x5e9   :  { %1369 = vsyncpa [#allocation5], 1 }

// kernel: seq2seq_forward.10
= control target key start
LH: loop header
LB: loop body
LE: loop exit
PB: predicated region body
PF: predicated region fallthrough
CT: control target
= control target key end

     0   :  { %vm283_vm0 = vcmask 1041408   ;;  %vm285_vm1 = vcmask 1045508   ;;  %vm287_vm2 = vcmask 1043456   ;;  %s2340_s3 = inlined_call_operand.vmem [shape: bf16[128,512], index: 3, kind: input, shape index: {}]   ;;  %s2341_s1 = inlined_call_operand.vmem [shape: f32[2,128], index: 1, kind: input, shape index: {}, may-alias: {1,2}]   ;;  %s2342_s2 = inlined_call_operand.vmem [shape: f32[2,128], index: 2, kind: input, shape index: {}, may-alias: {1,2}]   ;;  %s2343_s0 = inlined_call_operand.vmem [shape: f32[8,2,512], index: 0, kind: input, shape index: {}]   ;;  %s2344_s4 = inlined_call_operand.vmem [shape: bf16[8,2,128], index: 4, kind: output, shape index: {0}]   ;;  %s2345_s6 = inlined_call_operand.vmem [shape: f32[2,128], index: 6, kind: output, shape index: {2}]   ;;  %s2346_s5 = inlined_call_operand.vmem [shape: f32[2,128], index: 5, kind: output, shape index: {1}]  }
   0x1   :  { %v1469_v0 = vld [vmem:[%s2340_s3 + $0xe0] sm:$0xf]  ;;  %v1551_v1 = vld [vmem:[%s2340_s3 + $0xec] sm:$0xf0]  ;;  %v1549_v2 = vld [vmem:[%s2340_s3 + $0xe4] sm:$0xf] }
   0x2   :  { %v1725_v3 = vor.u32 %v1551_v1, %v1469_v0  ;;  %v1471_v4 = vld [vmem:[%s2340_s3 + $0xf0] sm:$0xf0]  ;;  %v1477_v5 = vld [vmem:[%s2340_s3 + $0xe8] sm:$0xf]  ;;  %v1552_v6 = vld [vmem:[%s2340_s3 + $0xf4] sm:$0xf0] }
   0x3   :  { %v1736_v7 = vor.u32 %v1549_v2, %v1471_v4  ;;  %v1738_v8 = vor.u32 %v1552_v6, %v1477_v5  ;;  %v1550_v9 = vld [vmem:[%s2340_s3 + $0xec] sm:$0xf]  ;;  %v1479_v10 = vld [vmem:[%s2340_s3 + $0xf8] sm:$0xf0]  ;;  %v1453_v11 = vld [vmem:[%s2340_s3 + $0xc0] sm:$0xf] }
   0x4   :  { %224 = vmatpush.bf16.msra.mxu0 %v1725_v3  ;;  %v1750_v12 = vor.u32 %v1550_v9, %v1479_v10  ;;  %v1547_v13 = vld [vmem:[%s2340_s3 + $0xcc] sm:$0xf0]  ;;  %v1545_v14 = vld [vmem:[%s2340_s3 + $0xc4] sm:$0xf]  ;;  %v1455_v15 = vld [vmem:[%s2340_s3 + $0xd0] sm:$0xf0] }
   0x5   :  { %237 = vmatpush.bf16.msra.mxu1 %v1736_v7  ;;  %250 = vmatpush.bf16.msra.mxu2 %v1738_v8  ;;  %v1763_v16 = vor.u32 %v1547_v13, %v1453_v11  ;;  %v1765_v17 = vor.u32 %v1545_v14, %v1455_v15  ;;  %v1461_v18 = vld [vmem:[%s2340_s3 + $0xc8] sm:$0xf]  ;;  %v1548_v19 = vld [vmem:[%s2340_s3 + $0xd4] sm:$0xf0]  ;;  %v1546_v20 = vld [vmem:[%s2340_s3 + $0xcc] sm:$0xf] }
   0x6   :  { %263 = vmatpush.bf16.msra.mxu3 %v1750_v12  ;;  %v1777_v21 = vor.u32 %v1548_v19, %v1461_v18  ;;  %v1463_v22 = vld [vmem:[%s2340_s3 + $0xd8] sm:$0xf0]  ;;  %v1437_v23 = vld [vmem:[%s2340_s3 + $0xa0] sm:$0xf]  ;;  %v1543_v24 = vld [vmem:[%s2340_s3 + $0xac] sm:$0xf0] }
   0x7   :  { %v1788_v25 = vor.u32 %v1546_v20, %v1463_v22  ;;  %v1541_v26 = vld [vmem:[%s2340_s3 + $0xa4] sm:$0xf]  ;;  %v1439_v27 = vld [vmem:[%s2340_s3 + $0xb0] sm:$0xf0]  ;;  %v1445_v28 = vld [vmem:[%s2340_s3 + $0xa8] sm:$0xf]  ;;  %v1800_v29 = vor.u32 %v1543_v24, %v1437_v23 }
   0x8   :  { %225 = vmatpush.bf16.msra.mxu0 %v1763_v16  ;;  %v1544_v30 = vld [vmem:[%s2340_s3 + $0xb4] sm:$0xf0]  ;;  %v1542_v31 = vld [vmem:[%s2340_s3 + $0xac] sm:$0xf]  ;;  %v1447_v32 = vld [vmem:[%s2340_s3 + $0xb8] sm:$0xf0]  ;;  %v1813_v33 = vor.u32 %v1541_v26, %v1439_v27 }
   0x9   :  { %238 = vmatpush.bf16.msra.mxu1 %v1765_v17  ;;  %251 = vmatpush.bf16.msra.mxu2 %v1777_v21  ;;  %v1815_v34 = vor.u32 %v1544_v30, %v1445_v28  ;;  %v1421_v35 = vld [vmem:[%s2340_s3 + $0x80] sm:$0xf]  ;;  %v1539_v36 = vld [vmem:[%s2340_s3 + $0x8c] sm:$0xf0]  ;;  %v1537_v37 = vld [vmem:[%s2340_s3 + $0x84] sm:$0xf]  ;;  %v1827_v38 = vor.u32 %v1542_v31, %v1447_v32 }
   0xa   :  { %264 = vmatpush.bf16.msra.mxu3 %v1788_v25  ;;  %v1423_v39 = vld [vmem:[%s2340_s3 + $0x90] sm:$0xf0]  ;;  %v1429_v40 = vld [vmem:[%s2340_s3 + $0x88] sm:$0xf]  ;;  %v1540_v41 = vld [vmem:[%s2340_s3 + $0x94] sm:$0xf0]  ;;  %v1845_v44 = vor.u32 %v1539_v36, %v1421_v35 }
   0xb   :  { %v1538_v42 = vld [vmem:[%s2340_s3 + $0x8c] sm:$0xf]  ;;  %v1431_v43 = vld [vmem:[%s2340_s3 + $0x98] sm:$0xf0]  ;;  %v1849_v45 = vor.u32 %v1537_v37, %v1423_v39  ;;  %v1851_v46 = vor.u32 %v1540_v41, %v1429_v40  ;;  %v1405_v47 = vld [vmem:[%s2340_s3 + $0x60] sm:$0xf] }
   0xc   :  { %226 = vmatpush.bf16.msra.mxu0 %v1800_v29  ;;  %v1535_v48 = vld [vmem:[%s2340_s3 + $0x6c] sm:$0xf0]  ;;  %v1533_v49 = vld [vmem:[%s2340_s3 + $0x64] sm:$0xf]  ;;  %v1863_v50 = vor.u32 %v1538_v42, %v1431_v43  ;;  %v1407_v51 = vld [vmem:[%s2340_s3 + $0x70] sm:$0xf0] }
   0xd   :  { %239 = vmatpush.bf16.msra.mxu1 %v1813_v33  ;;  %252 = vmatpush.bf16.msra.mxu2 %v1815_v34  ;;  %v1413_v52 = vld [vmem:[%s2340_s3 + $0x68] sm:$0xf]  ;;  %v1536_v53 = vld [vmem:[%s2340_s3 + $0x74] sm:$0xf0]  ;;  %v1534_v54 = vld [vmem:[%s2340_s3 + $0x6c] sm:$0xf]  ;;  %v1881_v56 = vor.u32 %v1535_v48, %v1405_v47  ;;  %v1885_v57 = vor.u32 %v1533_v49, %v1407_v51 }
   0xe   :  { %265 = vmatpush.bf16.msra.mxu3 %v1827_v38  ;;  %v1415_v55 = vld [vmem:[%s2340_s3 + $0x78] sm:$0xf0]  ;;  %v1887_v58 = vor.u32 %v1536_v53, %v1413_v52  ;;  %v1389_v59 = vld [vmem:[%s2340_s3 + $0x40] sm:$0xf]  ;;  %v1531_v60 = vld [vmem:[%s2340_s3 + $0x4c] sm:$0xf0] }
   0xf   :  { %v1529_v61 = vld [vmem:[%s2340_s3 + $0x44] sm:$0xf]  ;;  %v1899_v62 = vor.u32 %v1534_v54, %v1415_v55  ;;  %v1391_v63 = vld [vmem:[%s2340_s3 + $0x50] sm:$0xf0]  ;;  %v1397_v0 = vld [vmem:[%s2340_s3 + $0x48] sm:$0xf]  ;;  %v1917_v5 = vor.u32 %v1531_v60, %v1389_v59 }
  0x10   :  { %227 = vmatpush.bf16.msra.mxu0 %v1845_v44  ;;  %v1532_v1 = vld [vmem:[%s2340_s3 + $0x54] sm:$0xf0]  ;;  %v1530_v2 = vld [vmem:[%s2340_s3 + $0x4c] sm:$0xf]  ;;  %v1399_v4 = vld [vmem:[%s2340_s3 + $0x58] sm:$0xf0]  ;;  %v1924_v9 = vor.u32 %v1529_v61, %v1391_v63 }
  0x11   :  { %240 = vmatpush.bf16.msra.mxu1 %v1849_v45  ;;  %253 = vmatpush.bf16.msra.mxu2 %v1851_v46  ;;  %v1373_v6 = vld [vmem:[%s2340_s3 + $0x20] sm:$0xf]  ;;  %v1926_v10 = vor.u32 %v1532_v1, %v1397_v0  ;;  %v1527_v11 = vld [vmem:[%s2340_s3 + $0x2c] sm:$0xf0]  ;;  %v1525_v13 = vld [vmem:[%s2340_s3 + $0x24] sm:$0xf]  ;;  %v1938_v15 = vor.u32 %v1530_v2, %v1399_v4 }
  0x12   :  { %266 = vmatpush.bf16.msra.mxu3 %v1863_v50  ;;  %v1375_v14 = vld [vmem:[%s2340_s3 + $0x30] sm:$0xf0]  ;;  %v1381_v18 = vld [vmem:[%s2340_s3 + $0x28] sm:$0xf]  ;;  %v1528_v19 = vld [vmem:[%s2340_s3 + $0x34] sm:$0xf0]  ;;  %v1956_v24 = vor.u32 %v1527_v11, %v1373_v6 }
  0x13   :  { %v24_v20 = vld [vmem:[%s2341_s1] sm:$0x3]  ;;  %v1526_v22 = vld [vmem:[%s2340_s3 + $0x2c] sm:$0xf]  ;;  %v1383_v23 = vld [vmem:[%s2340_s3 + $0x38] sm:$0xf0]  ;;  %v1960_v26 = vor.u32 %v1525_v13, %v1375_v14  ;;  %v1962_v27 = vor.u32 %v1528_v19, %v1381_v18 }
  0x14   :  { %228 = vmatpush.bf16.msra.mxu0 %v1881_v56  ;;  %25 = vst [vmem:[#allocation2] sm:$0x3] %v24_v20  ;;  %v1357_v28 = vld [vmem:[%s2340_s3] sm:$0xf]  ;;  %v1523_v30 = vld [vmem:[%s2340_s3 + $0xc] sm:$0xf0]  ;;  %v1974_v32 = vor.u32 %v1526_v22, %v1383_v23 }
  0x15   :  { %241 = vmatpush.bf16.msra.mxu1 %v1885_v57  ;;  %254 = vmatpush.bf16.msra.mxu2 %v1887_v58  ;;  %v1521_v31 = vld [vmem:[%s2340_s3 + $0x4] sm:$0xf]  ;;  %v1359_v35 = vld [vmem:[%s2340_s3 + $0x10] sm:$0xf0]  ;;  %v1365_v36 = vld [vmem:[%s2340_s3 + $0x8] sm:$0xf]  ;;  %v1992_v41 = vor.u32 %v1523_v30, %v1357_v28 }
  0x16   :  { %267 = vmatpush.bf16.msra.mxu3 %v1899_v62  ;;  %v1524_v37 = vld [vmem:[%s2340_s3 + $0x14] sm:$0xf0]  ;;  %v1522_v39 = vld [vmem:[%s2340_s3 + $0xc] sm:$0xf]  ;;  %v1367_v40 = vld [vmem:[%s2340_s3 + $0x18] sm:$0xf0]  ;;  %v1996_v42 = vor.u32 %v1521_v31, %v1359_v35 }
  0x17   :  { %v1998_v43 = vor.u32 %v1524_v37, %v1365_v36  ;;  %v2001_v47 = vor.u32 %v1522_v39, %v1367_v40  ;;  %v26_v54 = vld [vmem:[%s2342_s2] sm:$0x3] }
  0x18   :  { %229 = vmatpush.bf16.msra.mxu0 %v1917_v5  ;;  %27 = vst [vmem:[#allocation3] sm:$0x3] %v26_v54  ;;  %v62_v2 = vld [vmem:[%s2343_s0] sm:$0xff] }
  0x19   :  { %242 = vmatpush.bf16.msra.mxu1 %v1924_v9  ;;  %255 = vmatpush.bf16.msra.mxu2 %v1926_v10 }
  0x1a   :  { %268 = vmatpush.bf16.msra.mxu3 %v1938_v15 }
  0x1b   :  { %v60_v48 = vld [vmem:[#allocation2] sm:$0x3] }
  0x1c   :  { %230 = vmatpush.bf16.msra.mxu0 %v1956_v24  ;;  %v63_v49 = vpack.c.bf16 %v60_v48, %v60_v48 }
  0x1d   :  { %243 = vmatpush.bf16.msra.mxu1 %v1960_v26  ;;  %256 = vmatpush.bf16.msra.mxu2 %v1962_v27 }
  0x1e   :  { %269 = vmatpush.bf16.msra.mxu3 %v1974_v32 }
  0x20   :  { %231 = vmatpush.bf16.msra.mxu0 %v1992_v41 }
  0x21   :  { %244 = vmatpush.bf16.msra.mxu1 %v1996_v42  ;;  %257 = vmatpush.bf16.msra.mxu2 %v1998_v43 }
  0x22   :  { %270 = vmatpush.bf16.msra.mxu3 %v2001_v47 }
  0x23   :  { %232 = vmatmul.bf16.vlgmr.msra.gmra.mxu0 %v63_v49 }
  0x24   :  { %365 = vmatpush.bf16.msrb.mxu0 %v1725_v3  ;;  %245 = vmatmul.bf16.vlgmr.msra.gmra.mxu1 %v63_v49 }
  0x25   :  { %378 = vmatpush.bf16.msrb.mxu1 %v1736_v7  ;;  %258 = vmatmul.bf16.vlgmr.msra.gmra.mxu2 %v63_v49 }
  0x26   :  { %271 = vmatmul.bf16.vlgmr.msra.gmra.mxu3 %v63_v49  ;;  %391 = vmatpush.bf16.msrb.mxu2 %v1738_v8 }
  0x27   :  { %404 = vmatpush.bf16.msrb.mxu3 %v1750_v12 }
  0x28   :  { %366 = vmatpush.bf16.msrb.mxu0 %v1763_v16 }
  0x29   :  { %379 = vmatpush.bf16.msrb.mxu1 %v1765_v17 }
  0x2a   :  { %392 = vmatpush.bf16.msrb.mxu2 %v1777_v21 }
  0x2b   :  { %405 = vmatpush.bf16.msrb.mxu3 %v1788_v25 }
  0x2c   :  { %367 = vmatpush.bf16.msrb.mxu0 %v1800_v29 }
  0x2d   :  { %380 = vmatpush.bf16.msrb.mxu1 %v1813_v33 }
  0x2e   :  { %393 = vmatpush.bf16.msrb.mxu2 %v1815_v34 }
  0x2f   :  { %406 = vmatpush.bf16.msrb.mxu3 %v1827_v38 }
  0x30   :  { %368 = vmatpush.bf16.msrb.mxu0 %v1845_v44 }
  0x31   :  { %381 = vmatpush.bf16.msrb.mxu1 %v1849_v45 }
  0x32   :  { %394 = vmatpush.bf16.msrb.mxu2 %v1851_v46 }
  0x33   :  { %407 = vmatpush.bf16.msrb.mxu3 %v1863_v50 }
  0x34   :  { %369 = vmatpush.bf16.msrb.mxu0 %v1881_v56 }
  0x35   :  { %382 = vmatpush.bf16.msrb.mxu1 %v1885_v57 }
  0x36   :  { %395 = vmatpush.bf16.msrb.mxu2 %v1887_v58 }
  0x37   :  { %408 = vmatpush.bf16.msrb.mxu3 %v1899_v62 }
  0x38   :  { %370 = vmatpush.bf16.msrb.mxu0 %v1917_v5 }
  0x39   :  { %383 = vmatpush.bf16.msrb.mxu1 %v1924_v9 }
  0x3a   :  { %396 = vmatpush.bf16.msrb.mxu2 %v1926_v10 }
  0x3b   :  { %409 = vmatpush.bf16.msrb.mxu3 %v1938_v15 }
  0x3c   :  { %371 = vmatpush.bf16.msrb.mxu0 %v1956_v24 }
  0x3d   :  { %384 = vmatpush.bf16.msrb.mxu1 %v1960_v26 }
  0x3e   :  { %397 = vmatpush.bf16.msrb.mxu2 %v1962_v27 }
  0x3f   :  { %410 = vmatpush.bf16.msrb.mxu3 %v1974_v32 }
  0x40   :  { %372 = vmatpush.bf16.msrb.mxu0 %v1992_v41 }
  0x41   :  { %385 = vmatpush.bf16.msrb.mxu1 %v1996_v42 }
  0x42   :  { %398 = vmatpush.bf16.msrb.mxu2 %v1998_v43 }
  0x43   :  { %411 = vmatpush.bf16.msrb.mxu3 %v2001_v47 }
  0x44   :  { %504 = vmatpush.bf16.msra.mxu0 %v1725_v3 }
  0x45   :  { %517 = vmatpush.bf16.msra.mxu1 %v1736_v7 }
  0x46   :  { %530 = vmatpush.bf16.msra.mxu2 %v1738_v8 }
  0x47   :  { %543 = vmatpush.bf16.msra.mxu3 %v1750_v12 }
  0x48   :  { %505 = vmatpush.bf16.msra.mxu0 %v1763_v16 }
  0x49   :  { %518 = vmatpush.bf16.msra.mxu1 %v1765_v17 }
  0x4a   :  { %531 = vmatpush.bf16.msra.mxu2 %v1777_v21 }
  0x4b   :  { %544 = vmatpush.bf16.msra.mxu3 %v1788_v25 }
  0x4c   :  { %506 = vmatpush.bf16.msra.mxu0 %v1800_v29 }
  0x4d   :  { %519 = vmatpush.bf16.msra.mxu1 %v1813_v33 }
  0x4e   :  { %532 = vmatpush.bf16.msra.mxu2 %v1815_v34 }
  0x4f   :  { %545 = vmatpush.bf16.msra.mxu3 %v1827_v38 }
  0x50   :  { %507 = vmatpush.bf16.msra.mxu0 %v1845_v44 }
  0x51   :  { %520 = vmatpush.bf16.msra.mxu1 %v1849_v45 }
  0x52   :  { %533 = vmatpush.bf16.msra.mxu2 %v1851_v46 }
  0x53   :  { %546 = vmatpush.bf16.msra.mxu3 %v1863_v50 }
  0x54   :  { %508 = vmatpush.bf16.msra.mxu0 %v1881_v56 }
  0x55   :  { %521 = vmatpush.bf16.msra.mxu1 %v1885_v57 }
  0x56   :  { %534 = vmatpush.bf16.msra.mxu2 %v1887_v58 }
  0x57   :  { %547 = vmatpush.bf16.msra.mxu3 %v1899_v62 }
  0x58   :  { %509 = vmatpush.bf16.msra.mxu0 %v1917_v5 }
  0x59   :  { %522 = vmatpush.bf16.msra.mxu1 %v1924_v9 }
  0x5a   :  { %535 = vmatpush.bf16.msra.mxu2 %v1926_v10 }
  0x5b   :  { %548 = vmatpush.bf16.msra.mxu3 %v1938_v15 }
  0x5c   :  { %510 = vmatpush.bf16.msra.mxu0 %v1956_v24 }
  0x5d   :  { %523 = vmatpush.bf16.msra.mxu1 %v1960_v26 }
  0x5e   :  { %536 = vmatpush.bf16.msra.mxu2 %v1962_v27 }
  0x5f   :  { %549 = vmatpush.bf16.msra.mxu3 %v1974_v32 }
  0x60   :  { %511 = vmatpush.bf16.msra.mxu0 %v1992_v41 }
  0x61   :  { %524 = vmatpush.bf16.msra.mxu1 %v1996_v42 }
  0x62   :  { %537 = vmatpush.bf16.msra.mxu2 %v1998_v43 }
  0x63   :  { %550 = vmatpush.bf16.msra.mxu3 %v2001_v47 }
  0xa0   :  { %v233_v51 = vpop.f32.mrf.mxu0 }
  0xa1   :  { %v246_v52 = vpop.f32.mrf.mxu1 }
  0xa2   :  { %v280_v53 = vrot.slane %v246_v52, 6 }
  0xa4   :  { %v284_v63 = vsel %vm283_vm0, %v233_v51, %v280_v53 }
  0xa8   :  { %v259_v55 = vpop.f32.mrf.mxu2  ;;  %v235_v61 = vpop.f32.mrf.mxu0 }
  0xa9   :  { %v281_v59 = vrot.slane %v259_v55, 4  ;;  %v272_v60 = vpop.f32.mrf.mxu3  ;;  %v248_v1 = vpop.f32.mrf.mxu1 }
  0xaa   :  { %v282_v0 = vrot.slane %v272_v60, 2 }
  0xac   :  { %v286_v4 = vsel %vm285_vm1, %v281_v59, %v282_v0 }
  0xad   :  { %v288_v6 = vsel %vm287_vm2, %v284_v63, %v286_v4 }
  0xae   :  { %v290_v11 = vadd.f32 %v288_v6, %v62_v2 }
  0xb0   :  { %v1483_v13 = vmul.f32 -1.442695, %v290_v11  ;;  %v311_v14 = vrot.slane %v290_v11, 2  ;;  %v335_v18 = vrot.slane %v290_v11, 6  ;;  %v261_v19 = vpop.f32.mrf.mxu2  ;;  %v332_v49 = vrot.slane %v290_v11, 4 }
  0xb1   :  { %v274_v20 = vpop.f32.mrf.mxu3 }
  0xb2   :  { %1553 = vpow2.f32 %v1483_v13  ;;  %v1484_v22 = vmul.f32 -1.442695, %v311_v14  ;;  %v1485_v23 = vmul.f32 -1.442695, %v335_v18  ;;  %v61_v14 = vld [vmem:[#allocation3] sm:$0x3] }
  0xb4   :  { %1555 = vpow2.f32 %v1484_v22 }
  0xb5   :  { %1557 = vpow2.f32 %v1485_v23 }
  0xb8   :  { %v1554_v28 = vpop.eup %1553 }
  0xb9   :  { %v294_v30 = vadd.f32 1.0, %v1554_v28 }
  0xba   :  { %v1556_v31 = vpop.eup %1555 }
  0xbb   :  { %v1558_v35 = vpop.eup %1557  ;;  %1559 = vrcp.f32 %v294_v30  ;;  %v316_v36 = vadd.f32 1.0, %v1556_v31  ;;  %v306_v54 = vand.u32 2147483648, %v294_v30  ;;  %v304_v61 = vand.u32 2147483647, %v294_v30 }
  0xbc   :  { %v340_v37 = vadd.f32 1.0, %v1558_v35  ;;  %vm300_vm4 = vweird.f32 %v294_v30 }
  0xbd   :  { %1561 = vrcp.f32 %v316_v36  ;;  %v328_v63 = vand.u32 2147483648, %v316_v36  ;;  %v326_v2 = vand.u32 2147483647, %v316_v36  ;;  %v307_v4 = vor.u32 1.1754944e-38, %v306_v54 }
  0xbe   :  { %1563 = vrcp.f32 %v340_v37  ;;  %vm305_vm7 = vcmp.eq.f32.partialorder %v304_v61, 8.507059e+37  ;;  %vm322_vm8 = vweird.f32 %v316_v36  ;;  %vm346_vm12 = vweird.f32 %v340_v37 }
  0xbf   :  { %1565 = vtanh.f32 %v332_v49  ;;  %v329_v19 = vor.u32 1.1754944e-38, %v328_v63  ;;  %vm327_vm10 = vcmp.eq.f32.partialorder %v326_v2, 8.507059e+37  ;;  %v352_v49 = vand.u32 2147483648, %v340_v37 }
  0xc1   :  { %v1560_v39 = vpop.eup %1559 }
  0xc2   :  { %v296_v40 = vmul.f32 %v1560_v39, %v294_v30  ;;  %vm301_vm3 = vweird.f32 %v1560_v39 }
  0xc3   :  { %v1562_v48 = vpop.eup %1561  ;;  %vm302_vm6 = vmor %vm300_vm4, %vm301_vm3 }
  0xc4   :  { %v1564_v51 = vpop.eup %1563  ;;  %v297_v52 = vsub.f32 1.0, %v296_v40  ;;  %v318_v53 = vmul.f32 %v1562_v48, %v316_v36  ;;  %vm323_vm5 = vweird.f32 %v1562_v48  ;;  %v350_v36 = vand.u32 2147483647, %v340_v37 }
  0xc5   :  { %v342_v55 = vmul.f32 %v1564_v51, %v340_v37  ;;  %vm324_vm9 = vmor %vm322_vm8, %vm323_vm5  ;;  %v1566_v22 = vpop.eup %1565  ;;  %vm347_vm11 = vweird.f32 %v1564_v51 }
  0xc6   :  { %v319_v59 = vsub.f32 1.0, %v318_v53  ;;  %v298_v60 = vmul.f32 %v1560_v39, %v297_v52  ;;  %vm348_vm13 = vmor %vm346_vm12, %vm347_vm11  ;;  %v353_v52 = vor.u32 1.1754944e-38, %v352_v49  ;;  %vm351_vm14 = vcmp.eq.f32.partialorder %v350_v36, 8.507059e+37 }
  0xc7   :  { %v343_v6 = vsub.f32 1.0, %v342_v55 }
  0xc8   :  { %v299_v0 = vadd.f32 %v1560_v39, %v298_v60  ;;  %v320_v1 = vmul.f32 %v1562_v48, %v319_v59 }
  0xc9   :  { %v344_v28 = vmul.f32 %v1564_v51, %v343_v6 }
  0xca   :  { %v303_v11 = vsel %vm302_vm6, %v1560_v39, %v299_v0  ;;  %v321_v13 = vadd.f32 %v1562_v48, %v320_v1 }
  0xcb   :  { %v308_v18 = vsel %vm305_vm7, %v307_v4, %v303_v11  ;;  %v345_v40 = vadd.f32 %v1564_v51, %v344_v28  ;;  %v1486_v4 = vld [vmem:[%s2343_s0 + $0x8] sm:$0xff] }
  0xcc   :  { %v325_v20 = vsel %vm324_vm9, %v1562_v48, %v321_v13  ;;  %v357_v31 = vmul.f32 %v1566_v22, %v308_v18 }
  0xcd   :  { %v330_v23 = vsel %vm327_vm10, %v329_v19, %v325_v20  ;;  %v349_v39 = vsel %vm348_vm13, %v1564_v51, %v345_v40 }
  0xce   :  { %v356_v30 = vmul.f32 %v330_v23, %v61_v14  ;;  %v354_v53 = vsel %vm351_vm14, %v353_v52, %v349_v39 }
  0xd0   :  { %v2080_v35 = vadd.f32 %v357_v31, %v356_v30 }
  0xd2   :  { %1567 = vtanh.f32 %v2080_v35 }
  0xd8   :  { %v1568_v48 = vpop.eup %1567 }
  0xd9   :  { %v360_v54 = vmul.f32 %v1568_v48, %v354_v53 }
  0xdb   :  { %v361_v55 = vpack.c.bf16 %v360_v54, %v360_v54 }
  0xdd   :  { %362 = vst [vmem:[%s2344_s4] sm:$0x1] %v361_v55  ;;  %373 = vmatmul.bf16.vlgmr.msrb.gmra.mxu0 %v361_v55  ;;  %386 = vmatmul.bf16.vlgmr.msrb.gmra.mxu1 %v361_v55 }
  0xde   :  { %399 = vmatmul.bf16.vlgmr.msrb.gmra.mxu2 %v361_v55  ;;  %412 = vmatmul.bf16.vlgmr.msrb.gmra.mxu3 %v361_v55 }
  0xdf   :  { %643 = vmatpush.bf16.msrb.mxu0 %v1725_v3  ;;  %656 = vmatpush.bf16.msrb.mxu1 %v1736_v7 }
  0xe0   :  { %669 = vmatpush.bf16.msrb.mxu2 %v1738_v8  ;;  %682 = vmatpush.bf16.msrb.mxu3 %v1750_v12 }
  0xe3   :  { %644 = vmatpush.bf16.msrb.mxu0 %v1763_v16  ;;  %657 = vmatpush.bf16.msrb.mxu1 %v1765_v17 }
  0xe4   :  { %670 = vmatpush.bf16.msrb.mxu2 %v1777_v21  ;;  %683 = vmatpush.bf16.msrb.mxu3 %v1788_v25 }
  0xe7   :  { %645 = vmatpush.bf16.msrb.mxu0 %v1800_v29  ;;  %658 = vmatpush.bf16.msrb.mxu1 %v1813_v33 }
  0xe8   :  { %671 = vmatpush.bf16.msrb.mxu2 %v1815_v34  ;;  %684 = vmatpush.bf16.msrb.mxu3 %v1827_v38 }
  0xeb   :  { %646 = vmatpush.bf16.msrb.mxu0 %v1845_v44  ;;  %659 = vmatpush.bf16.msrb.mxu1 %v1849_v45 }
  0xec   :  { %672 = vmatpush.bf16.msrb.mxu2 %v1851_v46  ;;  %685 = vmatpush.bf16.msrb.mxu3 %v1863_v50 }
  0xef   :  { %647 = vmatpush.bf16.msrb.mxu0 %v1881_v56  ;;  %660 = vmatpush.bf16.msrb.mxu1 %v1885_v57 }
  0xf0   :  { %673 = vmatpush.bf16.msrb.mxu2 %v1887_v58  ;;  %686 = vmatpush.bf16.msrb.mxu3 %v1899_v62 }
  0xf3   :  { %648 = vmatpush.bf16.msrb.mxu0 %v1917_v5  ;;  %661 = vmatpush.bf16.msrb.mxu1 %v1924_v9 }
  0xf4   :  { %674 = vmatpush.bf16.msrb.mxu2 %v1926_v10  ;;  %687 = vmatpush.bf16.msrb.mxu3 %v1938_v15 }
  0xf7   :  { %649 = vmatpush.bf16.msrb.mxu0 %v1956_v24  ;;  %662 = vmatpush.bf16.msrb.mxu1 %v1960_v26 }
  0xf8   :  { %675 = vmatpush.bf16.msrb.mxu2 %v1962_v27  ;;  %688 = vmatpush.bf16.msrb.mxu3 %v1974_v32 }
  0xfb   :  { %650 = vmatpush.bf16.msrb.mxu0 %v1992_v41  ;;  %663 = vmatpush.bf16.msrb.mxu1 %v1996_v42 }
  0xfc   :  { %676 = vmatpush.bf16.msrb.mxu2 %v1998_v43  ;;  %689 = vmatpush.bf16.msrb.mxu3 %v2001_v47 }
 0x15a   :  { %v374_v37 = vpop.f32.mrf.mxu0  ;;  %v387_v51 = vpop.f32.mrf.mxu1 }
 0x15b   :  { %v421_v59 = vrot.slane %v387_v51, 6 }
 0x15d   :  { %v424_v6 = vsel %vm283_vm0, %v374_v37, %v421_v59 }
 0x161   :  { %v400_v60 = vpop.f32.mrf.mxu2  ;;  %v413_v61 = vpop.f32.mrf.mxu3 }
 0x162   :  { %v422_v63 = vrot.slane %v400_v60, 4  ;;  %v423_v0 = vrot.slane %v413_v61, 2  ;;  %v376_v1 = vpop.f32.mrf.mxu0  ;;  %v389_v2 = vpop.f32.mrf.mxu1 }
 0x164   :  { %v425_v11 = vsel %vm285_vm1, %v422_v63, %v423_v0 }
 0x165   :  { %v426_v13 = vsel %vm287_vm2, %v424_v6, %v425_v11 }
 0x166   :  { %v428_v14 = vadd.f32 %v1486_v4, %v426_v13 }
 0x168   :  { %v1487_v18 = vmul.f32 -1.442695, %v428_v14  ;;  %v449_v19 = vrot.slane %v428_v14, 2  ;;  %v473_v20 = vrot.slane %v428_v14, 6  ;;  %v470_v55 = vrot.slane %v428_v14, 4 }
 0x169   :  { %v402_v22 = vpop.f32.mrf.mxu2  ;;  %v415_v23 = vpop.f32.mrf.mxu3 }
 0x16a   :  { %1569 = vpow2.f32 %v1487_v18  ;;  %v1488_v28 = vmul.f32 -1.442695, %v449_v19  ;;  %v1489_v30 = vmul.f32 -1.442695, %v473_v20 }
 0x16c   :  { %1571 = vpow2.f32 %v1488_v28 }
 0x16d   :  { %1573 = vpow2.f32 %v1489_v30 }
 0x170   :  { %v1570_v31 = vpop.eup %1569 }
 0x171   :  { %v432_v40 = vadd.f32 1.0, %v1570_v31 }
 0x172   :  { %v1572_v49 = vpop.eup %1571 }
 0x173   :  { %v1574_v36 = vpop.eup %1573  ;;  %1575 = vrcp.f32 %v432_v40  ;;  %v454_v39 = vadd.f32 1.0, %v1572_v49  ;;  %v444_v60 = vand.u32 2147483648, %v432_v40  ;;  %v442_v1 = vand.u32 2147483647, %v432_v40 }
 0x174   :  { %v478_v52 = vadd.f32 1.0, %v1574_v36  ;;  %vm438_vm3 = vweird.f32 %v432_v40 }
 0x175   :  { %1577 = vrcp.f32 %v454_v39  ;;  %v466_v2 = vand.u32 2147483648, %v454_v39  ;;  %v464_v11 = vand.u32 2147483647, %v454_v39  ;;  %v445_v13 = vor.u32 1.1754944e-38, %v444_v60 }
 0x176   :  { %1579 = vrcp.f32 %v478_v52  ;;  %vm443_vm6 = vcmp.eq.f32.partialorder %v442_v1, 8.507059e+37  ;;  %vm460_vm7 = vweird.f32 %v454_v39  ;;  %vm484_vm11 = vweird.f32 %v478_v52 }
 0x177   :  { %1581 = vtanh.f32 %v470_v55  ;;  %v467_v22 = vor.u32 1.1754944e-38, %v466_v2  ;;  %vm465_vm9 = vcmp.eq.f32.partialorder %v464_v11, 8.507059e+37  ;;  %v490_v55 = vand.u32 2147483648, %v478_v52  ;;  %v1491_v11 = vld [vmem:[%s2343_s0 + $0x10] sm:$0xff] }
 0x179   :  { %v1576_v48 = vpop.eup %1575 }
 0x17a   :  { %v434_v53 = vmul.f32 %v1576_v48, %v432_v40  ;;  %vm439_vm15 = vweird.f32 %v1576_v48 }
 0x17b   :  { %v1578_v54 = vpop.eup %1577  ;;  %vm440_vm5 = vmor %vm438_vm3, %vm439_vm15 }
 0x17c   :  { %v1580_v37 = vpop.eup %1579  ;;  %v435_v51 = vsub.f32 1.0, %v434_v53  ;;  %v456_v59 = vmul.f32 %v1578_v54, %v454_v39  ;;  %vm461_vm4 = vweird.f32 %v1578_v54  ;;  %v488_v39 = vand.u32 2147483647, %v478_v52 }
 0x17d   :  { %v480_v61 = vmul.f32 %v1580_v37, %v478_v52  ;;  %vm462_vm8 = vmor %vm460_vm7, %vm461_vm4  ;;  %v1582_v28 = vpop.eup %1581  ;;  %vm485_vm10 = vweird.f32 %v1580_v37 }
 0x17e   :  { %v457_v63 = vsub.f32 1.0, %v456_v59  ;;  %v436_v0 = vmul.f32 %v1576_v48, %v435_v51  ;;  %vm486_vm12 = vmor %vm484_vm11, %vm485_vm10  ;;  %v491_v51 = vor.u32 1.1754944e-38, %v490_v55  ;;  %vm489_vm13 = vcmp.eq.f32.partialorder %v488_v39, 8.507059e+37 }
 0x17f   :  { %v481_v18 = vsub.f32 1.0, %v480_v61 }
 0x180   :  { %v437_v4 = vadd.f32 %v1576_v48, %v436_v0  ;;  %v458_v6 = vmul.f32 %v1578_v54, %v457_v63 }
 0x181   :  { %v482_v31 = vmul.f32 %v1580_v37, %v481_v18 }
 0x182   :  { %v441_v14 = vsel %vm440_vm5, %v1576_v48, %v437_v4  ;;  %v459_v19 = vadd.f32 %v1578_v54, %v458_v6 }
 0x183   :  { %v446_v20 = vsel %vm443_vm6, %v445_v13, %v441_v14  ;;  %v483_v53 = vadd.f32 %v1580_v37, %v482_v31 }
 0x184   :  { %v463_v23 = vsel %vm462_vm8, %v1578_v54, %v459_v19  ;;  %v495_v49 = vmul.f32 %v1582_v28, %v446_v20 }
 0x185   :  { %v468_v30 = vsel %vm465_vm9, %v467_v22, %v463_v23  ;;  %v487_v48 = vsel %vm486_vm12, %v1580_v37, %v483_v53 }
 0x186   :  { %v494_v40 = vmul.f32 %v468_v30, %v2080_v35  ;;  %v492_v59 = vsel %vm489_vm13, %v491_v51, %v487_v48 }
 0x188   :  { %v2125_v36 = vadd.f32 %v495_v49, %v494_v40 }
 0x18a   :  { %1583 = vtanh.f32 %v2125_v36 }
 0x190   :  { %v1584_v54 = vpop.eup %1583 }
 0x191   :  { %v498_v60 = vmul.f32 %v1584_v54, %v492_v59 }
 0x193   :  { %v499_v61 = vpack.c.bf16 %v498_v60, %v498_v60 }
 0x195   :  { %1490 = vst [vmem:[%s2344_s4 + $0x1] sm:$0x1] %v499_v61  ;;  %512 = vmatmul.bf16.vlgmr.msra.gmra.mxu0 %v499_v61  ;;  %525 = vmatmul.bf16.vlgmr.msra.gmra.mxu1 %v499_v61 }
 0x196   :  { %538 = vmatmul.bf16.vlgmr.msra.gmra.mxu2 %v499_v61  ;;  %551 = vmatmul.bf16.vlgmr.msra.gmra.mxu3 %v499_v61 }
 0x197   :  { %782 = vmatpush.bf16.msra.mxu0 %v1725_v3  ;;  %795 = vmatpush.bf16.msra.mxu1 %v1736_v7 }
 0x198   :  { %808 = vmatpush.bf16.msra.mxu2 %v1738_v8  ;;  %821 = vmatpush.bf16.msra.mxu3 %v1750_v12 }
 0x19b   :  { %783 = vmatpush.bf16.msra.mxu0 %v1763_v16  ;;  %796 = vmatpush.bf16.msra.mxu1 %v1765_v17 }
 0x19c   :  { %809 = vmatpush.bf16.msra.mxu2 %v1777_v21  ;;  %822 = vmatpush.bf16.msra.mxu3 %v1788_v25 }
 0x19f   :  { %784 = vmatpush.bf16.msra.mxu0 %v1800_v29  ;;  %797 = vmatpush.bf16.msra.mxu1 %v1813_v33 }
 0x1a0   :  { %810 = vmatpush.bf16.msra.mxu2 %v1815_v34  ;;  %823 = vmatpush.bf16.msra.mxu3 %v1827_v38 }
 0x1a3   :  { %785 = vmatpush.bf16.msra.mxu0 %v1845_v44  ;;  %798 = vmatpush.bf16.msra.mxu1 %v1849_v45 }
 0x1a4   :  { %811 = vmatpush.bf16.msra.mxu2 %v1851_v46  ;;  %824 = vmatpush.bf16.msra.mxu3 %v1863_v50 }
 0x1a7   :  { %786 = vmatpush.bf16.msra.mxu0 %v1881_v56  ;;  %799 = vmatpush.bf16.msra.mxu1 %v1885_v57 }
 0x1a8   :  { %812 = vmatpush.bf16.msra.mxu2 %v1887_v58  ;;  %825 = vmatpush.bf16.msra.mxu3 %v1899_v62 }
 0x1ab   :  { %787 = vmatpush.bf16.msra.mxu0 %v1917_v5  ;;  %800 = vmatpush.bf16.msra.mxu1 %v1924_v9 }
 0x1ac   :  { %813 = vmatpush.bf16.msra.mxu2 %v1926_v10  ;;  %826 = vmatpush.bf16.msra.mxu3 %v1938_v15 }
 0x1af   :  { %788 = vmatpush.bf16.msra.mxu0 %v1956_v24  ;;  %801 = vmatpush.bf16.msra.mxu1 %v1960_v26 }
 0x1b0   :  { %814 = vmatpush.bf16.msra.mxu2 %v1962_v27  ;;  %827 = vmatpush.bf16.msra.mxu3 %v1974_v32 }
 0x1b3   :  { %789 = vmatpush.bf16.msra.mxu0 %v1992_v41  ;;  %802 = vmatpush.bf16.msra.mxu1 %v1996_v42 }
 0x1b4   :  { %815 = vmatpush.bf16.msra.mxu2 %v1998_v43  ;;  %828 = vmatpush.bf16.msra.mxu3 %v2001_v47 }
 0x212   :  { %v513_v35 = vpop.f32.mrf.mxu0  ;;  %v526_v52 = vpop.f32.mrf.mxu1 }
 0x213   :  { %v560_v37 = vrot.slane %v526_v52, 6 }
 0x215   :  { %v563_v13 = vsel %vm283_vm0, %v513_v35, %v560_v37 }
 0x219   :  { %v539_v63 = vpop.f32.mrf.mxu2  ;;  %v552_v0 = vpop.f32.mrf.mxu3 }
 0x21a   :  { %v561_v1 = vrot.slane %v539_v63, 4  ;;  %v562_v2 = vrot.slane %v552_v0, 2  ;;  %v515_v4 = vpop.f32.mrf.mxu0  ;;  %v528_v6 = vpop.f32.mrf.mxu1 }
 0x21c   :  { %v564_v18 = vsel %vm285_vm1, %v561_v1, %v562_v2 }
 0x21d   :  { %v565_v14 = vsel %vm287_vm2, %v563_v13, %v564_v18 }
 0x21e   :  { %v567_v19 = vadd.f32 %v1491_v11, %v565_v14 }
 0x220   :  { %v1492_v20 = vmul.f32 -1.442695, %v567_v19  ;;  %v588_v22 = vrot.slane %v567_v19, 2  ;;  %v612_v23 = vrot.slane %v567_v19, 6  ;;  %v609_v61 = vrot.slane %v567_v19, 4 }
 0x221   :  { %v541_v28 = vpop.f32.mrf.mxu2  ;;  %v554_v30 = vpop.f32.mrf.mxu3 }
 0x222   :  { %1585 = vpow2.f32 %v1492_v20  ;;  %v1493_v31 = vmul.f32 -1.442695, %v588_v22  ;;  %v1494_v40 = vmul.f32 -1.442695, %v612_v23 }
 0x224   :  { %1587 = vpow2.f32 %v1493_v31 }
 0x225   :  { %1589 = vpow2.f32 %v1494_v40 }
 0x228   :  { %v1586_v49 = vpop.eup %1585 }
 0x229   :  { %v571_v53 = vadd.f32 1.0, %v1586_v49 }
 0x22a   :  { %v1588_v55 = vpop.eup %1587 }
 0x22b   :  { %v1590_v39 = vpop.eup %1589  ;;  %1591 = vrcp.f32 %v571_v53  ;;  %v593_v48 = vadd.f32 1.0, %v1588_v55  ;;  %v583_v63 = vand.u32 2147483648, %v571_v53  ;;  %v581_v4 = vand.u32 2147483647, %v571_v53 }
 0x22c   :  { %v617_v51 = vadd.f32 1.0, %v1590_v39  ;;  %vm577_vm15 = vweird.f32 %v571_v53 }
 0x22d   :  { %1593 = vrcp.f32 %v593_v48  ;;  %v605_v6 = vand.u32 2147483648, %v593_v48  ;;  %v603_v18 = vand.u32 2147483647, %v593_v48  ;;  %v584_v14 = vor.u32 1.1754944e-38, %v583_v63 }
 0x22e   :  { %1595 = vrcp.f32 %v617_v51  ;;  %vm582_vm5 = vcmp.eq.f32.partialorder %v581_v4, 8.507059e+37  ;;  %vm599_vm6 = vweird.f32 %v593_v48  ;;  %vm623_vm10 = vweird.f32 %v617_v51 }
 0x22f   :  { %1597 = vtanh.f32 %v609_v61  ;;  %v606_v28 = vor.u32 1.1754944e-38, %v605_v6  ;;  %vm604_vm8 = vcmp.eq.f32.partialorder %v603_v18, 8.507059e+37  ;;  %v629_v61 = vand.u32 2147483648, %v617_v51  ;;  %v1496_v18 = vld [vmem:[%s2343_s0 + $0x18] sm:$0xff] }
 0x231   :  { %v1592_v54 = vpop.eup %1591 }
 0x232   :  { %v573_v59 = vmul.f32 %v1592_v54, %v571_v53  ;;  %vm578_vm14 = vweird.f32 %v1592_v54 }
 0x233   :  { %v1594_v60 = vpop.eup %1593  ;;  %vm579_vm4 = vmor %vm577_vm15, %vm578_vm14 }
 0x234   :  { %v1596_v35 = vpop.eup %1595  ;;  %v574_v52 = vsub.f32 1.0, %v573_v59  ;;  %v595_v37 = vmul.f32 %v1594_v60, %v593_v48  ;;  %vm600_vm3 = vweird.f32 %v1594_v60  ;;  %v627_v48 = vand.u32 2147483647, %v617_v51 }
 0x235   :  { %v619_v0 = vmul.f32 %v1596_v35, %v617_v51  ;;  %vm601_vm7 = vmor %vm599_vm6, %vm600_vm3  ;;  %v1598_v31 = vpop.eup %1597  ;;  %vm624_vm9 = vweird.f32 %v1596_v35 }
 0x236   :  { %v596_v1 = vsub.f32 1.0, %v595_v37  ;;  %v575_v2 = vmul.f32 %v1592_v54, %v574_v52  ;;  %vm625_vm11 = vmor %vm623_vm10, %vm624_vm9  ;;  %v630_v52 = vor.u32 1.1754944e-38, %v629_v61  ;;  %vm628_vm12 = vcmp.eq.f32.partialorder %v627_v48, 8.507059e+37 }
 0x237   :  { %v620_v20 = vsub.f32 1.0, %v619_v0 }
 0x238   :  { %v576_v11 = vadd.f32 %v1592_v54, %v575_v2  ;;  %v597_v13 = vmul.f32 %v1594_v60, %v596_v1 }
 0x239   :  { %v621_v49 = vmul.f32 %v1596_v35, %v620_v20 }
 0x23a   :  { %v580_v19 = vsel %vm579_vm4, %v1592_v54, %v576_v11  ;;  %v598_v22 = vadd.f32 %v1594_v60, %v597_v13 }
 0x23b   :  { %v585_v23 = vsel %vm582_vm5, %v584_v14, %v580_v19  ;;  %v622_v59 = vadd.f32 %v1596_v35, %v621_v49 }
 0x23c   :  { %v602_v30 = vsel %vm601_vm7, %v1594_v60, %v598_v22  ;;  %v634_v55 = vmul.f32 %v1598_v31, %v585_v23 }
 0x23d   :  { %v607_v40 = vsel %vm604_vm8, %v606_v28, %v602_v30  ;;  %v626_v54 = vsel %vm625_vm11, %v1596_v35, %v622_v59 }
 0x23e   :  { %v633_v53 = vmul.f32 %v607_v40, %v2125_v36  ;;  %v631_v37 = vsel %vm628_vm12, %v630_v52, %v626_v54 }
 0x240   :  { %v2170_v39 = vadd.f32 %v634_v55, %v633_v53 }
 0x242   :  { %1599 = vtanh.f32 %v2170_v39 }
 0x248   :  { %v1600_v60 = vpop.eup %1599 }
 0x249   :  { %v637_v63 = vmul.f32 %v1600_v60, %v631_v37 }
 0x24b   :  { %v638_v0 = vpack.c.bf16 %v637_v63, %v637_v63 }
 0x24d   :  { %1495 = vst [vmem:[%s2344_s4 + $0x2] sm:$0x1] %v638_v0  ;;  %651 = vmatmul.bf16.vlgmr.msrb.gmra.mxu0 %v638_v0  ;;  %664 = vmatmul.bf16.vlgmr.msrb.gmra.mxu1 %v638_v0 }
 0x24e   :  { %677 = vmatmul.bf16.vlgmr.msrb.gmra.mxu2 %v638_v0  ;;  %690 = vmatmul.bf16.vlgmr.msrb.gmra.mxu3 %v638_v0 }
 0x24f   :  { %921 = vmatpush.bf16.msrb.mxu0 %v1725_v3  ;;  %934 = vmatpush.bf16.msrb.mxu1 %v1736_v7 }
 0x250   :  { %947 = vmatpush.bf16.msrb.mxu2 %v1738_v8  ;;  %960 = vmatpush.bf16.msrb.mxu3 %v1750_v12 }
 0x253   :  { %922 = vmatpush.bf16.msrb.mxu0 %v1763_v16  ;;  %935 = vmatpush.bf16.msrb.mxu1 %v1765_v17 }
 0x254   :  { %948 = vmatpush.bf16.msrb.mxu2 %v1777_v21  ;;  %961 = vmatpush.bf16.msrb.mxu3 %v1788_v25 }
 0x257   :  { %923 = vmatpush.bf16.msrb.mxu0 %v1800_v29  ;;  %936 = vmatpush.bf16.msrb.mxu1 %v1813_v33 }
 0x258   :  { %949 = vmatpush.bf16.msrb.mxu2 %v1815_v34  ;;  %962 = vmatpush.bf16.msrb.mxu3 %v1827_v38 }
 0x25b   :  { %924 = vmatpush.bf16.msrb.mxu0 %v1845_v44  ;;  %937 = vmatpush.bf16.msrb.mxu1 %v1849_v45 }
 0x25c   :  { %950 = vmatpush.bf16.msrb.mxu2 %v1851_v46  ;;  %963 = vmatpush.bf16.msrb.mxu3 %v1863_v50 }
 0x25f   :  { %925 = vmatpush.bf16.msrb.mxu0 %v1881_v56  ;;  %938 = vmatpush.bf16.msrb.mxu1 %v1885_v57 }
 0x260   :  { %951 = vmatpush.bf16.msrb.mxu2 %v1887_v58  ;;  %964 = vmatpush.bf16.msrb.mxu3 %v1899_v62 }
 0x263   :  { %926 = vmatpush.bf16.msrb.mxu0 %v1917_v5  ;;  %939 = vmatpush.bf16.msrb.mxu1 %v1924_v9 }
 0x264   :  { %952 = vmatpush.bf16.msrb.mxu2 %v1926_v10  ;;  %965 = vmatpush.bf16.msrb.mxu3 %v1938_v15 }
 0x267   :  { %927 = vmatpush.bf16.msrb.mxu0 %v1956_v24  ;;  %940 = vmatpush.bf16.msrb.mxu1 %v1960_v26 }
 0x268   :  { %953 = vmatpush.bf16.msrb.mxu2 %v1962_v27  ;;  %966 = vmatpush.bf16.msrb.mxu3 %v1974_v32 }
 0x26b   :  { %928 = vmatpush.bf16.msrb.mxu0 %v1992_v41  ;;  %941 = vmatpush.bf16.msrb.mxu1 %v1996_v42 }
 0x26c   :  { %954 = vmatpush.bf16.msrb.mxu2 %v1998_v43  ;;  %967 = vmatpush.bf16.msrb.mxu3 %v2001_v47 }
 0x2ca   :  { %v652_v36 = vpop.f32.mrf.mxu0  ;;  %v665_v51 = vpop.f32.mrf.mxu1 }
 0x2cb   :  { %v699_v35 = vrot.slane %v665_v51, 6 }
 0x2cd   :  { %v702_v14 = vsel %vm283_vm0, %v652_v36, %v699_v35 }
 0x2d1   :  { %v678_v1 = vpop.f32.mrf.mxu2  ;;  %v691_v2 = vpop.f32.mrf.mxu3 }
 0x2d2   :  { %v700_v4 = vrot.slane %v678_v1, 4  ;;  %v701_v6 = vrot.slane %v691_v2, 2  ;;  %v654_v11 = vpop.f32.mrf.mxu0  ;;  %v667_v13 = vpop.f32.mrf.mxu1 }
 0x2d4   :  { %v703_v20 = vsel %vm285_vm1, %v700_v4, %v701_v6 }
 0x2d5   :  { %v704_v19 = vsel %vm287_vm2, %v702_v14, %v703_v20 }
 0x2d6   :  { %v706_v22 = vadd.f32 %v1496_v18, %v704_v19 }
 0x2d8   :  { %v1497_v23 = vmul.f32 -1.442695, %v706_v22  ;;  %v727_v28 = vrot.slane %v706_v22, 2  ;;  %v751_v30 = vrot.slane %v706_v22, 6  ;;  %v748_v0 = vrot.slane %v706_v22, 4 }
 0x2d9   :  { %v680_v31 = vpop.f32.mrf.mxu2  ;;  %v693_v40 = vpop.f32.mrf.mxu3 }
 0x2da   :  { %1601 = vpow2.f32 %v1497_v23  ;;  %v1498_v49 = vmul.f32 -1.442695, %v727_v28  ;;  %v1499_v53 = vmul.f32 -1.442695, %v751_v30 }
 0x2dc   :  { %1603 = vpow2.f32 %v1498_v49 }
 0x2dd   :  { %1605 = vpow2.f32 %v1499_v53 }
 0x2e0   :  { %v1602_v55 = vpop.eup %1601 }
 0x2e1   :  { %v710_v59 = vadd.f32 1.0, %v1602_v55 }
 0x2e2   :  { %v1604_v61 = vpop.eup %1603 }
 0x2e3   :  { %v1606_v48 = vpop.eup %1605  ;;  %1607 = vrcp.f32 %v710_v59  ;;  %v732_v54 = vadd.f32 1.0, %v1604_v61  ;;  %v722_v1 = vand.u32 2147483648, %v710_v59  ;;  %v720_v11 = vand.u32 2147483647, %v710_v59 }
 0x2e4   :  { %v756_v52 = vadd.f32 1.0, %v1606_v48  ;;  %vm716_vm14 = vweird.f32 %v710_v59 }
 0x2e5   :  { %1609 = vrcp.f32 %v732_v54  ;;  %v744_v13 = vand.u32 2147483648, %v732_v54  ;;  %v742_v20 = vand.u32 2147483647, %v732_v54  ;;  %v723_v19 = vor.u32 1.1754944e-38, %v722_v1 }
 0x2e6   :  { %1611 = vrcp.f32 %v756_v52  ;;  %vm721_vm4 = vcmp.eq.f32.partialorder %v720_v11, 8.507059e+37  ;;  %vm738_vm5 = vweird.f32 %v732_v54  ;;  %vm762_vm9 = vweird.f32 %v756_v52 }
 0x2e7   :  { %1613 = vtanh.f32 %v748_v0  ;;  %v745_v31 = vor.u32 1.1754944e-38, %v744_v13  ;;  %vm743_vm7 = vcmp.eq.f32.partialorder %v742_v20, 8.507059e+37  ;;  %v768_v0 = vand.u32 2147483648, %v756_v52  ;;  %v1501_v20 = vld [vmem:[%s2343_s0 + $0x20] sm:$0xff] }
 0x2e9   :  { %v1608_v60 = vpop.eup %1607 }
 0x2ea   :  { %v712_v37 = vmul.f32 %v1608_v60, %v710_v59  ;;  %vm717_vm13 = vweird.f32 %v1608_v60 }
 0x2eb   :  { %v1610_v63 = vpop.eup %1609  ;;  %vm718_vm3 = vmor %vm716_vm14, %vm717_vm13 }
 0x2ec   :  { %v1612_v36 = vpop.eup %1611  ;;  %v713_v51 = vsub.f32 1.0, %v712_v37  ;;  %v734_v35 = vmul.f32 %v1610_v63, %v732_v54  ;;  %vm739_vm15 = vweird.f32 %v1610_v63  ;;  %v766_v54 = vand.u32 2147483647, %v756_v52 }
 0x2ed   :  { %v758_v2 = vmul.f32 %v1612_v36, %v756_v52  ;;  %vm740_vm6 = vmor %vm738_vm5, %vm739_vm15  ;;  %v1614_v49 = vpop.eup %1613  ;;  %vm763_vm8 = vweird.f32 %v1612_v36 }
 0x2ee   :  { %v735_v4 = vsub.f32 1.0, %v734_v35  ;;  %v714_v6 = vmul.f32 %v1608_v60, %v713_v51  ;;  %vm764_vm10 = vmor %vm762_vm9, %vm763_vm8  ;;  %v769_v51 = vor.u32 1.1754944e-38, %v768_v0  ;;  %vm767_vm11 = vcmp.eq.f32.partialorder %v766_v54, 8.507059e+37 }
 0x2ef   :  { %v759_v23 = vsub.f32 1.0, %v758_v2 }
 0x2f0   :  { %v715_v18 = vadd.f32 %v1608_v60, %v714_v6  ;;  %v736_v14 = vmul.f32 %v1610_v63, %v735_v4 }
 0x2f1   :  { %v760_v55 = vmul.f32 %v1612_v36, %v759_v23 }
 0x2f2   :  { %v719_v22 = vsel %vm718_vm3, %v1608_v60, %v715_v18  ;;  %v737_v28 = vadd.f32 %v1610_v63, %v736_v14 }
 0x2f3   :  { %v724_v30 = vsel %vm721_vm4, %v723_v19, %v719_v22  ;;  %v761_v37 = vadd.f32 %v1612_v36, %v760_v55 }
 0x2f4   :  { %v741_v40 = vsel %vm740_vm6, %v1610_v63, %v737_v28  ;;  %v773_v61 = vmul.f32 %v1614_v49, %v724_v30 }
 0x2f5   :  { %v746_v53 = vsel %vm743_vm7, %v745_v31, %v741_v40  ;;  %v765_v60 = vsel %vm764_vm10, %v1612_v36, %v761_v37 }
 0x2f6   :  { %v772_v59 = vmul.f32 %v746_v53, %v2170_v39  ;;  %v770_v35 = vsel %vm767_vm11, %v769_v51, %v765_v60 }
 0x2f8   :  { %v2215_v48 = vadd.f32 %v773_v61, %v772_v59 }
 0x2fa   :  { %1615 = vtanh.f32 %v2215_v48 }
 0x300   :  { %v1616_v63 = vpop.eup %1615 }
 0x301   :  { %v776_v1 = vmul.f32 %v1616_v63, %v770_v35 }
 0x303   :  { %v777_v2 = vpack.c.bf16 %v776_v1, %v776_v1 }
 0x305   :  { %1500 = vst [vmem:[%s2344_s4 + $0x3] sm:$0x1] %v777_v2  ;;  %790 = vmatmul.bf16.vlgmr.msra.gmra.mxu0 %v777_v2  ;;  %803 = vmatmul.bf16.vlgmr.msra.gmra.mxu1 %v777_v2 }
 0x306   :  { %816 = vmatmul.bf16.vlgmr.msra.gmra.mxu2 %v777_v2  ;;  %829 = vmatmul.bf16.vlgmr.msra.gmra.mxu3 %v777_v2 }
 0x307   :  { %1060 = vmatpush.bf16.msra.mxu0 %v1725_v3  ;;  %1073 = vmatpush.bf16.msra.mxu1 %v1736_v7 }
 0x308   :  { %1086 = vmatpush.bf16.msra.mxu2 %v1738_v8  ;;  %1099 = vmatpush.bf16.msra.mxu3 %v1750_v12 }
 0x30b   :  { %1061 = vmatpush.bf16.msra.mxu0 %v1763_v16  ;;  %1074 = vmatpush.bf16.msra.mxu1 %v1765_v17 }
 0x30c   :  { %1087 = vmatpush.bf16.msra.mxu2 %v1777_v21  ;;  %1100 = vmatpush.bf16.msra.mxu3 %v1788_v25 }
 0x30f   :  { %1062 = vmatpush.bf16.msra.mxu0 %v1800_v29  ;;  %1075 = vmatpush.bf16.msra.mxu1 %v1813_v33 }
 0x310   :  { %1088 = vmatpush.bf16.msra.mxu2 %v1815_v34  ;;  %1101 = vmatpush.bf16.msra.mxu3 %v1827_v38 }
 0x313   :  { %1063 = vmatpush.bf16.msra.mxu0 %v1845_v44  ;;  %1076 = vmatpush.bf16.msra.mxu1 %v1849_v45 }
 0x314   :  { %1089 = vmatpush.bf16.msra.mxu2 %v1851_v46  ;;  %1102 = vmatpush.bf16.msra.mxu3 %v1863_v50 }
 0x317   :  { %1064 = vmatpush.bf16.msra.mxu0 %v1881_v56  ;;  %1077 = vmatpush.bf16.msra.mxu1 %v1885_v57 }
 0x318   :  { %1090 = vmatpush.bf16.msra.mxu2 %v1887_v58  ;;  %1103 = vmatpush.bf16.msra.mxu3 %v1899_v62 }
 0x31b   :  { %1065 = vmatpush.bf16.msra.mxu0 %v1917_v5  ;;  %1078 = vmatpush.bf16.msra.mxu1 %v1924_v9 }
 0x31c   :  { %1091 = vmatpush.bf16.msra.mxu2 %v1926_v10  ;;  %1104 = vmatpush.bf16.msra.mxu3 %v1938_v15 }
 0x31f   :  { %1066 = vmatpush.bf16.msra.mxu0 %v1956_v24  ;;  %1079 = vmatpush.bf16.msra.mxu1 %v1960_v26 }
 0x320   :  { %1092 = vmatpush.bf16.msra.mxu2 %v1962_v27  ;;  %1105 = vmatpush.bf16.msra.mxu3 %v1974_v32 }
 0x323   :  { %1067 = vmatpush.bf16.msra.mxu0 %v1992_v41  ;;  %1080 = vmatpush.bf16.msra.mxu1 %v1996_v42 }
 0x324   :  { %1093 = vmatpush.bf16.msra.mxu2 %v1998_v43  ;;  %1106 = vmatpush.bf16.msra.mxu3 %v2001_v47 }
 0x382   :  { %v791_v39 = vpop.f32.mrf.mxu0  ;;  %v804_v52 = vpop.f32.mrf.mxu1 }
 0x383   :  { %v838_v36 = vrot.slane %v804_v52, 6 }
 0x385   :  { %v841_v19 = vsel %vm283_vm0, %v791_v39, %v838_v36 }
 0x389   :  { %v817_v4 = vpop.f32.mrf.mxu2  ;;  %v830_v6 = vpop.f32.mrf.mxu3 }
 0x38a   :  { %v839_v11 = vrot.slane %v817_v4, 4  ;;  %v840_v13 = vrot.slane %v830_v6, 2  ;;  %v793_v18 = vpop.f32.mrf.mxu0  ;;  %v806_v14 = vpop.f32.mrf.mxu1 }
 0x38c   :  { %v842_v23 = vsel %vm285_vm1, %v839_v11, %v840_v13 }
 0x38d   :  { %v843_v22 = vsel %vm287_vm2, %v841_v19, %v842_v23 }
 0x38e   :  { %v845_v28 = vadd.f32 %v1501_v20, %v843_v22 }
 0x390   :  { %v1502_v30 = vmul.f32 -1.442695, %v845_v28  ;;  %v866_v31 = vrot.slane %v845_v28, 2  ;;  %v890_v40 = vrot.slane %v845_v28, 6  ;;  %v887_v2 = vrot.slane %v845_v28, 4 }
 0x391   :  { %v819_v49 = vpop.f32.mrf.mxu2  ;;  %v832_v53 = vpop.f32.mrf.mxu3 }
 0x392   :  { %1617 = vpow2.f32 %v1502_v30  ;;  %v1503_v55 = vmul.f32 -1.442695, %v866_v31  ;;  %v1504_v59 = vmul.f32 -1.442695, %v890_v40 }
 0x394   :  { %1619 = vpow2.f32 %v1503_v55 }
 0x395   :  { %1621 = vpow2.f32 %v1504_v59 }
 0x398   :  { %v1618_v61 = vpop.eup %1617 }
 0x399   :  { %v849_v37 = vadd.f32 1.0, %v1618_v61 }
 0x39a   :  { %v1620_v0 = vpop.eup %1619 }
 0x39b   :  { %v1622_v54 = vpop.eup %1621  ;;  %1623 = vrcp.f32 %v849_v37  ;;  %v871_v60 = vadd.f32 1.0, %v1620_v0  ;;  %v861_v4 = vand.u32 2147483648, %v849_v37  ;;  %v859_v18 = vand.u32 2147483647, %v849_v37 }
 0x39c   :  { %v895_v51 = vadd.f32 1.0, %v1622_v54  ;;  %vm855_vm13 = vweird.f32 %v849_v37 }
 0x39d   :  { %1625 = vrcp.f32 %v871_v60  ;;  %v883_v14 = vand.u32 2147483648, %v871_v60  ;;  %v881_v23 = vand.u32 2147483647, %v871_v60  ;;  %v862_v22 = vor.u32 1.1754944e-38, %v861_v4 }
 0x39e   :  { %1627 = vrcp.f32 %v895_v51  ;;  %vm860_vm3 = vcmp.eq.f32.partialorder %v859_v18, 8.507059e+37  ;;  %vm877_vm4 = vweird.f32 %v871_v60  ;;  %vm901_vm8 = vweird.f32 %v895_v51 }
 0x39f   :  { %1629 = vtanh.f32 %v887_v2  ;;  %v884_v49 = vor.u32 1.1754944e-38, %v883_v14  ;;  %vm882_vm6 = vcmp.eq.f32.partialorder %v881_v23, 8.507059e+37  ;;  %v907_v2 = vand.u32 2147483648, %v895_v51 }
 0x3a1   :  { %v1624_v63 = vpop.eup %1623 }
 0x3a2   :  { %v851_v35 = vmul.f32 %v1624_v63, %v849_v37  ;;  %vm856_vm12 = vweird.f32 %v1624_v63 }
 0x3a3   :  { %v1626_v1 = vpop.eup %1625  ;;  %vm857_vm15 = vmor %vm855_vm13, %vm856_vm12 }
 0x3a4   :  { %v1628_v39 = vpop.eup %1627  ;;  %v852_v52 = vsub.f32 1.0, %v851_v35  ;;  %v873_v36 = vmul.f32 %v1626_v1, %v871_v60  ;;  %vm878_vm14 = vweird.f32 %v1626_v1  ;;  %v905_v60 = vand.u32 2147483647, %v895_v51 }
 0x3a5   :  { %v897_v6 = vmul.f32 %v1628_v39, %v895_v51  ;;  %vm879_vm5 = vmor %vm877_vm4, %vm878_vm14  ;;  %v1630_v55 = vpop.eup %1629  ;;  %vm902_vm7 = vweird.f32 %v1628_v39 }
 0x3a6   :  { %v874_v11 = vsub.f32 1.0, %v873_v36  ;;  %v853_v13 = vmul.f32 %v1624_v63, %v852_v52  ;;  %vm903_vm9 = vmor %vm901_vm8, %vm902_vm7  ;;  %v908_v52 = vor.u32 1.1754944e-38, %v907_v2  ;;  %vm906_vm10 = vcmp.eq.f32.partialorder %v905_v60, 8.507059e+37 }
 0x3a7   :  { %v898_v30 = vsub.f32 1.0, %v897_v6 }
 0x3a8   :  { %v854_v20 = vadd.f32 %v1624_v63, %v853_v13  ;;  %v875_v19 = vmul.f32 %v1626_v1, %v874_v11 }
 0x3a9   :  { %v899_v61 = vmul.f32 %v1628_v39, %v898_v30 }
 0x3aa   :  { %v858_v28 = vsel %vm857_vm15, %v1624_v63, %v854_v20  ;;  %v876_v31 = vadd.f32 %v1626_v1, %v875_v19 }
 0x3ab   :  { %v863_v40 = vsel %vm860_vm3, %v862_v22, %v858_v28  ;;  %v900_v35 = vadd.f32 %v1628_v39, %v899_v61 }
 0x3ac   :  { %v880_v53 = vsel %vm879_vm5, %v1626_v1, %v876_v31  ;;  %v912_v0 = vmul.f32 %v1630_v55, %v863_v40 }
 0x3ad   :  { %v885_v59 = vsel %vm882_vm6, %v884_v49, %v880_v53  ;;  %v904_v63 = vsel %vm903_vm9, %v1628_v39, %v900_v35 }
 0x3ae   :  { %v911_v37 = vmul.f32 %v885_v59, %v2215_v48  ;;  %v909_v36 = vsel %vm906_vm10, %v908_v52, %v904_v63 }
 0x3b0   :  { %v2260_v54 = vadd.f32 %v912_v0, %v911_v37 }
 0x3b2   :  { %1631 = vtanh.f32 %v2260_v54 }
 0x3b8   :  { %v1632_v1 = vpop.eup %1631 }
 0x3b9   :  { %v915_v4 = vmul.f32 %v1632_v1, %v909_v36 }
 0x3bb   :  { %v916_v6 = vpack.c.bf16 %v915_v4, %v915_v4 }
 0x3bd   :  { %1505 = vst [vmem:[%s2344_s4 + $0x4] sm:$0x1] %v916_v6  ;;  %929 = vmatmul.bf16.vlgmr.msrb.gmra.mxu0 %v916_v6  ;;  %942 = vmatmul.bf16.vlgmr.msrb.gmra.mxu1 %v916_v6 }
 0x3be   :  { %955 = vmatmul.bf16.vlgmr.msrb.gmra.mxu2 %v916_v6  ;;  %968 = vmatmul.bf16.vlgmr.msrb.gmra.mxu3 %v916_v6 }
 0x3bf   :  { %1199 = vmatpush.bf16.msrb.mxu0 %v1725_v3  ;;  %1212 = vmatpush.bf16.msrb.mxu1 %v1736_v7 }
 0x3c0   :  { %1225 = vmatpush.bf16.msrb.mxu2 %v1738_v8  ;;  %1238 = vmatpush.bf16.msrb.mxu3 %v1750_v12 }
 0x3c3   :  { %1200 = vmatpush.bf16.msrb.mxu0 %v1763_v16  ;;  %1213 = vmatpush.bf16.msrb.mxu1 %v1765_v17 }
 0x3c4   :  { %1226 = vmatpush.bf16.msrb.mxu2 %v1777_v21  ;;  %1239 = vmatpush.bf16.msrb.mxu3 %v1788_v25 }
 0x3c7   :  { %1201 = vmatpush.bf16.msrb.mxu0 %v1800_v29  ;;  %1214 = vmatpush.bf16.msrb.mxu1 %v1813_v33  ;;  %v1506_v33 = vld [vmem:[%s2343_s0 + $0x28] sm:$0xff] }
 0x3c8   :  { %1227 = vmatpush.bf16.msrb.mxu2 %v1815_v34  ;;  %1240 = vmatpush.bf16.msrb.mxu3 %v1827_v38 }
 0x3cb   :  { %1202 = vmatpush.bf16.msrb.mxu0 %v1845_v44  ;;  %1215 = vmatpush.bf16.msrb.mxu1 %v1849_v45 }
 0x3cc   :  { %1228 = vmatpush.bf16.msrb.mxu2 %v1851_v46  ;;  %1241 = vmatpush.bf16.msrb.mxu3 %v1863_v50 }
 0x3cf   :  { %1203 = vmatpush.bf16.msrb.mxu0 %v1881_v56  ;;  %1216 = vmatpush.bf16.msrb.mxu1 %v1885_v57 }
 0x3d0   :  { %1229 = vmatpush.bf16.msrb.mxu2 %v1887_v58  ;;  %1242 = vmatpush.bf16.msrb.mxu3 %v1899_v62 }
 0x3d3   :  { %1204 = vmatpush.bf16.msrb.mxu0 %v1917_v5  ;;  %1217 = vmatpush.bf16.msrb.mxu1 %v1924_v9 }
 0x3d4   :  { %1230 = vmatpush.bf16.msrb.mxu2 %v1926_v10  ;;  %1243 = vmatpush.bf16.msrb.mxu3 %v1938_v15 }
 0x3d7   :  { %1205 = vmatpush.bf16.msrb.mxu0 %v1956_v24  ;;  %1218 = vmatpush.bf16.msrb.mxu1 %v1960_v26 }
 0x3d8   :  { %1231 = vmatpush.bf16.msrb.mxu2 %v1962_v27  ;;  %1244 = vmatpush.bf16.msrb.mxu3 %v1974_v32 }
 0x3db   :  { %1206 = vmatpush.bf16.msrb.mxu0 %v1992_v41  ;;  %1219 = vmatpush.bf16.msrb.mxu1 %v1996_v42 }
 0x3dc   :  { %1232 = vmatpush.bf16.msrb.mxu2 %v1998_v43  ;;  %1245 = vmatpush.bf16.msrb.mxu3 %v2001_v47 }
 0x43a   :  { %v930_v3 = vpop.f32.mrf.mxu0  ;;  %v943_v7 = vpop.f32.mrf.mxu1 }
 0x43b   :  { %v977_v8 = vrot.slane %v943_v7, 6 }
 0x43d   :  { %v980_v34 = vsel %vm283_vm0, %v930_v3, %v977_v8 }
 0x441   :  { %v956_v12 = vpop.f32.mrf.mxu2  ;;  %v969_v16 = vpop.f32.mrf.mxu3 }
 0x442   :  { %v978_v17 = vrot.slane %v956_v12, 4  ;;  %v979_v21 = vrot.slane %v969_v16, 2  ;;  %v932_v25 = vpop.f32.mrf.mxu0  ;;  %v945_v29 = vpop.f32.mrf.mxu1 }
 0x444   :  { %v981_v38 = vsel %vm285_vm1, %v978_v17, %v979_v21 }
 0x445   :  { %v982_v44 = vsel %vm287_vm2, %v980_v34, %v981_v38  ;;  %v1511_v34 = vld [vmem:[%s2343_s0 + $0x30] sm:$0xff] }
 0x446   :  { %v984_v45 = vadd.f32 %v1506_v33, %v982_v44 }
 0x448   :  { %v1507_v46 = vmul.f32 -1.442695, %v984_v45  ;;  %v1005_v50 = vrot.slane %v984_v45, 2  ;;  %v1029_v56 = vrot.slane %v984_v45, 6  ;;  %v1026_v43 = vrot.slane %v984_v45, 4 }
 0x449   :  { %v958_v57 = vpop.f32.mrf.mxu2  ;;  %v971_v58 = vpop.f32.mrf.mxu3 }
 0x44a   :  { %1633 = vpow2.f32 %v1507_v46  ;;  %v1508_v62 = vmul.f32 -1.442695, %v1005_v50  ;;  %v1509_v5 = vmul.f32 -1.442695, %v1029_v56 }
 0x44c   :  { %1635 = vpow2.f32 %v1508_v62 }
 0x44d   :  { %1637 = vpow2.f32 %v1509_v5 }
 0x450   :  { %v1634_v9 = vpop.eup %1633 }
 0x451   :  { %v988_v10 = vadd.f32 1.0, %v1634_v9 }
 0x452   :  { %v1636_v15 = vpop.eup %1635 }
 0x453   :  { %v1638_v24 = vpop.eup %1637  ;;  %1639 = vrcp.f32 %v988_v10  ;;  %v1010_v26 = vadd.f32 1.0, %v1636_v15  ;;  %v1000_v39 = vand.u32 2147483648, %v988_v10  ;;  %v998_v14 = vand.u32 2147483647, %v988_v10 }
 0x454   :  { %v1034_v27 = vadd.f32 1.0, %v1638_v24  ;;  %vm994_vm12 = vweird.f32 %v988_v10 }
 0x455   :  { %1641 = vrcp.f32 %v1010_v26  ;;  %v1022_v20 = vand.u32 2147483648, %v1010_v26  ;;  %v1020_v22 = vand.u32 2147483647, %v1010_v26  ;;  %v1001_v30 = vor.u32 1.1754944e-38, %v1000_v39 }
 0x456   :  { %1643 = vrcp.f32 %v1034_v27  ;;  %vm999_vm15 = vcmp.eq.f32.partialorder %v998_v14, 8.507059e+37  ;;  %vm1016_vm3 = vweird.f32 %v1010_v26  ;;  %v1046_v63 = vand.u32 2147483648, %v1034_v27 }
 0x457   :  { %1645 = vtanh.f32 %v1026_v43  ;;  %v1023_v53 = vor.u32 1.1754944e-38, %v1022_v20  ;;  %vm1021_vm5 = vcmp.eq.f32.partialorder %v1020_v22, 8.507059e+37  ;;  %vm1040_vm7 = vweird.f32 %v1034_v27 }
 0x458   :  { %v1044_v52 = vand.u32 2147483647, %v1034_v27  ;;  %v1047_v36 = vor.u32 1.1754944e-38, %v1046_v63 }
 0x459   :  { %v1640_v32 = vpop.eup %1639 }
 0x45a   :  { %v990_v41 = vmul.f32 %v1640_v32, %v988_v10  ;;  %vm995_vm11 = vweird.f32 %v1640_v32  ;;  %vm1045_vm9 = vcmp.eq.f32.partialorder %v1044_v52, 8.507059e+37 }
 0x45b   :  { %v1642_v42 = vpop.eup %1641  ;;  %vm996_vm14 = vmor %vm994_vm12, %vm995_vm11 }
 0x45c   :  { %v1644_v47 = vpop.eup %1643  ;;  %v991_v48 = vsub.f32 1.0, %v990_v41  ;;  %v1012_v51 = vmul.f32 %v1642_v42, %v1010_v26  ;;  %vm1017_vm13 = vweird.f32 %v1642_v42 }
 0x45d   :  { %v1036_v11 = vmul.f32 %v1644_v47, %v1034_v27  ;;  %vm1018_vm4 = vmor %vm1016_vm3, %vm1017_vm13  ;;  %v1646_v59 = vpop.eup %1645  ;;  %vm1041_vm6 = vweird.f32 %v1644_v47 }
 0x45e   :  { %v1013_v13 = vsub.f32 1.0, %v1012_v51  ;;  %v992_v18 = vmul.f32 %v1640_v32, %v991_v48  ;;  %vm1042_vm8 = vmor %vm1040_vm7, %vm1041_vm6 }
 0x45f   :  { %v1037_v28 = vsub.f32 1.0, %v1036_v11 }
 0x460   :  { %v993_v19 = vadd.f32 %v1640_v32, %v992_v18  ;;  %v1014_v23 = vmul.f32 %v1642_v42, %v1013_v13 }
 0x461   :  { %v1038_v37 = vmul.f32 %v1644_v47, %v1037_v28 }
 0x462   :  { %v997_v31 = vsel %vm996_vm14, %v1640_v32, %v993_v19  ;;  %v1015_v40 = vadd.f32 %v1642_v42, %v1014_v23 }
 0x463   :  { %v1002_v49 = vsel %vm999_vm15, %v1001_v30, %v997_v31  ;;  %v1039_v60 = vadd.f32 %v1644_v47, %v1038_v37 }
 0x464   :  { %v1019_v55 = vsel %vm1018_vm4, %v1642_v42, %v1015_v40  ;;  %v1051_v35 = vmul.f32 %v1646_v59, %v1002_v49 }
 0x465   :  { %v1024_v61 = vsel %vm1021_vm5, %v1023_v53, %v1019_v55  ;;  %v1043_v1 = vsel %vm1042_vm8, %v1644_v47, %v1039_v60 }
 0x466   :  { %v1050_v0 = vmul.f32 %v1024_v61, %v2260_v54  ;;  %v1048_v6 = vsel %vm1045_vm9, %v1047_v36, %v1043_v1 }
 0x468   :  { %v2305_v2 = vadd.f32 %v1051_v35, %v1050_v0 }
 0x46a   :  { %1647 = vtanh.f32 %v2305_v2 }
 0x470   :  { %v1648_v4 = vpop.eup %1647 }
 0x471   :  { %v1054_v3 = vmul.f32 %v1648_v4, %v1048_v6 }
 0x473   :  { %v1055_v7 = vpack.c.bf16 %v1054_v3, %v1054_v3 }
 0x475   :  { %1510 = vst [vmem:[%s2344_s4 + $0x5] sm:$0x1] %v1055_v7  ;;  %1068 = vmatmul.bf16.vlgmr.msra.gmra.mxu0 %v1055_v7  ;;  %1081 = vmatmul.bf16.vlgmr.msra.gmra.mxu1 %v1055_v7 }
 0x476   :  { %1094 = vmatmul.bf16.vlgmr.msra.gmra.mxu2 %v1055_v7  ;;  %1107 = vmatmul.bf16.vlgmr.msra.gmra.mxu3 %v1055_v7 }
 0x4f2   :  { %v1069_v54 = vpop.f32.mrf.mxu0  ;;  %v1082_v8 = vpop.f32.mrf.mxu1 }
 0x4f3   :  { %v1116_v12 = vrot.slane %v1082_v8, 6 }
 0x4f5   :  { %v1119_v38 = vsel %vm283_vm0, %v1069_v54, %v1116_v12 }
 0x4f9   :  { %v1095_v16 = vpop.f32.mrf.mxu2  ;;  %v1108_v17 = vpop.f32.mrf.mxu3 }
 0x4fa   :  { %v1117_v21 = vrot.slane %v1095_v16, 4  ;;  %v1118_v25 = vrot.slane %v1108_v17, 2  ;;  %v1071_v29 = vpop.f32.mrf.mxu0  ;;  %v1084_v33 = vpop.f32.mrf.mxu1 }
 0x4fc   :  { %v1120_v44 = vsel %vm285_vm1, %v1117_v21, %v1118_v25 }
 0x4fd   :  { %v1121_v45 = vsel %vm287_vm2, %v1119_v38, %v1120_v44  ;;  %v1516_v38 = vld [vmem:[%s2343_s0 + $0x38] sm:$0xff] }
 0x4fe   :  { %v1123_v46 = vadd.f32 %v1511_v34, %v1121_v45 }
 0x500   :  { %v1512_v50 = vmul.f32 -1.442695, %v1123_v46  ;;  %v1144_v56 = vrot.slane %v1123_v46, 2  ;;  %v1168_v57 = vrot.slane %v1123_v46, 6  ;;  %v1165_v47 = vrot.slane %v1123_v46, 4 }
 0x501   :  { %v1097_v58 = vpop.f32.mrf.mxu2  ;;  %v1110_v62 = vpop.f32.mrf.mxu3 }
 0x502   :  { %1649 = vpow2.f32 %v1512_v50  ;;  %v1513_v5 = vmul.f32 -1.442695, %v1144_v56  ;;  %v1514_v9 = vmul.f32 -1.442695, %v1168_v57 }
 0x504   :  { %1651 = vpow2.f32 %v1513_v5 }
 0x505   :  { %1653 = vpow2.f32 %v1514_v9 }
 0x508   :  { %v1650_v10 = vpop.eup %1649 }
 0x509   :  { %v1127_v15 = vadd.f32 1.0, %v1650_v10 }
 0x50a   :  { %v1652_v24 = vpop.eup %1651 }
 0x50b   :  { %v1654_v26 = vpop.eup %1653  ;;  %1655 = vrcp.f32 %v1127_v15  ;;  %v1149_v27 = vadd.f32 1.0, %v1652_v24  ;;  %v1139_v11 = vand.u32 2147483648, %v1127_v15  ;;  %v1137_v20 = vand.u32 2147483647, %v1127_v15 }
 0x50c   :  { %v1173_v32 = vadd.f32 1.0, %v1654_v26  ;;  %vm1133_vm11 = vweird.f32 %v1127_v15 }
 0x50d   :  { %1657 = vrcp.f32 %v1149_v27  ;;  %v1161_v19 = vand.u32 2147483648, %v1149_v27  ;;  %v1159_v30 = vand.u32 2147483647, %v1149_v27  ;;  %v1140_v28 = vor.u32 1.1754944e-38, %v1139_v11 }
 0x50e   :  { %1659 = vrcp.f32 %v1173_v32  ;;  %vm1138_vm14 = vcmp.eq.f32.partialorder %v1137_v20, 8.507059e+37  ;;  %vm1155_vm15 = vweird.f32 %v1149_v27  ;;  %v1185_v1 = vand.u32 2147483648, %v1173_v32 }
 0x50f   :  { %1661 = vtanh.f32 %v1165_v47  ;;  %v1162_v55 = vor.u32 1.1754944e-38, %v1161_v19  ;;  %vm1160_vm4 = vcmp.eq.f32.partialorder %v1159_v30, 8.507059e+37  ;;  %vm1179_vm6 = vweird.f32 %v1173_v32 }
 0x510   :  { %v1183_v36 = vand.u32 2147483647, %v1173_v32  ;;  %v1186_v6 = vor.u32 1.1754944e-38, %v1185_v1 }
 0x511   :  { %v1656_v41 = vpop.eup %1655 }
 0x512   :  { %v1129_v42 = vmul.f32 %v1656_v41, %v1127_v15  ;;  %vm1134_vm10 = vweird.f32 %v1656_v41  ;;  %vm1184_vm8 = vcmp.eq.f32.partialorder %v1183_v36, 8.507059e+37 }
 0x513   :  { %v1658_v43 = vpop.eup %1657  ;;  %vm1135_vm13 = vmor %vm1133_vm11, %vm1134_vm10 }
 0x514   :  { %v1660_v48 = vpop.eup %1659  ;;  %v1130_v51 = vsub.f32 1.0, %v1129_v42  ;;  %v1151_v39 = vmul.f32 %v1658_v43, %v1149_v27  ;;  %vm1156_vm12 = vweird.f32 %v1658_v43 }
 0x515   :  { %v1175_v13 = vmul.f32 %v1660_v48, %v1173_v32  ;;  %vm1157_vm3 = vmor %vm1155_vm15, %vm1156_vm12  ;;  %v1662_v61 = vpop.eup %1661  ;;  %vm1180_vm5 = vweird.f32 %v1660_v48 }
 0x516   :  { %v1152_v18 = vsub.f32 1.0, %v1151_v39  ;;  %v1131_v14 = vmul.f32 %v1656_v41, %v1130_v51  ;;  %vm1181_vm7 = vmor %vm1179_vm6, %vm1180_vm5 }
 0x517   :  { %v1176_v31 = vsub.f32 1.0, %v1175_v13 }
 0x518   :  { %v1132_v23 = vadd.f32 %v1656_v41, %v1131_v14  ;;  %v1153_v22 = vmul.f32 %v1658_v43, %v1152_v18 }
 0x519   :  { %v1177_v0 = vmul.f32 %v1660_v48, %v1176_v31 }
 0x51a   :  { %v1136_v40 = vsel %vm1135_vm13, %v1656_v41, %v1132_v23  ;;  %v1154_v49 = vadd.f32 %v1658_v43, %v1153_v22 }
 0x51b   :  { %v1141_v53 = vsel %vm1138_vm14, %v1140_v28, %v1136_v40  ;;  %v1178_v52 = vadd.f32 %v1660_v48, %v1177_v0 }
 0x51c   :  { %v1158_v59 = vsel %vm1157_vm3, %v1658_v43, %v1154_v49  ;;  %v1190_v60 = vmul.f32 %v1662_v61, %v1141_v53 }
 0x51d   :  { %v1163_v37 = vsel %vm1160_vm4, %v1162_v55, %v1158_v59  ;;  %v1182_v4 = vsel %vm1181_vm7, %v1660_v48, %v1178_v52 }
 0x51e   :  { %v1189_v35 = vmul.f32 %v1163_v37, %v2305_v2  ;;  %v1187_v7 = vsel %vm1184_vm8, %v1186_v6, %v1182_v4 }
 0x520   :  { %v2318_v63 = vadd.f32 %v1190_v60, %v1189_v35 }
 0x522   :  { %1663 = vtanh.f32 %v2318_v63 }
 0x528   :  { %v1664_v3 = vpop.eup %1663 }
 0x529   :  { %v1193_v54 = vmul.f32 %v1664_v3, %v1187_v7 }
 0x52b   :  { %v1194_v8 = vpack.c.bf16 %v1193_v54, %v1193_v54 }
 0x52d   :  { %1515 = vst [vmem:[%s2344_s4 + $0x6] sm:$0x1] %v1194_v8  ;;  %1207 = vmatmul.bf16.vlgmr.msrb.gmra.mxu0 %v1194_v8  ;;  %1220 = vmatmul.bf16.vlgmr.msrb.gmra.mxu1 %v1194_v8 }
 0x52e   :  { %1233 = vmatmul.bf16.vlgmr.msrb.gmra.mxu2 %v1194_v8  ;;  %1246 = vmatmul.bf16.vlgmr.msrb.gmra.mxu3 %v1194_v8 }
 0x5aa   :  { %v1208_v2 = vpop.f32.mrf.mxu0  ;;  %v1221_v12 = vpop.f32.mrf.mxu1 }
 0x5ab   :  { %v1255_v16 = vrot.slane %v1221_v12, 6 }
 0x5ad   :  { %v1258_v44 = vsel %vm283_vm0, %v1208_v2, %v1255_v16 }
 0x5b1   :  { %v1234_v17 = vpop.f32.mrf.mxu2  ;;  %v1247_v21 = vpop.f32.mrf.mxu3 }
 0x5b2   :  { %v1256_v25 = vrot.slane %v1234_v17, 4  ;;  %v1257_v29 = vrot.slane %v1247_v21, 2  ;;  %v1210_v33 = vpop.f32.mrf.mxu0  ;;  %v1223_v34 = vpop.f32.mrf.mxu1 }
 0x5b4   :  { %v1259_v45 = vsel %vm285_vm1, %v1256_v25, %v1257_v29 }
 0x5b5   :  { %v1260_v46 = vsel %vm287_vm2, %v1258_v44, %v1259_v45 }
 0x5b6   :  { %v1262_v50 = vadd.f32 %v1516_v38, %v1260_v46 }
 0x5b8   :  { %v1517_v56 = vmul.f32 -1.442695, %v1262_v50  ;;  %v1283_v57 = vrot.slane %v1262_v50, 2  ;;  %v1307_v58 = vrot.slane %v1262_v50, 6  ;;  %v1304_v51 = vrot.slane %v1262_v50, 4 }
 0x5b9   :  { %v1236_v62 = vpop.f32.mrf.mxu2  ;;  %v1249_v5 = vpop.f32.mrf.mxu3 }
 0x5ba   :  { %1665 = vpow2.f32 %v1517_v56  ;;  %v1518_v9 = vmul.f32 -1.442695, %v1283_v57  ;;  %v1519_v10 = vmul.f32 -1.442695, %v1307_v58 }
 0x5bc   :  { %1667 = vpow2.f32 %v1518_v9 }
 0x5bd   :  { %1669 = vpow2.f32 %v1519_v10 }
 0x5c0   :  { %v1666_v15 = vpop.eup %1665 }
 0x5c1   :  { %v1266_v24 = vadd.f32 1.0, %v1666_v15 }
 0x5c2   :  { %v1668_v26 = vpop.eup %1667 }
 0x5c3   :  { %v1670_v27 = vpop.eup %1669  ;;  %1671 = vrcp.f32 %v1266_v24  ;;  %v1288_v32 = vadd.f32 1.0, %v1668_v26  ;;  %v1278_v18 = vand.u32 2147483648, %v1266_v24  ;;  %v1276_v20 = vand.u32 2147483647, %v1266_v24 }
 0x5c4   :  { %v1312_v41 = vadd.f32 1.0, %v1670_v27  ;;  %vm1272_vm1 = vweird.f32 %v1266_v24 }
 0x5c5   :  { %1673 = vrcp.f32 %v1288_v32  ;;  %v1300_v22 = vand.u32 2147483648, %v1288_v32  ;;  %v1298_v28 = vand.u32 2147483647, %v1288_v32  ;;  %v1279_v40 = vor.u32 1.1754944e-38, %v1278_v18 }
 0x5c6   :  { %1675 = vrcp.f32 %v1312_v41  ;;  %vm1277_vm10 = vcmp.eq.f32.partialorder %v1276_v20, 8.507059e+37  ;;  %vm1294_vm11 = vweird.f32 %v1288_v32  ;;  %v1324_v4 = vand.u32 2147483648, %v1312_v41 }
 0x5c7   :  { %1677 = vtanh.f32 %v1304_v51  ;;  %v1301_v59 = vor.u32 1.1754944e-38, %v1300_v22  ;;  %vm1299_vm13 = vcmp.eq.f32.partialorder %v1298_v28, 8.507059e+37  ;;  %vm1318_vm15 = vweird.f32 %v1312_v41 }
 0x5c8   :  { %v1322_v6 = vand.u32 2147483647, %v1312_v41  ;;  %v1325_v7 = vor.u32 1.1754944e-38, %v1324_v4 }
 0x5c9   :  { %v1672_v42 = vpop.eup %1671 }
 0x5ca   :  { %v1268_v43 = vmul.f32 %v1672_v42, %v1266_v24  ;;  %vm1273_vm0 = vweird.f32 %v1672_v42  ;;  %vm1323_vm4 = vcmp.eq.f32.partialorder %v1322_v6, 8.507059e+37 }
 0x5cb   :  { %v1674_v47 = vpop.eup %1673  ;;  %vm1274_vm2 = vmor %vm1272_vm1, %vm1273_vm0 }
 0x5cc   :  { %v1269_v48 = vsub.f32 1.0, %v1268_v43  ;;  %v1676_v39 = vpop.eup %1675  ;;  %v1290_v11 = vmul.f32 %v1674_v47, %v1288_v32  ;;  %vm1295_vm9 = vweird.f32 %v1674_v47 }
 0x5cd   :  { %v1314_v14 = vmul.f32 %v1676_v39, %v1312_v41  ;;  %vm1296_vm12 = vmor %vm1294_vm11, %vm1295_vm9  ;;  %v1678_v37 = vpop.eup %1677  ;;  %vm1319_vm14 = vweird.f32 %v1676_v39 }
 0x5ce   :  { %v1270_v13 = vmul.f32 %v1672_v42, %v1269_v48  ;;  %v1291_v19 = vsub.f32 1.0, %v1290_v11  ;;  %vm1320_vm3 = vmor %vm1318_vm15, %vm1319_vm14 }
 0x5cf   :  { %v1315_v49 = vsub.f32 1.0, %v1314_v14 }
 0x5d0   :  { %v1271_v23 = vadd.f32 %v1672_v42, %v1270_v13  ;;  %v1292_v30 = vmul.f32 %v1674_v47, %v1291_v19 }
 0x5d1   :  { %v1316_v35 = vmul.f32 %v1676_v39, %v1315_v49 }
 0x5d2   :  { %v1275_v31 = vsel %vm1274_vm2, %v1672_v42, %v1271_v23  ;;  %v1293_v53 = vadd.f32 %v1674_v47, %v1292_v30 }
 0x5d3   :  { %v1280_v55 = vsel %vm1277_vm10, %v1279_v40, %v1275_v31  ;;  %v1317_v36 = vadd.f32 %v1676_v39, %v1316_v35 }
 0x5d4   :  { %v1297_v61 = vsel %vm1296_vm12, %v1674_v47, %v1293_v53  ;;  %v1329_v52 = vmul.f32 %v1678_v37, %v1280_v55 }
 0x5d5   :  { %v1302_v0 = vsel %vm1299_vm13, %v1301_v59, %v1297_v61  ;;  %v1321_v3 = vsel %vm1320_vm3, %v1676_v39, %v1317_v36 }
 0x5d6   :  { %v1328_v60 = vmul.f32 %v1302_v0, %v2318_v63  ;;  %v1326_v8 = vsel %vm1323_vm4, %v1325_v7, %v1321_v3 }
 0x5d8   :  { %v1330_v1 = vadd.f32 %v1329_v52, %v1328_v60 }
 0x5da   :  { %1679 = vtanh.f32 %v1330_v1  ;;  %1337 = vst [vmem:[#allocation3] sm:$0x3] %v1330_v1 }
 0x5db   :  { %1342 = vst [vmem:[%s2345_s6] sm:$0x3] %v1330_v1 }
 0x5e0   :  { %v1680_v54 = vpop.eup %1679 }
 0x5e1   :  { %v1332_v63 = vmul.f32 %v1680_v54, %v1326_v8 }
 0x5e3   :  { %v1333_v2 = vpack.c.bf16 %v1332_v63, %v1332_v63  ;;  %1336 = vst [vmem:[#allocation2] sm:$0x3] %v1332_v63 }
 0x5e4   :  { %1341 = vst [vmem:[%s2346_s5] sm:$0x3] %v1332_v63 }
 0x5e5   :  { %1520 = vst [vmem:[%s2344_s4 + $0x7] sm:$0x1] %v1333_v2 }

// kernel: seq2seq_forward.17
= control target key start
LH: loop header
LB: loop body
LE: loop exit
PB: predicated region body
PF: predicated region fallthrough
CT: control target
= control target key end

     0   :  { %s231_s1 = inlined_call_operand.vmem [shape: bf16[128,128], index: 1, kind: input, shape index: {}]   ;;  %s232_s2 = inlined_call_operand.vmem [shape: f32[1,128], index: 2, kind: input, shape index: {}]   ;;  %s233_s0 = inlined_call_operand.vmem [shape: bf16[16,128], index: 0, kind: input, shape index: {}]   ;;  %s234_s3 = inlined_call_operand.vmem [shape: f32[16,128], index: 3, kind: output, shape index: {}]  }
   0x1   :  { %v173_v0 = vld [vmem:[%s231_s1 + $0x38] sm:$0xff]  ;;  %v172_v1 = vld [vmem:[%s231_s1 + $0x30] sm:$0xff]  ;;  %v171_v2 = vld [vmem:[%s231_s1 + $0x28] sm:$0xff] }
   0x2   :  { %94 = vmatpush.bf16.msra.mxu0 %v173_v0  ;;  %v170_v3 = vld [vmem:[%s231_s1 + $0x20] sm:$0xff]  ;;  %v169_v4 = vld [vmem:[%s231_s1 + $0x18] sm:$0xff]  ;;  %v168_v5 = vld [vmem:[%s231_s1 + $0x10] sm:$0xff] }
   0x3   :  { %v167_v6 = vld [vmem:[%s231_s1 + $0x8] sm:$0xff]  ;;  %v166_v7 = vld [vmem:[%s231_s1] sm:$0xff] }
   0x4   :  { %v165_v8 = vld [vmem:[%s233_s0] sm:$0xff] }
   0x5   :  { %v174_v9 = vld [vmem:[%s232_s2] ss:$0 sm:$0xff] }
   0x6   :  { %95 = vmatpush.bf16.msra.mxu0 %v172_v1 }
   0xa   :  { %96 = vmatpush.bf16.msra.mxu0 %v171_v2 }
   0xe   :  { %97 = vmatpush.bf16.msra.mxu0 %v170_v3 }
  0x12   :  { %98 = vmatpush.bf16.msra.mxu0 %v169_v4 }
  0x16   :  { %99 = vmatpush.bf16.msra.mxu0 %v168_v5 }
  0x1a   :  { %100 = vmatpush.bf16.msra.mxu0 %v167_v6 }
  0x1e   :  { %101 = vmatpush.bf16.msra.mxu0 %v166_v7 }
  0x21   :  { %102 = vmatmul.bf16.vlgmr.msra.gmra.mxu0 %v165_v8 }
  0x9e   :  { %v103_v10 = vpop.f32.mrf.mxu0 }
  0x9f   :  { %v121_v11 = vadd.f32 %v174_v9, %v103_v10 }
  0xa1   :  { %123 = vst [vmem:[%s234_s3] sm:$0xff] %v121_v11 }
  0xa6   :  { %v105_v12 = vpop.f32.mrf.mxu0 }
  0xa7   :  { %v122_v13 = vadd.f32 %v174_v9, %v105_v12 }
  0xa9   :  { %124 = vst [vmem:[%s234_s3 + $0x8] sm:$0xff] %v122_v13 }

// kernel: seq2seq_forward.16
= control target key start
LH: loop header
LB: loop body
LE: loop exit
PB: predicated region body
PF: predicated region fallthrough
CT: control target
= control target key end

     0   :  { %12 = vsyncpa [#allocation5], 0  ;;  %s2282_s0 = inlined_call_operand.vmem [shape: f32[8,2,512], index: 0, kind: input, shape index: {}]   ;;  %s2283_s1 = inlined_call_operand.vmem [shape: f32[2,128], index: 1, kind: input, shape index: {}]   ;;  %s2284_s2 = inlined_call_operand.vmem [shape: f32[2,128], index: 2, kind: input, shape index: {}]   ;;  %s2285_s3 = inlined_call_operand.hbm [shape: bf16[128,512], index: 3, kind: input, shape index: {}]   ;;  %s2286_s4 = inlined_call_operand.vmem [shape: bf16[8,2,128], index: 4, kind: output, shape index: {0}]   ;;  %s2287_s5 = inlined_call_operand.hbm [shape: f32[2,128], index: 5, kind: output, shape index: {1}]   ;;  %s2288_s6 = inlined_call_operand.hbm [shape: f32[2,128], index: 6, kind: output, shape index: {2}]  }
   0x1   :  { %13 = vsyncpa [#allocation6], 0 }
   0x2   :  { %14 = vsyncpa [#allocation9], 0  ;;  %s25_s23 = sshll.u32 %s2285_s3, 4  ;;  %s1807_s24 = smov [#allocation4]   ;;  %s26_s23 = int_to_ptr.hbm [resolvable:$true] %s25_s23 }
   0x3   :  { %s27_s25 = sshll.u32 %s1807_s24, 4  ;;  %s1808_s26 = smov 256   ;;  %s28_s25 = int_to_ptr.vmem [resolvable:$true] %s27_s25 }
   0x4   :  { %s1809_s27 = smov 16  }
   0x5   :  { %33 = dma.hbm_to_vmem [thread:$0]  %s26_s23, 4096, %s28_s25, [#allocation5], %s1808_s26, %s1808_s26, %s1809_s27  }
   0x6   :  { %1801 = dma.done.wait [#allocation5], 4096  }
   0x7   :  { %1802 = vsyncadd [#allocation5], 4294963200  ;;  %v1512_v0 = vld [vmem:[#allocation4 + $0xe0] sm:$0xf]  ;;  %v1594_v1 = vld [vmem:[#allocation4 + $0xec] sm:$0xf0] }
   0x8   :  { %v1592_v2 = vld [vmem:[#allocation4 + $0xe4] sm:$0xf]  ;;  %v1850_v3 = vor.u32 %v1594_v1, %v1512_v0  ;;  %v1514_v4 = vld [vmem:[#allocation4 + $0xf0] sm:$0xf0]  ;;  %v1520_v5 = vld [vmem:[#allocation4 + $0xe8] sm:$0xf] }
   0x9   :  { %v1595_v6 = vld [vmem:[#allocation4 + $0xf4] sm:$0xf0]  ;;  %v1852_v7 = vor.u32 %v1592_v2, %v1514_v4  ;;  %v1593_v9 = vld [vmem:[#allocation4 + $0xec] sm:$0xf]  ;;  %v1522_v10 = vld [vmem:[#allocation4 + $0xf8] sm:$0xf0] }
   0xa   :  { %v1854_v8 = vor.u32 %v1595_v6, %v1520_v5  ;;  %v1496_v11 = vld [vmem:[#allocation4 + $0xc0] sm:$0xf]  ;;  %242 = vmatpush.bf16.msra.mxu0 %v1850_v3  ;;  %v1857_v12 = vor.u32 %v1593_v9, %v1522_v10  ;;  %v1590_v13 = vld [vmem:[#allocation4 + $0xcc] sm:$0xf0]  ;;  %v1588_v14 = vld [vmem:[#allocation4 + $0xc4] sm:$0xf] }
   0xb   :  { %v1498_v15 = vld [vmem:[#allocation4 + $0xd0] sm:$0xf0]  ;;  %255 = vmatpush.bf16.msra.mxu1 %v1852_v7  ;;  %v1861_v16 = vor.u32 %v1590_v13, %v1496_v11  ;;  %v1504_v18 = vld [vmem:[#allocation4 + $0xc8] sm:$0xf]  ;;  %v1591_v19 = vld [vmem:[#allocation4 + $0xd4] sm:$0xf0] }
   0xc   :  { %268 = vmatpush.bf16.msra.mxu2 %v1854_v8  ;;  %v1863_v17 = vor.u32 %v1588_v14, %v1498_v15  ;;  %v1589_v20 = vld [vmem:[#allocation4 + $0xcc] sm:$0xf]  ;;  %281 = vmatpush.bf16.msra.mxu3 %v1857_v12  ;;  %v1866_v21 = vor.u32 %v1591_v19, %v1504_v18  ;;  %v1506_v22 = vld [vmem:[#allocation4 + $0xd8] sm:$0xf0]  ;;  %v1480_v23 = vld [vmem:[#allocation4 + $0xa0] sm:$0xf] }
   0xd   :  { %v1586_v24 = vld [vmem:[#allocation4 + $0xac] sm:$0xf0]  ;;  %v1868_v25 = vor.u32 %v1589_v20, %v1506_v22  ;;  %v1584_v26 = vld [vmem:[#allocation4 + $0xa4] sm:$0xf]  ;;  %v1482_v27 = vld [vmem:[#allocation4 + $0xb0] sm:$0xf0] }
   0xe   :  { %v1488_v28 = vld [vmem:[#allocation4 + $0xa8] sm:$0xf]  ;;  %243 = vmatpush.bf16.msra.mxu0 %v1861_v16  ;;  %v1871_v29 = vor.u32 %v1586_v24, %v1480_v23  ;;  %v1587_v30 = vld [vmem:[#allocation4 + $0xb4] sm:$0xf0]  ;;  %v1585_v31 = vld [vmem:[#allocation4 + $0xac] sm:$0xf]  ;;  %v1875_v33 = vor.u32 %v1584_v26, %v1482_v27 }
   0xf   :  { %v1490_v32 = vld [vmem:[#allocation4 + $0xb8] sm:$0xf0]  ;;  %256 = vmatpush.bf16.msra.mxu1 %v1863_v17  ;;  %v1877_v34 = vor.u32 %v1587_v30, %v1488_v28  ;;  %v1464_v35 = vld [vmem:[#allocation4 + $0x80] sm:$0xf]  ;;  %v1582_v36 = vld [vmem:[#allocation4 + $0x8c] sm:$0xf0] }
  0x10   :  { %269 = vmatpush.bf16.msra.mxu2 %v1866_v21  ;;  %v1580_v37 = vld [vmem:[#allocation4 + $0x84] sm:$0xf]  ;;  %282 = vmatpush.bf16.msra.mxu3 %v1868_v25  ;;  %v1880_v38 = vor.u32 %v1585_v31, %v1490_v32  ;;  %v1466_v39 = vld [vmem:[#allocation4 + $0x90] sm:$0xf0]  ;;  %v1472_v40 = vld [vmem:[#allocation4 + $0x88] sm:$0xf]  ;;  %v1883_v44 = vor.u32 %v1582_v36, %v1464_v35 }
  0x11   :  { %v1583_v41 = vld [vmem:[#allocation4 + $0x94] sm:$0xf0]  ;;  %v1581_v42 = vld [vmem:[#allocation4 + $0x8c] sm:$0xf]  ;;  %v1474_v43 = vld [vmem:[#allocation4 + $0x98] sm:$0xf0]  ;;  %v1887_v45 = vor.u32 %v1580_v37, %v1466_v39 }
  0x12   :  { %244 = vmatpush.bf16.msra.mxu0 %v1871_v29  ;;  %v1889_v46 = vor.u32 %v1583_v41, %v1472_v40  ;;  %v1448_v47 = vld [vmem:[#allocation4 + $0x60] sm:$0xf]  ;;  %v1578_v48 = vld [vmem:[#allocation4 + $0x6c] sm:$0xf0]  ;;  %v1576_v49 = vld [vmem:[#allocation4 + $0x64] sm:$0xf]  ;;  %v1892_v50 = vor.u32 %v1581_v42, %v1474_v43 }
  0x13   :  { %257 = vmatpush.bf16.msra.mxu1 %v1875_v33  ;;  %v1450_v51 = vld [vmem:[#allocation4 + $0x70] sm:$0xf0]  ;;  %v1456_v52 = vld [vmem:[#allocation4 + $0x68] sm:$0xf]  ;;  %v1579_v53 = vld [vmem:[#allocation4 + $0x74] sm:$0xf0]  ;;  %v1895_v56 = vor.u32 %v1578_v48, %v1448_v47 }
  0x14   :  { %270 = vmatpush.bf16.msra.mxu2 %v1877_v34  ;;  %283 = vmatpush.bf16.msra.mxu3 %v1880_v38  ;;  %v1577_v54 = vld [vmem:[#allocation4 + $0x6c] sm:$0xf]  ;;  %v1458_v55 = vld [vmem:[#allocation4 + $0x78] sm:$0xf0]  ;;  %v1899_v57 = vor.u32 %v1576_v49, %v1450_v51  ;;  %v1901_v58 = vor.u32 %v1579_v53, %v1456_v52  ;;  %v1432_v59 = vld [vmem:[#allocation4 + $0x40] sm:$0xf] }
  0x15   :  { %v1574_v60 = vld [vmem:[#allocation4 + $0x4c] sm:$0xf0]  ;;  %v1572_v61 = vld [vmem:[#allocation4 + $0x44] sm:$0xf]  ;;  %v1904_v62 = vor.u32 %v1577_v54, %v1458_v55  ;;  %v1434_v63 = vld [vmem:[#allocation4 + $0x50] sm:$0xf0] }
  0x16   :  { %245 = vmatpush.bf16.msra.mxu0 %v1883_v44  ;;  %v1440_v0 = vld [vmem:[#allocation4 + $0x48] sm:$0xf]  ;;  %v1575_v1 = vld [vmem:[#allocation4 + $0x54] sm:$0xf0]  ;;  %v1573_v2 = vld [vmem:[#allocation4 + $0x4c] sm:$0xf]  ;;  %v1907_v5 = vor.u32 %v1574_v60, %v1432_v59  ;;  %v1911_v9 = vor.u32 %v1572_v61, %v1434_v63 }
  0x17   :  { %258 = vmatpush.bf16.msra.mxu1 %v1887_v45  ;;  %v1442_v4 = vld [vmem:[#allocation4 + $0x58] sm:$0xf0]  ;;  %v1416_v6 = vld [vmem:[#allocation4 + $0x20] sm:$0xf]  ;;  %v1913_v10 = vor.u32 %v1575_v1, %v1440_v0  ;;  %v1570_v11 = vld [vmem:[#allocation4 + $0x2c] sm:$0xf0] }
  0x18   :  { %271 = vmatpush.bf16.msra.mxu2 %v1889_v46  ;;  %284 = vmatpush.bf16.msra.mxu3 %v1892_v50  ;;  %v1568_v13 = vld [vmem:[#allocation4 + $0x24] sm:$0xf]  ;;  %v1418_v14 = vld [vmem:[#allocation4 + $0x30] sm:$0xf0]  ;;  %v1916_v15 = vor.u32 %v1573_v2, %v1442_v4  ;;  %v1424_v18 = vld [vmem:[#allocation4 + $0x28] sm:$0xf]  ;;  %v1922_v24 = vor.u32 %v1570_v11, %v1416_v6 }
  0x19   :  { %v1571_v19 = vld [vmem:[#allocation4 + $0x34] sm:$0xf0]  ;;  %v42_v20 = vld [vmem:[%s2283_s1] sm:$0x3]  ;;  %v1569_v22 = vld [vmem:[#allocation4 + $0x2c] sm:$0xf]  ;;  %v1926_v26 = vor.u32 %v1568_v13, %v1418_v14 }
  0x1a   :  { %246 = vmatpush.bf16.msra.mxu0 %v1895_v56  ;;  %v1426_v23 = vld [vmem:[#allocation4 + $0x38] sm:$0xf0]  ;;  %43 = vst [vmem:[#allocation2] sm:$0x3] %v42_v20  ;;  %v1928_v27 = vor.u32 %v1571_v19, %v1424_v18  ;;  %v1400_v28 = vld [vmem:[#allocation4] sm:$0xf] }
  0x1b   :  { %259 = vmatpush.bf16.msra.mxu1 %v1899_v57  ;;  %v1566_v30 = vld [vmem:[#allocation4 + $0xc] sm:$0xf0]  ;;  %v1564_v31 = vld [vmem:[#allocation4 + $0x4] sm:$0xf]  ;;  %v1931_v32 = vor.u32 %v1569_v22, %v1426_v23  ;;  %v1402_v35 = vld [vmem:[#allocation4 + $0x10] sm:$0xf0] }
  0x1c   :  { %272 = vmatpush.bf16.msra.mxu2 %v1901_v58  ;;  %285 = vmatpush.bf16.msra.mxu3 %v1904_v62  ;;  %v1408_v36 = vld [vmem:[#allocation4 + $0x8] sm:$0xf]  ;;  %v1567_v37 = vld [vmem:[#allocation4 + $0x14] sm:$0xf0]  ;;  %v1565_v39 = vld [vmem:[#allocation4 + $0xc] sm:$0xf]  ;;  %v1934_v41 = vor.u32 %v1566_v30, %v1400_v28  ;;  %v1938_v42 = vor.u32 %v1564_v31, %v1402_v35 }
  0x1d   :  { %v1410_v40 = vld [vmem:[#allocation4 + $0x18] sm:$0xf0]  ;;  %v1940_v43 = vor.u32 %v1567_v37, %v1408_v36  ;;  %vm301_vm0 = vcmask 1041408   ;;  %vm303_vm1 = vcmask 1045508   ;;  %vm305_vm2 = vcmask 1043456   ;;  %s1381_s11 = sshll.u32 %s2288_s6, 4  ;;  %s1382_s11 = int_to_ptr.hbm [resolvable:$true] %s1381_s11 }
  0x1e   :  { %247 = vmatpush.bf16.msra.mxu0 %v1907_v5  ;;  %v1943_v47 = vor.u32 %v1565_v39, %v1410_v40  ;;  %v44_v54 = vld [vmem:[%s2284_s2] sm:$0x3]  ;;  %s1811_s12 = smov [#allocation7]   ;;  %s1370_s15 = sshll.u32 %s2287_s5, 4  ;;  %s1371_s15 = int_to_ptr.hbm [resolvable:$true] %s1370_s15 }
  0x1f   :  { %260 = vmatpush.bf16.msra.mxu1 %v1911_v9  ;;  %45 = vst [vmem:[#allocation3] sm:$0x3] %v44_v54  ;;  %v80_v2 = vld [vmem:[%s2282_s0] sm:$0xff]  ;;  %s1368_s13 = sshll.u32 %s1811_s12, 4  ;;  %s1369_s13 = int_to_ptr.vmem [resolvable:$true] %s1368_s13 }
  0x20   :  { %273 = vmatpush.bf16.msra.mxu2 %v1913_v10  ;;  %286 = vmatpush.bf16.msra.mxu3 %v1916_v15 }
  0x21   :  { %v78_v48 = vld [vmem:[#allocation2] sm:$0x3] }
  0x22   :  { %248 = vmatpush.bf16.msra.mxu0 %v1922_v24  ;;  %v81_v49 = vpack.c.bf16 %v78_v48, %v78_v48 }
  0x23   :  { %261 = vmatpush.bf16.msra.mxu1 %v1926_v26 }
  0x24   :  { %274 = vmatpush.bf16.msra.mxu2 %v1928_v27  ;;  %287 = vmatpush.bf16.msra.mxu3 %v1931_v32 }
  0x26   :  { %249 = vmatpush.bf16.msra.mxu0 %v1934_v41 }
  0x27   :  { %262 = vmatpush.bf16.msra.mxu1 %v1938_v42 }
  0x28   :  { %275 = vmatpush.bf16.msra.mxu2 %v1940_v43  ;;  %288 = vmatpush.bf16.msra.mxu3 %v1943_v47 }
  0x29   :  { %250 = vmatmul.bf16.vlgmr.msra.gmra.mxu0 %v81_v49 }
  0x2a   :  { %383 = vmatpush.bf16.msrb.mxu0 %v1850_v3  ;;  %263 = vmatmul.bf16.vlgmr.msra.gmra.mxu1 %v81_v49 }
  0x2b   :  { %396 = vmatpush.bf16.msrb.mxu1 %v1852_v7  ;;  %276 = vmatmul.bf16.vlgmr.msra.gmra.mxu2 %v81_v49 }
  0x2c   :  { %289 = vmatmul.bf16.vlgmr.msra.gmra.mxu3 %v81_v49  ;;  %409 = vmatpush.bf16.msrb.mxu2 %v1854_v8 }
  0x2d   :  { %422 = vmatpush.bf16.msrb.mxu3 %v1857_v12 }
  0x2e   :  { %384 = vmatpush.bf16.msrb.mxu0 %v1861_v16 }
  0x2f   :  { %397 = vmatpush.bf16.msrb.mxu1 %v1863_v17 }
  0x30   :  { %410 = vmatpush.bf16.msrb.mxu2 %v1866_v21 }
  0x31   :  { %423 = vmatpush.bf16.msrb.mxu3 %v1868_v25 }
  0x32   :  { %385 = vmatpush.bf16.msrb.mxu0 %v1871_v29 }
  0x33   :  { %398 = vmatpush.bf16.msrb.mxu1 %v1875_v33 }
  0x34   :  { %411 = vmatpush.bf16.msrb.mxu2 %v1877_v34 }
  0x35   :  { %424 = vmatpush.bf16.msrb.mxu3 %v1880_v38 }
  0x36   :  { %386 = vmatpush.bf16.msrb.mxu0 %v1883_v44 }
  0x37   :  { %399 = vmatpush.bf16.msrb.mxu1 %v1887_v45 }
  0x38   :  { %412 = vmatpush.bf16.msrb.mxu2 %v1889_v46 }
  0x39   :  { %425 = vmatpush.bf16.msrb.mxu3 %v1892_v50 }
  0x3a   :  { %387 = vmatpush.bf16.msrb.mxu0 %v1895_v56 }
  0x3b   :  { %400 = vmatpush.bf16.msrb.mxu1 %v1899_v57 }
  0x3c   :  { %413 = vmatpush.bf16.msrb.mxu2 %v1901_v58 }
  0x3d   :  { %426 = vmatpush.bf16.msrb.mxu3 %v1904_v62 }
  0x3e   :  { %388 = vmatpush.bf16.msrb.mxu0 %v1907_v5 }
  0x3f   :  { %401 = vmatpush.bf16.msrb.mxu1 %v1911_v9 }
  0x40   :  { %414 = vmatpush.bf16.msrb.mxu2 %v1913_v10 }
  0x41   :  { %427 = vmatpush.bf16.msrb.mxu3 %v1916_v15 }
  0x42   :  { %389 = vmatpush.bf16.msrb.mxu0 %v1922_v24 }
  0x43   :  { %402 = vmatpush.bf16.msrb.mxu1 %v1926_v26 }
  0x44   :  { %415 = vmatpush.bf16.msrb.mxu2 %v1928_v27 }
  0x45   :  { %428 = vmatpush.bf16.msrb.mxu3 %v1931_v32 }
  0x46   :  { %390 = vmatpush.bf16.msrb.mxu0 %v1934_v41 }
  0x47   :  { %403 = vmatpush.bf16.msrb.mxu1 %v1938_v42 }
  0x48   :  { %416 = vmatpush.bf16.msrb.mxu2 %v1940_v43 }
  0x49   :  { %429 = vmatpush.bf16.msrb.mxu3 %v1943_v47 }
  0x4a   :  { %522 = vmatpush.bf16.msra.mxu0 %v1850_v3 }
  0x4b   :  { %535 = vmatpush.bf16.msra.mxu1 %v1852_v7 }
  0x4c   :  { %548 = vmatpush.bf16.msra.mxu2 %v1854_v8 }
  0x4d   :  { %561 = vmatpush.bf16.msra.mxu3 %v1857_v12 }
  0x4e   :  { %523 = vmatpush.bf16.msra.mxu0 %v1861_v16 }
  0x4f   :  { %536 = vmatpush.bf16.msra.mxu1 %v1863_v17 }
  0x50   :  { %549 = vmatpush.bf16.msra.mxu2 %v1866_v21 }
  0x51   :  { %562 = vmatpush.bf16.msra.mxu3 %v1868_v25 }
  0x52   :  { %524 = vmatpush.bf16.msra.mxu0 %v1871_v29 }
  0x53   :  { %537 = vmatpush.bf16.msra.mxu1 %v1875_v33 }
  0x54   :  { %550 = vmatpush.bf16.msra.mxu2 %v1877_v34 }
  0x55   :  { %563 = vmatpush.bf16.msra.mxu3 %v1880_v38 }
  0x56   :  { %525 = vmatpush.bf16.msra.mxu0 %v1883_v44 }
  0x57   :  { %538 = vmatpush.bf16.msra.mxu1 %v1887_v45 }
  0x58   :  { %551 = vmatpush.bf16.msra.mxu2 %v1889_v46 }
  0x59   :  { %564 = vmatpush.bf16.msra.mxu3 %v1892_v50 }
  0x5a   :  { %526 = vmatpush.bf16.msra.mxu0 %v1895_v56 }
  0x5b   :  { %539 = vmatpush.bf16.msra.mxu1 %v1899_v57 }
  0x5c   :  { %552 = vmatpush.bf16.msra.mxu2 %v1901_v58 }
  0x5d   :  { %565 = vmatpush.bf16.msra.mxu3 %v1904_v62 }
  0x5e   :  { %527 = vmatpush.bf16.msra.mxu0 %v1907_v5 }
  0x5f   :  { %540 = vmatpush.bf16.msra.mxu1 %v1911_v9 }
  0x60   :  { %553 = vmatpush.bf16.msra.mxu2 %v1913_v10 }
  0x61   :  { %566 = vmatpush.bf16.msra.mxu3 %v1916_v15 }
  0x62   :  { %528 = vmatpush.bf16.msra.mxu0 %v1922_v24 }
  0x63   :  { %541 = vmatpush.bf16.msra.mxu1 %v1926_v26 }
  0x64   :  { %554 = vmatpush.bf16.msra.mxu2 %v1928_v27 }
  0x65   :  { %567 = vmatpush.bf16.msra.mxu3 %v1931_v32 }
  0x66   :  { %529 = vmatpush.bf16.msra.mxu0 %v1934_v41 }
  0x67   :  { %542 = vmatpush.bf16.msra.mxu1 %v1938_v42 }
  0x68   :  { %555 = vmatpush.bf16.msra.mxu2 %v1940_v43 }
  0x69   :  { %568 = vmatpush.bf16.msra.mxu3 %v1943_v47 }
  0xa6   :  { %v251_v51 = vpop.f32.mrf.mxu0 }
  0xa7   :  { %v264_v52 = vpop.f32.mrf.mxu1 }
  0xa8   :  { %v298_v53 = vrot.slane %v264_v52, 6 }
  0xaa   :  { %v302_v63 = vsel %vm301_vm0, %v251_v51, %v298_v53 }
  0xae   :  { %v277_v55 = vpop.f32.mrf.mxu2  ;;  %v253_v61 = vpop.f32.mrf.mxu0 }
  0xaf   :  { %v299_v59 = vrot.slane %v277_v55, 4  ;;  %v290_v60 = vpop.f32.mrf.mxu3  ;;  %v266_v1 = vpop.f32.mrf.mxu1 }
  0xb0   :  { %v300_v0 = vrot.slane %v290_v60, 2 }
  0xb2   :  { %v304_v4 = vsel %vm303_vm1, %v299_v59, %v300_v0 }
  0xb3   :  { %v306_v6 = vsel %vm305_vm2, %v302_v63, %v304_v4 }
  0xb4   :  { %v308_v11 = vadd.f32 %v306_v6, %v80_v2 }
  0xb6   :  { %v1526_v13 = vmul.f32 -1.442695, %v308_v11  ;;  %v329_v14 = vrot.slane %v308_v11, 2  ;;  %v353_v18 = vrot.slane %v308_v11, 6  ;;  %v279_v19 = vpop.f32.mrf.mxu2  ;;  %v350_v49 = vrot.slane %v308_v11, 4 }
  0xb7   :  { %v292_v20 = vpop.f32.mrf.mxu3 }
  0xb8   :  { %1601 = vpow2.f32 %v1526_v13  ;;  %v1527_v22 = vmul.f32 -1.442695, %v329_v14  ;;  %v1528_v23 = vmul.f32 -1.442695, %v353_v18  ;;  %v79_v14 = vld [vmem:[#allocation3] sm:$0x3] }
  0xba   :  { %1603 = vpow2.f32 %v1527_v22 }
  0xbb   :  { %1605 = vpow2.f32 %v1528_v23 }
  0xbe   :  { %v1602_v28 = vpop.eup %1601 }
  0xbf   :  { %v312_v30 = vadd.f32 1.0, %v1602_v28 }
  0xc0   :  { %v1604_v31 = vpop.eup %1603 }
  0xc1   :  { %v1606_v35 = vpop.eup %1605  ;;  %1607 = vrcp.f32 %v312_v30  ;;  %v334_v36 = vadd.f32 1.0, %v1604_v31  ;;  %v324_v54 = vand.u32 2147483648, %v312_v30  ;;  %v322_v61 = vand.u32 2147483647, %v312_v30 }
  0xc2   :  { %v358_v37 = vadd.f32 1.0, %v1606_v35  ;;  %vm318_vm4 = vweird.f32 %v312_v30 }
  0xc3   :  { %1609 = vrcp.f32 %v334_v36  ;;  %v346_v63 = vand.u32 2147483648, %v334_v36  ;;  %v344_v2 = vand.u32 2147483647, %v334_v36  ;;  %v325_v4 = vor.u32 1.1754944e-38, %v324_v54 }
  0xc4   :  { %1611 = vrcp.f32 %v358_v37  ;;  %vm323_vm7 = vcmp.eq.f32.partialorder %v322_v61, 8.507059e+37  ;;  %vm340_vm8 = vweird.f32 %v334_v36  ;;  %vm364_vm12 = vweird.f32 %v358_v37 }
  0xc5   :  { %1613 = vtanh.f32 %v350_v49  ;;  %v347_v19 = vor.u32 1.1754944e-38, %v346_v63  ;;  %vm345_vm10 = vcmp.eq.f32.partialorder %v344_v2, 8.507059e+37  ;;  %v370_v49 = vand.u32 2147483648, %v358_v37 }
  0xc7   :  { %v1608_v39 = vpop.eup %1607 }
  0xc8   :  { %v314_v40 = vmul.f32 %v1608_v39, %v312_v30  ;;  %vm319_vm3 = vweird.f32 %v1608_v39 }
  0xc9   :  { %v1610_v48 = vpop.eup %1609  ;;  %vm320_vm6 = vmor %vm318_vm4, %vm319_vm3 }
  0xca   :  { %v1612_v51 = vpop.eup %1611  ;;  %v315_v52 = vsub.f32 1.0, %v314_v40  ;;  %v336_v53 = vmul.f32 %v1610_v48, %v334_v36  ;;  %vm341_vm5 = vweird.f32 %v1610_v48  ;;  %v368_v36 = vand.u32 2147483647, %v358_v37 }
  0xcb   :  { %v360_v55 = vmul.f32 %v1612_v51, %v358_v37  ;;  %vm342_vm9 = vmor %vm340_vm8, %vm341_vm5  ;;  %v1614_v22 = vpop.eup %1613  ;;  %vm365_vm11 = vweird.f32 %v1612_v51 }
  0xcc   :  { %v337_v59 = vsub.f32 1.0, %v336_v53  ;;  %v316_v60 = vmul.f32 %v1608_v39, %v315_v52  ;;  %vm366_vm13 = vmor %vm364_vm12, %vm365_vm11  ;;  %v371_v52 = vor.u32 1.1754944e-38, %v370_v49  ;;  %vm369_vm14 = vcmp.eq.f32.partialorder %v368_v36, 8.507059e+37 }
  0xcd   :  { %v361_v6 = vsub.f32 1.0, %v360_v55 }
  0xce   :  { %v317_v0 = vadd.f32 %v1608_v39, %v316_v60  ;;  %v338_v1 = vmul.f32 %v1610_v48, %v337_v59 }
  0xcf   :  { %v362_v28 = vmul.f32 %v1612_v51, %v361_v6 }
  0xd0   :  { %v321_v11 = vsel %vm320_vm6, %v1608_v39, %v317_v0  ;;  %v339_v13 = vadd.f32 %v1610_v48, %v338_v1 }
  0xd1   :  { %v326_v18 = vsel %vm323_vm7, %v325_v4, %v321_v11  ;;  %v363_v40 = vadd.f32 %v1612_v51, %v362_v28  ;;  %v1529_v4 = vld [vmem:[%s2282_s0 + $0x8] sm:$0xff] }
  0xd2   :  { %v343_v20 = vsel %vm342_vm9, %v1610_v48, %v339_v13  ;;  %v375_v31 = vmul.f32 %v1614_v22, %v326_v18 }
  0xd3   :  { %v348_v23 = vsel %vm345_vm10, %v347_v19, %v343_v20  ;;  %v367_v39 = vsel %vm366_vm13, %v1612_v51, %v363_v40 }
  0xd4   :  { %v374_v30 = vmul.f32 %v348_v23, %v79_v14  ;;  %v372_v53 = vsel %vm369_vm14, %v371_v52, %v367_v39 }
  0xd6   :  { %v2022_v35 = vadd.f32 %v375_v31, %v374_v30 }
  0xd8   :  { %1615 = vtanh.f32 %v2022_v35 }
  0xde   :  { %v1616_v48 = vpop.eup %1615 }
  0xdf   :  { %v378_v54 = vmul.f32 %v1616_v48, %v372_v53 }
  0xe1   :  { %v379_v55 = vpack.c.bf16 %v378_v54, %v378_v54 }
  0xe3   :  { %380 = vst [vmem:[%s2286_s4] sm:$0x1] %v379_v55  ;;  %391 = vmatmul.bf16.vlgmr.msrb.gmra.mxu0 %v379_v55  ;;  %404 = vmatmul.bf16.vlgmr.msrb.gmra.mxu1 %v379_v55 }
  0xe4   :  { %417 = vmatmul.bf16.vlgmr.msrb.gmra.mxu2 %v379_v55  ;;  %430 = vmatmul.bf16.vlgmr.msrb.gmra.mxu3 %v379_v55 }
  0xe5   :  { %661 = vmatpush.bf16.msrb.mxu0 %v1850_v3  ;;  %674 = vmatpush.bf16.msrb.mxu1 %v1852_v7 }
  0xe6   :  { %687 = vmatpush.bf16.msrb.mxu2 %v1854_v8  ;;  %700 = vmatpush.bf16.msrb.mxu3 %v1857_v12 }
  0xe9   :  { %662 = vmatpush.bf16.msrb.mxu0 %v1861_v16  ;;  %675 = vmatpush.bf16.msrb.mxu1 %v1863_v17 }
  0xea   :  { %688 = vmatpush.bf16.msrb.mxu2 %v1866_v21  ;;  %701 = vmatpush.bf16.msrb.mxu3 %v1868_v25 }
  0xed   :  { %663 = vmatpush.bf16.msrb.mxu0 %v1871_v29  ;;  %676 = vmatpush.bf16.msrb.mxu1 %v1875_v33 }
  0xee   :  { %689 = vmatpush.bf16.msrb.mxu2 %v1877_v34  ;;  %702 = vmatpush.bf16.msrb.mxu3 %v1880_v38 }
  0xf1   :  { %664 = vmatpush.bf16.msrb.mxu0 %v1883_v44  ;;  %677 = vmatpush.bf16.msrb.mxu1 %v1887_v45 }
  0xf2   :  { %690 = vmatpush.bf16.msrb.mxu2 %v1889_v46  ;;  %703 = vmatpush.bf16.msrb.mxu3 %v1892_v50 }
  0xf5   :  { %665 = vmatpush.bf16.msrb.mxu0 %v1895_v56  ;;  %678 = vmatpush.bf16.msrb.mxu1 %v1899_v57 }
  0xf6   :  { %691 = vmatpush.bf16.msrb.mxu2 %v1901_v58  ;;  %704 = vmatpush.bf16.msrb.mxu3 %v1904_v62 }
  0xf9   :  { %666 = vmatpush.bf16.msrb.mxu0 %v1907_v5  ;;  %679 = vmatpush.bf16.msrb.mxu1 %v1911_v9 }
  0xfa   :  { %692 = vmatpush.bf16.msrb.mxu2 %v1913_v10  ;;  %705 = vmatpush.bf16.msrb.mxu3 %v1916_v15 }
  0xfd   :  { %667 = vmatpush.bf16.msrb.mxu0 %v1922_v24  ;;  %680 = vmatpush.bf16.msrb.mxu1 %v1926_v26 }
  0xfe   :  { %693 = vmatpush.bf16.msrb.mxu2 %v1928_v27  ;;  %706 = vmatpush.bf16.msrb.mxu3 %v1931_v32 }
 0x101   :  { %668 = vmatpush.bf16.msrb.mxu0 %v1934_v41  ;;  %681 = vmatpush.bf16.msrb.mxu1 %v1938_v42 }
 0x102   :  { %694 = vmatpush.bf16.msrb.mxu2 %v1940_v43  ;;  %707 = vmatpush.bf16.msrb.mxu3 %v1943_v47 }
 0x160   :  { %v392_v37 = vpop.f32.mrf.mxu0  ;;  %v405_v51 = vpop.f32.mrf.mxu1 }
 0x161   :  { %v439_v59 = vrot.slane %v405_v51, 6 }
 0x163   :  { %v442_v6 = vsel %vm301_vm0, %v392_v37, %v439_v59 }
 0x167   :  { %v418_v60 = vpop.f32.mrf.mxu2  ;;  %v431_v61 = vpop.f32.mrf.mxu3 }
 0x168   :  { %v440_v63 = vrot.slane %v418_v60, 4  ;;  %v441_v0 = vrot.slane %v431_v61, 2  ;;  %v394_v1 = vpop.f32.mrf.mxu0  ;;  %v407_v2 = vpop.f32.mrf.mxu1 }
 0x16a   :  { %v443_v11 = vsel %vm303_vm1, %v440_v63, %v441_v0 }
 0x16b   :  { %v444_v13 = vsel %vm305_vm2, %v442_v6, %v443_v11 }
 0x16c   :  { %v446_v14 = vadd.f32 %v1529_v4, %v444_v13 }
 0x16e   :  { %v1530_v18 = vmul.f32 -1.442695, %v446_v14  ;;  %v467_v19 = vrot.slane %v446_v14, 2  ;;  %v491_v20 = vrot.slane %v446_v14, 6  ;;  %v488_v55 = vrot.slane %v446_v14, 4 }
 0x16f   :  { %v420_v22 = vpop.f32.mrf.mxu2  ;;  %v433_v23 = vpop.f32.mrf.mxu3 }
 0x170   :  { %1617 = vpow2.f32 %v1530_v18  ;;  %v1531_v28 = vmul.f32 -1.442695, %v467_v19  ;;  %v1532_v30 = vmul.f32 -1.442695, %v491_v20 }
 0x172   :  { %1619 = vpow2.f32 %v1531_v28 }
 0x173   :  { %1621 = vpow2.f32 %v1532_v30 }
 0x176   :  { %v1618_v31 = vpop.eup %1617 }
 0x177   :  { %v450_v40 = vadd.f32 1.0, %v1618_v31 }
 0x178   :  { %v1620_v49 = vpop.eup %1619 }
 0x179   :  { %v1622_v36 = vpop.eup %1621  ;;  %1623 = vrcp.f32 %v450_v40  ;;  %v472_v39 = vadd.f32 1.0, %v1620_v49  ;;  %v462_v60 = vand.u32 2147483648, %v450_v40  ;;  %v460_v1 = vand.u32 2147483647, %v450_v40 }
 0x17a   :  { %v496_v52 = vadd.f32 1.0, %v1622_v36  ;;  %vm456_vm3 = vweird.f32 %v450_v40 }
 0x17b   :  { %1625 = vrcp.f32 %v472_v39  ;;  %v484_v2 = vand.u32 2147483648, %v472_v39  ;;  %v482_v11 = vand.u32 2147483647, %v472_v39  ;;  %v463_v13 = vor.u32 1.1754944e-38, %v462_v60 }
 0x17c   :  { %1627 = vrcp.f32 %v496_v52  ;;  %vm461_vm6 = vcmp.eq.f32.partialorder %v460_v1, 8.507059e+37  ;;  %vm478_vm7 = vweird.f32 %v472_v39  ;;  %vm502_vm11 = vweird.f32 %v496_v52 }
 0x17d   :  { %1629 = vtanh.f32 %v488_v55  ;;  %v485_v22 = vor.u32 1.1754944e-38, %v484_v2  ;;  %vm483_vm9 = vcmp.eq.f32.partialorder %v482_v11, 8.507059e+37  ;;  %v508_v55 = vand.u32 2147483648, %v496_v52  ;;  %v1534_v11 = vld [vmem:[%s2282_s0 + $0x10] sm:$0xff] }
 0x17f   :  { %v1624_v48 = vpop.eup %1623 }
 0x180   :  { %v452_v53 = vmul.f32 %v1624_v48, %v450_v40  ;;  %vm457_vm15 = vweird.f32 %v1624_v48 }
 0x181   :  { %v1626_v54 = vpop.eup %1625  ;;  %vm458_vm5 = vmor %vm456_vm3, %vm457_vm15 }
 0x182   :  { %v1628_v37 = vpop.eup %1627  ;;  %v453_v51 = vsub.f32 1.0, %v452_v53  ;;  %v474_v59 = vmul.f32 %v1626_v54, %v472_v39  ;;  %vm479_vm4 = vweird.f32 %v1626_v54  ;;  %v506_v39 = vand.u32 2147483647, %v496_v52 }
 0x183   :  { %v498_v61 = vmul.f32 %v1628_v37, %v496_v52  ;;  %vm480_vm8 = vmor %vm478_vm7, %vm479_vm4  ;;  %v1630_v28 = vpop.eup %1629  ;;  %vm503_vm10 = vweird.f32 %v1628_v37 }
 0x184   :  { %v475_v63 = vsub.f32 1.0, %v474_v59  ;;  %v454_v0 = vmul.f32 %v1624_v48, %v453_v51  ;;  %vm504_vm12 = vmor %vm502_vm11, %vm503_vm10  ;;  %v509_v51 = vor.u32 1.1754944e-38, %v508_v55  ;;  %vm507_vm13 = vcmp.eq.f32.partialorder %v506_v39, 8.507059e+37 }
 0x185   :  { %v499_v18 = vsub.f32 1.0, %v498_v61 }
 0x186   :  { %v455_v4 = vadd.f32 %v1624_v48, %v454_v0  ;;  %v476_v6 = vmul.f32 %v1626_v54, %v475_v63 }
 0x187   :  { %v500_v31 = vmul.f32 %v1628_v37, %v499_v18 }
 0x188   :  { %v459_v14 = vsel %vm458_vm5, %v1624_v48, %v455_v4  ;;  %v477_v19 = vadd.f32 %v1626_v54, %v476_v6 }
 0x189   :  { %v464_v20 = vsel %vm461_vm6, %v463_v13, %v459_v14  ;;  %v501_v53 = vadd.f32 %v1628_v37, %v500_v31 }
 0x18a   :  { %v481_v23 = vsel %vm480_vm8, %v1626_v54, %v477_v19  ;;  %v513_v49 = vmul.f32 %v1630_v28, %v464_v20 }
 0x18b   :  { %v486_v30 = vsel %vm483_vm9, %v485_v22, %v481_v23  ;;  %v505_v48 = vsel %vm504_vm12, %v1628_v37, %v501_v53 }
 0x18c   :  { %v512_v40 = vmul.f32 %v486_v30, %v2022_v35  ;;  %v510_v59 = vsel %vm507_vm13, %v509_v51, %v505_v48 }
 0x18e   :  { %v2067_v36 = vadd.f32 %v513_v49, %v512_v40 }
 0x190   :  { %1631 = vtanh.f32 %v2067_v36 }
 0x196   :  { %v1632_v54 = vpop.eup %1631 }
 0x197   :  { %v516_v60 = vmul.f32 %v1632_v54, %v510_v59 }
 0x199   :  { %v517_v61 = vpack.c.bf16 %v516_v60, %v516_v60 }
 0x19b   :  { %1533 = vst [vmem:[%s2286_s4 + $0x1] sm:$0x1] %v517_v61  ;;  %530 = vmatmul.bf16.vlgmr.msra.gmra.mxu0 %v517_v61  ;;  %543 = vmatmul.bf16.vlgmr.msra.gmra.mxu1 %v517_v61 }
 0x19c   :  { %556 = vmatmul.bf16.vlgmr.msra.gmra.mxu2 %v517_v61  ;;  %569 = vmatmul.bf16.vlgmr.msra.gmra.mxu3 %v517_v61 }
 0x19d   :  { %800 = vmatpush.bf16.msra.mxu0 %v1850_v3  ;;  %813 = vmatpush.bf16.msra.mxu1 %v1852_v7 }
 0x19e   :  { %826 = vmatpush.bf16.msra.mxu2 %v1854_v8  ;;  %839 = vmatpush.bf16.msra.mxu3 %v1857_v12 }
 0x1a1   :  { %801 = vmatpush.bf16.msra.mxu0 %v1861_v16  ;;  %814 = vmatpush.bf16.msra.mxu1 %v1863_v17 }
 0x1a2   :  { %827 = vmatpush.bf16.msra.mxu2 %v1866_v21  ;;  %840 = vmatpush.bf16.msra.mxu3 %v1868_v25 }
 0x1a5   :  { %802 = vmatpush.bf16.msra.mxu0 %v1871_v29  ;;  %815 = vmatpush.bf16.msra.mxu1 %v1875_v33 }
 0x1a6   :  { %828 = vmatpush.bf16.msra.mxu2 %v1877_v34  ;;  %841 = vmatpush.bf16.msra.mxu3 %v1880_v38 }
 0x1a9   :  { %803 = vmatpush.bf16.msra.mxu0 %v1883_v44  ;;  %816 = vmatpush.bf16.msra.mxu1 %v1887_v45 }
 0x1aa   :  { %829 = vmatpush.bf16.msra.mxu2 %v1889_v46  ;;  %842 = vmatpush.bf16.msra.mxu3 %v1892_v50 }
 0x1ad   :  { %804 = vmatpush.bf16.msra.mxu0 %v1895_v56  ;;  %817 = vmatpush.bf16.msra.mxu1 %v1899_v57 }
 0x1ae   :  { %830 = vmatpush.bf16.msra.mxu2 %v1901_v58  ;;  %843 = vmatpush.bf16.msra.mxu3 %v1904_v62 }
 0x1b1   :  { %805 = vmatpush.bf16.msra.mxu0 %v1907_v5  ;;  %818 = vmatpush.bf16.msra.mxu1 %v1911_v9 }
 0x1b2   :  { %831 = vmatpush.bf16.msra.mxu2 %v1913_v10  ;;  %844 = vmatpush.bf16.msra.mxu3 %v1916_v15 }
 0x1b5   :  { %806 = vmatpush.bf16.msra.mxu0 %v1922_v24  ;;  %819 = vmatpush.bf16.msra.mxu1 %v1926_v26 }
 0x1b6   :  { %832 = vmatpush.bf16.msra.mxu2 %v1928_v27  ;;  %845 = vmatpush.bf16.msra.mxu3 %v1931_v32 }
 0x1b9   :  { %807 = vmatpush.bf16.msra.mxu0 %v1934_v41  ;;  %820 = vmatpush.bf16.msra.mxu1 %v1938_v42 }
 0x1ba   :  { %833 = vmatpush.bf16.msra.mxu2 %v1940_v43  ;;  %846 = vmatpush.bf16.msra.mxu3 %v1943_v47 }
 0x218   :  { %v531_v35 = vpop.f32.mrf.mxu0  ;;  %v544_v52 = vpop.f32.mrf.mxu1 }
 0x219   :  { %v578_v37 = vrot.slane %v544_v52, 6 }
 0x21b   :  { %v581_v13 = vsel %vm301_vm0, %v531_v35, %v578_v37 }
 0x21f   :  { %v557_v63 = vpop.f32.mrf.mxu2  ;;  %v570_v0 = vpop.f32.mrf.mxu3 }
 0x220   :  { %v579_v1 = vrot.slane %v557_v63, 4  ;;  %v580_v2 = vrot.slane %v570_v0, 2  ;;  %v533_v4 = vpop.f32.mrf.mxu0  ;;  %v546_v6 = vpop.f32.mrf.mxu1 }
 0x222   :  { %v582_v18 = vsel %vm303_vm1, %v579_v1, %v580_v2 }
 0x223   :  { %v583_v14 = vsel %vm305_vm2, %v581_v13, %v582_v18 }
 0x224   :  { %v585_v19 = vadd.f32 %v1534_v11, %v583_v14 }
 0x226   :  { %v1535_v20 = vmul.f32 -1.442695, %v585_v19  ;;  %v606_v22 = vrot.slane %v585_v19, 2  ;;  %v630_v23 = vrot.slane %v585_v19, 6  ;;  %v627_v61 = vrot.slane %v585_v19, 4 }
 0x227   :  { %v559_v28 = vpop.f32.mrf.mxu2  ;;  %v572_v30 = vpop.f32.mrf.mxu3 }
 0x228   :  { %1633 = vpow2.f32 %v1535_v20  ;;  %v1536_v31 = vmul.f32 -1.442695, %v606_v22  ;;  %v1537_v40 = vmul.f32 -1.442695, %v630_v23 }
 0x22a   :  { %1635 = vpow2.f32 %v1536_v31 }
 0x22b   :  { %1637 = vpow2.f32 %v1537_v40 }
 0x22e   :  { %v1634_v49 = vpop.eup %1633 }
 0x22f   :  { %v589_v53 = vadd.f32 1.0, %v1634_v49 }
 0x230   :  { %v1636_v55 = vpop.eup %1635 }
 0x231   :  { %v1638_v39 = vpop.eup %1637  ;;  %1639 = vrcp.f32 %v589_v53  ;;  %v611_v48 = vadd.f32 1.0, %v1636_v55  ;;  %v601_v63 = vand.u32 2147483648, %v589_v53  ;;  %v599_v4 = vand.u32 2147483647, %v589_v53 }
 0x232   :  { %v635_v51 = vadd.f32 1.0, %v1638_v39  ;;  %vm595_vm15 = vweird.f32 %v589_v53 }
 0x233   :  { %1641 = vrcp.f32 %v611_v48  ;;  %v623_v6 = vand.u32 2147483648, %v611_v48  ;;  %v621_v18 = vand.u32 2147483647, %v611_v48  ;;  %v602_v14 = vor.u32 1.1754944e-38, %v601_v63 }
 0x234   :  { %1643 = vrcp.f32 %v635_v51  ;;  %vm600_vm5 = vcmp.eq.f32.partialorder %v599_v4, 8.507059e+37  ;;  %vm617_vm6 = vweird.f32 %v611_v48  ;;  %vm641_vm10 = vweird.f32 %v635_v51 }
 0x235   :  { %1645 = vtanh.f32 %v627_v61  ;;  %v624_v28 = vor.u32 1.1754944e-38, %v623_v6  ;;  %vm622_vm8 = vcmp.eq.f32.partialorder %v621_v18, 8.507059e+37  ;;  %v647_v61 = vand.u32 2147483648, %v635_v51  ;;  %v1539_v18 = vld [vmem:[%s2282_s0 + $0x18] sm:$0xff] }
 0x237   :  { %v1640_v54 = vpop.eup %1639 }
 0x238   :  { %v591_v59 = vmul.f32 %v1640_v54, %v589_v53  ;;  %vm596_vm14 = vweird.f32 %v1640_v54 }
 0x239   :  { %v1642_v60 = vpop.eup %1641  ;;  %vm597_vm4 = vmor %vm595_vm15, %vm596_vm14 }
 0x23a   :  { %v1644_v35 = vpop.eup %1643  ;;  %v592_v52 = vsub.f32 1.0, %v591_v59  ;;  %v613_v37 = vmul.f32 %v1642_v60, %v611_v48  ;;  %vm618_vm3 = vweird.f32 %v1642_v60  ;;  %v645_v48 = vand.u32 2147483647, %v635_v51 }
 0x23b   :  { %v637_v0 = vmul.f32 %v1644_v35, %v635_v51  ;;  %vm619_vm7 = vmor %vm617_vm6, %vm618_vm3  ;;  %v1646_v31 = vpop.eup %1645  ;;  %vm642_vm9 = vweird.f32 %v1644_v35 }
 0x23c   :  { %v614_v1 = vsub.f32 1.0, %v613_v37  ;;  %v593_v2 = vmul.f32 %v1640_v54, %v592_v52  ;;  %vm643_vm11 = vmor %vm641_vm10, %vm642_vm9  ;;  %v648_v52 = vor.u32 1.1754944e-38, %v647_v61  ;;  %vm646_vm12 = vcmp.eq.f32.partialorder %v645_v48, 8.507059e+37 }
 0x23d   :  { %v638_v20 = vsub.f32 1.0, %v637_v0 }
 0x23e   :  { %v594_v11 = vadd.f32 %v1640_v54, %v593_v2  ;;  %v615_v13 = vmul.f32 %v1642_v60, %v614_v1 }
 0x23f   :  { %v639_v49 = vmul.f32 %v1644_v35, %v638_v20 }
 0x240   :  { %v598_v19 = vsel %vm597_vm4, %v1640_v54, %v594_v11  ;;  %v616_v22 = vadd.f32 %v1642_v60, %v615_v13 }
 0x241   :  { %v603_v23 = vsel %vm600_vm5, %v602_v14, %v598_v19  ;;  %v640_v59 = vadd.f32 %v1644_v35, %v639_v49 }
 0x242   :  { %v620_v30 = vsel %vm619_vm7, %v1642_v60, %v616_v22  ;;  %v652_v55 = vmul.f32 %v1646_v31, %v603_v23 }
 0x243   :  { %v625_v40 = vsel %vm622_vm8, %v624_v28, %v620_v30  ;;  %v644_v54 = vsel %vm643_vm11, %v1644_v35, %v640_v59 }
 0x244   :  { %v651_v53 = vmul.f32 %v625_v40, %v2067_v36  ;;  %v649_v37 = vsel %vm646_vm12, %v648_v52, %v644_v54 }
 0x246   :  { %v2112_v39 = vadd.f32 %v652_v55, %v651_v53 }
 0x248   :  { %1647 = vtanh.f32 %v2112_v39 }
 0x24e   :  { %v1648_v60 = vpop.eup %1647 }
 0x24f   :  { %v655_v63 = vmul.f32 %v1648_v60, %v649_v37 }
 0x251   :  { %v656_v0 = vpack.c.bf16 %v655_v63, %v655_v63 }
 0x253   :  { %1538 = vst [vmem:[%s2286_s4 + $0x2] sm:$0x1] %v656_v0  ;;  %669 = vmatmul.bf16.vlgmr.msrb.gmra.mxu0 %v656_v0  ;;  %682 = vmatmul.bf16.vlgmr.msrb.gmra.mxu1 %v656_v0 }
 0x254   :  { %695 = vmatmul.bf16.vlgmr.msrb.gmra.mxu2 %v656_v0  ;;  %708 = vmatmul.bf16.vlgmr.msrb.gmra.mxu3 %v656_v0 }
 0x255   :  { %939 = vmatpush.bf16.msrb.mxu0 %v1850_v3  ;;  %952 = vmatpush.bf16.msrb.mxu1 %v1852_v7 }
 0x256   :  { %965 = vmatpush.bf16.msrb.mxu2 %v1854_v8  ;;  %978 = vmatpush.bf16.msrb.mxu3 %v1857_v12 }
 0x259   :  { %940 = vmatpush.bf16.msrb.mxu0 %v1861_v16  ;;  %953 = vmatpush.bf16.msrb.mxu1 %v1863_v17 }
 0x25a   :  { %966 = vmatpush.bf16.msrb.mxu2 %v1866_v21  ;;  %979 = vmatpush.bf16.msrb.mxu3 %v1868_v25 }
 0x25d   :  { %941 = vmatpush.bf16.msrb.mxu0 %v1871_v29  ;;  %954 = vmatpush.bf16.msrb.mxu1 %v1875_v33 }
 0x25e   :  { %967 = vmatpush.bf16.msrb.mxu2 %v1877_v34  ;;  %980 = vmatpush.bf16.msrb.mxu3 %v1880_v38 }
 0x261   :  { %942 = vmatpush.bf16.msrb.mxu0 %v1883_v44  ;;  %955 = vmatpush.bf16.msrb.mxu1 %v1887_v45 }
 0x262   :  { %968 = vmatpush.bf16.msrb.mxu2 %v1889_v46  ;;  %981 = vmatpush.bf16.msrb.mxu3 %v1892_v50 }
 0x265   :  { %943 = vmatpush.bf16.msrb.mxu0 %v1895_v56  ;;  %956 = vmatpush.bf16.msrb.mxu1 %v1899_v57 }
 0x266   :  { %969 = vmatpush.bf16.msrb.mxu2 %v1901_v58  ;;  %982 = vmatpush.bf16.msrb.mxu3 %v1904_v62 }
 0x269   :  { %944 = vmatpush.bf16.msrb.mxu0 %v1907_v5  ;;  %957 = vmatpush.bf16.msrb.mxu1 %v1911_v9 }
 0x26a   :  { %970 = vmatpush.bf16.msrb.mxu2 %v1913_v10  ;;  %983 = vmatpush.bf16.msrb.mxu3 %v1916_v15 }
 0x26d   :  { %945 = vmatpush.bf16.msrb.mxu0 %v1922_v24  ;;  %958 = vmatpush.bf16.msrb.mxu1 %v1926_v26 }
 0x26e   :  { %971 = vmatpush.bf16.msrb.mxu2 %v1928_v27  ;;  %984 = vmatpush.bf16.msrb.mxu3 %v1931_v32 }
 0x271   :  { %946 = vmatpush.bf16.msrb.mxu0 %v1934_v41  ;;  %959 = vmatpush.bf16.msrb.mxu1 %v1938_v42 }
 0x272   :  { %972 = vmatpush.bf16.msrb.mxu2 %v1940_v43  ;;  %985 = vmatpush.bf16.msrb.mxu3 %v1943_v47 }
 0x2d0   :  { %v670_v36 = vpop.f32.mrf.mxu0  ;;  %v683_v51 = vpop.f32.mrf.mxu1 }
 0x2d1   :  { %v717_v35 = vrot.slane %v683_v51, 6 }
 0x2d3   :  { %v720_v14 = vsel %vm301_vm0, %v670_v36, %v717_v35 }
 0x2d7   :  { %v696_v1 = vpop.f32.mrf.mxu2  ;;  %v709_v2 = vpop.f32.mrf.mxu3 }
 0x2d8   :  { %v718_v4 = vrot.slane %v696_v1, 4  ;;  %v719_v6 = vrot.slane %v709_v2, 2  ;;  %v672_v11 = vpop.f32.mrf.mxu0  ;;  %v685_v13 = vpop.f32.mrf.mxu1 }
 0x2da   :  { %v721_v20 = vsel %vm303_vm1, %v718_v4, %v719_v6 }
 0x2db   :  { %v722_v19 = vsel %vm305_vm2, %v720_v14, %v721_v20 }
 0x2dc   :  { %v724_v22 = vadd.f32 %v1539_v18, %v722_v19 }
 0x2de   :  { %v1540_v23 = vmul.f32 -1.442695, %v724_v22  ;;  %v745_v28 = vrot.slane %v724_v22, 2  ;;  %v769_v30 = vrot.slane %v724_v22, 6  ;;  %v766_v0 = vrot.slane %v724_v22, 4 }
 0x2df   :  { %v698_v31 = vpop.f32.mrf.mxu2  ;;  %v711_v40 = vpop.f32.mrf.mxu3 }
 0x2e0   :  { %1649 = vpow2.f32 %v1540_v23  ;;  %v1541_v49 = vmul.f32 -1.442695, %v745_v28  ;;  %v1542_v53 = vmul.f32 -1.442695, %v769_v30 }
 0x2e2   :  { %1651 = vpow2.f32 %v1541_v49 }
 0x2e3   :  { %1653 = vpow2.f32 %v1542_v53 }
 0x2e6   :  { %v1650_v55 = vpop.eup %1649 }
 0x2e7   :  { %v728_v59 = vadd.f32 1.0, %v1650_v55 }
 0x2e8   :  { %v1652_v61 = vpop.eup %1651 }
 0x2e9   :  { %v1654_v48 = vpop.eup %1653  ;;  %1655 = vrcp.f32 %v728_v59  ;;  %v750_v54 = vadd.f32 1.0, %v1652_v61  ;;  %v740_v1 = vand.u32 2147483648, %v728_v59  ;;  %v738_v11 = vand.u32 2147483647, %v728_v59 }
 0x2ea   :  { %v774_v52 = vadd.f32 1.0, %v1654_v48  ;;  %vm734_vm14 = vweird.f32 %v728_v59 }
 0x2eb   :  { %1657 = vrcp.f32 %v750_v54  ;;  %v762_v13 = vand.u32 2147483648, %v750_v54  ;;  %v760_v20 = vand.u32 2147483647, %v750_v54  ;;  %v741_v19 = vor.u32 1.1754944e-38, %v740_v1 }
 0x2ec   :  { %1659 = vrcp.f32 %v774_v52  ;;  %vm739_vm4 = vcmp.eq.f32.partialorder %v738_v11, 8.507059e+37  ;;  %vm756_vm5 = vweird.f32 %v750_v54  ;;  %vm780_vm9 = vweird.f32 %v774_v52 }
 0x2ed   :  { %1661 = vtanh.f32 %v766_v0  ;;  %v763_v31 = vor.u32 1.1754944e-38, %v762_v13  ;;  %vm761_vm7 = vcmp.eq.f32.partialorder %v760_v20, 8.507059e+37  ;;  %v786_v0 = vand.u32 2147483648, %v774_v52  ;;  %v1544_v20 = vld [vmem:[%s2282_s0 + $0x20] sm:$0xff] }
 0x2ef   :  { %v1656_v60 = vpop.eup %1655 }
 0x2f0   :  { %v730_v37 = vmul.f32 %v1656_v60, %v728_v59  ;;  %vm735_vm13 = vweird.f32 %v1656_v60 }
 0x2f1   :  { %v1658_v63 = vpop.eup %1657  ;;  %vm736_vm3 = vmor %vm734_vm14, %vm735_vm13 }
 0x2f2   :  { %v1660_v36 = vpop.eup %1659  ;;  %v731_v51 = vsub.f32 1.0, %v730_v37  ;;  %v752_v35 = vmul.f32 %v1658_v63, %v750_v54  ;;  %vm757_vm15 = vweird.f32 %v1658_v63  ;;  %v784_v54 = vand.u32 2147483647, %v774_v52 }
 0x2f3   :  { %v776_v2 = vmul.f32 %v1660_v36, %v774_v52  ;;  %vm758_vm6 = vmor %vm756_vm5, %vm757_vm15  ;;  %v1662_v49 = vpop.eup %1661  ;;  %vm781_vm8 = vweird.f32 %v1660_v36 }
 0x2f4   :  { %v753_v4 = vsub.f32 1.0, %v752_v35  ;;  %v732_v6 = vmul.f32 %v1656_v60, %v731_v51  ;;  %vm782_vm10 = vmor %vm780_vm9, %vm781_vm8  ;;  %v787_v51 = vor.u32 1.1754944e-38, %v786_v0  ;;  %vm785_vm11 = vcmp.eq.f32.partialorder %v784_v54, 8.507059e+37 }
 0x2f5   :  { %v777_v23 = vsub.f32 1.0, %v776_v2 }
 0x2f6   :  { %v733_v18 = vadd.f32 %v1656_v60, %v732_v6  ;;  %v754_v14 = vmul.f32 %v1658_v63, %v753_v4 }
 0x2f7   :  { %v778_v55 = vmul.f32 %v1660_v36, %v777_v23 }
 0x2f8   :  { %v737_v22 = vsel %vm736_vm3, %v1656_v60, %v733_v18  ;;  %v755_v28 = vadd.f32 %v1658_v63, %v754_v14 }
 0x2f9   :  { %v742_v30 = vsel %vm739_vm4, %v741_v19, %v737_v22  ;;  %v779_v37 = vadd.f32 %v1660_v36, %v778_v55 }
 0x2fa   :  { %v759_v40 = vsel %vm758_vm6, %v1658_v63, %v755_v28  ;;  %v791_v61 = vmul.f32 %v1662_v49, %v742_v30 }
 0x2fb   :  { %v764_v53 = vsel %vm761_vm7, %v763_v31, %v759_v40  ;;  %v783_v60 = vsel %vm782_vm10, %v1660_v36, %v779_v37 }
 0x2fc   :  { %v790_v59 = vmul.f32 %v764_v53, %v2112_v39  ;;  %v788_v35 = vsel %vm785_vm11, %v787_v51, %v783_v60 }
 0x2fe   :  { %v2157_v48 = vadd.f32 %v791_v61, %v790_v59 }
 0x300   :  { %1663 = vtanh.f32 %v2157_v48 }
 0x306   :  { %v1664_v63 = vpop.eup %1663 }
 0x307   :  { %v794_v1 = vmul.f32 %v1664_v63, %v788_v35 }
 0x309   :  { %v795_v2 = vpack.c.bf16 %v794_v1, %v794_v1 }
 0x30b   :  { %1543 = vst [vmem:[%s2286_s4 + $0x3] sm:$0x1] %v795_v2  ;;  %808 = vmatmul.bf16.vlgmr.msra.gmra.mxu0 %v795_v2  ;;  %821 = vmatmul.bf16.vlgmr.msra.gmra.mxu1 %v795_v2 }
 0x30c   :  { %834 = vmatmul.bf16.vlgmr.msra.gmra.mxu2 %v795_v2  ;;  %847 = vmatmul.bf16.vlgmr.msra.gmra.mxu3 %v795_v2 }
 0x30d   :  { %1078 = vmatpush.bf16.msra.mxu0 %v1850_v3  ;;  %1091 = vmatpush.bf16.msra.mxu1 %v1852_v7 }
 0x30e   :  { %1104 = vmatpush.bf16.msra.mxu2 %v1854_v8  ;;  %1117 = vmatpush.bf16.msra.mxu3 %v1857_v12 }
 0x311   :  { %1079 = vmatpush.bf16.msra.mxu0 %v1861_v16  ;;  %1092 = vmatpush.bf16.msra.mxu1 %v1863_v17 }
 0x312   :  { %1105 = vmatpush.bf16.msra.mxu2 %v1866_v21  ;;  %1118 = vmatpush.bf16.msra.mxu3 %v1868_v25 }
 0x315   :  { %1080 = vmatpush.bf16.msra.mxu0 %v1871_v29  ;;  %1093 = vmatpush.bf16.msra.mxu1 %v1875_v33 }
 0x316   :  { %1106 = vmatpush.bf16.msra.mxu2 %v1877_v34  ;;  %1119 = vmatpush.bf16.msra.mxu3 %v1880_v38 }
 0x319   :  { %1081 = vmatpush.bf16.msra.mxu0 %v1883_v44  ;;  %1094 = vmatpush.bf16.msra.mxu1 %v1887_v45 }
 0x31a   :  { %1107 = vmatpush.bf16.msra.mxu2 %v1889_v46  ;;  %1120 = vmatpush.bf16.msra.mxu3 %v1892_v50 }
 0x31d   :  { %1082 = vmatpush.bf16.msra.mxu0 %v1895_v56  ;;  %1095 = vmatpush.bf16.msra.mxu1 %v1899_v57 }
 0x31e   :  { %1108 = vmatpush.bf16.msra.mxu2 %v1901_v58  ;;  %1121 = vmatpush.bf16.msra.mxu3 %v1904_v62 }
 0x321   :  { %1083 = vmatpush.bf16.msra.mxu0 %v1907_v5  ;;  %1096 = vmatpush.bf16.msra.mxu1 %v1911_v9 }
 0x322   :  { %1109 = vmatpush.bf16.msra.mxu2 %v1913_v10  ;;  %1122 = vmatpush.bf16.msra.mxu3 %v1916_v15 }
 0x325   :  { %1084 = vmatpush.bf16.msra.mxu0 %v1922_v24  ;;  %1097 = vmatpush.bf16.msra.mxu1 %v1926_v26 }
 0x326   :  { %1110 = vmatpush.bf16.msra.mxu2 %v1928_v27  ;;  %1123 = vmatpush.bf16.msra.mxu3 %v1931_v32 }
 0x329   :  { %1085 = vmatpush.bf16.msra.mxu0 %v1934_v41  ;;  %1098 = vmatpush.bf16.msra.mxu1 %v1938_v42 }
 0x32a   :  { %1111 = vmatpush.bf16.msra.mxu2 %v1940_v43  ;;  %1124 = vmatpush.bf16.msra.mxu3 %v1943_v47 }
 0x388   :  { %v809_v39 = vpop.f32.mrf.mxu0  ;;  %v822_v52 = vpop.f32.mrf.mxu1 }
 0x389   :  { %v856_v36 = vrot.slane %v822_v52, 6 }
 0x38b   :  { %v859_v19 = vsel %vm301_vm0, %v809_v39, %v856_v36 }
 0x38f   :  { %v835_v4 = vpop.f32.mrf.mxu2  ;;  %v848_v6 = vpop.f32.mrf.mxu3 }
 0x390   :  { %v857_v11 = vrot.slane %v835_v4, 4  ;;  %v858_v13 = vrot.slane %v848_v6, 2  ;;  %v811_v18 = vpop.f32.mrf.mxu0  ;;  %v824_v14 = vpop.f32.mrf.mxu1 }
 0x392   :  { %v860_v23 = vsel %vm303_vm1, %v857_v11, %v858_v13 }
 0x393   :  { %v861_v22 = vsel %vm305_vm2, %v859_v19, %v860_v23 }
 0x394   :  { %v863_v28 = vadd.f32 %v1544_v20, %v861_v22 }
 0x396   :  { %v1545_v30 = vmul.f32 -1.442695, %v863_v28  ;;  %v884_v31 = vrot.slane %v863_v28, 2  ;;  %v908_v40 = vrot.slane %v863_v28, 6  ;;  %v905_v2 = vrot.slane %v863_v28, 4 }
 0x397   :  { %v837_v49 = vpop.f32.mrf.mxu2  ;;  %v850_v53 = vpop.f32.mrf.mxu3 }
 0x398   :  { %1665 = vpow2.f32 %v1545_v30  ;;  %v1546_v55 = vmul.f32 -1.442695, %v884_v31  ;;  %v1547_v59 = vmul.f32 -1.442695, %v908_v40 }
 0x39a   :  { %1667 = vpow2.f32 %v1546_v55 }
 0x39b   :  { %1669 = vpow2.f32 %v1547_v59 }
 0x39e   :  { %v1666_v61 = vpop.eup %1665 }
 0x39f   :  { %v867_v37 = vadd.f32 1.0, %v1666_v61 }
 0x3a0   :  { %v1668_v0 = vpop.eup %1667 }
 0x3a1   :  { %v1670_v54 = vpop.eup %1669  ;;  %1671 = vrcp.f32 %v867_v37  ;;  %v889_v60 = vadd.f32 1.0, %v1668_v0  ;;  %v879_v4 = vand.u32 2147483648, %v867_v37  ;;  %v877_v18 = vand.u32 2147483647, %v867_v37 }
 0x3a2   :  { %v913_v51 = vadd.f32 1.0, %v1670_v54  ;;  %vm873_vm13 = vweird.f32 %v867_v37 }
 0x3a3   :  { %1673 = vrcp.f32 %v889_v60  ;;  %v901_v14 = vand.u32 2147483648, %v889_v60  ;;  %v899_v23 = vand.u32 2147483647, %v889_v60  ;;  %v880_v22 = vor.u32 1.1754944e-38, %v879_v4 }
 0x3a4   :  { %1675 = vrcp.f32 %v913_v51  ;;  %vm878_vm3 = vcmp.eq.f32.partialorder %v877_v18, 8.507059e+37  ;;  %vm895_vm4 = vweird.f32 %v889_v60  ;;  %vm919_vm8 = vweird.f32 %v913_v51 }
 0x3a5   :  { %1677 = vtanh.f32 %v905_v2  ;;  %v902_v49 = vor.u32 1.1754944e-38, %v901_v14  ;;  %vm900_vm6 = vcmp.eq.f32.partialorder %v899_v23, 8.507059e+37  ;;  %v925_v2 = vand.u32 2147483648, %v913_v51 }
 0x3a7   :  { %v1672_v63 = vpop.eup %1671 }
 0x3a8   :  { %v869_v35 = vmul.f32 %v1672_v63, %v867_v37  ;;  %vm874_vm12 = vweird.f32 %v1672_v63 }
 0x3a9   :  { %v1674_v1 = vpop.eup %1673  ;;  %vm875_vm15 = vmor %vm873_vm13, %vm874_vm12 }
 0x3aa   :  { %v1676_v39 = vpop.eup %1675  ;;  %v870_v52 = vsub.f32 1.0, %v869_v35  ;;  %v891_v36 = vmul.f32 %v1674_v1, %v889_v60  ;;  %vm896_vm14 = vweird.f32 %v1674_v1  ;;  %v923_v60 = vand.u32 2147483647, %v913_v51 }
 0x3ab   :  { %v915_v6 = vmul.f32 %v1676_v39, %v913_v51  ;;  %vm897_vm5 = vmor %vm895_vm4, %vm896_vm14  ;;  %v1678_v55 = vpop.eup %1677  ;;  %vm920_vm7 = vweird.f32 %v1676_v39 }
 0x3ac   :  { %v892_v11 = vsub.f32 1.0, %v891_v36  ;;  %v871_v13 = vmul.f32 %v1672_v63, %v870_v52  ;;  %vm921_vm9 = vmor %vm919_vm8, %vm920_vm7  ;;  %v926_v52 = vor.u32 1.1754944e-38, %v925_v2  ;;  %vm924_vm10 = vcmp.eq.f32.partialorder %v923_v60, 8.507059e+37 }
 0x3ad   :  { %v916_v30 = vsub.f32 1.0, %v915_v6 }
 0x3ae   :  { %v872_v20 = vadd.f32 %v1672_v63, %v871_v13  ;;  %v893_v19 = vmul.f32 %v1674_v1, %v892_v11 }
 0x3af   :  { %v917_v61 = vmul.f32 %v1676_v39, %v916_v30 }
 0x3b0   :  { %v876_v28 = vsel %vm875_vm15, %v1672_v63, %v872_v20  ;;  %v894_v31 = vadd.f32 %v1674_v1, %v893_v19 }
 0x3b1   :  { %v881_v40 = vsel %vm878_vm3, %v880_v22, %v876_v28  ;;  %v918_v35 = vadd.f32 %v1676_v39, %v917_v61 }
 0x3b2   :  { %v898_v53 = vsel %vm897_vm5, %v1674_v1, %v894_v31  ;;  %v930_v0 = vmul.f32 %v1678_v55, %v881_v40 }
 0x3b3   :  { %v903_v59 = vsel %vm900_vm6, %v902_v49, %v898_v53  ;;  %v922_v63 = vsel %vm921_vm9, %v1676_v39, %v918_v35 }
 0x3b4   :  { %v929_v37 = vmul.f32 %v903_v59, %v2157_v48  ;;  %v927_v36 = vsel %vm924_vm10, %v926_v52, %v922_v63 }
 0x3b6   :  { %v2202_v54 = vadd.f32 %v930_v0, %v929_v37 }
 0x3b8   :  { %1679 = vtanh.f32 %v2202_v54 }
 0x3be   :  { %v1680_v1 = vpop.eup %1679 }
 0x3bf   :  { %v933_v4 = vmul.f32 %v1680_v1, %v927_v36 }
 0x3c1   :  { %v934_v6 = vpack.c.bf16 %v933_v4, %v933_v4 }
 0x3c3   :  { %1548 = vst [vmem:[%s2286_s4 + $0x4] sm:$0x1] %v934_v6  ;;  %947 = vmatmul.bf16.vlgmr.msrb.gmra.mxu0 %v934_v6  ;;  %960 = vmatmul.bf16.vlgmr.msrb.gmra.mxu1 %v934_v6 }
 0x3c4   :  { %973 = vmatmul.bf16.vlgmr.msrb.gmra.mxu2 %v934_v6  ;;  %986 = vmatmul.bf16.vlgmr.msrb.gmra.mxu3 %v934_v6 }
 0x3c5   :  { %1217 = vmatpush.bf16.msrb.mxu0 %v1850_v3  ;;  %1230 = vmatpush.bf16.msrb.mxu1 %v1852_v7 }
 0x3c6   :  { %1243 = vmatpush.bf16.msrb.mxu2 %v1854_v8  ;;  %1256 = vmatpush.bf16.msrb.mxu3 %v1857_v12 }
 0x3c9   :  { %1218 = vmatpush.bf16.msrb.mxu0 %v1861_v16  ;;  %1231 = vmatpush.bf16.msrb.mxu1 %v1863_v17 }
 0x3ca   :  { %1244 = vmatpush.bf16.msrb.mxu2 %v1866_v21  ;;  %1257 = vmatpush.bf16.msrb.mxu3 %v1868_v25 }
 0x3cd   :  { %1219 = vmatpush.bf16.msrb.mxu0 %v1871_v29  ;;  %1232 = vmatpush.bf16.msrb.mxu1 %v1875_v33  ;;  %v1549_v33 = vld [vmem:[%s2282_s0 + $0x28] sm:$0xff] }
 0x3ce   :  { %1245 = vmatpush.bf16.msrb.mxu2 %v1877_v34  ;;  %1258 = vmatpush.bf16.msrb.mxu3 %v1880_v38 }
 0x3d1   :  { %1220 = vmatpush.bf16.msrb.mxu0 %v1883_v44  ;;  %1233 = vmatpush.bf16.msrb.mxu1 %v1887_v45 }
 0x3d2   :  { %1246 = vmatpush.bf16.msrb.mxu2 %v1889_v46  ;;  %1259 = vmatpush.bf16.msrb.mxu3 %v1892_v50 }
 0x3d5   :  { %1221 = vmatpush.bf16.msrb.mxu0 %v1895_v56  ;;  %1234 = vmatpush.bf16.msrb.mxu1 %v1899_v57 }
 0x3d6   :  { %1247 = vmatpush.bf16.msrb.mxu2 %v1901_v58  ;;  %1260 = vmatpush.bf16.msrb.mxu3 %v1904_v62 }
 0x3d9   :  { %1222 = vmatpush.bf16.msrb.mxu0 %v1907_v5  ;;  %1235 = vmatpush.bf16.msrb.mxu1 %v1911_v9 }
 0x3da   :  { %1248 = vmatpush.bf16.msrb.mxu2 %v1913_v10  ;;  %1261 = vmatpush.bf16.msrb.mxu3 %v1916_v15 }
 0x3dd   :  { %1223 = vmatpush.bf16.msrb.mxu0 %v1922_v24  ;;  %1236 = vmatpush.bf16.msrb.mxu1 %v1926_v26 }
 0x3de   :  { %1249 = vmatpush.bf16.msrb.mxu2 %v1928_v27  ;;  %1262 = vmatpush.bf16.msrb.mxu3 %v1931_v32 }
 0x3e1   :  { %1224 = vmatpush.bf16.msrb.mxu0 %v1934_v41  ;;  %1237 = vmatpush.bf16.msrb.mxu1 %v1938_v42 }
 0x3e2   :  { %1250 = vmatpush.bf16.msrb.mxu2 %v1940_v43  ;;  %1263 = vmatpush.bf16.msrb.mxu3 %v1943_v47 }
 0x440   :  { %v948_v3 = vpop.f32.mrf.mxu0  ;;  %v961_v7 = vpop.f32.mrf.mxu1 }
 0x441   :  { %v995_v8 = vrot.slane %v961_v7, 6 }
 0x443   :  { %v998_v34 = vsel %vm301_vm0, %v948_v3, %v995_v8 }
 0x447   :  { %v974_v12 = vpop.f32.mrf.mxu2  ;;  %v987_v16 = vpop.f32.mrf.mxu3 }
 0x448   :  { %v996_v17 = vrot.slane %v974_v12, 4  ;;  %v997_v21 = vrot.slane %v987_v16, 2  ;;  %v950_v25 = vpop.f32.mrf.mxu0  ;;  %v963_v29 = vpop.f32.mrf.mxu1 }
 0x44a   :  { %v999_v38 = vsel %vm303_vm1, %v996_v17, %v997_v21 }
 0x44b   :  { %v1000_v44 = vsel %vm305_vm2, %v998_v34, %v999_v38  ;;  %v1554_v34 = vld [vmem:[%s2282_s0 + $0x30] sm:$0xff] }
 0x44c   :  { %v1002_v45 = vadd.f32 %v1549_v33, %v1000_v44 }
 0x44e   :  { %v1550_v46 = vmul.f32 -1.442695, %v1002_v45  ;;  %v1023_v50 = vrot.slane %v1002_v45, 2  ;;  %v1047_v56 = vrot.slane %v1002_v45, 6  ;;  %v1044_v43 = vrot.slane %v1002_v45, 4 }
 0x44f   :  { %v976_v57 = vpop.f32.mrf.mxu2  ;;  %v989_v58 = vpop.f32.mrf.mxu3 }
 0x450   :  { %1681 = vpow2.f32 %v1550_v46  ;;  %v1551_v62 = vmul.f32 -1.442695, %v1023_v50  ;;  %v1552_v5 = vmul.f32 -1.442695, %v1047_v56 }
 0x452   :  { %1683 = vpow2.f32 %v1551_v62 }
 0x453   :  { %1685 = vpow2.f32 %v1552_v5 }
 0x456   :  { %v1682_v9 = vpop.eup %1681 }
 0x457   :  { %v1006_v10 = vadd.f32 1.0, %v1682_v9 }
 0x458   :  { %v1684_v15 = vpop.eup %1683 }
 0x459   :  { %v1686_v24 = vpop.eup %1685  ;;  %1687 = vrcp.f32 %v1006_v10  ;;  %v1028_v26 = vadd.f32 1.0, %v1684_v15  ;;  %v1018_v39 = vand.u32 2147483648, %v1006_v10  ;;  %v1016_v14 = vand.u32 2147483647, %v1006_v10 }
 0x45a   :  { %v1052_v27 = vadd.f32 1.0, %v1686_v24  ;;  %vm1012_vm12 = vweird.f32 %v1006_v10 }
 0x45b   :  { %1689 = vrcp.f32 %v1028_v26  ;;  %v1040_v20 = vand.u32 2147483648, %v1028_v26  ;;  %v1038_v22 = vand.u32 2147483647, %v1028_v26  ;;  %v1019_v30 = vor.u32 1.1754944e-38, %v1018_v39 }
 0x45c   :  { %1691 = vrcp.f32 %v1052_v27  ;;  %vm1017_vm15 = vcmp.eq.f32.partialorder %v1016_v14, 8.507059e+37  ;;  %vm1034_vm3 = vweird.f32 %v1028_v26  ;;  %v1064_v63 = vand.u32 2147483648, %v1052_v27 }
 0x45d   :  { %1693 = vtanh.f32 %v1044_v43  ;;  %v1041_v53 = vor.u32 1.1754944e-38, %v1040_v20  ;;  %vm1039_vm5 = vcmp.eq.f32.partialorder %v1038_v22, 8.507059e+37  ;;  %vm1058_vm7 = vweird.f32 %v1052_v27 }
 0x45e   :  { %v1062_v52 = vand.u32 2147483647, %v1052_v27  ;;  %v1065_v36 = vor.u32 1.1754944e-38, %v1064_v63 }
 0x45f   :  { %v1688_v32 = vpop.eup %1687 }
 0x460   :  { %v1008_v41 = vmul.f32 %v1688_v32, %v1006_v10  ;;  %vm1013_vm11 = vweird.f32 %v1688_v32  ;;  %vm1063_vm9 = vcmp.eq.f32.partialorder %v1062_v52, 8.507059e+37 }
 0x461   :  { %v1690_v42 = vpop.eup %1689  ;;  %vm1014_vm14 = vmor %vm1012_vm12, %vm1013_vm11 }
 0x462   :  { %v1692_v47 = vpop.eup %1691  ;;  %v1009_v48 = vsub.f32 1.0, %v1008_v41  ;;  %v1030_v51 = vmul.f32 %v1690_v42, %v1028_v26  ;;  %vm1035_vm13 = vweird.f32 %v1690_v42 }
 0x463   :  { %v1054_v11 = vmul.f32 %v1692_v47, %v1052_v27  ;;  %vm1036_vm4 = vmor %vm1034_vm3, %vm1035_vm13  ;;  %v1694_v59 = vpop.eup %1693  ;;  %vm1059_vm6 = vweird.f32 %v1692_v47 }
 0x464   :  { %v1031_v13 = vsub.f32 1.0, %v1030_v51  ;;  %v1010_v18 = vmul.f32 %v1688_v32, %v1009_v48  ;;  %vm1060_vm8 = vmor %vm1058_vm7, %vm1059_vm6 }
 0x465   :  { %v1055_v28 = vsub.f32 1.0, %v1054_v11 }
 0x466   :  { %v1011_v19 = vadd.f32 %v1688_v32, %v1010_v18  ;;  %v1032_v23 = vmul.f32 %v1690_v42, %v1031_v13 }
 0x467   :  { %v1056_v37 = vmul.f32 %v1692_v47, %v1055_v28 }
 0x468   :  { %v1015_v31 = vsel %vm1014_vm14, %v1688_v32, %v1011_v19  ;;  %v1033_v40 = vadd.f32 %v1690_v42, %v1032_v23 }
 0x469   :  { %v1020_v49 = vsel %vm1017_vm15, %v1019_v30, %v1015_v31  ;;  %v1057_v60 = vadd.f32 %v1692_v47, %v1056_v37 }
 0x46a   :  { %v1037_v55 = vsel %vm1036_vm4, %v1690_v42, %v1033_v40  ;;  %v1069_v35 = vmul.f32 %v1694_v59, %v1020_v49 }
 0x46b   :  { %v1042_v61 = vsel %vm1039_vm5, %v1041_v53, %v1037_v55  ;;  %v1061_v1 = vsel %vm1060_vm8, %v1692_v47, %v1057_v60 }
 0x46c   :  { %v1068_v0 = vmul.f32 %v1042_v61, %v2202_v54  ;;  %v1066_v6 = vsel %vm1063_vm9, %v1065_v36, %v1061_v1 }
 0x46e   :  { %v2247_v2 = vadd.f32 %v1069_v35, %v1068_v0 }
 0x470   :  { %1695 = vtanh.f32 %v2247_v2 }
 0x476   :  { %v1696_v4 = vpop.eup %1695 }
 0x477   :  { %v1072_v3 = vmul.f32 %v1696_v4, %v1066_v6 }
 0x479   :  { %v1073_v7 = vpack.c.bf16 %v1072_v3, %v1072_v3 }
 0x47b   :  { %1553 = vst [vmem:[%s2286_s4 + $0x5] sm:$0x1] %v1073_v7  ;;  %1086 = vmatmul.bf16.vlgmr.msra.gmra.mxu0 %v1073_v7  ;;  %1099 = vmatmul.bf16.vlgmr.msra.gmra.mxu1 %v1073_v7 }
 0x47c   :  { %1112 = vmatmul.bf16.vlgmr.msra.gmra.mxu2 %v1073_v7  ;;  %1125 = vmatmul.bf16.vlgmr.msra.gmra.mxu3 %v1073_v7 }
 0x4f8   :  { %v1087_v54 = vpop.f32.mrf.mxu0  ;;  %v1100_v8 = vpop.f32.mrf.mxu1 }
 0x4f9   :  { %v1134_v12 = vrot.slane %v1100_v8, 6 }
 0x4fb   :  { %v1137_v38 = vsel %vm301_vm0, %v1087_v54, %v1134_v12 }
 0x4ff   :  { %v1113_v16 = vpop.f32.mrf.mxu2  ;;  %v1126_v17 = vpop.f32.mrf.mxu3 }
 0x500   :  { %v1135_v21 = vrot.slane %v1113_v16, 4  ;;  %v1136_v25 = vrot.slane %v1126_v17, 2  ;;  %v1089_v29 = vpop.f32.mrf.mxu0  ;;  %v1102_v33 = vpop.f32.mrf.mxu1 }
 0x502   :  { %v1138_v44 = vsel %vm303_vm1, %v1135_v21, %v1136_v25 }
 0x503   :  { %v1139_v45 = vsel %vm305_vm2, %v1137_v38, %v1138_v44  ;;  %v1559_v38 = vld [vmem:[%s2282_s0 + $0x38] sm:$0xff]  ;;  %s1810_s0 = smov [#allocation8]  }
 0x504   :  { %v1141_v46 = vadd.f32 %v1554_v34, %v1139_v45  ;;  %s1379_s8 = sshll.u32 %s1810_s0, 4  ;;  %s1380_s8 = int_to_ptr.vmem [resolvable:$true] %s1379_s8 }
 0x506   :  { %v1555_v50 = vmul.f32 -1.442695, %v1141_v46  ;;  %v1162_v56 = vrot.slane %v1141_v46, 2  ;;  %v1186_v57 = vrot.slane %v1141_v46, 6  ;;  %v1183_v47 = vrot.slane %v1141_v46, 4 }
 0x507   :  { %v1115_v58 = vpop.f32.mrf.mxu2  ;;  %v1128_v62 = vpop.f32.mrf.mxu3 }
 0x508   :  { %1697 = vpow2.f32 %v1555_v50  ;;  %v1556_v5 = vmul.f32 -1.442695, %v1162_v56  ;;  %v1557_v9 = vmul.f32 -1.442695, %v1186_v57 }
 0x50a   :  { %1699 = vpow2.f32 %v1556_v5 }
 0x50b   :  { %1701 = vpow2.f32 %v1557_v9 }
 0x50e   :  { %v1698_v10 = vpop.eup %1697 }
 0x50f   :  { %v1145_v15 = vadd.f32 1.0, %v1698_v10 }
 0x510   :  { %v1700_v24 = vpop.eup %1699 }
 0x511   :  { %v1702_v26 = vpop.eup %1701  ;;  %1703 = vrcp.f32 %v1145_v15  ;;  %v1167_v27 = vadd.f32 1.0, %v1700_v24  ;;  %v1157_v11 = vand.u32 2147483648, %v1145_v15  ;;  %v1155_v20 = vand.u32 2147483647, %v1145_v15 }
 0x512   :  { %v1191_v32 = vadd.f32 1.0, %v1702_v26  ;;  %vm1151_vm11 = vweird.f32 %v1145_v15 }
 0x513   :  { %1705 = vrcp.f32 %v1167_v27  ;;  %v1179_v19 = vand.u32 2147483648, %v1167_v27  ;;  %v1177_v30 = vand.u32 2147483647, %v1167_v27  ;;  %v1158_v28 = vor.u32 1.1754944e-38, %v1157_v11 }
 0x514   :  { %1707 = vrcp.f32 %v1191_v32  ;;  %vm1156_vm14 = vcmp.eq.f32.partialorder %v1155_v20, 8.507059e+37  ;;  %vm1173_vm15 = vweird.f32 %v1167_v27  ;;  %v1203_v1 = vand.u32 2147483648, %v1191_v32 }
 0x515   :  { %1709 = vtanh.f32 %v1183_v47  ;;  %v1180_v55 = vor.u32 1.1754944e-38, %v1179_v19  ;;  %vm1178_vm4 = vcmp.eq.f32.partialorder %v1177_v30, 8.507059e+37  ;;  %vm1197_vm6 = vweird.f32 %v1191_v32 }
 0x516   :  { %v1201_v36 = vand.u32 2147483647, %v1191_v32  ;;  %v1204_v6 = vor.u32 1.1754944e-38, %v1203_v1 }
 0x517   :  { %v1704_v41 = vpop.eup %1703 }
 0x518   :  { %v1147_v42 = vmul.f32 %v1704_v41, %v1145_v15  ;;  %vm1152_vm10 = vweird.f32 %v1704_v41  ;;  %vm1202_vm8 = vcmp.eq.f32.partialorder %v1201_v36, 8.507059e+37 }
 0x519   :  { %v1706_v43 = vpop.eup %1705  ;;  %vm1153_vm13 = vmor %vm1151_vm11, %vm1152_vm10 }
 0x51a   :  { %v1708_v48 = vpop.eup %1707  ;;  %v1148_v51 = vsub.f32 1.0, %v1147_v42  ;;  %v1169_v39 = vmul.f32 %v1706_v43, %v1167_v27  ;;  %vm1174_vm12 = vweird.f32 %v1706_v43 }
 0x51b   :  { %v1193_v13 = vmul.f32 %v1708_v48, %v1191_v32  ;;  %vm1175_vm3 = vmor %vm1173_vm15, %vm1174_vm12  ;;  %v1710_v61 = vpop.eup %1709  ;;  %vm1198_vm5 = vweird.f32 %v1708_v48 }
 0x51c   :  { %v1170_v18 = vsub.f32 1.0, %v1169_v39  ;;  %v1149_v14 = vmul.f32 %v1704_v41, %v1148_v51  ;;  %vm1199_vm7 = vmor %vm1197_vm6, %vm1198_vm5 }
 0x51d   :  { %v1194_v31 = vsub.f32 1.0, %v1193_v13 }
 0x51e   :  { %v1150_v23 = vadd.f32 %v1704_v41, %v1149_v14  ;;  %v1171_v22 = vmul.f32 %v1706_v43, %v1170_v18 }
 0x51f   :  { %v1195_v0 = vmul.f32 %v1708_v48, %v1194_v31 }
 0x520   :  { %v1154_v40 = vsel %vm1153_vm13, %v1704_v41, %v1150_v23  ;;  %v1172_v49 = vadd.f32 %v1706_v43, %v1171_v22 }
 0x521   :  { %v1159_v53 = vsel %vm1156_vm14, %v1158_v28, %v1154_v40  ;;  %v1196_v52 = vadd.f32 %v1708_v48, %v1195_v0 }
 0x522   :  { %v1176_v59 = vsel %vm1175_vm3, %v1706_v43, %v1172_v49  ;;  %v1208_v60 = vmul.f32 %v1710_v61, %v1159_v53 }
 0x523   :  { %v1181_v37 = vsel %vm1178_vm4, %v1180_v55, %v1176_v59  ;;  %v1200_v4 = vsel %vm1199_vm7, %v1708_v48, %v1196_v52 }
 0x524   :  { %v1207_v35 = vmul.f32 %v1181_v37, %v2247_v2  ;;  %v1205_v7 = vsel %vm1202_vm8, %v1204_v6, %v1200_v4 }
 0x526   :  { %v2260_v63 = vadd.f32 %v1208_v60, %v1207_v35 }
 0x528   :  { %1711 = vtanh.f32 %v2260_v63 }
 0x52e   :  { %v1712_v3 = vpop.eup %1711 }
 0x52f   :  { %v1211_v54 = vmul.f32 %v1712_v3, %v1205_v7 }
 0x531   :  { %v1212_v8 = vpack.c.bf16 %v1211_v54, %v1211_v54 }
 0x533   :  { %1558 = vst [vmem:[%s2286_s4 + $0x6] sm:$0x1] %v1212_v8  ;;  %1225 = vmatmul.bf16.vlgmr.msrb.gmra.mxu0 %v1212_v8  ;;  %1238 = vmatmul.bf16.vlgmr.msrb.gmra.mxu1 %v1212_v8 }
 0x534   :  { %1251 = vmatmul.bf16.vlgmr.msrb.gmra.mxu2 %v1212_v8  ;;  %1264 = vmatmul.bf16.vlgmr.msrb.gmra.mxu3 %v1212_v8 }
 0x5b0   :  { %v1226_v2 = vpop.f32.mrf.mxu0  ;;  %v1239_v12 = vpop.f32.mrf.mxu1 }
 0x5b1   :  { %v1273_v16 = vrot.slane %v1239_v12, 6 }
 0x5b3   :  { %v1276_v44 = vsel %vm301_vm0, %v1226_v2, %v1273_v16 }
 0x5b7   :  { %v1252_v17 = vpop.f32.mrf.mxu2  ;;  %v1265_v21 = vpop.f32.mrf.mxu3 }
 0x5b8   :  { %v1274_v25 = vrot.slane %v1252_v17, 4  ;;  %v1275_v29 = vrot.slane %v1265_v21, 2  ;;  %v1228_v33 = vpop.f32.mrf.mxu0  ;;  %v1241_v34 = vpop.f32.mrf.mxu1 }
 0x5ba   :  { %v1277_v45 = vsel %vm303_vm1, %v1274_v25, %v1275_v29 }
 0x5bb   :  { %v1278_v46 = vsel %vm305_vm2, %v1276_v44, %v1277_v45 }
 0x5bc   :  { %v1280_v50 = vadd.f32 %v1559_v38, %v1278_v46 }
 0x5be   :  { %v1560_v56 = vmul.f32 -1.442695, %v1280_v50  ;;  %v1301_v57 = vrot.slane %v1280_v50, 2  ;;  %v1325_v58 = vrot.slane %v1280_v50, 6  ;;  %v1322_v48 = vrot.slane %v1280_v50, 4 }
 0x5bf   :  { %v1254_v62 = vpop.f32.mrf.mxu2  ;;  %v1267_v5 = vpop.f32.mrf.mxu3 }
 0x5c0   :  { %1713 = vpow2.f32 %v1560_v56  ;;  %v1561_v9 = vmul.f32 -1.442695, %v1301_v57  ;;  %v1562_v10 = vmul.f32 -1.442695, %v1325_v58 }
 0x5c2   :  { %1715 = vpow2.f32 %v1561_v9 }
 0x5c3   :  { %1717 = vpow2.f32 %v1562_v10 }
 0x5c6   :  { %v1714_v15 = vpop.eup %1713 }
 0x5c7   :  { %v1284_v24 = vadd.f32 1.0, %v1714_v15 }
 0x5c8   :  { %v1716_v26 = vpop.eup %1715 }
 0x5c9   :  { %v1718_v27 = vpop.eup %1717  ;;  %1719 = vrcp.f32 %v1284_v24  ;;  %v1306_v32 = vadd.f32 1.0, %v1716_v26  ;;  %v1296_v13 = vand.u32 2147483648, %v1284_v24  ;;  %v1294_v19 = vand.u32 2147483647, %v1284_v24 }
 0x5ca   :  { %v1330_v41 = vadd.f32 1.0, %v1718_v27  ;;  %vm1290_vm1 = vweird.f32 %v1284_v24 }
 0x5cb   :  { %1721 = vrcp.f32 %v1306_v32  ;;  %v1318_v23 = vand.u32 2147483648, %v1306_v32  ;;  %v1316_v28 = vand.u32 2147483647, %v1306_v32  ;;  %v1297_v31 = vor.u32 1.1754944e-38, %v1296_v13 }
 0x5cc   :  { %1723 = vrcp.f32 %v1330_v41  ;;  %vm1295_vm10 = vcmp.eq.f32.partialorder %v1294_v19, 8.507059e+37  ;;  %vm1312_vm11 = vweird.f32 %v1306_v32  ;;  %v1342_v4 = vand.u32 2147483648, %v1330_v41 }
 0x5cd   :  { %1725 = vtanh.f32 %v1322_v48  ;;  %v1319_v59 = vor.u32 1.1754944e-38, %v1318_v23  ;;  %vm1317_vm13 = vcmp.eq.f32.partialorder %v1316_v28, 8.507059e+37  ;;  %vm1336_vm15 = vweird.f32 %v1330_v41 }
 0x5ce   :  { %v1340_v6 = vand.u32 2147483647, %v1330_v41  ;;  %v1343_v3 = vor.u32 1.1754944e-38, %v1342_v4 }
 0x5cf   :  { %v1720_v42 = vpop.eup %1719 }
 0x5d0   :  { %v1286_v43 = vmul.f32 %v1720_v42, %v1284_v24  ;;  %vm1291_vm0 = vweird.f32 %v1720_v42  ;;  %vm1341_vm4 = vcmp.eq.f32.partialorder %v1340_v6, 8.507059e+37 }
 0x5d1   :  { %v1722_v47 = vpop.eup %1721  ;;  %vm1292_vm9 = vmor %vm1290_vm1, %vm1291_vm0 }
 0x5d2   :  { %v1724_v51 = vpop.eup %1723  ;;  %v1287_v39 = vsub.f32 1.0, %v1286_v43  ;;  %v1308_v11 = vmul.f32 %v1722_v47, %v1306_v32  ;;  %vm1313_vm2 = vweird.f32 %v1722_v47 }
 0x5d3   :  { %v1332_v18 = vmul.f32 %v1724_v51, %v1330_v41  ;;  %vm1314_vm12 = vmor %vm1312_vm11, %vm1313_vm2  ;;  %v1726_v37 = vpop.eup %1725  ;;  %vm1337_vm14 = vweird.f32 %v1724_v51 }
 0x5d4   :  { %v1309_v14 = vsub.f32 1.0, %v1308_v11  ;;  %v1288_v20 = vmul.f32 %v1720_v42, %v1287_v39  ;;  %vm1338_vm3 = vmor %vm1336_vm15, %vm1337_vm14 }
 0x5d5   :  { %v1333_v40 = vsub.f32 1.0, %v1332_v18 }
 0x5d6   :  { %v1289_v22 = vadd.f32 %v1720_v42, %v1288_v20  ;;  %v1310_v30 = vmul.f32 %v1722_v47, %v1309_v14 }
 0x5d7   :  { %v1334_v35 = vmul.f32 %v1724_v51, %v1333_v40 }
 0x5d8   :  { %v1293_v49 = vsel %vm1292_vm9, %v1720_v42, %v1289_v22  ;;  %v1311_v53 = vadd.f32 %v1722_v47, %v1310_v30 }
 0x5d9   :  { %v1298_v55 = vsel %vm1295_vm10, %v1297_v31, %v1293_v49  ;;  %v1335_v36 = vadd.f32 %v1724_v51, %v1334_v35 }
 0x5da   :  { %v1315_v61 = vsel %vm1314_vm12, %v1722_v47, %v1311_v53  ;;  %v1347_v52 = vmul.f32 %v1726_v37, %v1298_v55 }
 0x5db   :  { %v1320_v0 = vsel %vm1317_vm13, %v1319_v59, %v1315_v61 }
 0x5dc   :  { %v1346_v60 = vmul.f32 %v1320_v0, %v2260_v63  ;;  %v1339_v63 = vsel %vm1338_vm3, %v1724_v51, %v1335_v36 }
 0x5dd   :  { %v1344_v54 = vsel %vm1341_vm4, %v1343_v3, %v1339_v63 }
 0x5de   :  { %v1348_v1 = vadd.f32 %v1347_v52, %v1346_v60 }
 0x5e0   :  { %1727 = vtanh.f32 %v1348_v1  ;;  %1355 = vst [vmem:[#allocation3] sm:$0x3] %v1348_v1 }
 0x5e1   :  { %1360 = vst [vmem:[#allocation8] sm:$0x3] %v1348_v1 }
 0x5e2   :  { %1384 = dma.vmem_to_hbm [thread:$0]  %s1380_s8, 32, %s1382_s11, [#allocation9]  }
 0x5e6   :  { %v1728_v7 = vpop.eup %1727 }
 0x5e7   :  { %v1350_v8 = vmul.f32 %v1728_v7, %v1344_v54 }
 0x5e9   :  { %v1351_v2 = vpack.c.bf16 %v1350_v8, %v1350_v8  ;;  %1354 = vst [vmem:[#allocation2] sm:$0x3] %v1350_v8 }
 0x5ea   :  { %1359 = vst [vmem:[#allocation7] sm:$0x3] %v1350_v8 }
 0x5eb   :  { %1563 = vst [vmem:[%s2286_s4 + $0x7] sm:$0x1] %v1351_v2  ;;  %1373 = dma.vmem_to_hbm [thread:$0]  %s1369_s13, 32, %s1371_s15, [#allocation6]  }
 0x5ec   :  { %1803 = dma.done.wait [#allocation6], 32  }
 0x5ed   :  { %1804 = vsyncadd [#allocation6], 4294967264 }
 0x5ee   :  { %1805 = dma.done.wait [#allocation9], 32  }
 0x5ef   :  { %1806 = vsyncadd [#allocation9], 4294967264 }
 0x5f0   :  { %1395 = vsyncpa [#allocation5], 1 }
 0x5f1   :  { %1396 = vsyncpa [#allocation6], 1 }
 0x5f2   :  { %1397 = vsyncpa [#allocation9], 1 }

</bundles_post_ra>
